<compile_context>
chip_gen: v5e
topology: v5e:2x2
jax: 0.10.0
libtpu: 0.0.40
codegen_flags: <defaults>
</compile_context>

<pallas_src>
import functools

import jax
import jax.numpy as jnp
from jax import lax
from jax.experimental import pallas as pl
from jax.experimental.pallas import tpu as pltpu


# ---------------------------------------------------------------------------
# in-kernel helpers (traced inside the Pallas kernel body)
# ---------------------------------------------------------------------------
def _group_mats(C, groups):
    """Channel<->group membership matrices for GroupNorm with group size > 1."""
    cs = C // groups
    if cs == 1:
        return None
    ch_cg = lax.broadcasted_iota(jnp.int32, (C, groups), 0)
    gr_cg = lax.broadcasted_iota(jnp.int32, (C, groups), 1)
    m_fwd = ((ch_cg >= gr_cg * cs) & (ch_cg < (gr_cg + 1) * cs)).astype(jnp.float32)
    gr_gc = lax.broadcasted_iota(jnp.int32, (groups, C), 0)
    ch_gc = lax.broadcasted_iota(jnp.int32, (groups, C), 1)
    m_bwd = ((ch_gc >= gr_gc * cs) & (ch_gc < (gr_gc + 1) * cs)).astype(jnp.float32)
    return m_fwd, m_bwd


def _group_norm(y, gamma, beta, groups, eps, mats):
    """GroupNorm on a (P, C) tile holding one sample's (H*W, C) activations (f32)."""
    P, C = y.shape
    cs = C // groups
    cnt = float(P * cs)
    s = jnp.sum(y, axis=0, keepdims=True)           # (1, C)
    sq = jnp.sum(y * y, axis=0, keepdims=True)      # (1, C)
    if mats is None:                                # cs == 1: per-channel stats
        mean_c = s / cnt
        var_c = sq / cnt - mean_c * mean_c
    else:
        m_fwd, m_bwd = mats                         # (C, G), (G, C)
        mean_g = jnp.dot(s, m_fwd, preferred_element_type=jnp.float32) / cnt
        var_g = jnp.dot(sq, m_fwd, preferred_element_type=jnp.float32) / cnt - mean_g * mean_g
        mean_c = jnp.dot(mean_g, m_bwd, preferred_element_type=jnp.float32)
        var_c = jnp.dot(var_g, m_bwd, preferred_element_type=jnp.float32)
    var_c = jnp.maximum(var_c, 0.0)                 # single-pass var can round < 0
    inv = lax.rsqrt(var_c + eps)
    return (y - mean_c) * (inv * gamma) + beta


def _shift_rows(y, s):
    """out[p, :] = y[p + s, :] for 0 <= p + s < P, else 0 (s is a static int)."""
    if s == 0:
        return y
    P = y.shape[0]
    pad = jnp.zeros((abs(s),) + y.shape[1:], y.dtype)
    if s > 0:
        return jnp.concatenate([y[s:, :], pad], axis=0)
    return jnp.concatenate([pad, y[:P + s, :]], axis=0)


# ---------------------------------------------------------------------------
# the fused kernel: one grid step == one batch element
# ---------------------------------------------------------------------------
def _preact_bottleneck_kernel(*refs, H, W, cin, cmid, cout, has_downsample, mm_dtype):
    if has_downsample:
        (x_ref, w1_ref, w2_ref, w3_ref,
         g1_ref, b1_ref, g2_ref, b2_ref, g3_ref, b3_ref,
         gp_ref, bp_ref, o_ref) = refs
    else:
        (x_ref, w1_ref, w2_ref, w3_ref,
         g1_ref, b1_ref, g2_ref, b2_ref, g3_ref, b3_ref,
         o_ref) = refs

    P = H * W
    x = x_ref[...].reshape(P, cin)                  # f32 (H*W, Cin)
    x_mm = x.astype(mm_dtype)

    # GroupNorm membership matrices: built once per step, shared by GN calls.
    mid_mats = _group_mats(cmid, 32)
    out_mats = _group_mats(cout, 32)

    # ---- conv1 (1x1, pre-standardized weights) fused with the downsample 1x1 ----
    z = jnp.dot(x_mm, w1_ref[...], preferred_element_type=jnp.float32)
    if has_downsample:
        y = z[:, :cmid]                             # conv1 output
        r_pre = z[:, cmid:]                         # downsample projection output
    else:
        y = z
        r_pre = None

    # GN1(32, eps=1e-6) + ReLU
    y = jnp.maximum(_group_norm(y, g1_ref[...], b1_ref[...], 32, 1e-6, mid_mats), 0.0)

    # ---- conv2 (3x3, pad=1) as ONE im2col matmul with K = 9*Cmid ----------------
    # Shifted copies built with zero-filled row shifts + column-boundary masks; row
    # shifts by +/-W are sublane-aligned, out-of-range rows are zero-filled, and the
    # +/-1 column shifts only need the j-boundary mask.
    pidx = lax.broadcasted_iota(jnp.int32, (P, 1), 0)
    col = pidx % W
    mask_l = (col >= 1).astype(jnp.float32)          # reading column j-1 is valid
    mask_r = (col <= (W - 2)).astype(jnp.float32)    # reading column j+1 is valid
    pieces = []
    for dy in range(3):
        for dx in range(3):
            s = (dy - 1) * W + (dx - 1)
            sh = _shift_rows(y, s)
            if dx == 0:
                sh = sh * mask_l
            elif dx == 2:
                sh = sh * mask_r
            pieces.append(sh)
    patches = jnp.concatenate(pieces, axis=-1)       # (P, 9*Cmid) f32
    y = jnp.dot(patches.astype(mm_dtype), w2_ref[...],
                preferred_element_type=jnp.float32)
    # GN2(32, eps=1e-6) + ReLU
    y = jnp.maximum(_group_norm(y, g2_ref[...], b2_ref[...], 32, 1e-6, mid_mats), 0.0)

    # ---- conv3 (1x1) + GN3(32, eps=1e-6) ----------------------------------------
    y = jnp.dot(y.astype(mm_dtype), w3_ref[...], preferred_element_type=jnp.float32)
    y = _group_norm(y, g3_ref[...], b3_ref[...], 32, 1e-6, out_mats)

    # ---- residual path + final ReLU ---------------------------------------------
    if has_downsample:
        r = _group_norm(r_pre, gp_ref[...], bp_ref[...], cout, 1e-5, None)  # GN default eps
    else:
        r = x
    o_ref[...] = jnp.maximum(r + y, 0.0).reshape(H, W, cout)


# ---------------------------------------------------------------------------
# wrapper: weight standardization + layout prep (hoisted) + pallas_call
# ---------------------------------------------------------------------------
@functools.partial(jax.jit, static_argnames=("mm_dtype",))
def preact_bottleneck_pallas(x_nchw, params, mm_dtype=jnp.bfloat16):
    N, cin, H, W = x_nchw.shape
    cmid = params["conv1"].shape[0]
    cout = params["conv3"].shape[0]
    has_ds = "downsample" in params

    x_nhwc = jnp.transpose(x_nchw, (0, 2, 3, 1)).astype(jnp.float32)

    # StdConv2d weight standardization (per output channel), hoisted out of the
    # kernel: grid-invariant, done once in f32 before the bf16 cast.
    def std_oihw(w):
        m = jnp.mean(w, axis=(1, 2, 3), keepdims=True)
        v = jnp.mean((w - m) ** 2, axis=(1, 2, 3), keepdims=True)   # unbiased=False
        return (w - m) / jnp.sqrt(v + 1e-5)

    w1 = jnp.transpose(std_oihw(params["conv1"])[:, :, 0, 0])                    # (Cin, Cmid)
    w2 = jnp.transpose(std_oihw(params["conv2"]), (2, 3, 1, 0)).reshape(9 * cmid, cmid)
    w3 = jnp.transpose(std_oihw(params["conv3"])[:, :, 0, 0])                    # (Cmid, Cout)
    if has_ds:
        wds = jnp.transpose(std_oihw(params["downsample"])[:, :, 0, 0])          # (Cin, Cout)
        w1 = jnp.concatenate([w1, wds], axis=1)                                  # (Cin, Cmid+Cout)
    w1 = w1.astype(mm_dtype)
    w2 = w2.astype(mm_dtype)
    w3 = w3.astype(mm_dtype)

    row = lambda v: v.reshape(1, -1).astype(jnp.float32)

    def full_spec(a):
        nd = a.ndim
        return pl.BlockSpec(a.shape, lambda n, _nd=nd: (0,) * _nd)

    args = [x_nhwc, w1, w2, w3,
            row(params["gn1_w"]), row(params["gn1_b"]),
            row(params["gn2_w"]), row(params["gn2_b"]),
            row(params["gn3_w"]), row(params["gn3_b"])]
    if has_ds:
        args += [row(params["gn_proj_w"]), row(params["gn_proj_b"])]

    in_specs = [pl.BlockSpec((None, H, W, cin), lambda n: (n, 0, 0, 0))]
    in_specs += [full_spec(a) for a in args[1:]]

    kernel = functools.partial(_preact_bottleneck_kernel, H=H, W=W, cin=cin,
                               cmid=cmid, cout=cout, has_downsample=has_ds,
                               mm_dtype=mm_dtype)

    out_nhwc = pl.pallas_call(
        kernel,
        out_shape=jax.ShapeDtypeStruct((N, H, W, cout), jnp.float32),
        grid=(N,),
        in_specs=in_specs,
        out_specs=pl.BlockSpec((None, H, W, cout), lambda n: (n, 0, 0, 0)),
        compiler_params=pltpu.CompilerParams(
            dimension_semantics=("parallel",)),   # batch blocks are independent
    )(*args)

    return jnp.transpose(out_nhwc, (0, 3, 1, 2))   # back to NCHW


# ---------------------------------------------------------------------------
# pure-JAX reference (independent implementation, NCHW like PyTorch)
# ---------------------------------------------------------------------------
def ref_forward(x, p):
    def std(w):
        m = jnp.mean(w, axis=(1, 2, 3), keepdims=True)
        v = jnp.mean((w - m) ** 2, axis=(1, 2, 3), keepdims=True)
        return (w - m) / jnp.sqrt(v + 1e-5)

    def conv(x, w, pad=0):
        return lax.conv_general_dilated(x, w, (1, 1), [(pad, pad), (pad, pad)],
                                        dimension_numbers=("NCHW", "OIHW", "NCHW"),
                                        precision=lax.Precision.HIGHEST)

    def gn(x, gamma, beta, groups, eps):
        N, C, H, W = x.shape
        xr = x.reshape(N, groups, C // groups, H, W)
        m = jnp.mean(xr, axis=(2, 3, 4), keepdims=True)
        v = jnp.mean((xr - m) ** 2, axis=(2, 3, 4), keepdims=True)
        xn = ((xr - m) / jnp.sqrt(v + eps)).reshape(N, C, H, W)
        return xn * gamma[None, :, None, None] + beta[None, :, None, None]

    if "downsample" in p:
        r = gn(conv(x, std(p["downsample"])), p["gn_proj_w"], p["gn_proj_b"],
               p["downsample"].shape[0], 1e-5)
    else:
        r = x
    y = jax.nn.relu(gn(conv(x, std(p["conv1"])), p["gn1_w"], p["gn1_b"], 32, 1e-6))
    y = jax.nn.relu(gn(conv(y, std(p["conv2"]), pad=1), p["gn2_w"], p["gn2_b"], 32, 1e-6))
    y = gn(conv(y, std(p["conv3"])), p["gn3_w"], p["gn3_b"], 32, 1e-6)
    return jax.nn.relu(r + y)


# ---------------------------------------------------------------------------
# deterministic parameter construction (shapes from PreActBottleneck.__init__)
# ---------------------------------------------------------------------------
def init_params(key, cin, cout, cmid, with_downsample):
    ks = jax.random.split(key, 12)
    n = lambda k, shape, s: s * jax.random.normal(k, shape, jnp.float32)
    p = {
        "conv1": n(ks[0], (cmid, cin, 1, 1), 0.1),
        "conv2": n(ks[1], (cmid, cmid, 3, 3), 0.1),
        "conv3": n(ks[2], (cout, cmid, 1, 1), 0.1),
        "gn1_w": 1.0 + n(ks[3], (cmid,), 0.1), "gn1_b": n(ks[4], (cmid,), 0.05),
        "gn2_w": 1.0 + n(ks[5], (cmid,), 0.1), "gn2_b": n(ks[6], (cmid,), 0.05),
        "gn3_w": 1.0 + n(ks[7], (cout,), 0.1), "gn3_b": n(ks[8], (cout,), 0.05),
    }
    if with_downsample:
        p["downsample"] = n(ks[9], (cout, cin, 1, 1), 0.1)
        p["gn_proj_w"] = 1.0 + n(ks[10], (cout,), 0.1)
        p["gn_proj_b"] = n(ks[11], (cout,), 0.05)
    return p


if __name__ == "__main__":
    key = jax.random.PRNGKey(0)
    k_x, k_p1, k_p2 = jax.random.split(key, 3)

    # Config 1: cin != cout -> downsample + gn_proj path active (stride=1).
    N, cin, cout, cmid, H, W = 2, 64, 128, 32, 16, 16
    x = jax.random.normal(k_x, (N, cin, H, W), jnp.float32)
    params = init_params(k_p1, cin, cout, cmid, with_downsample=True)
    ref = ref_forward(x, params)

    # f32-MXU path: tight tolerance (validates kernel structure exactly).
    out_f32 = jax.block_until_ready(preact_bottleneck_pallas(x, params, mm_dtype=jnp.float32))
    assert out_f32.shape == (N, cout, H, W)
    assert float(jnp.max(jnp.abs(out_f32 - ref))) < 5e-3

    # Fast path: bf16 MXU operands, f32 accumulation (looser tolerance).
    out_bf = jax.block_until_ready(preact_bottleneck_pallas(x, params))
    assert out_bf.shape == (N, cout, H, W)
    assert float(jnp.max(jnp.abs(out_bf - ref))) < 1e-1
    assert float(jnp.mean(jnp.abs(out_bf - ref))) < 1e-2

    # Config 2: cin == cout -> identity residual path (no downsample).
    params2 = init_params(k_p2, cin, cin, cmid, with_downsample=False)
    ref2 = ref_forward(x, params2)
    out2_f32 = jax.block_until_ready(preact_bottleneck_pallas(x, params2, mm_dtype=jnp.float32))
    assert out2_f32.shape == (N, cin, H, W)
    assert float(jnp.max(jnp.abs(out2_f32 - ref2))) < 5e-3
    out2_bf = jax.block_until_ready(preact_bottleneck_pallas(x, params2))
    assert float(jnp.max(jnp.abs(out2_bf - ref2))) < 1e-1
    assert float(jnp.mean(jnp.abs(out2_bf - ref2))) < 1e-2

    print("KERNEL_OK")
</pallas_src>

<mosaic_0001>
module attributes {stable_mosaic.version = 11 : i64} {
  func.func @_preact_bottleneck_kernel(%arg0: i32, %arg1: memref<1x16x16x64xf32, #tpu.memory_space<vmem>>, %arg2: memref<64x160xf32, #tpu.memory_space<vmem>>, %arg3: memref<288x32xf32, #tpu.memory_space<vmem>>, %arg4: memref<32x128xf32, #tpu.memory_space<vmem>>, %arg5: memref<1x32xf32, #tpu.memory_space<vmem>>, %arg6: memref<1x32xf32, #tpu.memory_space<vmem>>, %arg7: memref<1x32xf32, #tpu.memory_space<vmem>>, %arg8: memref<1x32xf32, #tpu.memory_space<vmem>>, %arg9: memref<1x128xf32, #tpu.memory_space<vmem>>, %arg10: memref<1x128xf32, #tpu.memory_space<vmem>>, %arg11: memref<1x128xf32, #tpu.memory_space<vmem>>, %arg12: memref<1x128xf32, #tpu.memory_space<vmem>>, %arg13: memref<1x16x16x128xf32, #tpu.memory_space<vmem>>) attributes {dimension_semantics = [#tpu.dimension_semantics<parallel>], iteration_bounds = array<i64: 2>, scalar_prefetch = 0 : i64, scratch_operands = 0 : i64, tpu.core_type = #tpu.core_type<tc>, window_params = [{transform_indices = @transform_0, window_bounds = array<i64: 1, 16, 16, 64>}, {pipeline_mode = #tpu.pipeline_mode<synchronous>, transform_indices = @transform_1, window_bounds = array<i64: 64, 160>}, {pipeline_mode = #tpu.pipeline_mode<synchronous>, transform_indices = @transform_2, window_bounds = array<i64: 288, 32>}, {pipeline_mode = #tpu.pipeline_mode<synchronous>, transform_indices = @transform_3, window_bounds = array<i64: 32, 128>}, {pipeline_mode = #tpu.pipeline_mode<synchronous>, transform_indices = @transform_4, window_bounds = array<i64: 1, 32>}, {pipeline_mode = #tpu.pipeline_mode<synchronous>, transform_indices = @transform_5, window_bounds = array<i64: 1, 32>}, {pipeline_mode = #tpu.pipeline_mode<synchronous>, transform_indices = @transform_6, window_bounds = array<i64: 1, 32>}, {pipeline_mode = #tpu.pipeline_mode<synchronous>, transform_indices = @transform_7, window_bounds = array<i64: 1, 32>}, {pipeline_mode = #tpu.pipeline_mode<synchronous>, transform_indices = @transform_8, window_bounds = array<i64: 1, 128>}, {pipeline_mode = #tpu.pipeline_mode<synchronous>, transform_indices = @transform_9, window_bounds = array<i64: 1, 128>}, {pipeline_mode = #tpu.pipeline_mode<synchronous>, transform_indices = @transform_10, window_bounds = array<i64: 1, 128>}, {pipeline_mode = #tpu.pipeline_mode<synchronous>, transform_indices = @transform_11, window_bounds = array<i64: 1, 128>}, {transform_indices = @transform_12, window_bounds = array<i64: 1, 16, 16, 128>}]} {
    %c0 = arith.constant 0 : index
    %c0_0 = arith.constant 0 : index
    %c0_1 = arith.constant 0 : index
    %c0_2 = arith.constant 0 : index
    %0 = vector.load %arg1[%c0, %c0_0, %c0_1, %c0_2] : memref<1x16x16x64xf32, #tpu.memory_space<vmem>>, vector<1x16x16x64xf32>
    %1 = vector.shape_cast %0 : vector<1x16x16x64xf32> to vector<16x16x64xf32>
    %2 = vector.shape_cast %1 : vector<16x16x64xf32> to vector<256x64xf32>
    %3 = tpu.iota {dimensions = array<i32: 0>} : vector<128x32xi32>
    %4 = tpu.iota {dimensions = array<i32: 1>} : vector<128x32xi32>
    %c4_i32 = arith.constant 4 : i32
    %5 = vector.broadcast %c4_i32 : i32 to vector<128x32xi32>
    %6 = arith.muli %4, %5 : vector<128x32xi32>
    %7 = arith.cmpi sge, %3, %6 : vector<128x32xi32>
    %c1_i32 = arith.constant 1 : i32
    %8 = vector.broadcast %c1_i32 : i32 to vector<128x32xi32>
    %9 = arith.addi %4, %8 : vector<128x32xi32>
    %c4_i32_3 = arith.constant 4 : i32
    %10 = vector.broadcast %c4_i32_3 : i32 to vector<128x32xi32>
    %11 = arith.muli %9, %10 : vector<128x32xi32>
    %12 = arith.cmpi slt, %3, %11 : vector<128x32xi32>
    %13 = arith.andi %7, %12 : vector<128x32xi1>
    %14 = arith.extui %13 : vector<128x32xi1> to vector<128x32xi32>
    %15 = arith.sitofp %14 : vector<128x32xi32> to vector<128x32xf32>
    %16 = tpu.iota {dimensions = array<i32: 0>} : vector<32x128xi32>
    %17 = tpu.iota {dimensions = array<i32: 1>} : vector<32x128xi32>
    %c4_i32_4 = arith.constant 4 : i32
    %18 = vector.broadcast %c4_i32_4 : i32 to vector<32x128xi32>
    %19 = arith.muli %16, %18 : vector<32x128xi32>
    %20 = arith.cmpi sge, %17, %19 : vector<32x128xi32>
    %c1_i32_5 = arith.constant 1 : i32
    %21 = vector.broadcast %c1_i32_5 : i32 to vector<32x128xi32>
    %22 = arith.addi %16, %21 : vector<32x128xi32>
    %c4_i32_6 = arith.constant 4 : i32
    %23 = vector.broadcast %c4_i32_6 : i32 to vector<32x128xi32>
    %24 = arith.muli %22, %23 : vector<32x128xi32>
    %25 = arith.cmpi slt, %17, %24 : vector<32x128xi32>
    %26 = arith.andi %20, %25 : vector<32x128xi1>
    %27 = arith.extui %26 : vector<32x128xi1> to vector<32x128xi32>
    %28 = arith.sitofp %27 : vector<32x128xi32> to vector<32x128xf32>
    %c0_7 = arith.constant 0 : index
    %c0_8 = arith.constant 0 : index
    %29 = vector.load %arg2[%c0_7, %c0_8] : memref<64x160xf32, #tpu.memory_space<vmem>>, vector<64x160xf32>
    %cst = arith.constant dense<0.000000e+00> : vector<256x160xf32>
    %30 = tpu.matmul %2, %29, %cst {dimension_numbers = #tpu.dot_dimension_numbers<[1], [0], [0], [1], [0, 0, 1, 1], [], []>} : vector<256x64xf32>, vector<64x160xf32>, vector<256x160xf32> -> vector<256x160xf32>
    %31 = vector.extract_strided_slice %30 {offsets = [0, 0], sizes = [256, 32], strides = [1, 1]} : vector<256x160xf32> to vector<256x32xf32>
    %32 = vector.extract_strided_slice %30 {offsets = [0, 32], sizes = [256, 128], strides = [1, 1]} : vector<256x160xf32> to vector<256x128xf32>
    %c0_9 = arith.constant 0 : index
    %c0_10 = arith.constant 0 : index
    %33 = vector.load %arg5[%c0_9, %c0_10] : memref<1x32xf32, #tpu.memory_space<vmem>>, vector<1x32xf32>
    %c0_11 = arith.constant 0 : index
    %c0_12 = arith.constant 0 : index
    %34 = vector.load %arg6[%c0_11, %c0_12] : memref<1x32xf32, #tpu.memory_space<vmem>>, vector<1x32xf32>
    %cst_13 = arith.constant dense<0.000000e+00> : vector<32xf32>
    %35 = vector.multi_reduction <add>, %31, %cst_13 [0] : vector<256x32xf32> to vector<32xf32>
    %36 = vector.shape_cast %35 : vector<32xf32> to vector<1x32xf32>
    %37 = arith.mulf %31, %31 : vector<256x32xf32>
    %cst_14 = arith.constant dense<0.000000e+00> : vector<32xf32>
    %38 = vector.multi_reduction <add>, %37, %cst_14 [0] : vector<256x32xf32> to vector<32xf32>
    %39 = vector.shape_cast %38 : vector<32xf32> to vector<1x32xf32>
    %cst_15 = arith.constant 2.560000e+02 : f32
    %40 = vector.broadcast %cst_15 : f32 to vector<1x32xf32>
    %41 = arith.divf %36, %40 : vector<1x32xf32>
    %cst_16 = arith.constant 2.560000e+02 : f32
    %42 = vector.broadcast %cst_16 : f32 to vector<1x32xf32>
    %43 = arith.divf %39, %42 : vector<1x32xf32>
    %44 = arith.mulf %41, %41 : vector<1x32xf32>
    %45 = arith.subf %43, %44 : vector<1x32xf32>
    %cst_17 = arith.constant 0.000000e+00 : f32
    %46 = vector.broadcast %cst_17 : f32 to vector<1x32xf32>
    %47 = arith.maximumf %45, %46 : vector<1x32xf32>
    %cst_18 = arith.constant 9.99999997E-7 : f32
    %48 = vector.broadcast %cst_18 : f32 to vector<1x32xf32>
    %49 = arith.addf %47, %48 : vector<1x32xf32>
    %50 = math.rsqrt %49 : vector<1x32xf32>
    %51 = vector.broadcast %41 : vector<1x32xf32> to vector<256x32xf32>
    %52 = arith.subf %31, %51 : vector<256x32xf32>
    %53 = arith.mulf %50, %33 : vector<1x32xf32>
    %54 = vector.broadcast %53 : vector<1x32xf32> to vector<256x32xf32>
    %55 = arith.mulf %52, %54 : vector<256x32xf32>
    %56 = vector.broadcast %34 : vector<1x32xf32> to vector<256x32xf32>
    %57 = arith.addf %55, %56 : vector<256x32xf32>
    %cst_19 = arith.constant 0.000000e+00 : f32
    %58 = vector.broadcast %cst_19 : f32 to vector<256x32xf32>
    %59 = arith.maximumf %57, %58 : vector<256x32xf32>
    %60 = tpu.iota {dimensions = array<i32: 0>} : vector<256x1xi32>
    %c16_i32 = arith.constant 16 : i32
    %c0_i32 = arith.constant 0 : i32
    %61 = arith.cmpi eq, %c16_i32, %c0_i32 : i32
    %c1_i32_20 = arith.constant 1 : i32
    %62 = arith.select %61, %c1_i32_20, %c16_i32 : i32
    %63 = vector.broadcast %62 : i32 to vector<256x1xi32>
    %64 = arith.remsi %60, %63 : vector<256x1xi32>
    %c0_i32_21 = arith.constant 0 : i32
    %65 = vector.broadcast %c0_i32_21 : i32 to vector<256x1xi32>
    %66 = arith.cmpi ne, %64, %65 : vector<256x1xi32>
    %c0_i32_22 = arith.constant 0 : i32
    %67 = vector.broadcast %c0_i32_22 : i32 to vector<256x1xi32>
    %68 = arith.cmpi slt, %64, %67 : vector<256x1xi32>
    %c0_i32_23 = arith.constant 0 : i32
    %69 = arith.cmpi slt, %62, %c0_i32_23 : i32
    %70 = vector.broadcast %69 : i1 to vector<256x1xi1>
    %71 = vector.broadcast %70 : vector<256x1xi1> to vector<256x1xi1>
    %72 = arith.xori %68, %71 : vector<256x1xi1>
    %73 = arith.andi %72, %66 : vector<256x1xi1>
    %74 = vector.broadcast %62 : i32 to vector<256x1xi32>
    %75 = arith.addi %64, %74 : vector<256x1xi32>
    %76 = arith.select %73, %75, %64 : vector<256x1xi1>, vector<256x1xi32>
    %c1_i32_24 = arith.constant 1 : i32
    %77 = vector.broadcast %c1_i32_24 : i32 to vector<256x1xi32>
    %78 = arith.cmpi sge, %76, %77 : vector<256x1xi32>
    %79 = arith.extui %78 : vector<256x1xi1> to vector<256x1xi32>
    %80 = arith.sitofp %79 : vector<256x1xi32> to vector<256x1xf32>
    %c14_i32 = arith.constant 14 : i32
    %81 = vector.broadcast %c14_i32 : i32 to vector<256x1xi32>
    %82 = arith.cmpi sle, %76, %81 : vector<256x1xi32>
    %83 = arith.extui %82 : vector<256x1xi1> to vector<256x1xi32>
    %84 = arith.sitofp %83 : vector<256x1xi32> to vector<256x1xf32>
    %cst_25 = arith.constant 0.000000e+00 : f32
    %85 = vector.broadcast %cst_25 : f32 to vector<17x32xf32>
    %86 = vector.extract_strided_slice %59 {offsets = [0, 0], sizes = [239, 32], strides = [1, 1]} : vector<256x32xf32> to vector<239x32xf32>
    %87 = tpu.concatenate %85, %86 in 0 : vector<17x32xf32>, vector<239x32xf32> -> vector<256x32xf32>
    %88 = vector.broadcast %80 : vector<256x1xf32> to vector<256x32xf32>
    %89 = arith.mulf %87, %88 : vector<256x32xf32>
    %cst_26 = arith.constant 0.000000e+00 : f32
    %90 = vector.broadcast %cst_26 : f32 to vector<16x32xf32>
    %91 = vector.extract_strided_slice %59 {offsets = [0, 0], sizes = [240, 32], strides = [1, 1]} : vector<256x32xf32> to vector<240x32xf32>
    %92 = tpu.concatenate %90, %91 in 0 : vector<16x32xf32>, vector<240x32xf32> -> vector<256x32xf32>
    %cst_27 = arith.constant 0.000000e+00 : f32
    %93 = vector.broadcast %cst_27 : f32 to vector<15x32xf32>
    %94 = vector.extract_strided_slice %59 {offsets = [0, 0], sizes = [241, 32], strides = [1, 1]} : vector<256x32xf32> to vector<241x32xf32>
    %95 = tpu.concatenate %93, %94 in 0 : vector<15x32xf32>, vector<241x32xf32> -> vector<256x32xf32>
    %96 = vector.broadcast %84 : vector<256x1xf32> to vector<256x32xf32>
    %97 = arith.mulf %95, %96 : vector<256x32xf32>
    %cst_28 = arith.constant 0.000000e+00 : f32
    %98 = vector.broadcast %cst_28 : f32 to vector<1x32xf32>
    %99 = vector.extract_strided_slice %59 {offsets = [0, 0], sizes = [255, 32], strides = [1, 1]} : vector<256x32xf32> to vector<255x32xf32>
    %100 = tpu.concatenate %98, %99 in 0 : vector<1x32xf32>, vector<255x32xf32> -> vector<256x32xf32>
    %101 = vector.broadcast %80 : vector<256x1xf32> to vector<256x32xf32>
    %102 = arith.mulf %100, %101 : vector<256x32xf32>
    %cst_29 = arith.constant 0.000000e+00 : f32
    %103 = vector.broadcast %cst_29 : f32 to vector<1x32xf32>
    %104 = vector.extract_strided_slice %59 {offsets = [1, 0], sizes = [255, 32], strides = [1, 1]} : vector<256x32xf32> to vector<255x32xf32>
    %105 = tpu.concatenate %104, %103 in 0 : vector<255x32xf32>, vector<1x32xf32> -> vector<256x32xf32>
    %106 = vector.broadcast %84 : vector<256x1xf32> to vector<256x32xf32>
    %107 = arith.mulf %105, %106 : vector<256x32xf32>
    %cst_30 = arith.constant 0.000000e+00 : f32
    %108 = vector.broadcast %cst_30 : f32 to vector<15x32xf32>
    %109 = vector.extract_strided_slice %59 {offsets = [15, 0], sizes = [241, 32], strides = [1, 1]} : vector<256x32xf32> to vector<241x32xf32>
    %110 = tpu.concatenate %109, %108 in 0 : vector<241x32xf32>, vector<15x32xf32> -> vector<256x32xf32>
    %111 = vector.broadcast %80 : vector<256x1xf32> to vector<256x32xf32>
    %112 = arith.mulf %110, %111 : vector<256x32xf32>
    %cst_31 = arith.constant 0.000000e+00 : f32
    %113 = vector.broadcast %cst_31 : f32 to vector<16x32xf32>
    %114 = vector.extract_strided_slice %59 {offsets = [16, 0], sizes = [240, 32], strides = [1, 1]} : vector<256x32xf32> to vector<240x32xf32>
    %115 = tpu.concatenate %114, %113 in 0 : vector<240x32xf32>, vector<16x32xf32> -> vector<256x32xf32>
    %cst_32 = arith.constant 0.000000e+00 : f32
    %116 = vector.broadcast %cst_32 : f32 to vector<17x32xf32>
    %117 = vector.extract_strided_slice %59 {offsets = [17, 0], sizes = [239, 32], strides = [1, 1]} : vector<256x32xf32> to vector<239x32xf32>
    %118 = tpu.concatenate %117, %116 in 0 : vector<239x32xf32>, vector<17x32xf32> -> vector<256x32xf32>
    %119 = vector.broadcast %84 : vector<256x1xf32> to vector<256x32xf32>
    %120 = arith.mulf %118, %119 : vector<256x32xf32>
    %121 = tpu.concatenate %89, %92, %97, %102, %59, %107, %112, %115, %120 in 1 : vector<256x32xf32>, vector<256x32xf32>, vector<256x32xf32>, vector<256x32xf32>, vector<256x32xf32>, vector<256x32xf32>, vector<256x32xf32>, vector<256x32xf32>, vector<256x32xf32> -> vector<256x288xf32>
    %c0_33 = arith.constant 0 : index
    %c0_34 = arith.constant 0 : index
    %122 = vector.load %arg3[%c0_33, %c0_34] : memref<288x32xf32, #tpu.memory_space<vmem>>, vector<288x32xf32>
    %cst_35 = arith.constant dense<0.000000e+00> : vector<256x32xf32>
    %123 = tpu.matmul %121, %122, %cst_35 {dimension_numbers = #tpu.dot_dimension_numbers<[1], [0], [0], [1], [0, 0, 1, 1], [], []>} : vector<256x288xf32>, vector<288x32xf32>, vector<256x32xf32> -> vector<256x32xf32>
    %c0_36 = arith.constant 0 : index
    %c0_37 = arith.constant 0 : index
    %124 = vector.load %arg7[%c0_36, %c0_37] : memref<1x32xf32, #tpu.memory_space<vmem>>, vector<1x32xf32>
    %c0_38 = arith.constant 0 : index
    %c0_39 = arith.constant 0 : index
    %125 = vector.load %arg8[%c0_38, %c0_39] : memref<1x32xf32, #tpu.memory_space<vmem>>, vector<1x32xf32>
    %cst_40 = arith.constant dense<0.000000e+00> : vector<32xf32>
    %126 = vector.multi_reduction <add>, %123, %cst_40 [0] : vector<256x32xf32> to vector<32xf32>
    %127 = vector.shape_cast %126 : vector<32xf32> to vector<1x32xf32>
    %128 = arith.mulf %123, %123 : vector<256x32xf32>
    %cst_41 = arith.constant dense<0.000000e+00> : vector<32xf32>
    %129 = vector.multi_reduction <add>, %128, %cst_41 [0] : vector<256x32xf32> to vector<32xf32>
    %130 = vector.shape_cast %129 : vector<32xf32> to vector<1x32xf32>
    %cst_42 = arith.constant 2.560000e+02 : f32
    %131 = vector.broadcast %cst_42 : f32 to vector<1x32xf32>
    %132 = arith.divf %127, %131 : vector<1x32xf32>
    %cst_43 = arith.constant 2.560000e+02 : f32
    %133 = vector.broadcast %cst_43 : f32 to vector<1x32xf32>
    %134 = arith.divf %130, %133 : vector<1x32xf32>
    %135 = arith.mulf %132, %132 : vector<1x32xf32>
    %136 = arith.subf %134, %135 : vector<1x32xf32>
    %cst_44 = arith.constant 0.000000e+00 : f32
    %137 = vector.broadcast %cst_44 : f32 to vector<1x32xf32>
    %138 = arith.maximumf %136, %137 : vector<1x32xf32>
    %cst_45 = arith.constant 9.99999997E-7 : f32
    %139 = vector.broadcast %cst_45 : f32 to vector<1x32xf32>
    %140 = arith.addf %138, %139 : vector<1x32xf32>
    %141 = math.rsqrt %140 : vector<1x32xf32>
    %142 = vector.broadcast %132 : vector<1x32xf32> to vector<256x32xf32>
    %143 = arith.subf %123, %142 : vector<256x32xf32>
    %144 = arith.mulf %141, %124 : vector<1x32xf32>
    %145 = vector.broadcast %144 : vector<1x32xf32> to vector<256x32xf32>
    %146 = arith.mulf %143, %145 : vector<256x32xf32>
    %147 = vector.broadcast %125 : vector<1x32xf32> to vector<256x32xf32>
    %148 = arith.addf %146, %147 : vector<256x32xf32>
    %cst_46 = arith.constant 0.000000e+00 : f32
    %149 = vector.broadcast %cst_46 : f32 to vector<256x32xf32>
    %150 = arith.maximumf %148, %149 : vector<256x32xf32>
    %c0_47 = arith.constant 0 : index
    %c0_48 = arith.constant 0 : index
    %151 = vector.load %arg4[%c0_47, %c0_48] : memref<32x128xf32, #tpu.memory_space<vmem>>, vector<32x128xf32>
    %cst_49 = arith.constant dense<0.000000e+00> : vector<256x128xf32>
    %152 = tpu.matmul %150, %151, %cst_49 {dimension_numbers = #tpu.dot_dimension_numbers<[1], [0], [0], [1], [0, 0, 1, 1], [], []>} : vector<256x32xf32>, vector<32x128xf32>, vector<256x128xf32> -> vector<256x128xf32>
    %c0_50 = arith.constant 0 : index
    %c0_51 = arith.constant 0 : index
    %153 = vector.load %arg9[%c0_50, %c0_51] : memref<1x128xf32, #tpu.memory_space<vmem>>, vector<1x128xf32>
    %c0_52 = arith.constant 0 : index
    %c0_53 = arith.constant 0 : index
    %154 = vector.load %arg10[%c0_52, %c0_53] : memref<1x128xf32, #tpu.memory_space<vmem>>, vector<1x128xf32>
    %cst_54 = arith.constant dense<0.000000e+00> : vector<128xf32>
    %155 = vector.multi_reduction <add>, %152, %cst_54 [0] : vector<256x128xf32> to vector<128xf32>
    %156 = vector.shape_cast %155 : vector<128xf32> to vector<1x128xf32>
    %157 = arith.mulf %152, %152 : vector<256x128xf32>
    %cst_55 = arith.constant dense<0.000000e+00> : vector<128xf32>
    %158 = vector.multi_reduction <add>, %157, %cst_55 [0] : vector<256x128xf32> to vector<128xf32>
    %159 = vector.shape_cast %158 : vector<128xf32> to vector<1x128xf32>
    %cst_56 = arith.constant dense<0.000000e+00> : vector<1x32xf32>
    %160 = tpu.matmul %156, %15, %cst_56 {dimension_numbers = #tpu.dot_dimension_numbers<[1], [0], [0], [1], [0, 0, 1, 1], [], []>} : vector<1x128xf32>, vector<128x32xf32>, vector<1x32xf32> -> vector<1x32xf32>
    %cst_57 = arith.constant 1.024000e+03 : f32
    %161 = vector.broadcast %cst_57 : f32 to vector<1x32xf32>
    %162 = arith.divf %160, %161 : vector<1x32xf32>
    %cst_58 = arith.constant dense<0.000000e+00> : vector<1x32xf32>
    %163 = tpu.matmul %159, %15, %cst_58 {dimension_numbers = #tpu.dot_dimension_numbers<[1], [0], [0], [1], [0, 0, 1, 1], [], []>} : vector<1x128xf32>, vector<128x32xf32>, vector<1x32xf32> -> vector<1x32xf32>
    %cst_59 = arith.constant 1.024000e+03 : f32
    %164 = vector.broadcast %cst_59 : f32 to vector<1x32xf32>
    %165 = arith.divf %163, %164 : vector<1x32xf32>
    %166 = arith.mulf %162, %162 : vector<1x32xf32>
    %167 = arith.subf %165, %166 : vector<1x32xf32>
    %cst_60 = arith.constant dense<0.000000e+00> : vector<1x128xf32>
    %168 = tpu.matmul %162, %28, %cst_60 {dimension_numbers = #tpu.dot_dimension_numbers<[1], [0], [0], [1], [0, 0, 1, 1], [], []>} : vector<1x32xf32>, vector<32x128xf32>, vector<1x128xf32> -> vector<1x128xf32>
    %cst_61 = arith.constant dense<0.000000e+00> : vector<1x128xf32>
    %169 = tpu.matmul %167, %28, %cst_61 {dimension_numbers = #tpu.dot_dimension_numbers<[1], [0], [0], [1], [0, 0, 1, 1], [], []>} : vector<1x32xf32>, vector<32x128xf32>, vector<1x128xf32> -> vector<1x128xf32>
    %cst_62 = arith.constant 0.000000e+00 : f32
    %170 = vector.broadcast %cst_62 : f32 to vector<1x128xf32>
    %171 = arith.maximumf %169, %170 : vector<1x128xf32>
    %cst_63 = arith.constant 9.99999997E-7 : f32
    %172 = vector.broadcast %cst_63 : f32 to vector<1x128xf32>
    %173 = arith.addf %171, %172 : vector<1x128xf32>
    %174 = math.rsqrt %173 : vector<1x128xf32>
    %175 = vector.broadcast %168 : vector<1x128xf32> to vector<256x128xf32>
    %176 = arith.subf %152, %175 : vector<256x128xf32>
    %177 = arith.mulf %174, %153 : vector<1x128xf32>
    %178 = vector.broadcast %177 : vector<1x128xf32> to vector<256x128xf32>
    %179 = arith.mulf %176, %178 : vector<256x128xf32>
    %180 = vector.broadcast %154 : vector<1x128xf32> to vector<256x128xf32>
    %181 = arith.addf %179, %180 : vector<256x128xf32>
    %c0_64 = arith.constant 0 : index
    %c0_65 = arith.constant 0 : index
    %182 = vector.load %arg11[%c0_64, %c0_65] : memref<1x128xf32, #tpu.memory_space<vmem>>, vector<1x128xf32>
    %c0_66 = arith.constant 0 : index
    %c0_67 = arith.constant 0 : index
    %183 = vector.load %arg12[%c0_66, %c0_67] : memref<1x128xf32, #tpu.memory_space<vmem>>, vector<1x128xf32>
    %cst_68 = arith.constant dense<0.000000e+00> : vector<128xf32>
    %184 = vector.multi_reduction <add>, %32, %cst_68 [0] : vector<256x128xf32> to vector<128xf32>
    %185 = vector.shape_cast %184 : vector<128xf32> to vector<1x128xf32>
    %186 = arith.mulf %32, %32 : vector<256x128xf32>
    %cst_69 = arith.constant dense<0.000000e+00> : vector<128xf32>
    %187 = vector.multi_reduction <add>, %186, %cst_69 [0] : vector<256x128xf32> to vector<128xf32>
    %188 = vector.shape_cast %187 : vector<128xf32> to vector<1x128xf32>
    %cst_70 = arith.constant 2.560000e+02 : f32
    %189 = vector.broadcast %cst_70 : f32 to vector<1x128xf32>
    %190 = arith.divf %185, %189 : vector<1x128xf32>
    %cst_71 = arith.constant 2.560000e+02 : f32
    %191 = vector.broadcast %cst_71 : f32 to vector<1x128xf32>
    %192 = arith.divf %188, %191 : vector<1x128xf32>
    %193 = arith.mulf %190, %190 : vector<1x128xf32>
    %194 = arith.subf %192, %193 : vector<1x128xf32>
    %cst_72 = arith.constant 0.000000e+00 : f32
    %195 = vector.broadcast %cst_72 : f32 to vector<1x128xf32>
    %196 = arith.maximumf %194, %195 : vector<1x128xf32>
    %cst_73 = arith.constant 9.99999974E-6 : f32
    %197 = vector.broadcast %cst_73 : f32 to vector<1x128xf32>
    %198 = arith.addf %196, %197 : vector<1x128xf32>
    %199 = math.rsqrt %198 : vector<1x128xf32>
    %200 = vector.broadcast %190 : vector<1x128xf32> to vector<256x128xf32>
    %201 = arith.subf %32, %200 : vector<256x128xf32>
    %202 = arith.mulf %199, %182 : vector<1x128xf32>
    %203 = vector.broadcast %202 : vector<1x128xf32> to vector<256x128xf32>
    %204 = arith.mulf %201, %203 : vector<256x128xf32>
    %205 = vector.broadcast %183 : vector<1x128xf32> to vector<256x128xf32>
    %206 = arith.addf %204, %205 : vector<256x128xf32>
    %207 = arith.addf %206, %181 : vector<256x128xf32>
    %cst_74 = arith.constant 0.000000e+00 : f32
    %208 = vector.broadcast %cst_74 : f32 to vector<256x128xf32>
    %209 = arith.maximumf %207, %208 : vector<256x128xf32>
    %210 = vector.shape_cast %209 : vector<256x128xf32> to vector<16x16x128xf32>
    %c0_75 = arith.constant 0 : index
    %c0_76 = arith.constant 0 : index
    %c0_77 = arith.constant 0 : index
    %c0_78 = arith.constant 0 : index
    %211 = vector.load %arg13[%c0_75, %c0_76, %c0_77, %c0_78] : memref<1x16x16x128xf32, #tpu.memory_space<vmem>>, vector<1x16x16x128xf32>
    %212 = vector.shape_cast %211 : vector<1x16x16x128xf32> to vector<16x16x128xf32>
    %213 = vector.shape_cast %210 : vector<16x16x128xf32> to vector<1x16x16x128xf32>
    tpu.vector_store %arg13[%c0_75, %c0_76, %c0_77, %c0_78], %213 {strides = array<i32>} : memref<1x16x16x128xf32, #tpu.memory_space<vmem>>, vector<1x16x16x128xf32>,
    return
  }
  func.func @transform_0(%arg0: i32) -> (i32, i32, i32, i32) {
    %c0_i32 = arith.constant 0 : i32
    %c0_i32_0 = arith.constant 0 : i32
    %c0_i32_1 = arith.constant 0 : i32
    %c0_i32_2 = arith.constant 0 : i32
    return %arg0, %c0_i32, %c0_i32_0, %c0_i32_1 : i32, i32, i32, i32
  }
  func.func @transform_1(%arg0: i32) -> (i32, i32) {
    %c0_i32 = arith.constant 0 : i32
    %c0_i32_0 = arith.constant 0 : i32
    %c0_i32_1 = arith.constant 0 : i32
    return %c0_i32, %c0_i32_0 : i32, i32
  }
  func.func @transform_2(%arg0: i32) -> (i32, i32) {
    %c0_i32 = arith.constant 0 : i32
    %c0_i32_0 = arith.constant 0 : i32
    %c0_i32_1 = arith.constant 0 : i32
    return %c0_i32, %c0_i32_0 : i32, i32
  }
  func.func @transform_3(%arg0: i32) -> (i32, i32) {
    %c0_i32 = arith.constant 0 : i32
    %c0_i32_0 = arith.constant 0 : i32
    %c0_i32_1 = arith.constant 0 : i32
    return %c0_i32, %c0_i32_0 : i32, i32
  }
  func.func @transform_4(%arg0: i32) -> (i32, i32) {
    %c0_i32 = arith.constant 0 : i32
    %c0_i32_0 = arith.constant 0 : i32
    %c0_i32_1 = arith.constant 0 : i32
    return %c0_i32, %c0_i32_0 : i32, i32
  }
  func.func @transform_5(%arg0: i32) -> (i32, i32) {
    %c0_i32 = arith.constant 0 : i32
    %c0_i32_0 = arith.constant 0 : i32
    %c0_i32_1 = arith.constant 0 : i32
    return %c0_i32, %c0_i32_0 : i32, i32
  }
  func.func @transform_6(%arg0: i32) -> (i32, i32) {
    %c0_i32 = arith.constant 0 : i32
    %c0_i32_0 = arith.constant 0 : i32
    %c0_i32_1 = arith.constant 0 : i32
    return %c0_i32, %c0_i32_0 : i32, i32
  }
  func.func @transform_7(%arg0: i32) -> (i32, i32) {
    %c0_i32 = arith.constant 0 : i32
    %c0_i32_0 = arith.constant 0 : i32
    %c0_i32_1 = arith.constant 0 : i32
    return %c0_i32, %c0_i32_0 : i32, i32
  }
  func.func @transform_8(%arg0: i32) -> (i32, i32) {
    %c0_i32 = arith.constant 0 : i32
    %c0_i32_0 = arith.constant 0 : i32
    %c0_i32_1 = arith.constant 0 : i32
    return %c0_i32, %c0_i32_0 : i32, i32
  }
  func.func @transform_9(%arg0: i32) -> (i32, i32) {
    %c0_i32 = arith.constant 0 : i32
    %c0_i32_0 = arith.constant 0 : i32
    %c0_i32_1 = arith.constant 0 : i32
    return %c0_i32, %c0_i32_0 : i32, i32
  }
  func.func @transform_10(%arg0: i32) -> (i32, i32) {
    %c0_i32 = arith.constant 0 : i32
    %c0_i32_0 = arith.constant 0 : i32
    %c0_i32_1 = arith.constant 0 : i32
    return %c0_i32, %c0_i32_0 : i32, i32
  }
  func.func @transform_11(%arg0: i32) -> (i32, i32) {
    %c0_i32 = arith.constant 0 : i32
    %c0_i32_0 = arith.constant 0 : i32
    %c0_i32_1 = arith.constant 0 : i32
    return %c0_i32, %c0_i32_0 : i32, i32
  }
  func.func @transform_12(%arg0: i32) -> (i32, i32, i32, i32) {
    %c0_i32 = arith.constant 0 : i32
    %c0_i32_0 = arith.constant 0 : i32
    %c0_i32_1 = arith.constant 0 : i32
    %c0_i32_2 = arith.constant 0 : i32
    return %arg0, %c0_i32, %c0_i32_0, %c0_i32_1 : i32, i32, i32, i32
  }
}

</mosaic_0001>

<bundles_post_ra>
// kernel: preact_bottleneck_pallas.1
= control target key start
LH: loop header
LB: loop body
LE: loop exit
PB: predicated region body
PF: predicated region fallthrough
CT: control target
= control target key end

     0   :  { %17 = vsyncpa [#allocation3], 0  ;;  %s11029_s0 = inlined_call_operand.vmem [shape: f32[2,16,16,64], index: 0, kind: input, shape index: {}]   ;;  %s11030_s1 = inlined_call_operand.vmem [shape: f32[64,160], index: 1, kind: input, shape index: {}]   ;;  %s11031_s2 = inlined_call_operand.vmem [shape: f32[288,32], index: 2, kind: input, shape index: {}]   ;;  %s11032_s3 = inlined_call_operand.vmem [shape: f32[32,128], index: 3, kind: input, shape index: {}]   ;;  %s11033_s4 = inlined_call_operand.vmem [shape: f32[1,32], index: 4, kind: input, shape index: {}]   ;;  %s11034_s5 = inlined_call_operand.vmem [shape: f32[1,32], index: 5, kind: input, shape index: {}]   ;;  %s11035_s6 = inlined_call_operand.vmem [shape: f32[1,32], index: 6, kind: input, shape index: {}]   ;;  %s11036_s7 = inlined_call_operand.vmem [shape: f32[1,32], index: 7, kind: input, shape index: {}]   ;;  %s11037_s8 = inlined_call_operand.vmem [shape: f32[1,128], index: 8, kind: input, shape index: {}]   ;;  %s11038_s9 = inlined_call_operand.vmem [shape: f32[1,128], index: 9, kind: input, shape index: {}]   ;;  %s11039_s10 = inlined_call_operand.vmem [shape: f32[1,128], index: 10, kind: input, shape index: {}]   ;;  %s11040_s11 = inlined_call_operand.vmem [shape: f32[1,128], index: 11, kind: input, shape index: {}]   ;;  %s11041_s12 = inlined_call_operand.hbm [shape: f32[2,16,16,128], index: 12, kind: output, shape index: {}]  }
   0x1   :  { %19 = vsyncpa [#allocation3 + $0x1], 0  ;;  %s6573_s21 = smov 0   ;;  %s6575_s22 = smov 0  }
   0x2   :  { %s6577_s23 = smov 0   ;;  %s6579_s24 = smov 0  }
   0x3 LB: > { %11226 = sst [smem:[#allocation5_spill]] %s6493_s23  ;;  %s6594_s25 = sadd.s32 4294967295, %s6497_s24   ;;  %s6497_s24 = sphi %s6579_s24, %s11599_s24   ;;  %s6493_s23 = sphi %s6577_s23, %s11596_s23   ;;  %s6489_s22 = sphi %s6575_s22, %s11598_s22   ;;  %s6485_s21 = sphi %s6573_s21, %s11597_s21  }
   0x4   : > { %s5647_s26 = sadd.s32 4294967294, %s6497_s24   ;;  %s6598_s27 = sadd.s32 1, %s6497_s24  }
   0x5   : > { %s289_s28 = sadd.s32 1, %s6493_s23  ;;  %s286_s29 = ssub.s32 %s6497_s24, %s6598_s27 }
   0x6   : > { %p299_p0 = scmp.ne.s32.totalorder %s6493_s23, %s6489_s22  ;;  %p287_p1 = scmp.eq.s32.totalorder %s286_s29, 0 }
   0x7   : > { %p300_p2 = scmp.eq.s32.totalorder %s6594_s25, 1  ;;  %p305_p3 = scmp.ne.s32.totalorder %s6489_s22, %s6485_s21 }
   0x8   : > { %p306_p4 = scmp.eq.s32.totalorder %s5647_s26, 1  ;;  %p5650_p7 = scmp.ge.s32.totalorder %s6497_s24, 1 }
   0x9   : > { %s6609_s30 = scalar_select %p287_p1, %s6493_s23, %s289_s28  }
   0xa   : > { %p6611_p5 = por %p300_p2, %p299_p0  ;;  %p6615_p6 = por %p306_p4, %p305_p3 }
   0xb   : > { %11227 = sst [smem:[#allocation6_spill]] %s6609_s30  ;;  %p365_p8 = scmp.lt.s32.totalorder %s6497_s24, 3 }
   0xd   : > { %p366_p9 = pnand %p5650_p7, %p365_p8 }
   0xf   : > { %369 = sbr.rel (%p366_p9) target bundleno = 2059 (0x80b), region = 68 }
  0x14   : > { %v592_v0 = vld [vmem:[%s11030_s1 + $0x70] sm:$0xff]  ;;  %v590_v1 = vld [vmem:[%s11030_s1 + $0x60] sm:$0xff]  ;;  %p407_p10 = scmp.lt.s32.totalorder %s6594_s25, 1  ;;  %vm594_vm0 = vcmask 523264   ;;  %vm4478_vm1 = vcmask 1047808   ;;  %v593_v47 = vld [vmem:[%s11030_s1 + $0x78] sm:$0xff] }
  0x15   : > { %699 = vmatpush.msra.mxu0 %v592_v0  ;;  %5882 = vmatpush.msra.mxu2 %v592_v0  ;;  %v588_v2 = vld [vmem:[%s11030_s1 + $0x50] sm:$0xff]  ;;  %v586_v3 = vld [vmem:[%s11030_s1 + $0x40] sm:$0xff]  ;;  %v591_v48 = vld [vmem:[%s11030_s1 + $0x68] sm:$0xff]  ;;  %vm919_vm2 = vcmask 261120   ;;  %vm1992_vm7 = vcmask 1046528   ;;  %vm1868_vm8 = vcmask 1040384  }
  0x16   : > { %s408_s26 = scalar_select %p407_p10, %s6594_s25, 1  ;;  %v584_v4 = vld [vmem:[%s11030_s1 + $0x30] sm:$0xff]  ;;  %v582_v5 = vld [vmem:[%s11030_s1 + $0x20] sm:$0xff]  ;;  %812 = vmatpush.msra.mxu1 %v593_v47  ;;  %5890 = vmatpush.msra.mxu3 %v593_v47  ;;  %v589_v51 = vld [vmem:[%s11030_s1 + $0x58] sm:$0xff] }
  0x17   : > { %700 = vmatpush.msra.mxu0 %v590_v1  ;;  %5883 = vmatpush.msra.mxu2 %v590_v1  ;;  %v580_v6 = vld [vmem:[%s11030_s1 + $0x10] sm:$0xff]  ;;  %v578_v7 = vld [vmem:[%s11030_s1] sm:$0xff]  ;;  %v587_v53 = vld [vmem:[%s11030_s1 + $0x48] sm:$0xff]  ;;  %s6501_s30 = smov 32   ;;  %s6503_s15 = smov 96  }
  0x18   : > { %s5880_s17 = sshll.u32 %s408_s26, 8  ;;  %813 = vmatpush.msra.mxu1 %v591_v48  ;;  %5891 = vmatpush.msra.mxu3 %v591_v48  ;;  %v585_v55 = vld [vmem:[%s11030_s1 + $0x38] sm:$0xff]  ;;  %v583_v56 = vld [vmem:[%s11030_s1 + $0x28] sm:$0xff]  ;;  %s6502_s26 = smov 64  }
  0x19   : > { %701 = vmatpush.msra.mxu0 %v588_v2  ;;  %5884 = vmatpush.msra.mxu2 %v588_v2  ;;  %s6647_s23 = scalar_lea.vmem %s11029_s0, %s5880_s17  ;;  %v581_v59 = vld [vmem:[%s11030_s1 + $0x18] sm:$0xff]  ;;  %v579_v61 = vld [vmem:[%s11030_s1 + $0x8] sm:$0xff]  ;;  %s6455_s20 = scalar_lea.hbm %s11041_s12, 512 }
  0x1a   : > { %v6653_v8 = vld [vmem:[%s6647_s23] sm:$0xff]  ;;  %v6658_v9 = vld [vmem:[%s6647_s23 + $0x8] sm:$0xff]  ;;  %v6663_v10 = vld [vmem:[%s6647_s23 + $0x10] sm:$0xff]  ;;  %814 = vmatpush.msra.mxu1 %v589_v51  ;;  %5892 = vmatpush.msra.mxu3 %v589_v51 }
  0x1b   : > { %702 = vmatpush.msra.mxu0 %v586_v3  ;;  %5885 = vmatpush.msra.mxu2 %v586_v3  ;;  %v6668_v11 = vld [vmem:[%s6647_s23 + $0x90] sm:$0xff]  ;;  %v6673_v12 = vld [vmem:[%s6647_s23 + $0x18] sm:$0xff]  ;;  %v6683_v14 = vld [vmem:[%s6647_s23 + $0x20] sm:$0xff] }
  0x1c   : > { %v6678_v13 = vld [vmem:[%s6647_s23 + $0x98] sm:$0xff]  ;;  %v6688_v15 = vld [vmem:[%s6647_s23 + $0xa0] sm:$0xff]  ;;  %v6693_v16 = vld [vmem:[%s6647_s23 + $0x28] sm:$0xff]  ;;  %815 = vmatpush.msra.mxu1 %v587_v53  ;;  %5893 = vmatpush.msra.mxu3 %v587_v53 }
  0x1d   : > { %703 = vmatpush.msra.mxu0 %v584_v4  ;;  %5886 = vmatpush.msra.mxu2 %v584_v4  ;;  %v6698_v17 = vld [vmem:[%s6647_s23 + $0xa8] sm:$0xff]  ;;  %v6703_v18 = vld [vmem:[%s6647_s23 + $0x30] sm:$0xff]  ;;  %v6713_v20 = vld [vmem:[%s6647_s23 + $0x38] sm:$0xff] }
  0x1e   : > { %v6708_v19 = vld [vmem:[%s6647_s23 + $0xb0] sm:$0xff]  ;;  %v6718_v21 = vld [vmem:[%s6647_s23 + $0xb8] sm:$0xff]  ;;  %v6723_v22 = vld [vmem:[%s6647_s23 + $0x40] sm:$0xff]  ;;  %816 = vmatpush.msra.mxu1 %v585_v55  ;;  %5894 = vmatpush.msra.mxu3 %v585_v55 }
  0x1f   : > { %704 = vmatpush.msra.mxu0 %v582_v5  ;;  %5887 = vmatpush.msra.mxu2 %v582_v5  ;;  %v6728_v23 = vld [vmem:[%s6647_s23 + $0xc0] sm:$0xff]  ;;  %v6733_v24 = vld [vmem:[%s6647_s23 + $0x48] sm:$0xff]  ;;  %v6743_v26 = vld [vmem:[%s6647_s23 + $0x50] sm:$0xff] }
  0x20   : > { %v6738_v25 = vld [vmem:[%s6647_s23 + $0xc8] sm:$0xff]  ;;  %v6748_v27 = vld [vmem:[%s6647_s23 + $0xd0] sm:$0xff]  ;;  %v6753_v28 = vld [vmem:[%s6647_s23 + $0x58] sm:$0xff]  ;;  %817 = vmatpush.msra.mxu1 %v583_v56  ;;  %5895 = vmatpush.msra.mxu3 %v583_v56 }
  0x21   : > { %705 = vmatpush.msra.mxu0 %v580_v6  ;;  %5888 = vmatpush.msra.mxu2 %v580_v6  ;;  %v6758_v29 = vld [vmem:[%s6647_s23 + $0x60] sm:$0xff]  ;;  %v6761_v30 = vld [vmem:[%s6647_s23 + $0xd8] sm:$0xff]  ;;  %v6768_v31 = vld [vmem:[%s6647_s23 + $0x68] sm:$0xff] }
  0x22   : > { %v6771_v32 = vld [vmem:[%s6647_s23 + $0xe0] sm:$0xff]  ;;  %v6778_v33 = vld [vmem:[%s6647_s23 + $0x70] sm:$0xff]  ;;  %v6781_v34 = vld [vmem:[%s6647_s23 + $0xe8] sm:$0xff]  ;;  %818 = vmatpush.msra.mxu1 %v581_v59  ;;  %5896 = vmatpush.msra.mxu3 %v581_v59 }
  0x23   : > { %706 = vmatpush.msra.mxu0 %v578_v7  ;;  %5889 = vmatpush.msra.mxu2 %v578_v7  ;;  %v6788_v35 = vld [vmem:[%s6647_s23 + $0x78] sm:$0xff]  ;;  %v6791_v36 = vld [vmem:[%s6647_s23 + $0xf0] sm:$0xff]  ;;  %v6800_v38 = vld [vmem:[%s6647_s23 + $0x80] sm:$0xff] }
  0x24   : > { %5674 = vmatmul.msk.f32.vlgmr.msra.gmra.mxu0 %vm594_vm0, %v6653_v8  ;;  %5692 = vmatmul.msk.f32.vlgmr.msra.gmra.mxu2 %vm594_vm0, %v6668_v11  ;;  %v6803_v39 = vld [vmem:[%s6647_s23 + $0xf8] sm:$0xff]  ;;  %v429_v42 = vld [vmem:[%s6647_s23 + $0x88] sm:$0xff] }
  0x25   : > { %819 = vmatpush.msra.mxu1 %v579_v61  ;;  %5897 = vmatpush.msra.mxu3 %v579_v61 }
  0x26   : > { %5706 = vmatmul.msk.f32.vlgmr.msra.gmra.mxu1 %vm594_vm0, %v6653_v8  ;;  %5723 = vmatmul.msk.f32.vlgmr.msra.gmra.mxu3 %vm594_vm0, %v429_v42 }
  0x2c   : > { %5675 = vmatmul.msk.f32.gmra.mxu0 %vm594_vm0, %v6658_v9  ;;  %5693 = vmatmul.msk.f32.gmra.mxu2 %vm594_vm0, %v6678_v13 }
  0x2e   : > { %5707 = vmatmul.msk.f32.gmra.mxu1 %vm594_vm0, %v6658_v9  ;;  %5724 = vmatmul.msk.f32.gmra.mxu3 %vm594_vm0, %v6668_v11 }
  0x34   : > { %5676 = vmatmul.msk.f32.gmra.mxu0 %vm594_vm0, %v6663_v10  ;;  %5694 = vmatmul.msk.f32.gmra.mxu2 %vm594_vm0, %v6688_v15 }
  0x36   : > { %5708 = vmatmul.msk.f32.gmra.mxu1 %vm594_vm0, %v6663_v10  ;;  %5725 = vmatmul.msk.f32.gmra.mxu3 %vm594_vm0, %v6678_v13 }
  0x3c   : > { %5677 = vmatmul.msk.f32.gmra.mxu0 %vm594_vm0, %v6673_v12  ;;  %5695 = vmatmul.msk.f32.gmra.mxu2 %vm594_vm0, %v6698_v17 }
  0x3e   : > { %5709 = vmatmul.msk.f32.gmra.mxu1 %vm594_vm0, %v6673_v12  ;;  %5726 = vmatmul.msk.f32.gmra.mxu3 %vm594_vm0, %v6688_v15 }
  0x44   : > { %5678 = vmatmul.msk.f32.gmra.mxu0 %vm594_vm0, %v6683_v14  ;;  %5696 = vmatmul.msk.f32.gmra.mxu2 %vm594_vm0, %v6708_v19 }
  0x46   : > { %5710 = vmatmul.msk.f32.gmra.mxu1 %vm594_vm0, %v6683_v14  ;;  %5727 = vmatmul.msk.f32.gmra.mxu3 %vm594_vm0, %v6698_v17 }
  0x4c   : > { %5679 = vmatmul.msk.f32.gmra.mxu0 %vm594_vm0, %v6693_v16  ;;  %5697 = vmatmul.msk.f32.gmra.mxu2 %vm594_vm0, %v6718_v21 }
  0x4e   : > { %5711 = vmatmul.msk.f32.gmra.mxu1 %vm594_vm0, %v6693_v16  ;;  %5728 = vmatmul.msk.f32.gmra.mxu3 %vm594_vm0, %v6708_v19 }
  0x54   : > { %5680 = vmatmul.msk.f32.gmra.mxu0 %vm594_vm0, %v6703_v18  ;;  %5698 = vmatmul.msk.f32.gmra.mxu2 %vm594_vm0, %v6728_v23 }
  0x56   : > { %5712 = vmatmul.msk.f32.gmra.mxu1 %vm594_vm0, %v6703_v18  ;;  %5729 = vmatmul.msk.f32.gmra.mxu3 %vm594_vm0, %v6718_v21 }
  0x5c   : > { %5681 = vmatmul.msk.f32.gmra.mxu0 %vm594_vm0, %v6713_v20  ;;  %5699 = vmatmul.msk.f32.gmra.mxu2 %vm594_vm0, %v6738_v25 }
  0x5e   : > { %5713 = vmatmul.msk.f32.gmra.mxu1 %vm594_vm0, %v6713_v20  ;;  %5730 = vmatmul.msk.f32.gmra.mxu3 %vm594_vm0, %v6728_v23 }
  0x64   : > { %5682 = vmatmul.msk.f32.gmra.mxu0 %vm594_vm0, %v6723_v22  ;;  %5700 = vmatmul.msk.f32.gmra.mxu2 %vm594_vm0, %v6748_v27 }
  0x66   : > { %5714 = vmatmul.msk.f32.gmra.mxu1 %vm594_vm0, %v6723_v22  ;;  %5731 = vmatmul.msk.f32.gmra.mxu3 %vm594_vm0, %v6738_v25 }
  0x6c   : > { %5683 = vmatmul.msk.f32.gmra.mxu0 %vm594_vm0, %v6733_v24  ;;  %5701 = vmatmul.msk.f32.gmra.mxu2 %vm594_vm0, %v6761_v30 }
  0x6e   : > { %5715 = vmatmul.msk.f32.gmra.mxu1 %vm594_vm0, %v6733_v24  ;;  %5732 = vmatmul.msk.f32.gmra.mxu3 %vm594_vm0, %v6748_v27 }
  0x74   : > { %5684 = vmatmul.msk.f32.gmra.mxu0 %vm594_vm0, %v6743_v26  ;;  %5702 = vmatmul.msk.f32.gmra.mxu2 %vm594_vm0, %v6771_v32 }
  0x76   : > { %5716 = vmatmul.msk.f32.gmra.mxu1 %vm594_vm0, %v6743_v26  ;;  %5733 = vmatmul.msk.f32.gmra.mxu3 %vm594_vm0, %v6761_v30 }
  0x7c   : > { %5685 = vmatmul.msk.f32.gmra.mxu0 %vm594_vm0, %v6753_v28  ;;  %5703 = vmatmul.msk.f32.gmra.mxu2 %vm594_vm0, %v6781_v34 }
  0x7e   : > { %5717 = vmatmul.msk.f32.gmra.mxu1 %vm594_vm0, %v6753_v28  ;;  %5734 = vmatmul.msk.f32.gmra.mxu3 %vm594_vm0, %v6771_v32 }
  0x84   : > { %5686 = vmatmul.msk.f32.gmra.mxu0 %vm594_vm0, %v6758_v29  ;;  %5704 = vmatmul.msk.f32.gmra.mxu2 %vm594_vm0, %v6791_v36 }
  0x86   : > { %5718 = vmatmul.msk.f32.gmra.mxu1 %vm594_vm0, %v6758_v29  ;;  %5735 = vmatmul.msk.f32.gmra.mxu3 %vm594_vm0, %v6781_v34 }
  0x8c   : > { %5687 = vmatmul.msk.f32.gmra.mxu0 %vm594_vm0, %v6768_v31  ;;  %5705 = vmatmul.msk.f32.gmra.mxu2 %vm594_vm0, %v6803_v39 }
  0x8e   : > { %5719 = vmatmul.msk.f32.gmra.mxu1 %vm594_vm0, %v6768_v31  ;;  %5736 = vmatmul.msk.f32.gmra.mxu3 %vm594_vm0, %v6791_v36 }
  0x94   : > { %5688 = vmatmul.msk.f32.gmra.mxu0 %vm594_vm0, %v6778_v33 }
  0x96   : > { %5720 = vmatmul.msk.f32.gmra.mxu1 %vm594_vm0, %v6778_v33  ;;  %5737 = vmatmul.msk.f32.gmra.mxu3 %vm594_vm0, %v6803_v39 }
  0x9c   : > { %5689 = vmatmul.msk.f32.gmra.mxu0 %vm594_vm0, %v6788_v35 }
  0x9e   : > { %5721 = vmatmul.msk.f32.gmra.mxu1 %vm594_vm0, %v6788_v35 }
  0xa1   : > { %v6797_v37 = vpop.f32.mrf.mxu0 }
  0xa2   : > { %11230 = vst [vmem:[#allocation7_spill] sm:$0xff] %v6797_v37  ;;  %v6811_v40 = vmul.f32 %v6797_v37, %v6797_v37 }
  0xa4   : > { %5690 = vmatmul.msk.f32.gmra.mxu0 %vm594_vm0, %v6800_v38  ;;  %v4649_v44 = vsel %vm4478_vm1, %v6811_v40, 0.0 }
  0xa6   : > { %5722 = vmatmul.msk.f32.gmra.mxu1 %vm594_vm0, %v6800_v38 }
  0xa7   : > { %v6865_v63 = vpop.f32.mrf.mxu2 }
  0xa8   : > { %11234 = vst [vmem:[#allocation11_spill] sm:$0xff] %v6865_v63 }
  0xa9   : > { %v6813_v41 = vpop.f32.mrf.mxu0 }
  0xaa   : > { %11231 = vst [vmem:[#allocation8_spill] sm:$0xff] %v6813_v41  ;;  %v6818_v43 = vmul.f32 %v6813_v41, %v6813_v41  ;;  %v921_v22 = vsel %vm919_vm2, %v6813_v41, 0.0 }
  0xac   : > { %v4650_v45 = vsel %vm4478_vm1, %v6818_v43, 0.0  ;;  %5691 = vmatmul.msk.f32.gmra.mxu0 %vm594_vm0, %v429_v42 }
  0xad   : > { %v4651_v46 = vadd.f32 %v4650_v45, %v4649_v44 }
  0xaf   : > { %v6882_v4 = vpop.f32.mrf.mxu2 }
  0xb0   : > { %11236 = vst [vmem:[#allocation13_spill] sm:$0xff] %v6882_v4 }
  0xb1   : > { %v6831_v49 = vpop.f32.mrf.mxu0 }
  0xb2   : > { %11232 = vst [vmem:[#allocation9_spill] sm:$0xff] %v6831_v49  ;;  %v6835_v50 = vmul.f32 %v6831_v49, %v6831_v49 }
  0xb4   : > { %v4652_v52 = vsel %vm4478_vm1, %v6835_v50, 0.0 }
  0xb5   : > { %v4653_v54 = vadd.f32 %v4652_v52, %v4651_v46 }
  0xb7   : > { %v6898_v11 = vpop.f32.mrf.mxu2 }
  0xb8   : > { %11239 = vst [vmem:[#allocation16_spill] sm:$0xff] %v6898_v11 }
  0xb9   : > { %v6851_v57 = vpop.f32.mrf.mxu0 }
  0xba   : > { %11233 = vst [vmem:[#allocation10_spill] sm:$0xff] %v6851_v57  ;;  %v6855_v58 = vmul.f32 %v6851_v57, %v6851_v57 }
  0xbc   : > { %v4654_v60 = vsel %vm4478_vm1, %v6855_v58, 0.0 }
  0xbd   : > { %v4655_v62 = vadd.f32 %v4654_v60, %v4653_v54 }
  0xbf   : > { %v6916_v46 = vpop.f32.mrf.mxu2 }
  0xc0   : > { %11241 = vst [vmem:[#allocation18_spill] sm:$0xff] %v6916_v46 }
  0xc1   : > { %v6870_v0 = vpop.f32.mrf.mxu0 }
  0xc2   : > { %11235 = vst [vmem:[#allocation12_spill] sm:$0xff] %v6870_v0  ;;  %v6874_v1 = vmul.f32 %v6870_v0, %v6870_v0 }
  0xc4   : > { %v4656_v2 = vsel %vm4478_vm1, %v6874_v1, 0.0 }
  0xc5   : > { %v4657_v3 = vadd.f32 %v4656_v2, %v4655_v62 }
  0xc7   : > { %v6932_v53 = vpop.f32.mrf.mxu2 }
  0xc8   : > { %11243 = vst [vmem:[#allocation20_spill] sm:$0xff] %v6932_v53 }
  0xc9   : > { %v6884_v5 = vpop.f32.mrf.mxu0 }
  0xca   : > { %11237 = vst [vmem:[#allocation14_spill] sm:$0xff] %v6884_v5  ;;  %v6888_v6 = vmul.f32 %v6884_v5, %v6884_v5 }
  0xcc   : > { %v4658_v7 = vsel %vm4478_vm1, %v6888_v6, 0.0 }
  0xcd   : > { %v4659_v8 = vadd.f32 %v4658_v7, %v4657_v3 }
  0xcf   : > { %v6950_v16 = vpop.f32.mrf.mxu2 }
  0xd0   : > { %11245 = vst [vmem:[#allocation22_spill] sm:$0xff] %v6950_v16 }
  0xd1   : > { %v6896_v9 = vpop.f32.mrf.mxu0 }
  0xd2   : > { %11238 = vst [vmem:[#allocation15_spill] sm:$0xff] %v6896_v9  ;;  %v6902_v42 = vmul.f32 %v6896_v9, %v6896_v9  ;;  %v931_v26 = vsel %vm919_vm2, %v6896_v9, 0.0 }
  0xd4   : > { %v4660_v44 = vsel %vm4478_vm1, %v6902_v42, 0.0 }
  0xd5   : > { %v4661_v45 = vadd.f32 %v4660_v44, %v4659_v8  ;;  %v920_v44 = vsel %vm919_vm2, %v6797_v37, 0.0 }
  0xd6   : > { %v922_v27 = vadd.f32 %v921_v22, %v920_v44 }
  0xd7   : > { %v6966_v21 = vpop.f32.mrf.mxu2 }
  0xd8   : > { %11248 = vst [vmem:[#allocation25_spill] sm:$0xff] %v6966_v21 }
  0xd9   : > { %v6910_v10 = vpop.f32.mrf.mxu0 }
  0xda   : > { %11240 = vst [vmem:[#allocation17_spill] sm:$0xff] %v6910_v10  ;;  %v6914_v13 = vmul.f32 %v6910_v10, %v6910_v10 }
  0xdc   : > { %v4662_v47 = vsel %vm4478_vm1, %v6914_v13, 0.0 }
  0xdd   : > { %v4663_v48 = vadd.f32 %v4662_v47, %v4661_v45  ;;  %v1022_v45 = vsel %vm919_vm2, %v6818_v43, 0.0  ;;  %v923_v47 = vsel %vm919_vm2, %v6831_v49, 0.0 }
  0xdf   : > { %v6984_v3 = vpop.f32.mrf.mxu2 }
  0xe0   : > { %11250 = vst [vmem:[#allocation27_spill] sm:$0xff] %v6984_v3 }
  0xe1   : > { %v6924_v12 = vpop.f32.mrf.mxu0 }
  0xe2   : > { %11242 = vst [vmem:[#allocation19_spill] sm:$0xff] %v6924_v12  ;;  %v6928_v15 = vmul.f32 %v6924_v12, %v6924_v12 }
  0xe4   : > { %v4664_v51 = vsel %vm4478_vm1, %v6928_v15, 0.0 }
  0xe5   : > { %v4665_v52 = vadd.f32 %v4664_v51, %v4663_v48  ;;  %v1021_v48 = vsel %vm919_vm2, %v6811_v40, 0.0  ;;  %v1024_v51 = vsel %vm919_vm2, %v6835_v50, 0.0  ;;  %v927_v40 = vsel %vm919_vm2, %v6870_v0, 0.0 }
  0xe9   : > { %v6938_v14 = vpop.f32.mrf.mxu0 }
  0xea   : > { %11244 = vst [vmem:[#allocation21_spill] sm:$0xff] %v6938_v14  ;;  %v6942_v17 = vmul.f32 %v6938_v14, %v6938_v14 }
  0xec   : > { %v4666_v54 = vsel %vm4478_vm1, %v6942_v17, 0.0  ;;  %v1038_v28 = vsel %vm919_vm2, %v6942_v17, 0.0 }
  0xed   : > { %v4667_v55 = vadd.f32 %v4666_v54, %v4665_v52  ;;  %v925_v52 = vsel %vm919_vm2, %v6851_v57, 0.0  ;;  %v1023_v54 = vadd.f32 %v1022_v45, %v1021_v48  ;;  %v1030_v45 = vsel %vm919_vm2, %v6888_v6, 0.0 }
  0xee   : > { %v933_v48 = vsel %vm919_vm2, %v6910_v10, 0.0  ;;  %v1034_v6 = vsel %vm919_vm2, %v6914_v13, 0.0 }
  0xef   : > { %v1025_v50 = vadd.f32 %v1024_v51, %v1023_v54 }
  0xf1   : > { %v6952_v56 = vpop.f32.mrf.mxu0 }
  0xf2   : > { %11246 = vst [vmem:[#allocation23_spill] sm:$0xff] %v6952_v56  ;;  %v6956_v19 = vmul.f32 %v6952_v56, %v6952_v56  ;;  %v939_v32 = vsel %vm919_vm2, %v6952_v56, 0.0 }
  0xf4   : > { %v4668_v59 = vsel %vm4478_vm1, %v6956_v19, 0.0 }
  0xf5   : > { %v4669_v60 = vadd.f32 %v4668_v59, %v4667_v55  ;;  %v924_v55 = vadd.f32 %v923_v47, %v922_v27 }
  0xf9   : > { %v6964_v18 = vpop.f32.mrf.mxu0 }
  0xfa   : > { %11247 = vst [vmem:[#allocation24_spill] sm:$0xff] %v6964_v18  ;;  %v6970_v61 = vmul.f32 %v6964_v18, %v6964_v18 }
  0xfc   : > { %v4670_v62 = vsel %vm4478_vm1, %v6970_v61, 0.0  ;;  %v1042_v17 = vsel %vm919_vm2, %v6970_v61, 0.0 }
  0xfd   : > { %v4671_v2 = vadd.f32 %v4670_v62, %v4669_v60  ;;  %v7014_v60 = vpop.f32.mrf.mxu2  ;;  %v1026_v62 = vsel %vm919_vm2, %v6855_v58, 0.0 }
  0xfe   : > { %11252 = vst [vmem:[#allocation29_spill] sm:$0xff] %v7014_v60  ;;  %v1027_v22 = vadd.f32 %v1026_v62, %v1025_v50  ;;  %v1036_v50 = vsel %vm919_vm2, %v6928_v15, 0.0  ;;  %v1040_v15 = vsel %vm919_vm2, %v6956_v19, 0.0 }
 0x101   : > { %v6978_v20 = vpop.f32.mrf.mxu0 }
 0x102   : > { %11249 = vst [vmem:[#allocation26_spill] sm:$0xff] %v6978_v20  ;;  %v6982_v23 = vmul.f32 %v6978_v20, %v6978_v20 }
 0x104   : > { %v4672_v7 = vsel %vm4478_vm1, %v6982_v23, 0.0 }
 0x105   : > { %v4673_v8 = vadd.f32 %v4672_v7, %v4671_v2  ;;  %v926_v2 = vadd.f32 %v925_v52, %v924_v55  ;;  %v1028_v7 = vsel %vm919_vm2, %v6874_v1, 0.0  ;;  %v1032_v1 = vsel %vm919_vm2, %v6902_v42, 0.0 }
 0x106   : > { %v1029_v47 = vadd.f32 %v1028_v7, %v1027_v22  ;;  %v935_v55 = vsel %vm919_vm2, %v6924_v12, 0.0 }
 0x107   : > { %v928_v44 = vadd.f32 %v927_v40, %v926_v2  ;;  %v7049_v40 = vpop.f32.mrf.mxu2 }
 0x108   : > { %v1031_v52 = vadd.f32 %v1030_v45, %v1029_v47  ;;  %11254 = vst [vmem:[#allocation31_spill] sm:$0xff] %v7049_v40  ;;  %v941_v45 = vsel %vm919_vm2, %v6964_v18, 0.0 }
 0x109   : > { %v6994_v25 = vpop.f32.mrf.mxu0 }
 0x10a   : > { %11251 = vst [vmem:[#allocation28_spill] sm:$0xff] %v6994_v25  ;;  %v7004_v24 = vmul.f32 %v6994_v25, %v6994_v25  ;;  %v1033_v42 = vadd.f32 %v1032_v1, %v1031_v52  ;;  %v1044_v52 = vsel %vm919_vm2, %v6982_v23, 0.0 }
 0x10c   : > { %v4674_v43 = vsel %vm4478_vm1, %v7004_v24, 0.0  ;;  %v1035_v13 = vadd.f32 %v1034_v6, %v1033_v42  ;;  %v1046_v29 = vsel %vm919_vm2, %v7004_v24, 0.0 }
 0x10d   : > { %v4675_v59 = vadd.f32 %v4674_v43, %v4673_v8  ;;  %v929_v8 = vsel %vm919_vm2, %v6884_v5, 0.0 }
 0x10e   : > { %v930_v27 = vadd.f32 %v929_v8, %v928_v44  ;;  %v1037_v22 = vadd.f32 %v1036_v50, %v1035_v13 }
 0x110   : > { %v932_v43 = vadd.f32 %v931_v26, %v930_v27  ;;  %v1039_v47 = vadd.f32 %v1038_v28, %v1037_v22 }
 0x111   : > { %v7028_v58 = vpop.f32.mrf.mxu0 }
 0x112   : > { %11253 = vst [vmem:[#allocation30_spill] sm:$0xff] %v7028_v58  ;;  %v1003_v30 = vmul.f32 %v7028_v58, %v7028_v58  ;;  %v934_v62 = vadd.f32 %v933_v48, %v932_v43  ;;  %v943_v48 = vsel %vm919_vm2, %v6978_v20, 0.0  ;;  %v1041_v19 = vadd.f32 %v1040_v15, %v1039_v47 }
 0x113   : > { %v945_v43 = vsel %vm919_vm2, %v6994_v25, 0.0  ;;  %v947_v34 = vsel %vm919_vm2, %v7028_v58, 0.0 }
 0x114   : > { %v4676_v51 = vsel %vm4478_vm1, %v1003_v30, 0.0  ;;  %v936_v2 = vadd.f32 %v935_v55, %v934_v62  ;;  %v7082_v55 = vpop.f32.mrf.mxu2  ;;  %v1048_v50 = vsel %vm919_vm2, %v1003_v30, 0.0 }
 0x115   : > { %v4677_v54 = vadd.f32 %v4676_v51, %v4675_v59  ;;  %v937_v59 = vsel %vm919_vm2, %v6938_v14, 0.0  ;;  %11257 = vst [vmem:[#allocation34_spill] sm:$0xff] %v7082_v55 }
 0x116   : > { %v938_v44 = vadd.f32 %v937_v59, %v936_v2 }
 0x118   : > { %v940_v27 = vadd.f32 %v939_v32, %v938_v44 }
 0x119   : > { %v7055_v7 = vpop.f32.mrf.mxu0 }
 0x11a   : > { %11255 = vst [vmem:[#allocation32_spill] sm:$0xff] %v7055_v7  ;;  %v1004_v8 = vmul.f32 %v7055_v7, %v7055_v7  ;;  %v942_v51 = vadd.f32 %v941_v45, %v940_v27  ;;  %v949_v59 = vsel %vm919_vm2, %v7055_v7, 0.0 }
 0x11c   : > { %v4678_v26 = vsel %vm4478_vm1, %v1004_v8, 0.0  ;;  %v944_v6 = vadd.f32 %v943_v48, %v942_v51  ;;  %v1050_v24 = vsel %vm919_vm2, %v1004_v8, 0.0  ;;  %v1007_v8 = vmul.f32 %v6865_v63, %v6865_v63  ;;  %v7110_v36 = vpop.f32.mrf.mxu2 }
 0x11d   : > { %v4679_v1 = vadd.f32 %v4678_v26, %v4677_v54  ;;  %v1043_v54 = vadd.f32 %v1042_v17, %v1041_v19  ;;  %11259 = vst [vmem:[#allocation36_spill] sm:$0xff] %v7110_v36  ;;  %v955_v48 = vsel %vm919_vm2, %v6865_v63, 0.0  ;;  %v1008_v19 = vmul.f32 %v6882_v4, %v6882_v4 }
 0x11e   : > { %v946_v23 = vadd.f32 %v945_v43, %v944_v6 }
 0x11f   : > { %v1045_v62 = vadd.f32 %v1044_v52, %v1043_v54 }
 0x120   : > { %v948_v28 = vadd.f32 %v947_v34, %v946_v23  ;;  %v4684_v34 = vsel %vm4478_vm1, %v1007_v8, 0.0 }
 0x121   : > { %v7080_v61 = vpop.f32.mrf.mxu0  ;;  %v1047_v2 = vadd.f32 %v1046_v29, %v1045_v62  ;;  %v1056_v29 = vsel %vm919_vm2, %v1007_v8, 0.0  ;;  %v1009_v62 = vmul.f32 %v6898_v11, %v6898_v11 }
 0x122   : > { %11256 = vst [vmem:[#allocation33_spill] sm:$0xff] %v7080_v61  ;;  %v1005_v42 = vmul.f32 %v7080_v61, %v7080_v61  ;;  %v951_v22 = vsel %vm919_vm2, %v7080_v61, 0.0  ;;  %v950_v44 = vadd.f32 %v949_v59, %v948_v28  ;;  %v959_v28 = vsel %vm919_vm2, %v6898_v11, 0.0 }
 0x123   : > { %v1049_v30 = vadd.f32 %v1048_v50, %v1047_v2  ;;  %v4686_v2 = vsel %vm4478_vm1, %v1008_v19, 0.0  ;;  %v1060_v39 = vsel %vm919_vm2, %v1009_v62, 0.0 }
 0x124   : > { %v4680_v13 = vsel %vm4478_vm1, %v1005_v42, 0.0  ;;  %v1052_v15 = vsel %vm919_vm2, %v1005_v42, 0.0  ;;  %v952_v26 = vadd.f32 %v951_v22, %v950_v44  ;;  %v957_v42 = vsel %vm919_vm2, %v6882_v4, 0.0 }
 0x125   : > { %v4681_v32 = vadd.f32 %v4680_v13, %v4679_v1  ;;  %v1051_v45 = vadd.f32 %v1050_v24, %v1049_v30  ;;  %v1058_v13 = vsel %vm919_vm2, %v1008_v19, 0.0  ;;  %v1011_v24 = vmul.f32 %v6932_v53, %v6932_v53 }
 0x126   : > { %v4688_v44 = vsel %vm4478_vm1, %v1009_v62, 0.0 }
 0x127   : > { %v1053_v1 = vadd.f32 %v1052_v15, %v1051_v45  ;;  %v961_v15 = vsel %vm919_vm2, %v6916_v46, 0.0 }
 0x129   : > { %v7102_v47 = vpop.f32.mrf.mxu0 }
 0x12a   : > { %11258 = vst [vmem:[#allocation35_spill] sm:$0xff] %v7102_v47  ;;  %v953_v27 = vsel %vm919_vm2, %v7102_v47, 0.0  ;;  %v1006_v31 = vmul.f32 %v7102_v47, %v7102_v47 }
 0x12b   : > { %v954_v17 = vadd.f32 %v953_v27, %v952_v26 }
 0x12c   : > { %v1054_v51 = vsel %vm919_vm2, %v1006_v31, 0.0  ;;  %v4682_v52 = vsel %vm4478_vm1, %v1006_v31, 0.0 }
 0x12d   : > { %v956_v43 = vadd.f32 %v955_v48, %v954_v17  ;;  %v1055_v54 = vadd.f32 %v1054_v51, %v1053_v1  ;;  %v4683_v6 = vadd.f32 %v4682_v52, %v4681_v32  ;;  %v1010_v32 = vmul.f32 %v6916_v46, %v6916_v46 }
 0x12e   : > { %v963_v1 = vsel %vm919_vm2, %v6932_v53, 0.0  ;;  %v1012_v17 = vmul.f32 %v6950_v16, %v6950_v16  ;;  %v1064_v48 = vsel %vm919_vm2, %v1011_v24, 0.0 }
 0x12f   : > { %v958_v23 = vadd.f32 %v957_v42, %v956_v43  ;;  %v1057_v50 = vadd.f32 %v1056_v29, %v1055_v54  ;;  %v4685_v59 = vadd.f32 %v4684_v34, %v4683_v6  ;;  %v1062_v27 = vsel %vm919_vm2, %v1010_v32, 0.0  ;;  %v7147_v43 = vpop.f32.mrf.mxu2 }
 0x130   : > { %v4690_v31 = vsel %vm4478_vm1, %v1010_v32, 0.0  ;;  %11260 = vst [vmem:[#allocation37_spill] sm:$0xff] %v7147_v43  ;;  %v4692_v54 = vsel %vm4478_vm1, %v1011_v24, 0.0  ;;  %v965_v6 = vsel %vm919_vm2, %v6950_v16, 0.0  ;;  %v1013_v29 = vmul.f32 %v6966_v21, %v6966_v21 }
 0x131   : > { %v960_v33 = vadd.f32 %v959_v28, %v958_v23  ;;  %v1059_v22 = vadd.f32 %v1058_v13, %v1057_v50  ;;  %v4687_v30 = vadd.f32 %v4686_v2, %v4685_v59  ;;  %v1066_v23 = vsel %vm919_vm2, %v1012_v17, 0.0 }
 0x132   : > { %v4694_v50 = vsel %vm4478_vm1, %v1012_v17, 0.0  ;;  %v967_v59 = vsel %vm919_vm2, %v6966_v21, 0.0  ;;  %v1014_v13 = vmul.f32 %v6984_v3, %v6984_v3  ;;  %v6499_v24 = vmov 256.0  }
 0x133   : > { %v962_v45 = vadd.f32 %v961_v15, %v960_v33  ;;  %v1061_v26 = vadd.f32 %v1060_v39, %v1059_v22  ;;  %v4689_v8 = vadd.f32 %v4688_v44, %v4687_v30  ;;  %6421 = vrcp.f32 %v6499_v24 }
 0x134   : > { %v1068_v35 = vsel %vm919_vm2, %v1013_v29, 0.0  ;;  %v4696_v33 = vsel %vm4478_vm1, %v1013_v29, 0.0  ;;  %v969_v22 = vsel %vm919_vm2, %v6984_v3, 0.0  ;;  %v1015_v30 = vmul.f32 %v7014_v60, %v7014_v60 }
 0x135   : > { %v964_v19 = vadd.f32 %v963_v1, %v962_v45  ;;  %v1063_v51 = vadd.f32 %v1062_v27, %v1061_v26  ;;  %v4691_v52 = vadd.f32 %v4690_v31, %v4689_v8  ;;  %v1016_v39 = vmul.f32 %v7049_v40, %v7049_v40 }
 0x136   : > { %v1070_v26 = vsel %vm919_vm2, %v1014_v13, 0.0  ;;  %v4698_v8 = vsel %vm4478_vm1, %v1014_v13, 0.0  ;;  %v971_v27 = vsel %vm919_vm2, %v7014_v60, 0.0  ;;  %v1017_v31 = vmul.f32 %v7082_v55, %v7082_v55 }
 0x137   : > { %v1065_v34 = vadd.f32 %v1064_v48, %v1063_v51  ;;  %v4693_v42 = vadd.f32 %v4692_v54, %v4691_v52  ;;  %v966_v62 = vadd.f32 %v965_v6, %v964_v19  ;;  %v1072_v19 = vsel %vm919_vm2, %v1015_v30, 0.0 }
 0x138   : > { %v4700_v51 = vsel %vm4478_vm1, %v1015_v30, 0.0  ;;  %v973_v52 = vsel %vm919_vm2, %v7049_v40, 0.0  ;;  %v1074_v6 = vsel %vm919_vm2, %v1016_v39, 0.0  ;;  %v1018_v13 = vmul.f32 %v7110_v36, %v7110_v36 }
 0x139   : > { %v968_v2 = vadd.f32 %v967_v59, %v966_v62  ;;  %v1067_v28 = vadd.f32 %v1066_v23, %v1065_v34  ;;  %v4695_v32 = vadd.f32 %v4694_v50, %v4693_v42  ;;  %v6422_v54 = vpop.eup %6421  ;;  %v7183_v62 = vpop.f32.mrf.mxu2  ;;  %v4702_v23 = vsel %vm4478_vm1, %v1016_v39, 0.0 }
 0x13a   : > { %11261 = vst [vmem:[#allocation38_spill] sm:$0xff] %v7183_v62  ;;  %v975_v50 = vsel %vm919_vm2, %v7082_v55, 0.0  ;;  %v1076_v59 = vsel %vm919_vm2, %v1017_v31, 0.0  ;;  %v4704_v24 = vsel %vm4478_vm1, %v1017_v31, 0.0  ;;  %vm1095_vm3 = vweird.f32 %v6422_v54 }
 0x13b   : > { %v970_v44 = vadd.f32 %v969_v22, %v968_v2  ;;  %v1069_v15 = vadd.f32 %v1068_v35, %v1067_v28  ;;  %v4697_v45 = vadd.f32 %v4696_v33, %v4695_v32  ;;  %v1019_v32 = vmul.f32 %v7147_v43, %v7147_v43 }
 0x13c   : > { %v977_v35 = vsel %vm919_vm2, %v7110_v36, 0.0  ;;  %v1020_v33 = vmul.f32 %v7183_v62, %v7183_v62  ;;  %v1091_v22 = vmul.f32 256.0, %v6422_v54 }
 0x13d   : > { %v972_v1 = vadd.f32 %v971_v27, %v970_v44  ;;  %v1071_v17 = vadd.f32 %v1070_v26, %v1069_v15  ;;  %v4699_v48 = vadd.f32 %v4698_v8, %v4697_v45  ;;  %v1078_v15 = vsel %vm919_vm2, %v1018_v13, 0.0 }
 0x13e   : > { %v4706_v45 = vsel %vm4478_vm1, %v1018_v13, 0.0  ;;  %v979_v26 = vsel %vm919_vm2, %v7147_v43, 0.0  ;;  %v981_v8 = vsel %vm919_vm2, %v7183_v62, 0.0 }
 0x13f   : > { %v974_v29 = vadd.f32 %v973_v52, %v972_v1  ;;  %v1073_v34 = vadd.f32 %v1072_v19, %v1071_v17  ;;  %v4701_v42 = vadd.f32 %v4700_v51, %v4699_v48  ;;  %v1080_v17 = vsel %vm919_vm2, %v1019_v32, 0.0 }
 0x140   : > { %v4708_v48 = vsel %vm4478_vm1, %v1019_v32, 0.0  ;;  %v1082_v19 = vsel %vm919_vm2, %v1020_v33, 0.0  ;;  %v1092_v51 = vsub.f32 1.0, %v1091_v22  ;;  %v4710_v52 = vsel %vm4478_vm1, %v1020_v33, 0.0 }
 0x141   : > { %v976_v2 = vadd.f32 %v975_v50, %v974_v29  ;;  %v1075_v38 = vadd.f32 %v1074_v6, %v1073_v34  ;;  %v4703_v28 = vadd.f32 %v4702_v23, %v4701_v42 }
 0x143   : > { %v1077_v30 = vadd.f32 %v1076_v59, %v1075_v38  ;;  %v4705_v39 = vadd.f32 %v4704_v24, %v4703_v28  ;;  %v978_v44 = vadd.f32 %v977_v35, %v976_v2  ;;  %v1093_v59 = vmul.f32 %v6422_v54, %v1092_v51 }
 0x145   : > { %v1079_v27 = vadd.f32 %v1078_v15, %v1077_v30  ;;  %v4707_v31 = vadd.f32 %v4706_v45, %v4705_v39  ;;  %v980_v1 = vadd.f32 %v979_v26, %v978_v44  ;;  %v1094_v24 = vadd.f32 %v6422_v54, %v1093_v59 }
 0x147   : > { %v1081_v6 = vadd.f32 %v1080_v17, %v1079_v27  ;;  %v4709_v29 = vadd.f32 %v4708_v48, %v4707_v31  ;;  %v982_v34 = vadd.f32 %v981_v8, %v980_v1  ;;  %v7210_v39 = vsel %vm1095_vm3, %v6422_v54, %v1094_v24  ;;  %v3187_v54 = vld [vmem:[%s11031_s2 + $0x118] sm:$0xff] }
 0x148   : > { %11263 = vst [vmem:[#allocation40_spill] sm:$0xff] %v7210_v39  ;;  %3522 = vmatpush.msrb.mxu0 %v3187_v54 }
 0x149   : > { %v983_v42 = vrot.slane %v982_v34, 4  ;;  %v1083_v23 = vadd.f32 %v1082_v19, %v1081_v6  ;;  %v7208_v50 = vadd.f32 %v4710_v52, %v4709_v29  ;;  %v3186_v52 = vld [vmem:[%s11031_s2 + $0x110] sm:$0xff]  ;;  %v3185_v6 = vld [vmem:[%s11031_s2 + $0x108] sm:$0xff] }
 0x14a   : > { %3523 = vmatpush.msrb.mxu0 %v3186_v52 }
 0x14b   : > { %11262 = vst [vmem:[#allocation39_spill] sm:$0xff] %v7208_v50  ;;  %v984_v13 = vadd.f32 %v983_v42, %v982_v34  ;;  %v1084_v2 = vrot.slane %v1083_v23, 4  ;;  %v3184_v34 = vld [vmem:[%s11031_s2 + $0x100] sm:$0xff] }
 0x14c   : > { %3524 = vmatpush.msrb.mxu0 %v3185_v6  ;;  %v917_v42 = vld [vmem:[%s11033_s4] sm:$0x1] }
 0x14d   : > { %v985_v38 = vrot.slane %v984_v13, 2  ;;  %v1085_v28 = vadd.f32 %v1084_v2, %v1083_v23 }
 0x14e   : > { %3525 = vmatpush.msrb.mxu0 %v3184_v34 }
 0x14f   : > { %v986_v35 = vadd.f32 %v985_v38, %v984_v13  ;;  %v1086_v32 = vrot.slane %v1085_v28, 2 }
 0x151   : > { %v987_v30 = vrot.slane %v986_v35, 1  ;;  %v1087_v22 = vadd.f32 %v1086_v32, %v1085_v28 }
 0x153   : > { %v988_v33 = vadd.f32 %v987_v30, %v986_v35  ;;  %v1088_v44 = vrot.slane %v1087_v22, 1  ;;  %v7248_v30 = vld [vmem:[%s11034_s5] ss:$0 sm:$0xff] }
 0x155   : > { %v1089_v15 = vadd.f32 %v1088_v44, %v1087_v22  ;;  %v7213_v45 = vmul.f32 %v7210_v39, %v988_v33 }
 0x157   : > { %v1098_v26 = vmul.f32 %v7210_v39, %v1089_v15  ;;  %v1099_v8 = vmul.f32 %v7213_v45, %v7213_v45  ;;  %v1144_v13 = vsub.f32 %v7183_v62, %v7213_v45  ;;  %v1115_v38 = vsub.f32 %v6831_v49, %v7213_v45 }
 0x158   : > { %v1124_v28 = vsub.f32 %v6964_v18, %v7213_v45  ;;  %v1125_v24 = vsub.f32 %v6978_v20, %v7213_v45  ;;  %v1126_v35 = vsub.f32 %v6994_v25, %v7213_v45  ;;  %v1127_v32 = vsub.f32 %v7028_v58, %v7213_v45 }
 0x159   : > { %v1100_v27 = vsub.f32 %v1098_v26, %v1099_v8  ;;  %v1128_v33 = vsub.f32 %v7055_v7, %v7213_v45  ;;  %v1129_v44 = vsub.f32 %v7080_v61, %v7213_v45  ;;  %v1130_v15 = vsub.f32 %v7102_v47, %v7213_v45 }
 0x15a   : > { %v1131_v26 = vsub.f32 %v6865_v63, %v7213_v45  ;;  %v1132_v8 = vsub.f32 %v6882_v4, %v7213_v45  ;;  %v1138_v54 = vsub.f32 %v6984_v3, %v7213_v45  ;;  %v1140_v52 = vsub.f32 %v7049_v40, %v7213_v45 }
 0x15b   : > { %v1101_v31 = vmax.f32 %v1100_v27, 0.0  ;;  %v1133_v27 = vsub.f32 %v6898_v11, %v7213_v45  ;;  %v1141_v6 = vsub.f32 %v7082_v55, %v7213_v45  ;;  %v1142_v34 = vsub.f32 %v7110_v36, %v7213_v45 }
 0x15d   : > { %v1102_v1 = vadd.f32 1e-06, %v1101_v31  ;;  %v1134_v31 = vsub.f32 %v6916_v46, %v7213_v45 }
 0x15f   : > { %6423 = vrsqrt.f32 %v1102_v1  ;;  %vm1109_vm5 = vweird.f32 %v1102_v1 }
 0x165   : > { %v6424_v17 = vpop.eup %6423 }
 0x166   : > { %v1104_v48 = vmul.f32 %v6424_v17, %v1102_v1  ;;  %vm1110_vm4 = vweird.f32 %v6424_v17 }
 0x167   : > { %vm1111_vm6 = vmor %vm1109_vm5, %vm1110_vm4 }
 0x168   : > { %v1105_v19 = vmul.f32 %v6424_v17, %v1104_v48  ;;  %v1136_v48 = vsub.f32 %v6950_v16, %v7213_v45 }
 0x16a   : > { %v1106_v51 = vmul.f32 0.5, %v1105_v19  ;;  %v1137_v19 = vsub.f32 %v6966_v21, %v7213_v45 }
 0x16c   : > { %v1107_v29 = vsub.f32 1.5, %v1106_v51  ;;  %v1139_v51 = vsub.f32 %v7014_v60, %v7213_v45 }
 0x16e   : > { %v1108_v23 = vmul.f32 %v6424_v17, %v1107_v29 }
 0x170   : > { %v1112_v59 = vsel %vm1111_vm6, %v6424_v17, %v1108_v23  ;;  %v1135_v17 = vsub.f32 %v6932_v53, %v7213_v45  ;;  %v1118_v53 = vsub.f32 %v6884_v5, %v7213_v45 }
 0x171   : > { %v1145_v2 = vmul.f32 %v1112_v59, %v917_v42  ;;  %v1143_v42 = vsub.f32 %v7147_v43, %v7213_v45 }
 0x173   : > { %v7250_v22 = vperm.slane %v1145_v2, 0 }
 0x175   : > { %v1178_v1 = vmul.f32 %v7250_v22, %v1144_v13  ;;  %v1149_v59 = vmul.f32 %v7250_v22, %v1115_v38  ;;  %v1158_v13 = vmul.f32 %v7250_v22, %v1124_v28  ;;  %v1159_v2 = vmul.f32 %v7250_v22, %v1125_v24 }
 0x176   : > { %v1160_v39 = vmul.f32 %v7250_v22, %v1126_v35  ;;  %v1161_v50 = vmul.f32 %v7250_v22, %v1127_v32  ;;  %v1162_v62 = vmul.f32 %v7250_v22, %v1128_v33  ;;  %v1163_v36 = vmul.f32 %v7250_v22, %v1129_v44 }
 0x177   : > { %v7282_v29 = vadd.f32 %v7248_v30, %v1178_v1  ;;  %v3183_v1 = vld [vmem:[%s11031_s2 + $0xf8] sm:$0xff]  ;;  %v1164_v23 = vmul.f32 %v7250_v22, %v1130_v15  ;;  %v1165_v38 = vmul.f32 %v7250_v22, %v1131_v26  ;;  %v1166_v28 = vmul.f32 %v7250_v22, %v1132_v8 }
 0x178   : > { %3397 = vmatpush.msrb.mxu3 %v3183_v1  ;;  %v1167_v24 = vmul.f32 %v7250_v22, %v1133_v27  ;;  %v1168_v35 = vmul.f32 %v7250_v22, %v1134_v31  ;;  %v1169_v43 = vmul.f32 %v7250_v22, %v1135_v17  ;;  %v1170_v55 = vmul.f32 %v7250_v22, %v1136_v48 }
 0x179   : > { %11264 = vst [vmem:[#allocation41_spill] sm:$0xff] %v7282_v29  ;;  %v1171_v32 = vmul.f32 %v7250_v22, %v1137_v19  ;;  %v1172_v33 = vmul.f32 %v7250_v22, %v1138_v54  ;;  %v1173_v44 = vmul.f32 %v7250_v22, %v1139_v51  ;;  %v1174_v15 = vmul.f32 %v7250_v22, %v1140_v52  ;;  %v3173_v29 = vld [vmem:[%s11031_s2 + $0xa8] sm:$0xff] }
 0x17a   : > { %v1175_v26 = vmul.f32 %v7250_v22, %v1141_v6  ;;  %v1176_v8 = vmul.f32 %v7250_v22, %v1142_v34  ;;  %v1116_v27 = vsub.f32 %v6851_v57, %v7213_v45  ;;  %v1177_v31 = vmul.f32 %v7250_v22, %v1143_v42 }
 0x17b   : > { %v1117_v17 = vsub.f32 %v6870_v0, %v7213_v45  ;;  %v11265_v48 = vlaneseq  ;;  %v1184_v51 = vadd.f32 %v7248_v30, %v1149_v59  ;;  %v7322_v52 = vadd.f32 %v7248_v30, %v1158_v13  ;;  %v3167_v59 = vld [vmem:[%s11031_s2 + $0x78] sm:$0xff]  ;;  %v3182_v13 = vld [vmem:[%s11031_s2 + $0xf0] sm:$0xff] }
 0x17c   : > { %v1150_v54 = vmul.f32 %v7250_v22, %v1116_v27  ;;  %v7325_v6 = vadd.f32 %v7248_v30, %v1159_v2  ;;  %v7328_v34 = vadd.f32 %v7248_v30, %v1160_v39  ;;  %v7331_v42 = vadd.f32 %v7248_v30, %v1161_v50  ;;  %3284 = vmatpush.msrb.mxu2 %v3167_v59 }
 0x17d   : > { %v7317_v19 = vshrl.u32 %v11265_v48, 7  ;;  %v7334_v1 = vadd.f32 %v7248_v30, %v1162_v62  ;;  %v7337_v48 = vadd.f32 %v7248_v30, %v1163_v36  ;;  %v7346_v39 = vadd.f32 %v7248_v30, %v1164_v23  ;;  %3398 = vmatpush.msrb.mxu3 %v3182_v13 }
 0x17e   : > { %v7349_v50 = vadd.f32 %v7248_v30, %v1165_v38  ;;  %v7352_v62 = vadd.f32 %v7248_v30, %v1166_v28  ;;  %v7355_v36 = vadd.f32 %v7248_v30, %v1167_v24  ;;  %v7358_v2 = vadd.f32 %v7248_v30, %v1168_v35 }
 0x17f   : > { %11266 = vst [vmem:[#allocation42_spill] sm:$0xff] %v7317_v19  ;;  %v7361_v27 = vadd.f32 %v7248_v30, %v1169_v43  ;;  %v7364_v40 = vadd.f32 %v7248_v30, %v1170_v55  ;;  %v7367_v23 = vadd.f32 %v7248_v30, %v1171_v32  ;;  %v7370_v38 = vadd.f32 %v7248_v30, %v1172_v33 }
 0x180   : > { %v7373_v28 = vadd.f32 %v7248_v30, %v1173_v44  ;;  %v7376_v24 = vadd.f32 %v7248_v30, %v1174_v15  ;;  %v7379_v35 = vadd.f32 %v7248_v30, %v1175_v26  ;;  %v1185_v43 = vadd.f32 %v7248_v30, %v1150_v54 }
 0x181   : > { %v7383_v55 = vadd.f32 %v7248_v30, %v1176_v8  ;;  %v7386_v32 = vadd.f32 %v7248_v30, %v1177_v31  ;;  %v1151_v33 = vmul.f32 %v7250_v22, %v1117_v17  ;;  %v7390_v59 = vadd.s32 8, %v7317_v19  ;;  %v3166_v8 = vld [vmem:[%s11031_s2 + $0x70] sm:$0xff]  ;;  %v3181_v31 = vld [vmem:[%s11031_s2 + $0xe8] sm:$0xff] }
 0x182   : > { %v1113_v44 = vsub.f32 %v6797_v37, %v7213_v45  ;;  %v1114_v15 = vsub.f32 %v6813_v41, %v7213_v45  ;;  %v7397_v26 = vadd.s32 16, %v7317_v19  ;;  %v7399_v54 = vmax.f32 %v1184_v51, 0.0  ;;  %3285 = vmatpush.msrb.mxu2 %v3166_v8  ;;  %3399 = vmatpush.msrb.mxu3 %v3181_v31 }
 0x183   : > { %11267 = vst [vmem:[#allocation43_spill] sm:$0xff] %v7383_v55  ;;  %v7409_v60 = vmax.f32 %v1185_v43, 0.0  ;;  %v1186_v3 = vadd.f32 %v7248_v30, %v1151_v33  ;;  %v1273_v51 = vand.u32 15, %v7390_v59  ;;  %v1266_v21 = vand.u32 15, %v7317_v19 }
 0x184   : > { %11268 = vst [vmem:[#allocation44_spill] sm:$0xff] %v7386_v32  ;;  %v1147_v17 = vmul.f32 %v7250_v22, %v1113_v44  ;;  %v1148_v13 = vmul.f32 %v7250_v22, %v1114_v15  ;;  %v1280_v16 = vand.u32 15, %v7397_v26  ;;  %v1119_v44 = vsub.f32 %v6896_v9, %v7213_v45 }
 0x185   : > { %11269 = vst [vmem:[#allocation45_spill] sm:$0xff] %v7390_v59  ;;  %v1996_v43 = vrot.slane %v7399_v54, 1  ;;  %v1998_v15 = vrot.slane %v7409_v60, 1  ;;  %v7423_v31 = vmax.f32 %v1186_v3, 0.0  ;;  %vm1743_vm9 = vcmp.le.s32.totalorder %v1273_v51, 14 }
 0x186   : > { %11270 = vst [vmem:[#allocation46_spill] sm:$0xff] %v7397_v26  ;;  %v1182_v8 = vadd.f32 %v7248_v30, %v1147_v17  ;;  %v1183_v33 = vadd.f32 %v7248_v30, %v1148_v13  ;;  %vm1646_vm10 = vcmp.ge.s32.totalorder %v1266_v21, 1  ;;  %vm7432_vm11 = vcmp.ge.s32.totalorder %v1280_v16, 1  ;;  %v3180_v16 = vld [vmem:[%s11031_s2 + $0xe0] sm:$0xff] }
 0x187   : > { %v7426_v59 = vsel %vm1992_vm7, %v1996_v43, %v1998_v15  ;;  %v1152_v17 = vmul.f32 %v7250_v22, %v1118_v53  ;;  %v1874_v3 = vrot.slane %v7409_v60, 7  ;;  %v11099_v13 = vmov 0.0   ;;  %3400 = vmatpush.msrb.mxu3 %v3180_v16 }
 0x188   : > { %v7428_v26 = vmax.f32 %v1182_v8, 0.0  ;;  %v7430_v46 = vmax.f32 %v1183_v33, 0.0  ;;  %5770 = vmatmul.msk.f32.vlgmr.msrb.gmra.mxu0 %vm919_vm2, %v7426_v59  ;;  %v5754_v21 = vsel %vm1743_vm9, 1.0, %v11099_v13  ;;  %v1872_v51 = vrot.slane %v7399_v54, 7  ;;  %v3165_v8 = vld [vmem:[%s11031_s2 + $0x68] sm:$0xff] }
 0x189   : > { %v7451_v4 = vsel %vm1646_vm10, 1.0, %v11099_v13  ;;  %3286 = vmatpush.msrb.mxu2 %v3165_v8  ;;  %v1153_v47 = vmul.f32 %v7250_v22, %v1119_v44  ;;  %v5739_v61 = vsel %vm7432_vm11, 1.0, %v11099_v13  ;;  %v2000_v7 = vrot.slane %v7423_v31, 1 }
 0x18a   : > { %v1993_v53 = vrot.slane %v7428_v26, 1  ;;  %v1994_v33 = vrot.slane %v7430_v46, 1  ;;  %v1869_v63 = vrot.slane %v7428_v26, 7  ;;  %v1870_v18 = vrot.slane %v7430_v46, 7 }
 0x18b   : > { %v1187_v8 = vadd.f32 %v7248_v30, %v1152_v17  ;;  %v7470_v9 = vsel %vm1868_vm8, %v1872_v51, %v1874_v3  ;;  %v7475_v0 = vsel %vm1992_vm7, %v1998_v15, %v2000_v7  ;;  %v7742_v55 = vadd.s32 96, %v7317_v19 }
 0x18c   : > { %v7460_v58 = vsel %vm1992_vm7, %v1993_v53, %v1994_v33  ;;  %v2085_v25 = vsel %vm1992_vm7, 0.0, %v1993_v53  ;;  %v1958_v20 = vsel %vm1868_vm8, 0.0, %v1869_v63  ;;  %v7478_v53 = vsel %vm1868_vm8, %v1870_v18, %v1872_v51  ;;  %v3164_v51 = vld [vmem:[%s11031_s2 + $0x60] sm:$0xff] }
 0x18d   : > { %v5946_v44 = vpack.i.bf16 %v7460_v58, %v11099_v13  ;;  %v2087_v16 = vmul.f32 %v5754_v21, %v2085_v25  ;;  %v2125_v11 = vmul.f32 %v7451_v4, %v1958_v20  ;;  %v7472_v5 = vmul.f32 %v5739_v61, %v1958_v20  ;;  %3287 = vmatpush.msrb.mxu2 %v3164_v51 }
 0x18e   : > { %v2229_v13 = vmul.f32 %v5754_v21, %v7475_v0  ;;  %v7485_v57 = vsel %vm1992_vm7, %v1994_v33, %v1996_v43  ;;  %v1188_v20 = vadd.f32 %v7248_v30, %v1153_v47  ;;  %v7488_v49 = vmax.f32 %v1187_v8, 0.0  ;;  %v3179_v43 = vld [vmem:[%s11031_s2 + $0xd8] sm:$0xff]  ;;  %11294 = vst [vmem:[#allocation67_spill] sm:$0xff] %v7742_v55 }
 0x18f   : > { %5947 = vrot.lane.b32.xlu0 %v5946_v44, %s6501_s30  ;;  %v5966_v17 = vpack.i.bf16 %v7470_v9, %v2087_v16  ;;  %v5956_v25 = vpack.i.bf16 %v7399_v54, %v2125_v11  ;;  %v2196_v15 = vmul.f32 %v7451_v4, %v7478_v53  ;;  %v2163_v47 = vmul.f32 %v5754_v21, %v7485_v57 }
 0x190   : > { %5771 = vmatmul.msk.f32.gmra.mxu0 %vm919_vm2, %v2229_v13  ;;  %3401 = vmatpush.msrb.mxu3 %v3179_v43  ;;  %v1876_v33 = vrot.slane %v7423_v31, 7  ;;  %v7504_v8 = vsel %vm1868_vm8, %v1869_v63, %v1870_v18  ;;  %v7506_v44 = vmax.f32 %v1188_v20, 0.0  ;;  %v11274_v16 = vmov 0.0  }
 0x191   : > { %5967 = vrot.lane.b32.xlu2 %v5966_v17, %s6502_s26  ;;  %5957 = vrot.lane.b32.xlu1 %v5956_v25, %s6503_s15  ;;  %v5951_v11 = vpack.i.bf16 %v2196_v15, %v11274_v16  ;;  %v2002_v17 = vrot.slane %v7488_v49, 1  ;;  %v7511_v25 = vadd.s32 24, %v7317_v19  ;;  %v1120_v13 = vsub.f32 %v6910_v10, %v7213_v45 }
 0x192   : > { %11273 = vst [vmem:[#allocation47_spill] sm:$0xff] %v7506_v44  ;;  %v5961_v21 = vpack.i.bf16 %v7428_v26, %v2163_v47  ;;  %v5971_v63 = vpack.i.bf16 %v7409_v60, %v7504_v8  ;;  %v7522_v15 = vsel %vm1868_vm8, %v1874_v3, %v1876_v33  ;;  %v2004_v43 = vrot.slane %v7506_v44, 1  ;;  %v3163_v47 = vld [vmem:[%s11031_s2 + $0x58] sm:$0xff] }
 0x193   : > { %11275 = vst [vmem:[#allocation48_spill] sm:$0xff] %v7511_v25  ;;  %v1287_v18 = vand.u32 15, %v7511_v25  ;;  %v1154_v20 = vmul.f32 %v7250_v22, %v1120_v13  ;;  %v7527_v51 = vsel %vm1992_vm7, %v2000_v7, %v2002_v17  ;;  %v1121_v3 = vsub.f32 %v6924_v12, %v7213_v45  ;;  %3288 = vmatpush.msrb.mxu2 %v3163_v47 }
 0x194   : > { %v2198_v7 = vmul.f32 %v5739_v61, %v7522_v15  ;;  %v2127_v13 = vmul.f32 %v5739_v61, %v7478_v53  ;;  %v5976_v25 = vpack.i.bf16 %v7430_v46, %v7426_v59  ;;  %v7548_v12 = vsel %vm1992_vm7, %v2002_v17, %v2004_v43 }
 0x195   : > { %vm1745_vm12 = vcmp.le.s32.totalorder %v1287_v18, 14  ;;  %v7551_v18 = vadd.s32 32, %v7317_v19 }
 0x196   : > { %v5755_v10 = vsel %vm1745_vm12, 1.0, %v11274_v16  ;;  %v5981_v47 = vpack.i.bf16 %v2198_v7, %v7460_v58  ;;  %v5986_v61 = vpack.i.bf16 %v7423_v31, %v2127_v13  ;;  %v3177_v7 = vld [vmem:[%s11031_s2 + $0xc8] sm:$0xff]  ;;  %v1878_v13 = vrot.slane %v7488_v49, 7 }
 0x197   : > { %5952 = vrot.lane.b32.xlu0 %v5951_v11, %s6502_s26  ;;  %v3178_v11 = vld [vmem:[%s11031_s2 + $0xd0] sm:$0xff]  ;;  %11276 = vst [vmem:[#allocation49_spill] sm:$0xff] %v7551_v18  ;;  %v2165_v58 = vmul.f32 %v5755_v10, %v7475_v0 }
 0x198   : > { %5772 = vmatmul.msk.f32.gmra.mxu0 %vm919_vm2, %v7527_v51  ;;  %3402 = vmatpush.msrb.mxu3 %v3178_v11  ;;  %v2231_v11 = vmul.f32 %v5755_v10, %v7548_v12  ;;  %v7584_v37 = vsel %vm1868_vm8, %v1876_v33, %v1878_v13 }
 0x199   : > { %5962 = vrot.lane.b32.xlu1 %v5961_v21, %s6501_s30  ;;  %5972 = vrot.lane.b32.xlu2 %v5971_v63, %s6503_s15  ;;  %v1155_v21 = vmul.f32 %v7250_v22, %v1121_v3  ;;  %v1189_v63 = vadd.f32 %v7248_v30, %v1154_v20  ;;  %v3162_v20 = vld [vmem:[%s11031_s2 + $0x50] sm:$0xff]  ;;  %11280 = vst [vmem:[#allocation53_spill] sm:$0xff] %v7584_v37 }
 0x19a   : > { %3289 = vmatpush.msrb.mxu2 %v3162_v20  ;;  %3403 = vmatpush.msrb.mxu3 %v3177_v7  ;;  %v5996_v20 = vpack.i.bf16 %v7399_v54, %v2165_v58 }
 0x19b   : > { %v1190_v3 = vadd.f32 %v7248_v30, %v1155_v21  ;;  %v7561_v17 = vmax.f32 %v1189_v63, 0.0  ;;  %v7573_v21 = vadd.s32 40, %v7317_v19  ;;  %v2089_v63 = vmul.f32 %v5755_v10, %v7485_v57 }
 0x19c   : > { %v5991_v10 = vpack.i.bf16 %v7488_v49, %v7470_v9 }
 0x19d   : > { %11277 = vst [vmem:[#allocation50_spill] sm:$0xff] %v7561_v17  ;;  %v1301_v41 = vand.u32 15, %v7573_v21  ;;  %v6006_v57 = vpack.i.bf16 %v7584_v37, %v2089_v63 }
 0x19e   : > { %11278 = vst [vmem:[#allocation51_spill] sm:$0xff] %v7573_v21  ;;  %v7630_v21 = vadd.s32 48, %v7317_v19 }
 0x19f   : > { %5977 = vrot.lane.b32.xlu0 %v5976_v25, %s6501_s30  ;;  %v1294_v25 = vand.u32 15, %v7551_v18  ;;  %v2006_v18 = vrot.slane %v7561_v17, 1  ;;  %vm1747_vm14 = vcmp.le.s32.totalorder %v1301_v41, 14 }
 0x1a0   : > { %5773 = vmatmul.msk.f32.gmra.mxu0 %vm919_vm2, %v2231_v11  ;;  %v1122_v11 = vsub.f32 %v6938_v14, %v7213_v45  ;;  %v5756_v41 = vsel %vm1747_vm14, 1.0, %v11274_v16  ;;  %11282 = vst [vmem:[#allocation55_spill] sm:$0xff] %v7630_v21  ;;  %v1308_v14 = vand.u32 15, %v7630_v21 }
 0x1a1   : > { %5982 = vrot.lane.b32.xlu1 %v5981_v47, %s6502_s26  ;;  %5987 = vrot.lane.b32.xlu2 %v5986_v61, %s6503_s15  ;;  %v1880_v47 = vrot.slane %v7506_v44, 7  ;;  %v7577_v61 = vmax.f32 %v1190_v3, 0.0  ;;  %vm1650_vm13 = vcmp.ge.s32.totalorder %v1294_v25, 1  ;;  %v3161_v3 = vld [vmem:[%s11031_s2 + $0x48] sm:$0xff]  ;;  %v7604_v7 = vsel %vm1992_vm7, %v2004_v43, %v2006_v18 }
 0x1a2   : > { %v1156_v58 = vmul.f32 %v7250_v22, %v1122_v11  ;;  %v7596_v25 = vsel %vm1650_vm13, 1.0, %v11274_v16  ;;  %3290 = vmatpush.msrb.mxu2 %v3161_v3  ;;  %v1123_v11 = vsub.f32 %v6952_v56, %v7213_v45  ;;  %v6001_v3 = vpack.i.bf16 %v7409_v60, %v7527_v51 }
 0x1a3   : > { %11279 = vst [vmem:[#allocation52_spill] sm:$0xff] %v7577_v61  ;;  %v7599_v33 = vsel %vm1868_vm8, %v1878_v13, %v1880_v47  ;;  %v2008_v63 = vrot.slane %v7577_v61, 1  ;;  %v3160_v13 = vld [vmem:[%s11031_s2 + $0x40] sm:$0xff]  ;;  %vm1652_vm15 = vcmp.ge.s32.totalorder %v1308_v14, 1 }
 0x1a4   : > { %11281 = vst [vmem:[#allocation54_spill] sm:$0xff] %v7599_v33  ;;  %v2200_v43 = vmul.f32 %v7596_v25, %v7599_v33  ;;  %3291 = vmatpush.msrb.mxu2 %v3160_v13  ;;  %v1191_v45 = vadd.f32 %v7248_v30, %v1156_v58 }
 0x1a6   : > { %v6011_v56 = vpack.i.bf16 %v2200_v43, %v7426_v59  ;;  %v3175_v59 = vld [vmem:[%s11031_s2 + $0xb8] sm:$0xff]  ;;  %v1882_v43 = vrot.slane %v7561_v17, 7 }
 0x1a7   : > { %5997 = vrot.lane.b32.xlu0 %v5996_v20, %s6501_s30  ;;  %v3176_v20 = vld [vmem:[%s11031_s2 + $0xc0] sm:$0xff] }
 0x1a8   : > { %5774 = vmatmul.msk.f32.gmra.mxu0 %vm919_vm2, %v7604_v7  ;;  %3404 = vmatpush.msrb.mxu3 %v3176_v20  ;;  %v7627_v20 = vsel %vm1992_vm7, %v2006_v18, %v2008_v63  ;;  %v2167_v18 = vmul.f32 %v5756_v41, %v7548_v12 }
 0x1a9   : > { %6007 = vrot.lane.b32.xlu1 %v6006_v57, %s6502_s26  ;;  %5992 = vrot.lane.b32.xlu2 %v5991_v10, %s6503_s15  ;;  %v2129_v57 = vmul.f32 %v7596_v25, %v7522_v15  ;;  %v1157_v10 = vmul.f32 %v7250_v22, %v1123_v11  ;;  %v2233_v22 = vmul.f32 %v5756_v41, %v7627_v20  ;;  %v7637_v11 = vmax.f32 %v1191_v45, 0.0 }
 0x1aa   : > { %3405 = vmatpush.msrb.mxu3 %v3175_v59 }
 0x1ab   : > { %v6016_v13 = vpack.i.bf16 %v7506_v44, %v2129_v57  ;;  %v1192_v58 = vadd.f32 %v7248_v30, %v1157_v10  ;;  %11283 = vst [vmem:[#allocation56_spill] sm:$0xff] %v7637_v11  ;;  %v7649_v30 = vadd.s32 56, %v7317_v19  ;;  %v2091_v57 = vmul.f32 %v5756_v41, %v7475_v0 }
 0x1ac   : > { %v1884_v10 = vrot.slane %v7577_v61, 7  ;;  %v6021_v0 = vpack.i.bf16 %v7561_v17, %v7584_v37  ;;  %v7669_v41 = vsel %vm1652_vm15, 1.0, %v11274_v16 }
 0x1ad   : > { %11284 = vst [vmem:[#allocation57_spill] sm:$0xff] %v7649_v30  ;;  %v7656_v45 = vmax.f32 %v1192_v58, 0.0  ;;  %v1315_v59 = vand.u32 15, %v7649_v30 }
 0x1ae   : > { %11287 = vst [vmem:[#allocation60_spill] sm:$0xff] %v7669_v41  ;;  %v7672_v58 = vsel %vm1868_vm8, %v1882_v43, %v1884_v10 }
 0x1af   : > { %6002 = vrot.lane.b32.xlu0 %v6001_v3, %s6501_s30  ;;  %11285 = vst [vmem:[#allocation58_spill] sm:$0xff] %v7656_v45  ;;  %v6026_v3 = vpack.i.bf16 %v7423_v31, %v2167_v18  ;;  %v3174_v18 = vld [vmem:[%s11031_s2 + $0xb0] sm:$0xff]  ;;  %vm1749_vm3 = vcmp.le.s32.totalorder %v1315_v59, 14  ;;  %v7702_v59 = vadd.s32 64, %v7317_v19 }
 0x1b0   : > { %5775 = vmatmul.msk.f32.gmra.mxu0 %vm919_vm2, %v2233_v22  ;;  %v7661_v22 = vsel %vm1868_vm8, %v1880_v47, %v1882_v43  ;;  %v2012_v47 = vrot.slane %v7656_v45, 1  ;;  %3406 = vmatpush.msrb.mxu3 %v3174_v18  ;;  %v7693_v43 = vadd.s32 80, %v7317_v19 }
 0x1b1   : > { %6012 = vrot.lane.b32.xlu1 %v6011_v56, %s6502_s26  ;;  %6017 = vrot.lane.b32.xlu2 %v6016_v13, %s6503_s15  ;;  %v3159_v56 = vld [vmem:[%s11031_s2 + $0x38] sm:$0xff]  ;;  %v2010_v13 = vrot.slane %v7637_v11, 1  ;;  %11286 = vst [vmem:[#allocation59_spill] sm:$0xff] %v7661_v22  ;;  %v6036_v21 = vpack.i.bf16 %v7661_v22, %v2091_v57  ;;  %v6031_v57 = vpack.i.bf16 %v7488_v49, %v7604_v7 }
 0x1b2   : > { %3292 = vmatpush.msrb.mxu2 %v3159_v56  ;;  %v3158_v56 = vld [vmem:[%s11031_s2 + $0x30] sm:$0xff]  ;;  %11288 = vst [vmem:[#allocation61_spill] sm:$0xff] %v7693_v43  ;;  %v1336_v18 = vand.u32 15, %v7693_v43  ;;  %3407 = vmatpush.msrb.mxu3 %v3173_v29  ;;  %v1886_v29 = vrot.slane %v7637_v11, 7 }
 0x1b3   : > { %v7677_v14 = vsel %vm1992_vm7, %v2008_v63, %v2010_v13  ;;  %v2131_v63 = vmul.f32 %v7669_v41, %v7599_v33  ;;  %11289 = vst [vmem:[#allocation62_spill] sm:$0xff] %v7702_v59 }
 0x1b4   : > { %3293 = vmatpush.msrb.mxu2 %v3158_v56  ;;  %vm1656_vm4 = vcmp.ge.s32.totalorder %v1336_v18, 1  ;;  %v7745_v33 = vsel %vm1868_vm8, %v1884_v10, %v1886_v29 }
 0x1b5   : > { %v6046_v30 = vpack.i.bf16 %v7577_v61, %v2131_v63  ;;  %v3157_v63 = vld [vmem:[%s11031_s2 + $0x28] sm:$0xff]  ;;  %11295 = vst [vmem:[#allocation68_spill] sm:$0xff] %v7745_v33 }
 0x1b6   : > { %3294 = vmatpush.msrb.mxu2 %v3157_v63 }
 0x1b7   : > { %6027 = vrot.lane.b32.xlu0 %v6026_v3, %s6501_s30  ;;  %v5757_v3 = vsel %vm1749_vm3, 1.0, %v11274_v16 }
 0x1b8   : > { %5776 = vmatmul.msk.f32.gmra.mxu0 %vm919_vm2, %v7677_v14  ;;  %v2093_v18 = vmul.f32 %v5757_v3, %v7548_v12 }
 0x1b9   : > { %6037 = vrot.lane.b32.xlu1 %v6036_v21, %s6502_s26  ;;  %6022 = vrot.lane.b32.xlu2 %v6021_v0, %s6503_s15  ;;  %v2202_v21 = vmul.f32 %v7669_v41, %v7672_v58  ;;  %v7699_v0 = vsel %vm1992_vm7, %v2010_v13, %v2012_v47  ;;  %v7713_v13 = vmax.f32 %v7322_v52, 0.0  ;;  %v7728_v52 = vadd.s32 72, %v7317_v19 }
 0x1ba   : > { %v2235_v32 = vmul.f32 %v5757_v3, %v7699_v0  ;;  %v6066_v12 = vpack.i.bf16 %v7745_v33, %v2093_v18 }
 0x1bb   : > { %v6041_v56 = vpack.i.bf16 %v2202_v21, %v7527_v51  ;;  %11290 = vst [vmem:[#allocation63_spill] sm:$0xff] %v7713_v13  ;;  %v1322_v51 = vand.u32 15, %v7702_v59  ;;  %v7720_v21 = vsel %vm1656_vm4, 1.0, %v11274_v16  ;;  %v1888_v59 = vrot.slane %v7656_v45, 7 }
 0x1bc   : > { %11291 = vst [vmem:[#allocation64_spill] sm:$0xff] %v7728_v52  ;;  %v1329_v63 = vand.u32 15, %v7728_v52  ;;  %v3156_v52 = vld [vmem:[%s11031_s2 + $0x20] sm:$0xff] }
 0x1bd   : > { %vm1654_vm5 = vcmp.ge.s32.totalorder %v1322_v51, 1  ;;  %v1889_v10 = vsel %vm1868_vm8, %v1886_v29, %v1888_v59  ;;  %3295 = vmatpush.msrb.mxu2 %v3156_v52  ;;  %v1890_v52 = vrot.slane %v7713_v13, 7 }
 0x1be   : > { %v7757_v51 = vsel %vm1654_vm5, 1.0, %v11274_v16  ;;  %vm1751_vm9 = vcmp.le.s32.totalorder %v1329_v63, 14  ;;  %v7800_v63 = vmax.f32 %v7328_v34, 0.0  ;;  %v7815_v34 = vadd.s32 88, %v7317_v19 }
 0x1bf   : > { %6032 = vrot.lane.b32.xlu0 %v6031_v57, %s6501_s30  ;;  %v2169_v57 = vmul.f32 %v5757_v3, %v7627_v20  ;;  %v3172_v3 = vld [vmem:[%s11031_s2 + $0xa0] sm:$0xff]  ;;  %11296 = vst [vmem:[#allocation69_spill] sm:$0xff] %v7757_v51  ;;  %v7831_v37 = vsel %vm1868_vm8, %v1888_v59, %v1890_v52 }
 0x1c0   : > { %5777 = vmatmul.msk.f32.gmra.mxu0 %vm919_vm2, %v2235_v32  ;;  %v2014_v32 = vrot.slane %v7713_v13, 1  ;;  %3408 = vmatpush.msrb.mxu3 %v3172_v3  ;;  %v6061_v3 = vpack.i.bf16 %v7561_v17, %v7677_v14  ;;  %11299 = vst [vmem:[#allocation72_spill] sm:$0xff] %v7800_v63 }
 0x1c1   : > { %6042 = vrot.lane.b32.xlu1 %v6041_v56, %s6502_s26  ;;  %6047 = vrot.lane.b32.xlu2 %v6046_v30, %s6503_s15  ;;  %v7732_v30 = vmul.f32 %v7720_v21, %v7672_v58  ;;  %v7736_v56 = vmax.f32 %v7325_v6, 0.0  ;;  %v6056_v43 = vpack.i.bf16 %v7506_v44, %v2169_v57  ;;  %v6051_v6 = vpack.i.bf16 %v7637_v11, %v7661_v22  ;;  %v3171_v22 = vld [vmem:[%s11031_s2 + $0x98] sm:$0xff] }
 0x1c2   : > { %v1350_v57 = vand.u32 15, %v7742_v55  ;;  %3409 = vmatpush.msrb.mxu3 %v3171_v22  ;;  %v3155_v22 = vld [vmem:[%s11031_s2 + $0x18] sm:$0xff]  ;;  %11301 = vst [vmem:[#allocation73_spill] sm:$0xff] %v7815_v34 }
 0x1c3   : > { %11292 = vst [vmem:[#allocation65_spill] sm:$0xff] %v7732_v30  ;;  %v2016_v18 = vrot.slane %v7736_v56, 1  ;;  %v7789_v30 = vadd.s32 112, %v7317_v19  ;;  %3296 = vmatpush.msrb.mxu2 %v3155_v22 }
 0x1c4   : > { %11293 = vst [vmem:[#allocation66_spill] sm:$0xff] %v7736_v56  ;;  %vm1658_vm6 = vcmp.ge.s32.totalorder %v1350_v57, 1  ;;  %v5758_v57 = vsel %vm1751_vm9, 1.0, %v11274_v16 }
 0x1c5   : > { %v7772_v29 = vsel %vm1658_vm6, 1.0, %v11274_v16  ;;  %v7784_v55 = vsel %vm1992_vm7, %v2014_v32, %v2016_v18  ;;  %11298 = vst [vmem:[#allocation71_spill] sm:$0xff] %v7789_v30  ;;  %vm3023_vm6 = vcmask 785408  }
 0x1c6   : > { %11304 = vst [vmem:[#allocation76_spill] sm:$0xff] %v7831_v37 }
 0x1c7   : > { %6057 = vrot.lane.b32.xlu0 %v6056_v43, %s6501_s30  ;;  %v7763_v43 = vsel %vm1992_vm7, %v2012_v47, %v2014_v32  ;;  %v2133_v47 = vmul.f32 %v7757_v51, %v7672_v58  ;;  %v2237_v32 = vmul.f32 %v5758_v57, %v7784_v55 }
 0x1c8   : > { %5778 = vmatmul.msk.f32.gmra.mxu0 %vm919_vm2, %v7763_v43 }
 0x1c9   : > { %6067 = vrot.lane.b32.xlu1 %v6066_v12, %s6502_s26  ;;  %6052 = vrot.lane.b32.xlu2 %v6051_v6, %s6503_s15  ;;  %v2204_v12 = vmul.f32 %v7757_v51, %v1889_v10  ;;  %v7778_v6 = vmul.f32 %v7772_v29, %v1889_v10  ;;  %v1364_v51 = vand.u32 15, %v7789_v30 }
 0x1cb   : > { %11297 = vst [vmem:[#allocation70_spill] sm:$0xff] %v7778_v6  ;;  %v6071_v58 = vpack.i.bf16 %v2204_v12, %v7604_v7  ;;  %v6076_v6 = vpack.i.bf16 %v7656_v45, %v2133_v47  ;;  %v2171_v7 = vmul.f32 %v5758_v57, %v7699_v0  ;;  %v11300_v12 = vrot.slane %v7736_v56, 7 }
 0x1cc   : > { %vm1660_vm10 = vcmp.ge.s32.totalorder %v1364_v51, 1  ;;  %v1343_v51 = vand.u32 15, %v7815_v34 }
 0x1cd   : > { %v7808_v47 = vsel %vm1868_vm8, %v1890_v52, %v11300_v12  ;;  %v7826_v12 = vmax.f32 %v7331_v42, 0.0  ;;  %v6086_v30 = vpack.i.bf16 %v7577_v61, %v2171_v7  ;;  %v3170_v42 = vld [vmem:[%s11031_s2 + $0x90] sm:$0xff]  ;;  %v1894_v52 = vrot.slane %v7800_v63, 7 }
 0x1ce   : > { %v3154_v7 = vld [vmem:[%s11031_s2 + $0x10] sm:$0xff]  ;;  %3410 = vmatpush.msrb.mxu3 %v3170_v42  ;;  %vm1753_vm11 = vcmp.le.s32.totalorder %v1343_v51, 14  ;;  %v2206_v22 = vmul.f32 %v7720_v21, %v7808_v47  ;;  %v6091_v42 = vpack.i.bf16 %v7637_v11, %v7763_v43 }
 0x1cf   : > { %6062 = vrot.lane.b32.xlu0 %v6061_v3, %s6501_s30  ;;  %v7819_v3 = vsel %vm1660_vm10, 1.0, %v11274_v16  ;;  %11303 = vst [vmem:[#allocation75_spill] sm:$0xff] %v7826_v12  ;;  %3297 = vmatpush.msrb.mxu2 %v3154_v7  ;;  %v5759_v51 = vsel %vm1753_vm11, 1.0, %v11274_v16 }
 0x1d0   : > { %5779 = vmatmul.msk.f32.gmra.mxu0 %vm919_vm2, %v2237_v32  ;;  %v2018_v32 = vrot.slane %v7800_v63, 1 }
 0x1d1   : > { %6072 = vrot.lane.b32.xlu1 %v6071_v58, %s6502_s26  ;;  %6077 = vrot.lane.b32.xlu2 %v6076_v6, %s6503_s15  ;;  %v2095_v6 = vmul.f32 %v5758_v57, %v7627_v20  ;;  %v7823_v58 = vmul.f32 %v7819_v3, %v7808_v47  ;;  %v6081_v57 = vpack.i.bf16 %v7713_v13, %v7745_v33  ;;  %v3153_v33 = vld [vmem:[%s11031_s2 + $0x8] sm:$0xff] }
 0x1d2   : > { %v7847_v59 = vsel %vm1992_vm7, %v2016_v18, %v2018_v32  ;;  %v3169_v18 = vld [vmem:[%s11031_s2 + $0x88] sm:$0xff]  ;;  %3298 = vmatpush.msrb.mxu2 %v3153_v33  ;;  %v2097_v33 = vmul.f32 %v5759_v51, %v7699_v0  ;;  %v1248_v0 = vadd.s32 144, %v7317_v19 }
 0x1d3   : > { %11302 = vst [vmem:[#allocation74_spill] sm:$0xff] %v7823_v58  ;;  %v6096_v20 = vpack.i.bf16 %v7831_v37, %v2095_v6  ;;  %v2135_v6 = vmul.f32 %v7720_v21, %v1889_v10  ;;  %3411 = vmatpush.msrb.mxu3 %v3169_v18  ;;  %v6101_v21 = vpack.i.bf16 %v2206_v22, %v7677_v14 }
 0x1d5   : > { %v6106_v10 = vpack.i.bf16 %v7736_v56, %v2135_v6  ;;  %v2173_v6 = vmul.f32 %v5759_v51, %v7784_v55 }
 0x1d7   : > { %6087 = vrot.lane.b32.xlu0 %v6086_v30, %s6501_s30  ;;  %v2020_v30 = vrot.slane %v7826_v12, 1 }
 0x1d8   : > { %5780 = vmatmul.msk.f32.gmra.mxu0 %vm919_vm2, %v7847_v59 }
 0x1d9   : > { %6097 = vrot.lane.b32.xlu1 %v6096_v20, %s6502_s26  ;;  %6082 = vrot.lane.b32.xlu2 %v6081_v57, %s6503_s15  ;;  %v11144_v20 = vrot.slane %v7826_v12, 7  ;;  %v1246_v57 = vadd.s32 128, %v7317_v19  ;;  %v7865_v7 = vsel %vm1992_vm7, %v2018_v32, %v2020_v30  ;;  %v7879_v32 = vmax.f32 %v7334_v1, 0.0 }
 0x1da   : > { %v2239_v14 = vmul.f32 %v5759_v51, %v7865_v7  ;;  %v7893_v1 = vadd.s32 104, %v7317_v19  ;;  %v11307_v51 = vrot.slane %v7736_v56, 7 }
 0x1db   : > { %v1378_v34 = vand.u32 15, %v1246_v57  ;;  %v7873_v58 = vsel %vm1868_vm8, %v1894_v52, %v11144_v20  ;;  %v7882_v57 = vmax.f32 %v7337_v48, 0.0 }
 0x1dc   : > { %11305 = vst [vmem:[#allocation77_spill] sm:$0xff] %v7893_v1  ;;  %v7914_v20 = vsel %vm1868_vm8, %v11307_v51, %v1894_v52  ;;  %v1357_v18 = vand.u32 15, %v7893_v1  ;;  %v2137_v51 = vmul.f32 %v7772_v29, %v7808_v47 }
 0x1dd   : > { %vm1662_vm12 = vcmp.ge.s32.totalorder %v1378_v34, 1  ;;  %v1898_v34 = vrot.slane %v7879_v32, 7  ;;  %11308 = vst [vmem:[#allocation79_spill] sm:$0xff] %v7914_v20 }
 0x1de   : > { %v7886_v22 = vsel %vm1662_vm12, 1.0, %v11274_v16  ;;  %vm1755_vm14 = vcmp.le.s32.totalorder %v1357_v18, 14  ;;  %v7951_v18 = vmax.f32 %v7349_v50, 0.0  ;;  %v6136_v47 = vpack.i.bf16 %v7826_v12, %v2137_v51 }
 0x1df   : > { %6092 = vrot.lane.b32.xlu0 %v6091_v42, %s6501_s30  ;;  %v7897_v48 = vmul.f32 %v7886_v22, %v7873_v58  ;;  %v3152_v42 = vld [vmem:[%s11031_s2] sm:$0xff] }
 0x1e0   : > { %5781 = vmatmul.msk.f32.gmra.mxu0 %vm919_vm2, %v2239_v14  ;;  %v2022_v14 = vrot.slane %v7879_v32, 1  ;;  %3299 = vmatpush.msrb.mxu2 %v3152_v42  ;;  %v11309_v42 = vrot.slane %v7882_v57, 7  ;;  %v11152_v50 = vrot.slane %v7951_v18, 7 }
 0x1e1   : > { %6102 = vrot.lane.b32.xlu1 %v6101_v21, %s6502_s26  ;;  %6107 = vrot.lane.b32.xlu2 %v6106_v10, %s6503_s15  ;;  %11306 = vst [vmem:[#allocation78_spill] sm:$0xff] %v7897_v48  ;;  %v3168_v21 = vld [vmem:[%s11031_s2 + $0x80] sm:$0xff]  ;;  %v6116_v10 = vpack.i.bf16 %v7656_v45, %v2173_v6  ;;  %v6126_v48 = vpack.i.bf16 %v7914_v20, %v2097_v33  ;;  %v1392_v45 = vand.u32 15, %v1248_v0 }
 0x1e2   : > { %3412 = vmatpush.msrb.mxu3 %v3168_v21  ;;  %v6111_v6 = vpack.i.bf16 %v7800_v63, %v7831_v37  ;;  %v7924_v21 = vsel %vm1868_vm8, %v1898_v34, %v11309_v42  ;;  %v7929_v52 = vsel %vm1992_vm7, %v2020_v30, %v2022_v14  ;;  %v5760_v42 = vsel %vm1755_vm14, 1.0, %v11274_v16 }
 0x1e3   : > { %vm1664_vm13 = vcmp.ge.s32.totalorder %v1392_v45, 1  ;;  %v7948_v45 = vmax.f32 %v7346_v39, 0.0  ;;  %v2175_v37 = vmul.f32 %v5760_v42, %v7865_v7  ;;  %v2099_v51 = vmul.f32 %v5760_v42, %v7784_v55 }
 0x1e4   : > { %v7935_v33 = vsel %vm1664_vm13, 1.0, %v11274_v16 }
 0x1e5   : > { %v7945_v30 = vmul.f32 %v7935_v33, %v7924_v21 }
 0x1e7   : > { %6117 = vrot.lane.b32.xlu0 %v6116_v10, %s6501_s30  ;;  %v2024_v10 = vrot.slane %v7882_v57, 1  ;;  %11310 = vst [vmem:[#allocation80_spill] sm:$0xff] %v7945_v30  ;;  %v1902_v30 = vrot.slane %v7948_v45, 7 }
 0x1e8   : > { %5782 = vmatmul.msk.f32.gmra.mxu0 %vm919_vm2, %v7929_v52 }
 0x1e9   : > { %6127 = vrot.lane.b32.xlu1 %v6126_v48, %s6502_s26  ;;  %6112 = vrot.lane.b32.xlu2 %v6111_v6, %s6503_s15  ;;  %v2208_v48 = vmul.f32 %v7772_v29, %v7873_v58  ;;  %v6121_v6 = vpack.i.bf16 %v7713_v13, %v7847_v59  ;;  %v7957_v1 = vsel %vm1992_vm7, %v2022_v14, %v2024_v10  ;;  %v1250_v14 = vadd.s32 160, %v7317_v19 }
 0x1ea   : > { %v2241_v39 = vmul.f32 %v5760_v42, %v7957_v1  ;;  %v2026_v13 = vrot.slane %v7948_v45, 1 }
 0x1eb   : > { %v7937_v0 = vpop.permute.xlu2 %5967  ;;  %v6131_v29 = vpack.i.bf16 %v2208_v48, %v7763_v43  ;;  %v7971_v43 = vadd.s32 120, %v7317_v19 }
 0x1ed   : > { %11311 = vst [vmem:[#allocation81_spill] sm:$0xff] %v7971_v43  ;;  %v1371_v61 = vand.u32 15, %v7971_v43  ;;  %v8026_v43 = vpop.f32.mrf.mxu3 }
 0x1ee   : > { %11315 = vst [vmem:[#allocation84_spill] sm:$0xff] %v8026_v43 }
 0x1ef   : > { %6122 = vrot.lane.b32.xlu0 %v6121_v6, %s6501_s30  ;;  %v1406_v6 = vand.u32 15, %v1250_v14  ;;  %vm1757_vm3 = vcmp.le.s32.totalorder %v1371_v61, 14 }
 0x1f0   : > { %5783 = vmatmul.msk.f32.gmra.mxu0 %vm919_vm2, %v2241_v39  ;;  %v11312_v39 = vrot.slane %v7826_v12, 7 }
 0x1f1   : > { %6132 = vrot.lane.b32.xlu1 %v6131_v29, %s6502_s26  ;;  %6137 = vrot.lane.b32.xlu2 %v6136_v47, %s6503_s15  ;;  %v7979_v29 = vsel %vm1868_vm8, %v1902_v30, %v11152_v50  ;;  %v6146_v47 = vpack.i.bf16 %v7736_v56, %v2175_v37  ;;  %vm1666_vm15 = vcmp.ge.s32.totalorder %v1406_v6, 1  ;;  %v6141_v37 = vpack.i.bf16 %v7879_v32, %v7914_v20 }
 0x1f2   : > { %v7986_v11 = vsel %vm1868_vm8, %v11312_v39, %v1898_v34  ;;  %v7990_v55 = vsel %vm1666_vm15, 1.0, %v11274_v16  ;;  %v8003_v34 = vsel %vm1992_vm7, %v2024_v10, %v2026_v13  ;;  %v2028_v6 = vrot.slane %v7951_v18, 1 }
 0x1f3   : > { %v7973_v48 = vpop.permute.xlu2 %5972  ;;  %11313 = vst [vmem:[#allocation82_spill] sm:$0xff] %v7986_v11  ;;  %v6156_v42 = vpack.i.bf16 %v7986_v11, %v2099_v51  ;;  %v7998_v14 = vmul.f32 %v7990_v55, %v7979_v29  ;;  %v2139_v39 = vmul.f32 %v7819_v3, %v7873_v58  ;;  %v8018_v10 = vmax.f32 %v7355_v36, 0.0 }
 0x1f4   : > { %v5761_v50 = vsel %vm1757_vm3, 1.0, %v11274_v16  ;;  %v8024_v61 = vsel %vm1992_vm7, %v2026_v13, %v2028_v6 }
 0x1f5   : > { %11314 = vst [vmem:[#allocation83_spill] sm:$0xff] %v7998_v14  ;;  %v1252_v14 = vadd.s32 176, %v7317_v19  ;;  %v2243_v36 = vmul.f32 %v5761_v50, %v8024_v61  ;;  %v2177_v13 = vmul.f32 %v5761_v50, %v7957_v1  ;;  %v11161_v20 = vrot.slane %v8018_v10, 7 }
 0x1f7   : > { %6147 = vrot.lane.b32.xlu0 %v6146_v47, %s6501_s30  ;;  %v2210_v47 = vmul.f32 %v7819_v3, %v7924_v21  ;;  %v6166_v3 = vpack.i.bf16 %v7882_v57, %v2139_v39 }
 0x1f8   : > { %5784 = vmatmul.msk.f32.gmra.mxu0 %vm919_vm2, %v8003_v34 }
 0x1f9   : > { %6157 = vrot.lane.b32.xlu1 %v6156_v42, %s6502_s26  ;;  %6142 = vrot.lane.b32.xlu2 %v6141_v37, %s6503_s15  ;;  %v8015_v42 = vmax.f32 %v7352_v62, 0.0  ;;  %v6151_v37 = vpack.i.bf16 %v7800_v63, %v7929_v52  ;;  %v6161_v62 = vpack.i.bf16 %v2210_v47, %v7847_v59  ;;  %v1247_v59 = vadd.s32 136, %v7317_v19 }
 0x1fa   : > { %v1420_v47 = vand.u32 15, %v1252_v14  ;;  %v2101_v63 = vmul.f32 %v5761_v50, %v7865_v7  ;;  %v6171_v50 = vpack.i.bf16 %v7948_v45, %v7986_v11 }
 0x1fb   : > { %v8008_v51 = vpop.permute.xlu2 %5987  ;;  %v11162_v43 = vrot.slane %v8015_v42, 7  ;;  %v1385_v17 = vand.u32 15, %v1247_v59 }
 0x1fc   : > { %vm1668_vm4 = vcmp.ge.s32.totalorder %v1420_v47, 1 }
 0x1fd   : > { %v8052_v56 = vsel %vm1868_vm8, %v11162_v43, %v11161_v20  ;;  %v1959_v20 = vmul.f32 0.0, %v7451_v4  ;;  %v8068_v43 = vpop.f32.mrf.mxu3  ;;  %vm1759_vm5 = vcmp.le.s32.totalorder %v1385_v17, 14 }
 0x1fe   : > { %11318 = vst [vmem:[#allocation86_spill] sm:$0xff] %v8068_v43 }
 0x1ff   : > { %6152 = vrot.lane.b32.xlu0 %v6151_v37, %s6501_s30 }
 0x200   : > { %5785 = vmatmul.msk.f32.gmra.mxu0 %vm919_vm2, %v2243_v36  ;;  %v11316_v36 = vrot.slane %v7882_v57, 7 }
 0x201   : > { %v8033_v58 = vpop.permute.xlu0 %5947  ;;  %6162 = vrot.lane.b32.xlu1 %v6161_v62, %s6502_s26  ;;  %6167 = vrot.lane.b32.xlu2 %v6166_v3, %s6503_s15  ;;  %v6176_v62 = vpack.i.bf16 %v7826_v12, %v2177_v13  ;;  %v2030_v3 = vrot.slane %v8015_v42, 1  ;;  %v8065_v12 = vsel %vm1668_vm4, 1.0, %v11274_v16 }
 0x202   : > { %v8057_v14 = vsel %vm1868_vm8, %v11316_v36, %v1902_v30  ;;  %11317 = vst [vmem:[#allocation85_spill] sm:$0xff] %v8065_v12  ;;  %v5950_v30 = vunpack.i.h.bf16 %v8033_v58  ;;  %v5949_v59 = vunpack.i.l.bf16 %v8033_v58  ;;  %v8074_v47 = vmul.f32 %v8065_v12, %v8052_v56 }
 0x203   : > { %v5958_v39 = vpop.permute.xlu1 %5957  ;;  %v8042_v37 = vpop.permute.xlu2 %5992  ;;  %v6186_v7 = vpack.i.bf16 %v8057_v14, %v2101_v63  ;;  %v8077_v63 = vmax.f32 %v7358_v2, 0.0  ;;  %v8082_v4 = vsel %vm1992_vm7, %v2028_v6, %v2030_v3  ;;  %v2212_v58 = vmul.f32 %v7886_v22, %v7979_v29 }
 0x204   : > { %11319 = vst [vmem:[#allocation87_spill] sm:$0xff] %v8074_v47  ;;  %v8089_v2 = vmax.f32 %v7361_v27, 0.0  ;;  %v5960_v43 = vunpack.i.h.bf16 %v5958_v39  ;;  %v2141_v6 = vmul.f32 %v7886_v22, %v7924_v21  ;;  %v5959_v11 = vunpack.i.l.bf16 %v5958_v39 }
 0x205   : > { %v2959_v17 = vsel %vm919_vm2, %v1959_v20, %v5949_v59  ;;  %v3056_v27 = vsel %vm919_vm2, %v7428_v26, %v5950_v30  ;;  %v5762_v22 = vsel %vm1759_vm5, 1.0, %v11274_v16  ;;  %v6181_v39 = vpack.i.bf16 %v7879_v32, %v8003_v34 }
 0x206   : > { %v6196_v26 = vpack.i.bf16 %v7951_v18, %v2141_v6  ;;  %v11170_v20 = vrot.slane %v8077_v63, 7  ;;  %v1254_v30 = vadd.s32 192, %v7317_v19  ;;  %v1249_v6 = vadd.s32 152, %v7317_v19 }
 0x207   : > { %6177 = vrot.lane.b32.xlu0 %v6176_v62, %s6501_s30 }
 0x208   : > { %5786 = vmatmul.msk.f32.gmra.mxu0 %vm919_vm2, %v8082_v4 }
 0x209   : > { %v5953_v62 = vpop.permute.xlu0 %5952  ;;  %6187 = vrot.lane.b32.xlu1 %v6186_v7, %s6502_s26  ;;  %6172 = vrot.lane.b32.xlu2 %v6171_v50, %s6503_s15  ;;  %v11320_v50 = vrot.slane %v8018_v10, 1 }
 0x20a   : > { %v5955_v36 = vunpack.i.h.bf16 %v5953_v62  ;;  %v5954_v13 = vunpack.i.l.bf16 %v5953_v62 }
 0x20b   : > { %v8091_v47 = vpop.permute.xlu1 %5962  ;;  %v8093_v7 = vpop.permute.xlu2 %6017  ;;  %v8100_v62 = vsel %vm1992_vm7, %v2030_v3, %v11320_v50  ;;  %v6191_v50 = vpack.i.bf16 %v2212_v58, %v7929_v52  ;;  %v2179_v52 = vmul.f32 %v5762_v22, %v8024_v61 }
 0x20c   : > { %v5964_v12 = vunpack.i.l.bf16 %v8091_v47  ;;  %v2991_v44 = vsel %vm594_vm0, %v2959_v17, %v5954_v13  ;;  %v3088_v41 = vsel %vm594_vm0, %v3056_v27, %v5955_v36  ;;  %v11169_v13 = vrot.slane %v8089_v2, 7 }
 0x20d   : > { %v3024_v21 = vsel %vm3023_vm6, %v2991_v44, %v5959_v11  ;;  %v3120_v3 = vsel %vm3023_vm6, %v3088_v41, %v5960_v43  ;;  %v2245_v44 = vmul.f32 %v5762_v22, %v8100_v62  ;;  %v2960_v11 = vsel %vm919_vm2, 0.0, %v5949_v59 }
 0x20e   : > { %3300 = vmatmul.f32.vlgmr.msrb.gmra.mxu2 %v3024_v21  ;;  %3413 = vmatmul.f32.vlgmr.msrb.gmra.mxu3 %v3120_v3  ;;  %v3057_v41 = vsel %vm919_vm2, %v7430_v46, %v5964_v12  ;;  %v5970_v43 = vunpack.i.h.bf16 %v7937_v0  ;;  %v5969_v36 = vunpack.i.l.bf16 %v7937_v0  ;;  %v1434_v17 = vand.u32 15, %v1254_v30  ;;  %v8137_v12 = vpop.f32.mrf.mxu3 }
 0x20f   : > { %6182 = vrot.lane.b32.xlu0 %v6181_v39, %s6501_s30  ;;  %v8132_v59 = vmax.f32 %v7364_v40, 0.0  ;;  %v8135_v46 = vmax.f32 %v7367_v23, 0.0  ;;  %11321 = vst [vmem:[#allocation88_spill] sm:$0xff] %v8137_v12  ;;  %v2103_v0 = vmul.f32 %v5762_v22, %v7957_v1  ;;  %v8150_v40 = vsel %vm1868_vm8, %v11170_v20, %v11169_v13 }
 0x210   : > { %5787 = vmatmul.msk.f32.gmra.mxu0 %vm919_vm2, %v2245_v44  ;;  %v2992_v3 = vsel %vm594_vm0, %v2960_v11, %v5969_v36  ;;  %v3089_v39 = vsel %vm594_vm0, %v3057_v41, %v5970_v43  ;;  %vm1670_vm9 = vcmp.ge.s32.totalorder %v1434_v17, 1  ;;  %v5975_v23 = vunpack.i.h.bf16 %v7973_v48 }
 0x211   : > { %v8126_v58 = vpop.permute.xlu0 %5977  ;;  %6192 = vrot.lane.b32.xlu1 %v6191_v50, %s6502_s26  ;;  %6197 = vrot.lane.b32.xlu2 %v6196_v26, %s6503_s15  ;;  %v5974_v50 = vunpack.i.l.bf16 %v7973_v48  ;;  %v11322_v22 = vrot.slane %v8015_v42, 7  ;;  %v11323_v26 = vrot.slane %v7951_v18, 7  ;;  %v6206_v44 = vpack.i.bf16 %v7882_v57, %v2179_v52 }
 0x212   : > { %v5979_v1 = vunpack.i.l.bf16 %v8126_v58  ;;  %v2034_v11 = vrot.slane %v8077_v63, 1  ;;  %v1399_v41 = vand.u32 15, %v1249_v6  ;;  %v8165_v43 = vsel %vm1670_vm9, 1.0, %v11274_v16 }
 0x213   : > { %v5983_v27 = vpop.permute.xlu1 %5982  ;;  %v8141_v21 = vpop.permute.xlu2 %6022  ;;  %v8160_v30 = vsel %vm1868_vm8, %v11323_v26, %v11322_v22  ;;  %v5965_v36 = vunpack.i.h.bf16 %v8091_v47  ;;  %v3025_v48 = vsel %vm3023_vm6, %v2992_v3, %v5974_v50  ;;  %v3121_v17 = vsel %vm3023_vm6, %v3089_v39, %v5975_v23 }
 0x214   : > { %v8172_v13 = vmul.f32 %v8165_v43, %v8150_v40  ;;  %v5985_v22 = vunpack.i.h.bf16 %v5983_v27  ;;  %v5984_v26 = vunpack.i.l.bf16 %v5983_v27  ;;  %v6216_v52 = vpack.i.bf16 %v8160_v30, %v2103_v0 }
 0x215   : > { %v6201_v6 = vpack.i.bf16 %v8015_v42, %v8057_v14  ;;  %v3058_v47 = vsel %vm919_vm2, %v7399_v54, %v5979_v1  ;;  %v11324_v27 = vrot.slane %v8018_v10, 1  ;;  %v2214_v0 = vmul.f32 %v7935_v33, %v8052_v56 }
 0x216   : > { %3303 = vmatmul.f32.gmra.mxu2 %v3025_v48  ;;  %3416 = vmatmul.f32.gmra.mxu3 %v3121_v17  ;;  %v11174_v23 = vrot.slane %v8089_v2, 1  ;;  %v2961_v54 = vsel %vm919_vm2, %v7472_v5, %v5965_v36  ;;  %vm1761_vm10 = vcmp.le.s32.totalorder %v1399_v41, 14  ;;  %v11173_v1 = vrot.slane %v8135_v46, 7  ;;  %v8205_v20 = vpop.f32.mrf.mxu3 }
 0x217   : > { %6207 = vrot.lane.b32.xlu0 %v6206_v44, %s6501_s30  ;;  %v8187_v39 = vsel %vm1992_vm7, %v11324_v27, %v2034_v11  ;;  %v2993_v17 = vsel %vm594_vm0, %v2961_v54, %v5984_v26  ;;  %v1256_v27 = vadd.s32 208, %v7317_v19  ;;  %11325 = vst [vmem:[#allocation89_spill] sm:$0xff] %v8205_v20  ;;  %v5990_v5 = vunpack.i.h.bf16 %v8008_v51 }
 0x218   : > { %5788 = vmatmul.msk.f32.gmra.mxu0 %vm919_vm2, %v8187_v39  ;;  %v5989_v41 = vunpack.i.l.bf16 %v8008_v51  ;;  %v6211_v50 = vpack.i.bf16 %v7948_v45, %v8082_v4  ;;  %v6221_v26 = vpack.i.bf16 %v2214_v0, %v8003_v34  ;;  %v11326_v20 = vrot.slane %v8132_v59, 7 }
 0x219   : > { %v8180_v3 = vpop.permute.xlu0 %5997  ;;  %6217 = vrot.lane.b32.xlu1 %v6216_v52, %s6502_s26  ;;  %6202 = vrot.lane.b32.xlu2 %v6201_v6, %s6503_s15  ;;  %v3090_v52 = vsel %vm594_vm0, %v3058_v47, %v5985_v22  ;;  %v2143_v6 = vmul.f32 %v7935_v33, %v7979_v29  ;;  %v5763_v22 = vsel %vm1761_vm10, 1.0, %v11274_v16  ;;  %v8217_v33 = vsel %vm1992_vm7, %v2034_v11, %v11174_v23 }
 0x21a   : > { %v5999_v36 = vunpack.i.l.bf16 %v8180_v3  ;;  %v1448_v29 = vand.u32 15, %v1256_v27  ;;  %v5980_v47 = vunpack.i.h.bf16 %v8126_v58  ;;  %v3026_v54 = vsel %vm3023_vm6, %v2993_v17, %v5989_v41 }
 0x21b   : > { %v6008_v44 = vpop.permute.xlu1 %6007  ;;  %v8198_v48 = vpop.permute.xlu2 %6047  ;;  %v3122_v51 = vsel %vm3023_vm6, %v3090_v52, %v5990_v5  ;;  %v8227_v34 = vsel %vm1868_vm8, %v11326_v20, %v11173_v1  ;;  %v6226_v11 = vpack.i.bf16 %v8018_v10, %v2143_v6  ;;  %v2247_v58 = vmul.f32 %v5763_v22, %v8217_v33 }
 0x21c   : > { %v6010_v0 = vunpack.i.h.bf16 %v6008_v44  ;;  %v6009_v12 = vunpack.i.l.bf16 %v6008_v44  ;;  %vm1672_vm11 = vcmp.ge.s32.totalorder %v1448_v29, 1  ;;  %v3059_v17 = vsel %vm919_vm2, %v7409_v60, %v5999_v36 }
 0x21d   : > { %v8235_v52 = vsel %vm1672_vm11, 1.0, %v11274_v16  ;;  %v2181_v20 = vmul.f32 %v5763_v22, %v8100_v62  ;;  %v2105_v44 = vmul.f32 %v5763_v22, %v8024_v61  ;;  %v8249_v60 = vmax.f32 %v7370_v38, 0.0 }
 0x21e   : > { %3306 = vmatmul.f32.gmra.mxu2 %v3026_v54  ;;  %3419 = vmatmul.f32.gmra.mxu3 %v3122_v51  ;;  %v8246_v6 = vmul.f32 %v8235_v52, %v8227_v34  ;;  %v8252_v5 = vmax.f32 %v7373_v28, 0.0  ;;  %v2962_v41 = vsel %vm919_vm2, %v7504_v8, %v5980_v47  ;;  %v3091_v22 = vsel %vm594_vm0, %v3059_v17, %v6010_v0 }
 0x21f   : > { %6212 = vrot.lane.b32.xlu0 %v6211_v50, %s6501_s30  ;;  %v1251_v50 = vadd.s32 168, %v7317_v19  ;;  %v2994_v61 = vsel %vm594_vm0, %v2962_v41, %v6009_v12  ;;  %v11328_v29 = vrot.slane %v8077_v63, 7  ;;  %v11329_v38 = vrot.slane %v8018_v10, 7  ;;  %v8277_v41 = vpop.f32.mrf.mxu3 }
 0x220   : > { %11327 = vst [vmem:[#allocation90_spill] sm:$0xff] %v8246_v6  ;;  %5789 = vmatmul.msk.f32.gmra.mxu0 %vm919_vm2, %v2247_v58  ;;  %v6231_v28 = vpack.i.bf16 %v8077_v63, %v8160_v30  ;;  %v5995_v51 = vunpack.i.h.bf16 %v8042_v37  ;;  %v5994_v8 = vunpack.i.l.bf16 %v8042_v37  ;;  %v2038_v12 = vrot.slane %v8132_v59, 1 }
 0x221   : > { %v8237_v27 = vpop.permute.xlu0 %6002  ;;  %6222 = vrot.lane.b32.xlu1 %v6221_v26, %s6502_s26  ;;  %6227 = vrot.lane.b32.xlu2 %v6226_v11, %s6503_s15  ;;  %v8266_v54 = vsel %vm1868_vm8, %v11329_v38, %v11328_v29  ;;  %v6236_v0 = vpack.i.bf16 %v7951_v18, %v2181_v20  ;;  %v1413_v58 = vand.u32 15, %v1251_v50  ;;  %v2040_v17 = vrot.slane %v8135_v46, 1  ;;  %11330 = vst [vmem:[#allocation91_spill] sm:$0xff] %v8277_v41 }
 0x222   : > { %v6004_v47 = vunpack.i.l.bf16 %v8237_v27  ;;  %v6246_v11 = vpack.i.bf16 %v8266_v54, %v2105_v44  ;;  %v6000_v29 = vunpack.i.h.bf16 %v8180_v3  ;;  %v3027_v38 = vsel %vm3023_vm6, %v2994_v61, %v5994_v8 }
 0x223   : > { %v6013_v36 = vpop.permute.xlu1 %6012  ;;  %v8257_v26 = vpop.permute.xlu2 %6052  ;;  %v3123_v1 = vsel %vm3023_vm6, %v3091_v22, %v5995_v51  ;;  %v11178_v37 = vrot.slane %v8249_v60, 7  ;;  %v11176_v20 = vrot.slane %v8252_v5, 7  ;;  %v1258_v44 = vadd.s32 224, %v7317_v19 }
 0x224   : > { %v6015_v23 = vunpack.i.h.bf16 %v6013_v36  ;;  %v6014_v6 = vunpack.i.l.bf16 %v6013_v36  ;;  %v8286_v50 = vmax.f32 %v7376_v24, 0.0  ;;  %v11331_v3 = vrot.slane %v8089_v2, 1 }
 0x225   : > { %v1963_v22 = vmul.f32 %v7596_v25, %v7478_v53  ;;  %v2216_v24 = vmul.f32 %v7990_v55, %v8150_v40  ;;  %v2145_v51 = vmul.f32 %v7990_v55, %v8052_v56  ;;  %vm8306_vm12 = vcmp.le.s32.totalorder %v1413_v58, 14 }
 0x226   : > { %3309 = vmatmul.f32.gmra.mxu2 %v3027_v38  ;;  %3422 = vmatmul.f32.gmra.mxu3 %v3123_v1  ;;  %v8292_v61 = vsel %vm1992_vm7, %v11331_v3, %v2038_v12  ;;  %v3060_v1 = vsel %vm919_vm2, %v7423_v31, %v6004_v47  ;;  %v1462_v53 = vand.u32 15, %v1258_v44  ;;  %v8311_v25 = vmax.f32 %v7379_v35, 0.0 }
 0x227   : > { %6237 = vrot.lane.b32.xlu0 %v6236_v0, %s6501_s30  ;;  %v2963_v31 = vsel %vm919_vm2, %v1963_v22, %v6000_v29  ;;  %v8321_v56 = vsel %vm1992_vm7, %v2038_v12, %v2040_v17  ;;  %v3092_v35 = vsel %vm594_vm0, %v3060_v1, %v6015_v23  ;;  %v6020_v58 = vunpack.i.h.bf16 %v8093_v7 }
 0x228   : > { %5790 = vmatmul.msk.f32.gmra.mxu0 %vm919_vm2, %v8292_v61  ;;  %v2995_v0 = vsel %vm594_vm0, %v2963_v31, %v6014_v6  ;;  %vm1674_vm13 = vcmp.ge.s32.totalorder %v1462_v53, 1  ;;  %v6019_v12 = vunpack.i.l.bf16 %v8093_v7  ;;  %v5764_v6 = vsel %vm8306_vm12, 1.0, %v11274_v16 }
 0x229   : > { %v8298_v36 = vpop.permute.xlu0 %6027  ;;  %6247 = vrot.lane.b32.xlu1 %v6246_v11, %s6502_s26  ;;  %6232 = vrot.lane.b32.xlu2 %v6231_v28, %s6503_s15  ;;  %v6241_v28 = vpack.i.bf16 %v8015_v42, %v8187_v39  ;;  %v8332_v11 = vsel %vm1868_vm8, %v11178_v37, %v11176_v20  ;;  %v6251_v23 = vpack.i.bf16 %v2216_v24, %v8082_v4  ;;  %v8343_v44 = vsel %vm1674_vm13, 1.0, %v11274_v16 }
 0x22a   : > { %v6029_v29 = vunpack.i.l.bf16 %v8298_v36  ;;  %v6256_v38 = vpack.i.bf16 %v8089_v2, %v2145_v51  ;;  %v1260_v3 = vadd.s32 240, %v7317_v19  ;;  %v6005_v22 = vunpack.i.h.bf16 %v8237_v27  ;;  %v8355_v51 = vpop.f32.mrf.mxu3 }
 0x22b   : > { %v6038_v55 = vpop.permute.xlu1 %6037  ;;  %v8323_v47 = vpop.permute.xlu2 %6077  ;;  %v3028_v1 = vsel %vm3023_vm6, %v2995_v0, %v6019_v12  ;;  %v3124_v7 = vsel %vm3023_vm6, %v3092_v35, %v6020_v58  ;;  %v8351_v53 = vmul.f32 %v8343_v44, %v8332_v11  ;;  %v11177_v4 = vrot.slane %v8286_v50, 7  ;;  %11334 = vst [vmem:[#allocation92_spill] sm:$0xff] %v8355_v51 }
 0x22c   : > { %v6040_v8 = vunpack.i.h.bf16 %v6038_v55  ;;  %v6039_v31 = vunpack.i.l.bf16 %v6038_v55  ;;  %v11175_v24 = vrot.slane %v8311_v25, 7  ;;  %v2249_v27 = vmul.f32 %v5764_v6, %v8321_v56 }
 0x22d   : > { %v3061_v0 = vsel %vm919_vm2, %v7488_v49, %v6029_v29  ;;  %v2183_v55 = vmul.f32 %v5764_v6, %v8217_v33  ;;  %v1253_v58 = vadd.s32 184, %v7317_v19  ;;  %v1476_v12 = vand.u32 15, %v1260_v3 }
 0x22e   : > { %3312 = vmatmul.f32.gmra.mxu2 %v3028_v1  ;;  %3425 = vmatmul.f32.gmra.mxu3 %v3124_v7  ;;  %v2107_v1 = vmul.f32 %v5764_v6, %v8100_v62  ;;  %v6025_v3 = vunpack.i.h.bf16 %v8141_v21  ;;  %v11335_v6 = vrot.slane %v8132_v59, 7  ;;  %v11358_v41 = vrot.slane %v8252_v5, 7 }
 0x22f   : > { %6242 = vrot.lane.b32.xlu0 %v6241_v28, %s6501_s30  ;;  %v2964_v28 = vsel %vm919_vm2, %v7470_v9, %v6005_v22  ;;  %vm1676_vm14 = vcmp.ge.s32.totalorder %v1476_v12, 1  ;;  %v6024_v9 = vunpack.i.l.bf16 %v8141_v21  ;;  %v11336_v22 = vrot.slane %v8089_v2, 7 }
 0x230   : > { %5791 = vmatmul.msk.f32.gmra.mxu0 %vm919_vm2, %v2249_v27  ;;  %v2996_v29 = vsel %vm594_vm0, %v2964_v28, %v6039_v31  ;;  %v6266_v31 = vpack.i.bf16 %v8018_v10, %v2183_v55  ;;  %v2042_v27 = vrot.slane %v8249_v60, 1  ;;  %v8395_v12 = vsel %vm1676_vm14, 1.0, %v11274_v16 }
 0x231   : > { %v8361_v35 = vpop.permute.xlu0 %6032  ;;  %6252 = vrot.lane.b32.xlu1 %v6251_v23, %s6502_s26  ;;  %6257 = vrot.lane.b32.xlu2 %v6256_v38, %s6503_s15  ;;  %v3093_v23 = vsel %vm594_vm0, %v3061_v0, %v6040_v8  ;;  %v8380_v38 = vsel %vm1868_vm8, %v11177_v4, %v11175_v24  ;;  %v8390_v8 = vsel %vm1868_vm8, %v11336_v22, %v11335_v6  ;;  %v1427_v0 = vand.u32 15, %v1253_v58 }
 0x232   : > { %v6034_v62 = vunpack.i.l.bf16 %v8361_v35  ;;  %v6030_v28 = vunpack.i.h.bf16 %v8298_v36  ;;  %v3029_v21 = vsel %vm3023_vm6, %v2996_v29, %v6024_v9  ;;  %v3125_v24 = vsel %vm3023_vm6, %v3093_v23, %v6025_v3  ;;  %v11337_v36 = vld [vmem:[#allocation60_spill] sm:$0xff]  ;;  %v11338_v9 = vld [vmem:[#allocation47_spill] sm:$0xff] }
 0x233   : > { %v6043_v7 = vpop.permute.xlu1 %6042  ;;  %v8371_v49 = vpop.permute.xlu2 %6082  ;;  %v8402_v20 = vmul.f32 %v8395_v12, %v8380_v38  ;;  %v6276_v55 = vpack.i.bf16 %v8390_v8, %v2107_v1  ;;  %v6261_v58 = vpack.i.bf16 %v8132_v59, %v8266_v54  ;;  %v1965_v29 = vmul.f32 %v11337_v36, %v7522_v15 }
 0x234   : > { %v6045_v6 = vunpack.i.h.bf16 %v6043_v7  ;;  %v6044_v22 = vunpack.i.l.bf16 %v6043_v7  ;;  %v3062_v23 = vsel %vm919_vm2, %v11338_v9, %v6034_v62  ;;  %v11179_v1 = vrot.slane %v8252_v5, 1  ;;  %v8422_v7 = vpop.f32.mrf.mxu3 }
 0x235   : > { %11339 = vst [vmem:[#allocation60_spill] sm:$0xff] %v8422_v7  ;;  %v2965_v15 = vsel %vm919_vm2, %v1965_v29, %v6030_v28  ;;  %vm1765_vm15 = vcmp.le.s32.totalorder %v1427_v0, 14  ;;  %v6050_v9 = vunpack.i.h.bf16 %v8198_v48  ;;  %v6049_v4 = vunpack.i.l.bf16 %v8198_v48 }
 0x236   : > { %3315 = vmatmul.f32.gmra.mxu2 %v3029_v21  ;;  %3428 = vmatmul.f32.gmra.mxu3 %v3125_v24  ;;  %v8419_v24 = vsel %vm1992_vm7, %v2040_v17, %v2042_v27  ;;  %v2997_v21 = vsel %vm594_vm0, %v2965_v15, %v6044_v22  ;;  %v11340_v17 = vld [vmem:[#allocation85_spill] sm:$0xff]  ;;  %v5765_v0 = vsel %vm1765_vm15, 1.0, %v11274_v16  ;;  %v8442_v22 = vsel %vm1992_vm7, %v2042_v27, %v11179_v1 }
 0x237   : > { %6267 = vrot.lane.b32.xlu0 %v6266_v31, %s6501_s30  ;;  %v2147_v36 = vmul.f32 %v11340_v17, %v8150_v40  ;;  %v6035_v29 = vunpack.i.h.bf16 %v8361_v35  ;;  %v6271_v48 = vpack.i.bf16 %v8077_v63, %v8292_v61  ;;  %v2251_v1 = vmul.f32 %v5765_v0, %v8442_v22  ;;  %v11342_v35 = vld [vmem:[#allocation50_spill] sm:$0xff] }
 0x238   : > { %5792 = vmatmul.msk.f32.gmra.mxu0 %vm919_vm2, %v8419_v24  ;;  %v6291_v7 = vpack.i.bf16 %v8249_v60, %v8390_v8 }
 0x239   : > { %v8412_v3 = vpop.permute.xlu0 %6057  ;;  %6277 = vrot.lane.b32.xlu1 %v6276_v55, %s6502_s26  ;;  %6262 = vrot.lane.b32.xlu2 %v6261_v58, %s6503_s15  ;;  %v3094_v55 = vsel %vm594_vm0, %v3062_v23, %v6045_v6  ;;  %v2218_v58 = vmul.f32 %v11340_v17, %v8227_v34  ;;  %v8444_v6 = vpop.f32.mrf.mxu0  ;;  %v3030_v23 = vsel %vm3023_vm6, %v2997_v21, %v6049_v4 }
 0x23a   : > { %v6059_v28 = vunpack.i.l.bf16 %v8412_v3  ;;  %11341 = vst [vmem:[#allocation47_spill] sm:$0xff] %v8444_v6  ;;  %v3126_v40 = vsel %vm3023_vm6, %v3094_v55, %v6050_v9  ;;  %v6286_v27 = vpack.i.bf16 %v8135_v46, %v2147_v36  ;;  %v11370_v6 = vld [vmem:[#allocation66_spill] sm:$0xff] }
 0x23b   : > { %v6068_v62 = vpop.permute.xlu1 %6067  ;;  %v8427_v31 = vpop.permute.xlu2 %6107  ;;  %v6281_v37 = vpack.i.bf16 %v2218_v58, %v8187_v39  ;;  %v11343_v39 = vld [vmem:[#allocation53_spill] sm:$0xff]  ;;  %v1255_v58 = vadd.s32 200, %v7317_v19 }
 0x23c   : > { %v6070_v15 = vunpack.i.h.bf16 %v6068_v62  ;;  %v6069_v17 = vunpack.i.l.bf16 %v6068_v62  ;;  %v3063_v4 = vsel %vm919_vm2, %v11342_v35, %v6059_v28  ;;  %v2185_v62 = vmul.f32 %v5765_v0, %v8321_v56 }
 0x23d   : > { %v2966_v55 = vsel %vm919_vm2, %v11343_v39, %v6035_v29  ;;  %v11345_v35 = vrot.slane %v8249_v60, 7  ;;  %v11346_v39 = vrot.slane %v8135_v46, 7 }
 0x23e   : > { %3318 = vmatmul.f32.gmra.mxu2 %v3030_v23  ;;  %3431 = vmatmul.f32.gmra.mxu3 %v3126_v40  ;;  %v2998_v28 = vsel %vm594_vm0, %v2966_v55, %v6069_v17  ;;  %v3095_v23 = vsel %vm594_vm0, %v3063_v4, %v6070_v15  ;;  %v8471_v40 = vpop.f32.mrf.mxu3  ;;  %v6296_v29 = vpack.i.bf16 %v8089_v2, %v2185_v62  ;;  %v2046_v15 = vrot.slane %v8286_v50, 1 }
 0x23f   : > { %6272 = vrot.lane.b32.xlu0 %v6271_v48, %s6501_s30  ;;  %11344 = vst [vmem:[#allocation85_spill] sm:$0xff] %v8471_v40  ;;  %v6055_v48 = vunpack.i.h.bf16 %v8257_v26  ;;  %v8482_v17 = vsel %vm1868_vm8, %v11346_v39, %v11345_v35  ;;  %v11347_v39 = vld [vmem:[#allocation54_spill] sm:$0xff] }
 0x240   : > { %5793 = vmatmul.msk.f32.gmra.mxu0 %vm919_vm2, %v2251_v1  ;;  %v6054_v1 = vunpack.i.l.bf16 %v8257_v26  ;;  %v1441_v26 = vand.u32 15, %v1255_v58 }
 0x241   : > { %v8457_v21 = vpop.permute.xlu0 %6062  ;;  %6282 = vrot.lane.b32.xlu1 %v6281_v37, %s6502_s26  ;;  %6287 = vrot.lane.b32.xlu2 %v6286_v27, %s6503_s15  ;;  %v2109_v37 = vmul.f32 %v5765_v0, %v8217_v33  ;;  %v6060_v33 = vunpack.i.h.bf16 %v8412_v3  ;;  %v3127_v4 = vsel %vm3023_vm6, %v3095_v23, %v6055_v48  ;;  %v8491_v35 = vpop.f32.mrf.mxu0  ;;  %v11348_v3 = vld [vmem:[#allocation69_spill] sm:$0xff]  ;;  %v11183_v48 = vrot.slane %v8311_v25, 1 }
 0x242   : > { %v6064_v27 = vunpack.i.l.bf16 %v8457_v21  ;;  %v3031_v0 = vsel %vm3023_vm6, %v2998_v28, %v6054_v1  ;;  %v1967_v51 = vmul.f32 %v11348_v3, %v11347_v39  ;;  %v11349_v28 = vld [vmem:[#allocation52_spill] sm:$0xff]  ;;  %vm1767_vm3 = vcmp.le.s32.totalorder %v1441_v26, 14 }
 0x243   : > { %v6073_v36 = vpop.permute.xlu1 %6072  ;;  %v8466_v9 = vpop.permute.xlu2 %6112  ;;  %v6306_v62 = vpack.i.bf16 %v8482_v17, %v2109_v37  ;;  %v6080_v39 = vunpack.i.h.bf16 %v8323_v47  ;;  %v6079_v3 = vunpack.i.l.bf16 %v8323_v47 }
 0x244   : > { %v6075_v55 = vunpack.i.h.bf16 %v6073_v36  ;;  %v6074_v40 = vunpack.i.l.bf16 %v6073_v36  ;;  %v3064_v23 = vsel %vm919_vm2, %v11349_v28, %v6064_v27  ;;  %v11350_v36 = vrot.slane %v8252_v5, 1 }
 0x245   : > { %v2967_v1 = vsel %vm919_vm2, %v1967_v51, %v6060_v33  ;;  %v5766_v33 = vsel %vm1767_vm3, 1.0, %v11274_v16 }
 0x246   : > { %3321 = vmatmul.f32.gmra.mxu2 %v3031_v0  ;;  %3434 = vmatmul.f32.gmra.mxu3 %v3127_v4  ;;  %v8505_v37 = vsel %vm1992_vm7, %v11350_v36, %v2046_v15  ;;  %v2999_v0 = vsel %vm594_vm0, %v2967_v1, %v6074_v40  ;;  %v2220_v4 = vmul.f32 %v8165_v43, %v8332_v11  ;;  %v8528_v26 = vpop.f32.mrf.mxu3 }
 0x247   : > { %6297 = vrot.lane.b32.xlu0 %v6296_v29, %s6501_s30  ;;  %v8526_v40 = vsel %vm1992_vm7, %v2046_v15, %v11183_v48  ;;  %11351 = vst [vmem:[#allocation50_spill] sm:$0xff] %v8528_v26  ;;  %v3032_v28 = vsel %vm3023_vm6, %v2999_v0, %v6079_v3  ;;  %v11353_v3 = vld [vmem:[#allocation43_spill] sm:$0xff]  ;;  %v11356_v48 = vld [vmem:[#allocation44_spill] sm:$0xff] }
 0x248   : > { %5794 = vmatmul.msk.f32.gmra.mxu0 %vm919_vm2, %v8505_v37  ;;  %v6311_v36 = vpack.i.bf16 %v2220_v4, %v8292_v61  ;;  %v2253_v1 = vmul.f32 %v5766_v33, %v8526_v40  ;;  %v2187_v61 = vmul.f32 %v5766_v33, %v8442_v22  ;;  %v11355_v4 = vld [vmem:[#allocation59_spill] sm:$0xff]  ;;  %v8564_v26 = vmax.f32 %v11356_v48, 0.0 }
 0x249   : > { %v8498_v58 = vpop.permute.xlu0 %6087  ;;  %6307 = vrot.lane.b32.xlu1 %v6306_v62, %s6502_s26  ;;  %6292 = vrot.lane.b32.xlu2 %v6291_v7, %s6503_s15  ;;  %v3096_v7 = vsel %vm594_vm0, %v3064_v23, %v6075_v55  ;;  %v2149_v62 = vmul.f32 %v8165_v43, %v8227_v34  ;;  %v6065_v55 = vunpack.i.h.bf16 %v8457_v21  ;;  %v6301_v34 = vpack.i.bf16 %v8132_v59, %v8419_v24  ;;  %v11352_v21 = vld [vmem:[#allocation56_spill] sm:$0xff] }
 0x24a   : > { %v6089_v51 = vunpack.i.l.bf16 %v8498_v58  ;;  %v3128_v43 = vsel %vm3023_vm6, %v3096_v7, %v6080_v39  ;;  %v8542_v7 = vmax.f32 %v11353_v3, 0.0  ;;  %v6084_v3 = vunpack.i.l.bf16 %v8371_v49 }
 0x24b   : > { %v6098_v27 = vpop.permute.xlu1 %6097  ;;  %v8511_v29 = vpop.permute.xlu2 %6137  ;;  %v6316_v15 = vpack.i.bf16 %v8252_v5, %v2149_v62  ;;  %v2968_v62 = vsel %vm919_vm2, %v11355_v4, %v6065_v55  ;;  %v6326_v55 = vpack.i.bf16 %v8135_v46, %v2187_v61  ;;  %v11357_v4 = vrot.slane %v8286_v50, 7 }
 0x24c   : > { %v6100_v47 = vunpack.i.h.bf16 %v6098_v27  ;;  %v6099_v23 = vunpack.i.l.bf16 %v6098_v27  ;;  %v3065_v0 = vsel %vm919_vm2, %v11352_v21, %v6089_v51  ;;  %v8549_v27 = vpop.f32.mrf.mxu0  ;;  %v1257_v51 = vadd.s32 216, %v7317_v19 }
 0x24d   : > { %11354 = vst [vmem:[#allocation53_spill] sm:$0xff] %v8549_v27  ;;  %v6085_v21 = vunpack.i.h.bf16 %v8371_v49  ;;  %v6321_v27 = vpack.i.bf16 %v8286_v50, %v8482_v17 }
 0x24e   : > { %3324 = vmatmul.f32.gmra.mxu2 %v3032_v28  ;;  %3437 = vmatmul.f32.gmra.mxu3 %v3128_v43 }
 0x24f   : > { %6302 = vrot.lane.b32.xlu0 %v6301_v34, %s6501_s30  ;;  %v3000_v34 = vsel %vm594_vm0, %v2968_v62, %v6099_v23  ;;  %v8572_v23 = vsel %vm1868_vm8, %v11358_v41, %v11357_v4  ;;  %v8581_v41 = vpop.f32.mrf.mxu3  ;;  %v11360_v4 = vld [vmem:[#allocation58_spill] sm:$0xff] }
 0x250   : > { %5795 = vmatmul.msk.f32.gmra.mxu0 %vm919_vm2, %v2253_v1  ;;  %v3033_v49 = vsel %vm3023_vm6, %v3000_v34, %v6084_v3  ;;  %11359 = vst [vmem:[#allocation54_spill] sm:$0xff] %v8581_v41 }
 0x251   : > { %v8544_v39 = vpop.permute.xlu0 %6092  ;;  %6312 = vrot.lane.b32.xlu1 %v6311_v36, %s6502_s26  ;;  %6317 = vrot.lane.b32.xlu2 %v6316_v15, %s6503_s15  ;;  %v3097_v36 = vsel %vm594_vm0, %v3065_v0, %v6100_v47  ;;  %v2111_v15 = vmul.f32 %v5766_v33, %v8321_v56  ;;  %v2050_v56 = vrot.slane %v8542_v7, 1  ;;  %v6090_v33 = vunpack.i.h.bf16 %v8498_v58 }
 0x252   : > { %v6094_v1 = vunpack.i.l.bf16 %v8544_v39  ;;  %v3129_v47 = vsel %vm3023_vm6, %v3097_v36, %v6085_v21  ;;  %v1455_v0 = vand.u32 15, %v1257_v51  ;;  %v11361_v51 = vrot.slane %v8311_v25, 1 }
 0x253   : > { %v6103_v28 = vpop.permute.xlu1 %6102  ;;  %v8555_v43 = vpop.permute.xlu2 %6142  ;;  %v6336_v61 = vpack.i.bf16 %v8572_v23, %v2111_v15  ;;  %v11187_v36 = vrot.slane %v8564_v26, 1  ;;  %v11362_v15 = vld [vmem:[#allocation65_spill] sm:$0xff] }
 0x254   : > { %v6105_v48 = vunpack.i.h.bf16 %v6103_v28  ;;  %v6104_v62 = vunpack.i.l.bf16 %v6103_v28  ;;  %v3066_v58 = vsel %vm919_vm2, %v11360_v4, %v6094_v1  ;;  %v8593_v28 = vsel %vm1992_vm7, %v11361_v51, %v2050_v56 }
 0x255   : > { %v2969_v21 = vsel %vm919_vm2, %v11362_v15, %v6090_v33  ;;  %vm1769_vm4 = vcmp.le.s32.totalorder %v1455_v0, 14  ;;  %v6110_v4 = vunpack.i.h.bf16 %v8427_v31  ;;  %v6109_v33 = vunpack.i.l.bf16 %v8427_v31 }
 0x256   : > { %3327 = vmatmul.f32.gmra.mxu2 %v3033_v49  ;;  %3440 = vmatmul.f32.gmra.mxu3 %v3129_v47  ;;  %v2222_v49 = vmul.f32 %v8235_v52, %v8380_v38  ;;  %v2151_v47 = vmul.f32 %v8235_v52, %v8332_v11  ;;  %v5767_v51 = vsel %vm1769_vm4, 1.0, %v11274_v16  ;;  %v6331_v11 = vpack.i.bf16 %v8249_v60, %v8505_v37 }
 0x257   : > { %6327 = vrot.lane.b32.xlu0 %v6326_v55, %s6501_s30  ;;  %v3001_v55 = vsel %vm594_vm0, %v2969_v21, %v6104_v62  ;;  %v6095_v62 = vunpack.i.h.bf16 %v8544_v39  ;;  %v11364_v39 = vld [vmem:[#allocation63_spill] sm:$0xff] }
 0x258   : > { %5796 = vmatmul.msk.f32.gmra.mxu0 %vm919_vm2, %v8593_v28  ;;  %v6341_v21 = vpack.i.bf16 %v2222_v49, %v8419_v24  ;;  %v6346_v41 = vpack.i.bf16 %v8311_v25, %v2151_v47  ;;  %v11365_v24 = vld [vmem:[#allocation41_spill] sm:$0xff]  ;;  %v8639_v47 = vpop.f32.mrf.mxu3 }
 0x259   : > { %v8586_v34 = vpop.permute.xlu0 %6117  ;;  %6337 = vrot.lane.b32.xlu1 %v6336_v61, %s6502_s26  ;;  %6322 = vrot.lane.b32.xlu2 %v6321_v27, %s6503_s15  ;;  %v3098_v27 = vsel %vm594_vm0, %v3066_v58, %v6105_v48  ;;  %v8608_v61 = vpop.f32.mrf.mxu0  ;;  %v8617_v48 = vsel %vm1992_vm7, %v2050_v56, %v11187_v36  ;;  %v3034_v58 = vsel %vm3023_vm6, %v3001_v55, %v6109_v33  ;;  %v8637_v49 = vmax.f32 %v11365_v24, 0.0 }
 0x25a   : > { %11363 = vst [vmem:[#allocation69_spill] sm:$0xff] %v8608_v61  ;;  %v6119_v0 = vunpack.i.l.bf16 %v8586_v34  ;;  %v3130_v52 = vsel %vm3023_vm6, %v3098_v27, %v6110_v4  ;;  %v2255_v56 = vmul.f32 %v5767_v51, %v8617_v48  ;;  %v1926_v27 = vrot.slane %v8542_v7, 7  ;;  %v11367_v4 = vld [vmem:[#allocation68_spill] sm:$0xff] }
 0x25b   : > { %v6128_v3 = vpop.permute.xlu1 %6127  ;;  %v8600_v1 = vpop.permute.xlu2 %6167  ;;  %11366 = vst [vmem:[#allocation52_spill] sm:$0xff] %v8639_v47  ;;  %v6115_v24 = vunpack.i.h.bf16 %v8466_v9  ;;  %v6114_v36 = vunpack.i.l.bf16 %v8466_v9 }
 0x25c   : > { %v6130_v15 = vunpack.i.h.bf16 %v6128_v3  ;;  %v6129_v31 = vunpack.i.l.bf16 %v6128_v3  ;;  %v3067_v55 = vsel %vm919_vm2, %v11364_v39, %v6119_v0  ;;  %v2189_v3 = vmul.f32 %v5767_v51, %v8526_v40 }
 0x25d   : > { %v2970_v0 = vsel %vm919_vm2, %v11367_v4, %v6095_v62  ;;  %v2113_v39 = vmul.f32 %v5767_v51, %v8442_v22  ;;  %v11368_v4 = vrot.slane %v8311_v25, 7  ;;  %v6120_v22 = vunpack.i.h.bf16 %v8586_v34 }
 0x25e   : > { %3330 = vmatmul.f32.gmra.mxu2 %v3034_v58  ;;  %3443 = vmatmul.f32.gmra.mxu3 %v3130_v52  ;;  %v1259_v58 = vadd.s32 232, %v7317_v19  ;;  %v6356_v62 = vpack.i.bf16 %v8252_v5, %v2189_v3  ;;  %v11371_v34 = vrot.slane %v8564_v26, 7 }
 0x25f   : > { %6332 = vrot.lane.b32.xlu0 %v6331_v11, %s6501_s30  ;;  %v8658_v61 = vsel %vm1868_vm8, %v11368_v4, %v1926_v27  ;;  %v6351_v4 = vpack.i.bf16 %v8542_v7, %v8572_v23 }
 0x260   : > { %5797 = vmatmul.msk.f32.gmra.mxu0 %vm919_vm2, %v2255_v56  ;;  %v6366_v3 = vpack.i.bf16 %v8658_v61, %v2113_v39 }
 0x261   : > { %v8630_v33 = vpop.permute.xlu0 %6122  ;;  %6342 = vrot.lane.b32.xlu1 %v6341_v21, %s6502_s26  ;;  %6347 = vrot.lane.b32.xlu2 %v6346_v41, %s6503_s15  ;;  %v3002_v41 = vsel %vm594_vm0, %v2970_v0, %v6129_v31  ;;  %v3099_v21 = vsel %vm594_vm0, %v3067_v55, %v6130_v15  ;;  %v2157_v31 = vrot.slane %v8637_v49, 1  ;;  %v8661_v15 = vpop.f32.mrf.mxu0  ;;  %v1469_v55 = vand.u32 15, %v1259_v58 }
 0x262   : > { %v6124_v56 = vunpack.i.l.bf16 %v8630_v33  ;;  %11369 = vst [vmem:[#allocation56_spill] sm:$0xff] %v8661_v15  ;;  %v3035_v51 = vsel %vm3023_vm6, %v3002_v41, %v6114_v36  ;;  %v3131_v9 = vsel %vm3023_vm6, %v3099_v21, %v6115_v24  ;;  %v8675_v36 = vsel %vm1868_vm8, %v1926_v27, %v11371_v34 }
 0x263   : > { %v6133_v52 = vpop.permute.xlu1 %6132  ;;  %v8645_v11 = vpop.permute.xlu2 %6172  ;;  %vm1771_vm5 = vcmp.le.s32.totalorder %v1469_v55, 14 }
 0x264   : > { %v6135_v0 = vunpack.i.h.bf16 %v6133_v52  ;;  %v6134_v47 = vunpack.i.l.bf16 %v6133_v52  ;;  %v3068_v15 = vsel %vm919_vm2, %v11370_v6, %v6124_v56  ;;  %v11372_v52 = vrot.slane %v8564_v26, 1  ;;  %v11373_v6 = vld [vmem:[#allocation70_spill] sm:$0xff]  ;;  %v8701_v55 = vpop.f32.mrf.mxu3 }
 0x265   : > { %v2971_v21 = vsel %vm919_vm2, %v11373_v6, %v6120_v22  ;;  %11374 = vst [vmem:[#allocation43_spill] sm:$0xff] %v8701_v55 }
 0x266   : > { %3333 = vmatmul.f32.gmra.mxu2 %v3035_v51  ;;  %3446 = vmatmul.f32.gmra.mxu3 %v3131_v9  ;;  %v8684_v41 = vsel %vm1992_vm7, %v11372_v52, %v2157_v31  ;;  %v3003_v24 = vsel %vm594_vm0, %v2971_v21, %v6134_v47  ;;  %v3100_v56 = vsel %vm594_vm0, %v3068_v15, %v6135_v0  ;;  %v6140_v9 = vunpack.i.h.bf16 %v8511_v29 }
 0x267   : > { %6357 = vrot.lane.b32.xlu0 %v6356_v62, %s6501_s30  ;;  %v2224_v62 = vmul.f32 %v8343_v44, %v8675_v36  ;;  %v2153_v51 = vmul.f32 %v8343_v44, %v8380_v38  ;;  %v8705_v47 = vsel %vm1992_vm7, %v2157_v31, 0.0  ;;  %v6125_v15 = vunpack.i.h.bf16 %v8630_v33  ;;  %v11375_v31 = vld [vmem:[#allocation72_spill] sm:$0xff] }
 0x268   : > { %5798 = vmatmul.msk.f32.gmra.mxu0 %vm919_vm2, %v8684_v41  ;;  %v3132_v34 = vsel %vm3023_vm6, %v3100_v56, %v6140_v9  ;;  %v6361_v44 = vpack.i.bf16 %v8286_v50, %v8593_v28 }
 0x269   : > { %v8677_v58 = vpop.permute.xlu0 %6147  ;;  %6367 = vrot.lane.b32.xlu1 %v6366_v3, %s6502_s26  ;;  %6352 = vrot.lane.b32.xlu2 %v6351_v4, %s6503_s15  ;;  %v6139_v3 = vunpack.i.l.bf16 %v8511_v29  ;;  %v5768_v4 = vsel %vm1771_vm5, 1.0, %v11274_v16  ;;  %v6371_v52 = vpack.i.bf16 %v2224_v62, %v8505_v37  ;;  %v6376_v6 = vpack.i.bf16 %v8564_v26, %v2153_v51  ;;  %v8714_v21 = vpop.f32.mrf.mxu0  ;;  %v11376_v37 = vld [vmem:[#allocation76_spill] sm:$0xff] }
 0x26a   : > { %v6149_v22 = vunpack.i.l.bf16 %v8677_v58  ;;  %v2257_v33 = vmul.f32 %v5768_v4, %v8705_v47  ;;  %v2972_v62 = vsel %vm919_vm2, %v11376_v37, %v6125_v15  ;;  %v2191_v51 = vmul.f32 %v5768_v4, %v8617_v48 }
 0x26b   : > { %v6158_v27 = vpop.permute.xlu1 %6157  ;;  %v8690_v39 = vpop.permute.xlu2 %6197  ;;  %v3036_v0 = vsel %vm3023_vm6, %v3003_v24, %v6139_v3  ;;  %v6150_v37 = vunpack.i.h.bf16 %v8677_v58  ;;  %v11379_v58 = vld [vmem:[#allocation75_spill] sm:$0xff] }
 0x26c   : > { %v6160_v38 = vunpack.i.h.bf16 %v6158_v27  ;;  %v6159_v29 = vunpack.i.l.bf16 %v6158_v27  ;;  %v3069_v24 = vsel %vm919_vm2, %v11375_v31, %v6149_v22  ;;  %v2121_v27 = vrot.slane %v8637_v49, 7 }
 0x26d   : > { %v1261_v31 = vadd.s32 248, %v7317_v19 }
 0x26e   : > { %3336 = vmatmul.f32.gmra.mxu2 %v3036_v0  ;;  %3449 = vmatmul.f32.gmra.mxu3 %v3132_v34  ;;  %v3004_v22 = vsel %vm594_vm0, %v2972_v62, %v6159_v29  ;;  %v3101_v0 = vsel %vm594_vm0, %v3069_v24, %v6160_v38  ;;  %v2115_v34 = vmul.f32 %v5768_v4, %v8526_v40  ;;  %v8747_v4 = vpop.f32.mrf.mxu3 }
 0x26f   : > { %6362 = vrot.lane.b32.xlu0 %v6361_v44, %s6501_s30  ;;  %v6145_v44 = vunpack.i.h.bf16 %v8555_v43  ;;  %v6386_v40 = vpack.i.bf16 %v8311_v25, %v2191_v51  ;;  %11378 = vst [vmem:[#allocation59_spill] sm:$0xff] %v8747_v4  ;;  %v1483_v51 = vand.u32 15, %v1261_v31  ;;  %v6170_v31 = vunpack.i.h.bf16 %v8600_v1 }
 0x270   : > { %5799 = vmatmul.msk.f32.gmra.mxu0 %vm919_vm2, %v2257_v33  ;;  %v11377_v33 = vrot.slane %v8564_v26, 7 }
 0x271   : > { %v8720_v56 = vpop.permute.xlu0 %6152  ;;  %6372 = vrot.lane.b32.xlu1 %v6371_v52, %s6502_s26  ;;  %6377 = vrot.lane.b32.xlu2 %v6376_v6, %s6503_s15  ;;  %v6144_v52 = vunpack.i.l.bf16 %v8555_v43  ;;  %v3133_v38 = vsel %vm3023_vm6, %v3101_v0, %v6145_v44  ;;  %v2195_v0 = vsel %vm1868_vm8, %v2121_v27, 0.0  ;;  %vm1773_vm7 = vcmp.le.s32.totalorder %v1483_v51, 14  ;;  %v11382_v51 = vld [vmem:[#allocation79_spill] sm:$0xff] }
 0x272   : > { %v6154_v6 = vunpack.i.l.bf16 %v8720_v56  ;;  %v8740_v15 = vsel %vm1868_vm8, %v11377_v33, %v2121_v27  ;;  %v6381_v33 = vpack.i.bf16 %v8637_v49, %v8658_v61 }
 0x273   : > { %v6163_v9 = vpop.permute.xlu1 %6162  ;;  %v8729_v3 = vpop.permute.xlu2 %6202  ;;  %v3037_v29 = vsel %vm3023_vm6, %v3004_v22, %v6144_v52  ;;  %v6396_v62 = vpack.i.bf16 %v8740_v15, %v2115_v34  ;;  %v11380_v52 = vld [vmem:[#allocation74_spill] sm:$0xff] }
 0x274   : > { %v6165_v43 = vunpack.i.h.bf16 %v6163_v9  ;;  %v6164_v24 = vunpack.i.l.bf16 %v6163_v9  ;;  %v3070_v22 = vsel %vm919_vm2, %v11379_v58, %v6154_v6  ;;  %v8758_v9 = vpop.f32.mrf.mxu0  ;;  %v2973_v34 = vsel %vm919_vm2, %v11380_v52, %v6150_v37 }
 0x275   : > { %v6155_v37 = vunpack.i.h.bf16 %v8720_v56  ;;  %v8782_v56 = vsel %vm1773_vm7, 1.0, %v11274_v16 }
 0x276   : > { %3339 = vmatmul.f32.gmra.mxu2 %v3037_v29  ;;  %3452 = vmatmul.f32.gmra.mxu3 %v3133_v38  ;;  %v3005_v6 = vsel %vm594_vm0, %v2973_v34, %v6164_v24  ;;  %v3102_v27 = vsel %vm594_vm0, %v3070_v22, %v6165_v43  ;;  %v6391_v43 = vpack.i.bf16 %v8542_v7, %v8684_v41 }
 0x277   : > { %6387 = vrot.lane.b32.xlu0 %v6386_v40, %s6501_s30  ;;  %v2226_v40 = vmul.f32 %v8395_v12, %v2195_v0  ;;  %v3134_v4 = vsel %vm3023_vm6, %v3102_v27, %v6170_v31  ;;  %v8784_v0 = vpop.f32.mrf.mxu3 }
 0x278   : > { %3616 = vmatmul.f32.gmra.mxu0 %v11274_v16  ;;  %11381 = vst [vmem:[#allocation44_spill] sm:$0xff] %v8784_v0  ;;  %v6175_v16 = vunpack.i.h.bf16 %v8645_v11  ;;  %v11405_v0 = vld [vmem:[#allocation32_spill] sm:$0xff] }
 0x279   : > { %v6178_v44 = vpop.permute.xlu0 %6177  ;;  %6397 = vrot.lane.b32.xlu1 %v6396_v62, %s6502_s26  ;;  %6382 = vrot.lane.b32.xlu2 %v6381_v33, %s6503_s15  ;;  %v2155_v62 = vmul.f32 %v8395_v12, %v8675_v36  ;;  %v6169_v33 = vunpack.i.l.bf16 %v8600_v1  ;;  %v6401_v12 = vpack.i.bf16 %v2226_v40, %v8593_v28  ;;  %v4508_v55 = vsel %vm4478_vm1, %v11405_v0, 0.0 }
 0x27a   : > { %v6179_v58 = vunpack.i.l.bf16 %v6178_v44 }
 0x27b   : > { %v6188_v29 = vpop.permute.xlu1 %6187  ;;  %v8763_v38 = vpop.permute.xlu2 %6227  ;;  %v3038_v52 = vsel %vm3023_vm6, %v3005_v6, %v6169_v33  ;;  %v6406_v36 = vpack.i.bf16 0.0, %v2155_v62  ;;  %v6174_v6 = vunpack.i.l.bf16 %v8645_v11  ;;  %v6180_v62 = vunpack.i.h.bf16 %v6178_v44 }
 0x27c   : > { %v6190_v24 = vunpack.i.h.bf16 %v6188_v29  ;;  %v6189_v22 = vunpack.i.l.bf16 %v6188_v29  ;;  %v3071_v1 = vsel %vm919_vm2, %v7879_v32, %v6179_v58  ;;  %v2117_v32 = vmul.f32 %v8782_v56, %v8617_v48 }
 0x27d   : > { %v2193_v58 = vmul.f32 %v8782_v56, %v8705_v47 }
 0x27e   : > { %3342 = vmatmul.f32.gmra.mxu2 %v3038_v52  ;;  %3455 = vmatmul.f32.gmra.mxu3 %v3134_v4  ;;  %v2974_v4 = vsel %vm919_vm2, %v11382_v51, %v6155_v37  ;;  %v3103_v29 = vsel %vm594_vm0, %v3071_v1, %v6190_v24  ;;  %v6411_v48 = vpack.i.bf16 0.0, %v2117_v32  ;;  %v6200_v1 = vunpack.i.h.bf16 %v8690_v39 }
 0x27f   : > { %6392 = vrot.lane.b32.xlu0 %v6391_v43, %s6501_s30  ;;  %v3006_v34 = vsel %vm594_vm0, %v2974_v4, %v6189_v22  ;;  %v3135_v33 = vsel %vm3023_vm6, %v3103_v29, %v6175_v16  ;;  %v11383_v43 = vld [vmem:[#allocation78_spill] sm:$0xff]  ;;  %v8810_v47 = vpop.f32.mrf.mxu3  ;;  %v6418_v4 = vld [vmem:[%s11040_s11] ss:$0 sm:$0xff] }
 0x280   : > { %v3039_v31 = vsel %vm3023_vm6, %v3006_v34, %v6174_v6  ;;  %v2975_v24 = vsel %vm919_vm2, %v11383_v43, %v6180_v62  ;;  %11384 = vst [vmem:[#allocation58_spill] sm:$0xff] %v8810_v47 }
 0x281   : > { %6402 = vrot.lane.b32.xlu1 %v6401_v12, %s6502_s26  ;;  %6407 = vrot.lane.b32.xlu2 %v6406_v36, %s6503_s15  ;;  %v6183_v41 = vpop.permute.xlu0 %6182 }
 0x282   : > { %v6184_v27 = vunpack.i.l.bf16 %v6183_v41 }
 0x283   : > { %v6193_v28 = vpop.permute.xlu1 %6192  ;;  %v8796_v40 = vpop.permute.xlu2 %6232 }
 0x284   : > { %v6195_v37 = vunpack.i.h.bf16 %v6193_v28  ;;  %v6194_v52 = vunpack.i.l.bf16 %v6193_v28  ;;  %v3072_v11 = vsel %vm919_vm2, %v7882_v57, %v6184_v27  ;;  %v6199_v57 = vunpack.i.l.bf16 %v8690_v39 }
 0x285   : > { %v6185_v28 = vunpack.i.h.bf16 %v6183_v41  ;;  %v11385_v41 = vld [vmem:[#allocation82_spill] sm:$0xff] }
 0x286   : > { %3345 = vmatmul.f32.gmra.mxu2 %v3039_v31  ;;  %3458 = vmatmul.f32.gmra.mxu3 %v3135_v33  ;;  %v3007_v12 = vsel %vm594_vm0, %v2975_v24, %v6194_v52  ;;  %v3104_v36 = vsel %vm594_vm0, %v3072_v11, %v6195_v37  ;;  %v6204_v11 = vunpack.i.l.bf16 %v8729_v3 }
 0x287   : > { %2704 = vrot.lane.b32.xlu0 %v2193_v58, %s6501_s30  ;;  %v3040_v34 = vsel %vm3023_vm6, %v3007_v12, %v6199_v57  ;;  %v3136_v29 = vsel %vm3023_vm6, %v3104_v36, %v6200_v1  ;;  %v2976_v31 = vsel %vm919_vm2, %v11385_v41, %v6185_v28  ;;  %v8840_v36 = vpop.f32.mrf.mxu0  ;;  %v11386_v28 = vld [vmem:[#allocation80_spill] sm:$0xff] }
 0x289   : > { %6412 = vrot.lane.b32.xlu1 %v6411_v48, %s6502_s26  ;;  %2576 = vrot.lane.b32.xlu2 %v8740_v15, %s6503_s15  ;;  %v6208_v44 = vpop.permute.xlu0 %6207  ;;  %v6417_v15 = vld [vmem:[%s11039_s10] ss:$0 sm:$0xff]  ;;  %v6205_v48 = vunpack.i.h.bf16 %v8729_v3 }
 0x28a   : > { %v6209_v51 = vunpack.i.l.bf16 %v6208_v44 }
 0x28b   : > { %v6218_v22 = vpop.permute.xlu1 %6217  ;;  %v8824_v6 = vpop.permute.xlu2 %6257 }
 0x28c   : > { %v6220_v32 = vunpack.i.h.bf16 %v6218_v22  ;;  %v6219_v16 = vunpack.i.l.bf16 %v6218_v22  ;;  %v3073_v39 = vsel %vm919_vm2, %v7948_v45, %v6209_v51  ;;  %v6210_v45 = vunpack.i.h.bf16 %v6208_v44 }
 0x28e   : > { %3348 = vmatmul.f32.gmra.mxu2 %v3040_v34  ;;  %3461 = vmatmul.f32.gmra.mxu3 %v3136_v29  ;;  %v3008_v37 = vsel %vm594_vm0, %v2976_v31, %v6219_v16  ;;  %v3105_v52 = vsel %vm594_vm0, %v3073_v39, %v6220_v32  ;;  %v2977_v44 = vsel %vm919_vm2, %v11386_v28, %v6210_v45  ;;  %v6230_v39 = vunpack.i.h.bf16 %v8763_v38 }
 0x28f   : > { %4885 = vrot.lane.b32.xlu0 %v6417_v15, %s6501_s30  ;;  %v3041_v22 = vsel %vm3023_vm6, %v3008_v37, %v6204_v11  ;;  %v3137_v12 = vsel %vm3023_vm6, %v3105_v52, %v6205_v48  ;;  %v8858_v11 = vpop.f32.mrf.mxu0 }
 0x291   : > { %4958 = vrot.lane.b32.xlu1 %v6418_v4, %s6501_s30  ;;  %v6213_v27 = vpop.permute.xlu0 %6212  ;;  %v3301_v62 = vpop.f32.mrf.mxu2 }
 0x292   : > { %v3414_v33 = vpop.f32.mrf.mxu3  ;;  %v6214_v43 = vunpack.i.l.bf16 %v6213_v27 }
 0x293   : > { %v6223_v58 = vpop.permute.xlu1 %6222  ;;  %v8836_v24 = vadd.f32 %v3414_v33, %v3301_v62  ;;  %v8844_v15 = vpop.permute.xlu2 %6262  ;;  %v6229_v62 = vunpack.i.l.bf16 %v8763_v38 }
 0x294   : > { %v6225_v1 = vunpack.i.h.bf16 %v6223_v58  ;;  %v6224_v57 = vunpack.i.l.bf16 %v6223_v58  ;;  %v3074_v51 = vsel %vm919_vm2, %v7951_v18, %v6214_v43  ;;  %v6215_v18 = vunpack.i.h.bf16 %v6213_v27 }
 0x296   : > { %3351 = vmatmul.f32.gmra.mxu2 %v3041_v22  ;;  %3464 = vmatmul.f32.gmra.mxu3 %v3137_v12  ;;  %v3009_v32 = vsel %vm594_vm0, %v2977_v44, %v6224_v57  ;;  %v3106_v16 = vsel %vm594_vm0, %v3074_v51, %v6225_v1  ;;  %v2978_v38 = vsel %vm919_vm2, %v8057_v14, %v6215_v18  ;;  %v6235_v57 = vunpack.i.h.bf16 %v8796_v40 }
 0x297   : > { %v3042_v33 = vsel %vm3023_vm6, %v3009_v32, %v6229_v62  ;;  %v3138_v58 = vsel %vm3023_vm6, %v3106_v16, %v6230_v39  ;;  %v6234_v51 = vunpack.i.l.bf16 %v8796_v40  ;;  %v11387_v40 = vld [vmem:[#allocation83_spill] sm:$0xff] }
 0x299   : > { %v6238_v3 = vpop.permute.xlu0 %6237  ;;  %v3304_v4 = vpop.f32.mrf.mxu2 }
 0x29a   : > { %v3417_v34 = vpop.f32.mrf.mxu3  ;;  %v6239_v41 = vunpack.i.l.bf16 %v6238_v3  ;;  %v6240_v44 = vunpack.i.h.bf16 %v6238_v3 }
 0x29b   : > { %v6248_v29 = vpop.permute.xlu1 %6247  ;;  %v8852_v31 = vadd.f32 %v3417_v34, %v3304_v4 }
 0x29c   : > { %v6250_v37 = vunpack.i.h.bf16 %v6248_v29  ;;  %v6249_v52 = vunpack.i.l.bf16 %v6248_v29  ;;  %v3075_v48 = vsel %vm919_vm2, %v8015_v42, %v6239_v41  ;;  %v8868_v42 = vpop.permute.xlu2 %6287  ;;  %v2979_v41 = vsel %vm919_vm2, %v11387_v40, %v6240_v44 }
 0x29e   : > { %3354 = vmatmul.f32.gmra.mxu2 %v3042_v33  ;;  %3467 = vmatmul.f32.gmra.mxu3 %v3138_v58  ;;  %v3010_v12 = vsel %vm594_vm0, %v2978_v38, %v6249_v52  ;;  %v3107_v1 = vsel %vm594_vm0, %v3075_v48, %v6250_v37  ;;  %v6260_v37 = vunpack.i.h.bf16 %v8824_v6  ;;  %v6259_v52 = vunpack.i.l.bf16 %v8824_v6  ;;  %v8882_v38 = vpop.f32.mrf.mxu0 }
 0x29f   : > { %v3043_v34 = vsel %vm3023_vm6, %v3010_v12, %v6234_v51  ;;  %v3139_v14 = vsel %vm3023_vm6, %v3107_v1, %v6235_v57 }
 0x2a1   : > { %v6243_v43 = vpop.permute.xlu0 %6242  ;;  %v3307_v45 = vpop.f32.mrf.mxu2 }
 0x2a2   : > { %v3420_v22 = vpop.f32.mrf.mxu3  ;;  %v6244_v4 = vunpack.i.l.bf16 %v6243_v43 }
 0x2a3   : > { %v6253_v27 = vpop.permute.xlu1 %6252  ;;  %v8866_v28 = vadd.f32 %v3420_v22, %v3307_v45 }
 0x2a4   : > { %v6255_v29 = vunpack.i.h.bf16 %v6253_v27  ;;  %v6254_v32 = vunpack.i.l.bf16 %v6253_v27  ;;  %v3076_v16 = vsel %vm919_vm2, %v8018_v10, %v6244_v4  ;;  %v6245_v10 = vunpack.i.h.bf16 %v6243_v43  ;;  %v8886_v12 = vpop.permute.xlu2 %6292 }
 0x2a6   : > { %3357 = vmatmul.f32.gmra.mxu2 %v3043_v34  ;;  %3470 = vmatmul.f32.gmra.mxu3 %v3139_v14  ;;  %v3011_v3 = vsel %vm594_vm0, %v2979_v41, %v6254_v32  ;;  %v3108_v58 = vsel %vm594_vm0, %v3076_v16, %v6255_v29  ;;  %v2980_v44 = vsel %vm919_vm2, %v8160_v30, %v6245_v10  ;;  %v6265_v32 = vunpack.i.h.bf16 %v8844_v15 }
 0x2a7   : > { %v3044_v22 = vsel %vm3023_vm6, %v3011_v3, %v6259_v52  ;;  %v3140_v27 = vsel %vm3023_vm6, %v3108_v58, %v6260_v37  ;;  %v6264_v16 = vunpack.i.l.bf16 %v8844_v15 }
 0x2a9   : > { %v6268_v39 = vpop.permute.xlu0 %6267  ;;  %v3310_v62 = vpop.f32.mrf.mxu2 }
 0x2aa   : > { %v3423_v18 = vpop.f32.mrf.mxu3  ;;  %v6269_v48 = vunpack.i.l.bf16 %v6268_v39  ;;  %v6270_v41 = vunpack.i.h.bf16 %v6268_v39 }
 0x2ab   : > { %v6278_v33 = vpop.permute.xlu1 %6277  ;;  %v8880_v45 = vadd.f32 %v3423_v18, %v3310_v62 }
 0x2ac   : > { %v6280_v1 = vunpack.i.h.bf16 %v6278_v33  ;;  %v6279_v57 = vunpack.i.l.bf16 %v6278_v33  ;;  %v3077_v51 = vsel %vm919_vm2, %v8077_v63, %v6269_v48  ;;  %v8900_v33 = vpop.f32.mrf.mxu0  ;;  %v6318_v37 = vpop.permute.xlu2 %6317  ;;  %v11388_v48 = vld [vmem:[#allocation87_spill] sm:$0xff] }
 0x2ad   : > { %v2981_v10 = vsel %vm919_vm2, %v11388_v48, %v6270_v41 }
 0x2ae   : > { %3360 = vmatmul.f32.gmra.mxu2 %v3044_v22  ;;  %3473 = vmatmul.f32.gmra.mxu3 %v3140_v27  ;;  %v3012_v14 = vsel %vm594_vm0, %v2980_v44, %v6279_v57  ;;  %v3109_v29 = vsel %vm594_vm0, %v3077_v51, %v6280_v1  ;;  %v6290_v57 = vunpack.i.h.bf16 %v8868_v42  ;;  %v6289_v51 = vunpack.i.l.bf16 %v8868_v42 }
 0x2af   : > { %v3045_v63 = vsel %vm3023_vm6, %v3012_v14, %v6264_v16  ;;  %v3141_v18 = vsel %vm3023_vm6, %v3109_v29, %v6265_v32 }
 0x2b1   : > { %v6273_v6 = vpop.permute.xlu0 %6272  ;;  %v3313_v4 = vpop.f32.mrf.mxu2 }
 0x2b2   : > { %v3426_v34 = vpop.f32.mrf.mxu3  ;;  %v6274_v62 = vunpack.i.l.bf16 %v6273_v6 }
 0x2b3   : > { %v6283_v43 = vpop.permute.xlu1 %6282  ;;  %v8896_v40 = vadd.f32 %v3426_v34, %v3313_v4 }
 0x2b4   : > { %v6285_v30 = vunpack.i.h.bf16 %v6283_v43  ;;  %v6284_v3 = vunpack.i.l.bf16 %v6283_v43  ;;  %v3078_v58 = vsel %vm919_vm2, %v8089_v2, %v6274_v62  ;;  %v6275_v2 = vunpack.i.h.bf16 %v6273_v6  ;;  %v8916_v16 = vpop.f32.mrf.mxu0 }
 0x2b6   : > { %3363 = vmatmul.f32.gmra.mxu2 %v3045_v63  ;;  %3476 = vmatmul.f32.gmra.mxu3 %v3141_v18  ;;  %v3013_v27 = vsel %vm594_vm0, %v2981_v10, %v6284_v3  ;;  %v3110_v1 = vsel %vm594_vm0, %v3078_v58, %v6285_v30  ;;  %v2982_v42 = vsel %vm919_vm2, %v8266_v54, %v6275_v2  ;;  %v6295_v3 = vunpack.i.h.bf16 %v8886_v12 }
 0x2b7   : > { %v3046_v34 = vsel %vm3023_vm6, %v3013_v27, %v6289_v51  ;;  %v3142_v43 = vsel %vm3023_vm6, %v3110_v1, %v6290_v57  ;;  %v6294_v58 = vunpack.i.l.bf16 %v8886_v12 }
 0x2b9   : > { %v6298_v52 = vpop.permute.xlu0 %6297  ;;  %v3316_v15 = vpop.f32.mrf.mxu2 }
 0x2ba   : > { %v3429_v39 = vpop.f32.mrf.mxu3  ;;  %v6299_v4 = vunpack.i.l.bf16 %v6298_v52  ;;  %v6300_v10 = vunpack.i.h.bf16 %v6298_v52 }
 0x2bb   : > { %v6308_v22 = vpop.permute.xlu1 %6307  ;;  %v8910_v44 = vadd.f32 %v3429_v39, %v3316_v15 }
 0x2bc   : > { %v6310_v14 = vunpack.i.h.bf16 %v6308_v22  ;;  %v6309_v29 = vunpack.i.l.bf16 %v6308_v22  ;;  %v3079_v32 = vsel %vm919_vm2, %v8132_v59, %v6299_v4  ;;  %v6323_v59 = vpop.permute.xlu2 %6322  ;;  %v2983_v12 = vsel %vm919_vm2, %v8172_v13, %v6300_v10 }
 0x2be   : > { %3366 = vmatmul.f32.gmra.mxu2 %v3046_v34  ;;  %3479 = vmatmul.f32.gmra.mxu3 %v3142_v43  ;;  %v3014_v18 = vsel %vm594_vm0, %v2982_v42, %v6309_v29  ;;  %v3111_v30 = vsel %vm594_vm0, %v3079_v32, %v6310_v14  ;;  %v6320_v43 = vunpack.i.h.bf16 %v6318_v37  ;;  %v6319_v14 = vunpack.i.l.bf16 %v6318_v37 }
 0x2bf   : > { %v3047_v39 = vsel %vm3023_vm6, %v3014_v18, %v6294_v58  ;;  %v3143_v22 = vsel %vm3023_vm6, %v3111_v30, %v6295_v3 }
 0x2c1   : > { %v6303_v62 = vpop.permute.xlu0 %6302  ;;  %v3319_v41 = vpop.f32.mrf.mxu2 }
 0x2c2   : > { %v3432_v63 = vpop.f32.mrf.mxu3  ;;  %v6304_v15 = vunpack.i.l.bf16 %v6303_v62  ;;  %v6305_v42 = vunpack.i.h.bf16 %v6303_v62 }
 0x2c3   : > { %v6313_v6 = vpop.permute.xlu1 %6312  ;;  %v8924_v48 = vadd.f32 %v3432_v63, %v3319_v41  ;;  %v8936_v41 = vpop.f32.mrf.mxu0 }
 0x2c4   : > { %v6315_v54 = vunpack.i.h.bf16 %v6313_v6  ;;  %v6314_v27 = vunpack.i.l.bf16 %v6313_v6  ;;  %v3080_v1 = vsel %vm919_vm2, %v8135_v46, %v6304_v15  ;;  %v6348_v6 = vpop.permute.xlu2 %6347  ;;  %v2984_v58 = vsel %vm919_vm2, %v8390_v8, %v6305_v42 }
 0x2c6   : > { %3369 = vmatmul.f32.gmra.mxu2 %v3047_v39  ;;  %3482 = vmatmul.f32.gmra.mxu3 %v3143_v22  ;;  %v3015_v52 = vsel %vm594_vm0, %v2983_v12, %v6314_v27  ;;  %v3112_v34 = vsel %vm594_vm0, %v3080_v1, %v6315_v54  ;;  %v6325_v22 = vunpack.i.h.bf16 %v6323_v59  ;;  %v6324_v54 = vunpack.i.l.bf16 %v6323_v59  ;;  %v11389_v59 = vld [vmem:[#allocation90_spill] sm:$0xff] }
 0x2c7   : > { %v3048_v46 = vsel %vm3023_vm6, %v3015_v52, %v6319_v14  ;;  %v3144_v63 = vsel %vm3023_vm6, %v3112_v34, %v6320_v43 }
 0x2c9   : > { %v6328_v57 = vpop.permute.xlu0 %6327  ;;  %v3322_v51 = vpop.f32.mrf.mxu2 }
 0x2ca   : > { %v3435_v4 = vpop.f32.mrf.mxu3  ;;  %v6329_v29 = vunpack.i.l.bf16 %v6328_v57  ;;  %v6330_v1 = vunpack.i.h.bf16 %v6328_v57 }
 0x2cb   : > { %v6338_v2 = vpop.permute.xlu1 %6337  ;;  %v8934_v32 = vadd.f32 %v3435_v4, %v3322_v51  ;;  %v8952_v12 = vpop.f32.mrf.mxu0 }
 0x2cc   : > { %v6340_v13 = vunpack.i.h.bf16 %v6338_v2  ;;  %v6339_v18 = vunpack.i.l.bf16 %v6338_v2  ;;  %v3081_v30 = vsel %vm919_vm2, %v8249_v60, %v6329_v29  ;;  %v6353_v52 = vpop.permute.xlu2 %6352  ;;  %v2985_v57 = vsel %vm919_vm2, %v11389_v59, %v6330_v1 }
 0x2ce   : > { %3372 = vmatmul.f32.gmra.mxu2 %v3048_v46  ;;  %3485 = vmatmul.f32.gmra.mxu3 %v3144_v63  ;;  %v3016_v10 = vsel %vm594_vm0, %v2984_v58, %v6339_v18  ;;  %v3113_v39 = vsel %vm594_vm0, %v3081_v30, %v6340_v13  ;;  %v6350_v63 = vunpack.i.h.bf16 %v6348_v6  ;;  %v6349_v13 = vunpack.i.l.bf16 %v6348_v6 }
 0x2cf   : > { %v3049_v51 = vsel %vm3023_vm6, %v3016_v10, %v6324_v54  ;;  %v3145_v60 = vsel %vm3023_vm6, %v3113_v39, %v6325_v22 }
 0x2d1   : > { %v6333_v3 = vpop.permute.xlu0 %6332  ;;  %v8942_v37 = vpop.f32.mrf.mxu2 }
 0x2d2   : > { %v8946_v15 = vpop.f32.mrf.mxu3  ;;  %v6334_v27 = vunpack.i.l.bf16 %v6333_v3  ;;  %v6335_v30 = vunpack.i.h.bf16 %v6333_v3 }
 0x2d3   : > { %v6343_v62 = vpop.permute.xlu1 %6342  ;;  %v8968_v22 = vpop.f32.mrf.mxu0 }
 0x2d4   : > { %v6345_v4 = vunpack.i.h.bf16 %v6343_v62  ;;  %v6344_v2 = vunpack.i.l.bf16 %v6343_v62  ;;  %v3082_v8 = vsel %vm919_vm2, %v8252_v5, %v6334_v27  ;;  %v2986_v6 = vsel %vm919_vm2, %v8482_v17, %v6335_v30 }
 0x2d6   : > { %3375 = vmatmul.f32.gmra.mxu2 %v3049_v51  ;;  %3488 = vmatmul.f32.gmra.mxu3 %v3145_v60  ;;  %v3017_v42 = vsel %vm594_vm0, %v2985_v57, %v6344_v2  ;;  %v3114_v46 = vsel %vm594_vm0, %v3082_v8, %v6345_v4  ;;  %v6355_v4 = vunpack.i.h.bf16 %v6353_v52  ;;  %v6354_v2 = vunpack.i.l.bf16 %v6353_v52  ;;  %v6378_v57 = vpop.permute.xlu2 %6377 }
 0x2d7   : > { %v3050_v5 = vsel %vm3023_vm6, %v3017_v42, %v6349_v13  ;;  %v3146_v58 = vsel %vm3023_vm6, %v3114_v46, %v6350_v63 }
 0x2d9   : > { %v6358_v34 = vpop.permute.xlu0 %6357  ;;  %v8956_v43 = vpop.f32.mrf.mxu2 }
 0x2da   : > { %v8960_v14 = vpop.f32.mrf.mxu3  ;;  %v6359_v18 = vunpack.i.l.bf16 %v6358_v34 }
 0x2db   : > { %v6368_v29 = vpop.permute.xlu1 %6367 }
 0x2dc   : > { %v6370_v62 = vunpack.i.h.bf16 %v6368_v29  ;;  %v6369_v10 = vunpack.i.l.bf16 %v6368_v29  ;;  %v3083_v39 = vsel %vm919_vm2, %v8286_v50, %v6359_v18  ;;  %v6360_v50 = vunpack.i.h.bf16 %v6358_v34 }
 0x2de   : > { %3378 = vmatmul.f32.gmra.mxu2 %v3050_v5  ;;  %3491 = vmatmul.f32.gmra.mxu3 %v3146_v58  ;;  %v3018_v51 = vsel %vm594_vm0, %v2986_v6, %v6369_v10  ;;  %v3115_v60 = vsel %vm594_vm0, %v3083_v39, %v6370_v62  ;;  %v2987_v52 = vsel %vm919_vm2, %v8351_v53, %v6360_v50  ;;  %v6380_v62 = vunpack.i.h.bf16 %v6378_v57  ;;  %v8986_v6 = vpop.f32.mrf.mxu0 }
 0x2df   : > { %v3051_v29 = vsel %vm3023_vm6, %v3018_v51, %v6354_v2  ;;  %v3147_v42 = vsel %vm3023_vm6, %v3115_v60, %v6355_v4  ;;  %v6379_v10 = vunpack.i.l.bf16 %v6378_v57  ;;  %v6383_v51 = vpop.permute.xlu2 %6382 }
 0x2e1   : > { %v6363_v54 = vpop.permute.xlu0 %6362  ;;  %v3331_v27 = vpop.f32.mrf.mxu2 }
 0x2e2   : > { %v3444_v1 = vpop.f32.mrf.mxu3  ;;  %v6364_v8 = vunpack.i.l.bf16 %v6363_v54 }
 0x2e3   : > { %v6373_v3 = vpop.permute.xlu1 %6372  ;;  %v8974_v59 = vadd.f32 %v3444_v1, %v3331_v27  ;;  %v6365_v1 = vunpack.i.h.bf16 %v6363_v54 }
 0x2e4   : > { %v6375_v46 = vunpack.i.h.bf16 %v6373_v3  ;;  %v6374_v63 = vunpack.i.l.bf16 %v6373_v3  ;;  %v3084_v17 = vsel %vm919_vm2, %v8311_v25, %v6364_v8 }
 0x2e5   : > { %v2988_v57 = vsel %vm919_vm2, %v8572_v23, %v6365_v1 }
 0x2e6   : > { %3381 = vmatmul.f32.gmra.mxu2 %v3051_v29  ;;  %3494 = vmatmul.f32.gmra.mxu3 %v3147_v42  ;;  %v3019_v34 = vsel %vm594_vm0, %v2987_v52, %v6374_v63  ;;  %v3116_v58 = vsel %vm594_vm0, %v3084_v17, %v6375_v46  ;;  %v6385_v46 = vunpack.i.h.bf16 %v6383_v51  ;;  %v6384_v63 = vunpack.i.l.bf16 %v6383_v51 }
 0x2e7   : > { %v3052_v25 = vsel %vm3023_vm6, %v3019_v34, %v6379_v10  ;;  %v3148_v3 = vsel %vm3023_vm6, %v3116_v58, %v6380_v62  ;;  %v2259_v52 = vmul.f32 0.0, %v8782_v56  ;;  %v9001_v34 = vpop.f32.mrf.mxu0  ;;  %v6408_v10 = vpop.permute.xlu2 %6407 }
 0x2e8   : > { %v6409_v51 = vunpack.i.l.bf16 %v6408_v10 }
 0x2e9   : > { %v6388_v13 = vpop.permute.xlu0 %6387  ;;  %v3334_v18 = vpop.f32.mrf.mxu2  ;;  %5800 = vmatmul.msk.f32.gmra.mxu0 %vm919_vm2, %v2259_v52 }
 0x2ea   : > { %v3447_v30 = vpop.f32.mrf.mxu3  ;;  %v6389_v39 = vunpack.i.l.bf16 %v6388_v13 }
 0x2eb   : > { %v6398_v5 = vpop.permute.xlu1 %6397  ;;  %v8984_v27 = vadd.f32 %v3447_v30, %v3334_v18  ;;  %v6390_v30 = vunpack.i.h.bf16 %v6388_v13 }
 0x2ec   : > { %v6400_v53 = vunpack.i.h.bf16 %v6398_v5  ;;  %v6399_v60 = vunpack.i.l.bf16 %v6398_v5  ;;  %v3085_v4 = vsel %vm919_vm2, %v8542_v7, %v6389_v39 }
 0x2ed   : > { %v2989_v56 = vsel %vm919_vm2, %v8402_v20, %v6390_v30 }
 0x2ee   : > { %3384 = vmatmul.f32.gmra.mxu2 %v3052_v25  ;;  %3497 = vmatmul.f32.gmra.mxu3 %v3148_v3  ;;  %v3020_v54 = vsel %vm594_vm0, %v2988_v57, %v6399_v60  ;;  %v3117_v42 = vsel %vm594_vm0, %v3085_v4, %v6400_v53  ;;  %v6410_v3 = vunpack.i.h.bf16 %v6408_v10 }
 0x2ef   : > { %v3053_v7 = vsel %vm3023_vm6, %v3020_v54, %v6384_v63  ;;  %v3149_v5 = vsel %vm3023_vm6, %v3117_v42, %v6385_v46  ;;  %v9014_v20 = vpop.f32.mrf.mxu0  ;;  %v2577_v30 = vpop.permute.xlu2 %2576 }
 0x2f1   : > { %v6393_v2 = vpop.permute.xlu0 %6392  ;;  %v3337_v8 = vpop.f32.mrf.mxu2 }
 0x2f2   : > { %v3450_v50 = vpop.f32.mrf.mxu3  ;;  %v6394_v17 = vunpack.i.l.bf16 %v6393_v2  ;;  %v6395_v4 = vunpack.i.h.bf16 %v6393_v2 }
 0x2f3   : > { %v6403_v29 = vpop.permute.xlu1 %6402  ;;  %v8996_v18 = vadd.f32 %v3450_v50, %v3337_v8 }
 0x2f4   : > { %v6405_v23 = vunpack.i.h.bf16 %v6403_v29  ;;  %v6404_v58 = vunpack.i.l.bf16 %v6403_v29  ;;  %v3086_v62 = vsel %vm919_vm2, %v8564_v26, %v6394_v17  ;;  %v2990_v46 = vsel %vm919_vm2, %v8658_v61, %v6395_v4  ;;  %v11390_v61 = vld [vmem:[#allocation8_spill] sm:$0xff] }
 0x2f5   : > { %v4480_v10 = vsel %vm4478_vm1, %v11390_v61, 0.0 }
 0x2f6   : > { %3387 = vmatmul.f32.gmra.mxu2 %v3053_v7  ;;  %3500 = vmatmul.f32.gmra.mxu3 %v3149_v5  ;;  %v3021_v1 = vsel %vm594_vm0, %v2989_v56, %v6404_v58  ;;  %v3118_v25 = vsel %vm594_vm0, %v3086_v62, %v6405_v23 }
 0x2f7   : > { %v3054_v26 = vsel %vm3023_vm6, %v3021_v1, %v6409_v51  ;;  %v3150_v8 = vsel %vm3023_vm6, %v3118_v25, %v6410_v3  ;;  %v11393_v51 = vld [vmem:[#allocation10_spill] sm:$0xff] }
 0x2f9   : > { %v3340_v39 = vpop.f32.mrf.mxu2  ;;  %v2705_v57 = vpop.permute.xlu0 %2704 }
 0x2fa   : > { %v3453_v13 = vpop.f32.mrf.mxu3  ;;  %v3087_v54 = vsel %vm919_vm2, %v8637_v49, %v2705_v57  ;;  %v9026_v49 = vpop.f32.mrf.mxu0 }
 0x2fb   : > { %v9010_v53 = vadd.f32 %v3453_v13, %v3340_v39  ;;  %v6413_v60 = vpop.permute.xlu1 %6412  ;;  %v11391_v39 = vld [vmem:[#allocation7_spill] sm:$0xff]  ;;  %v11392_v13 = vld [vmem:[#allocation9_spill] sm:$0xff] }
 0x2fc   : > { %v6415_v50 = vunpack.i.h.bf16 %v6413_v60  ;;  %v6414_v29 = vunpack.i.l.bf16 %v6413_v60  ;;  %v4479_v56 = vsel %vm4478_vm1, %v11391_v39, 0.0  ;;  %v4482_v1 = vsel %vm4478_vm1, %v11392_v13, 0.0  ;;  %v11404_v39 = vld [vmem:[#allocation30_spill] sm:$0xff] }
 0x2fd   : > { %v4481_v25 = vadd.f32 %v4480_v10, %v4479_v56  ;;  %v11398_v56 = vld [vmem:[#allocation19_spill] sm:$0xff]  ;;  %v4506_v47 = vsel %vm4478_vm1, %v11404_v39, 0.0 }
 0x2fe   : > { %3390 = vmatmul.f32.gmra.mxu2 %v3054_v26  ;;  %3503 = vmatmul.f32.gmra.mxu3 %v3150_v8  ;;  %v3022_v2 = vsel %vm594_vm0, %v2990_v46, %v6414_v29  ;;  %v3119_v17 = vsel %vm594_vm0, %v3087_v54, %v6415_v50  ;;  %v11394_v8 = vld [vmem:[#allocation12_spill] sm:$0xff] }
 0x2ff   : > { %v3055_v7 = vsel %vm3023_vm6, %v3022_v2, %v2577_v30  ;;  %v3151_v5 = vsel %vm3023_vm6, %v3119_v17, %v6410_v3  ;;  %v4484_v3 = vsel %vm4478_vm1, %v11393_v51, 0.0  ;;  %v4483_v4 = vadd.f32 %v4482_v1, %v4481_v25  ;;  %v11396_v2 = vld [vmem:[#allocation15_spill] sm:$0xff]  ;;  %v11401_v51 = vld [vmem:[#allocation24_spill] sm:$0xff] }
 0x300   : > { %v4486_v57 = vsel %vm4478_vm1, %v11394_v8, 0.0  ;;  %v4490_v17 = vsel %vm4478_vm1, %v11396_v2, 0.0  ;;  %v4494_v1 = vsel %vm4478_vm1, %v11398_v56, 0.0  ;;  %v4500_v61 = vsel %vm4478_vm1, %v11401_v51, 0.0  ;;  %v11421_v8 = vld [vmem:[#allocation27_spill] sm:$0xff] }
 0x301   : > { %v3343_v42 = vpop.f32.mrf.mxu2  ;;  %v4485_v29 = vadd.f32 %v4484_v3, %v4483_v4 }
 0x302   : > { %v3456_v63 = vpop.f32.mrf.mxu3  ;;  %v9042_v54 = vpop.f32.mrf.mxu0 }
 0x303   : > { %v9022_v52 = vadd.f32 %v3456_v63, %v3343_v42  ;;  %v11395_v42 = vld [vmem:[#allocation14_spill] sm:$0xff]  ;;  %v4487_v63 = vadd.f32 %v4486_v57, %v4485_v29  ;;  %v11400_v29 = vld [vmem:[#allocation23_spill] sm:$0xff] }
 0x304   : > { %v4488_v46 = vsel %vm4478_vm1, %v11395_v42, 0.0 }
 0x305   : > { %v4489_v30 = vadd.f32 %v4488_v46, %v4487_v63  ;;  %v4498_v46 = vsel %vm4478_vm1, %v11400_v29, 0.0 }
 0x306   : > { %3393 = vmatmul.f32.gmra.mxu2 %v3055_v7  ;;  %3506 = vmatmul.f32.gmra.mxu3 %v3151_v5  ;;  %v11397_v7 = vld [vmem:[#allocation17_spill] sm:$0xff] }
 0x307   : > { %v4492_v5 = vsel %vm4478_vm1, %v11397_v7, 0.0  ;;  %v11408_v7 = vld [vmem:[#allocation11_spill] sm:$0xff] }
 0x308   : > { %v4514_v0 = vsel %vm4478_vm1, %v11408_v7, 0.0 }
 0x309   : > { %v3346_v23 = vpop.f32.mrf.mxu2 }
 0x30a   : > { %v3459_v58 = vpop.f32.mrf.mxu3  ;;  %v3587_v57 = vpop.f32.mrf.mxu0 }
 0x30b   : > { %v9028_v62 = vadd.f32 %v3459_v58, %v3346_v23  ;;  %v4491_v58 = vadd.f32 %v4490_v17, %v4489_v30 }
 0x30d   : > { %v4493_v3 = vadd.f32 %v4492_v5, %v4491_v58  ;;  %v11402_v5 = vld [vmem:[#allocation26_spill] sm:$0xff] }
 0x30e   : > { %v4502_v58 = vsel %vm4478_vm1, %v11402_v5, 0.0  ;;  %v9120_v5 = vadd.f32 %v8491_v35, %v8852_v31 }
 0x310   : > { %11416 = vst [vmem:[#allocation63_spill] sm:$0xff] %v9120_v5  ;;  %v3695_v35 = vmul.f32 %v9120_v5, %v9120_v5 }
 0x311   : > { %v3349_v60 = vpop.f32.mrf.mxu2 }
 0x312   : > { %v3462_v26 = vpop.f32.mrf.mxu3 }
 0x313   : > { %v9040_v50 = vadd.f32 %v3462_v26, %v3349_v60  ;;  %v11399_v60 = vld [vmem:[#allocation21_spill] sm:$0xff]  ;;  %v4495_v26 = vadd.f32 %v4494_v1, %v4493_v3  ;;  %v11403_v3 = vld [vmem:[#allocation28_spill] sm:$0xff] }
 0x314   : > { %v4496_v4 = vsel %vm4478_vm1, %v11399_v60, 0.0  ;;  %v3727_v60 = vsel %vm919_vm2, %v3695_v35, 0.0  ;;  %v9175_v35 = vadd.f32 %v8758_v9, %v8924_v48  ;;  %v9188_v9 = vadd.f32 %v8840_v36, %v8934_v32  ;;  %v11428_v36 = vld [vmem:[#allocation34_spill] sm:$0xff] }
 0x315   : > { %v4497_v63 = vadd.f32 %v4496_v4, %v4495_v26  ;;  %v4504_v4 = vsel %vm4478_vm1, %v11403_v3, 0.0  ;;  %v3442_v48 = vadd.f32 %v8960_v14, %v8956_v43  ;;  %v4534_v32 = vsel %vm4478_vm1, %v11428_v36, 0.0 }
 0x316   : > { %11425 = vst [vmem:[#allocation66_spill] sm:$0xff] %v9175_v35 }
 0x317   : > { %v4499_v30 = vadd.f32 %v4498_v46, %v4497_v63  ;;  %v9071_v63 = vpop.f32.mrf.mxu0  ;;  %11427 = vst [vmem:[#allocation70_spill] sm:$0xff] %v9188_v9 }
 0x319   : > { %v3352_v23 = vpop.f32.mrf.mxu2  ;;  %v4501_v1 = vadd.f32 %v4500_v61, %v4499_v30 }
 0x31a   : > { %v3465_v10 = vpop.f32.mrf.mxu3 }
 0x31b   : > { %v9052_v25 = vadd.f32 %v3465_v10, %v3352_v23  ;;  %v3947_v23 = vld [vmem:[%s11032_s3 + $0x18] sm:$0xff]  ;;  %v4503_v26 = vadd.f32 %v4502_v58, %v4501_v1 }
 0x31c   : > { %4056 = vmatpush.msrb.mxu1 %v3947_v23  ;;  %v11407_v23 = vld [vmem:[#allocation35_spill] sm:$0xff] }
 0x31d   : > { %v4505_v46 = vadd.f32 %v4504_v4, %v4503_v26  ;;  %v4512_v58 = vsel %vm4478_vm1, %v11407_v23, 0.0  ;;  %v11411_v23 = vld [vmem:[#allocation18_spill] sm:$0xff] }
 0x31f   : > { %v4507_v29 = vadd.f32 %v4506_v47, %v4505_v46  ;;  %v9081_v26 = vpop.f32.mrf.mxu0 }
 0x321   : > { %v3355_v17 = vpop.f32.mrf.mxu2  ;;  %v4509_v30 = vadd.f32 %v4508_v55, %v4507_v29 }
 0x322   : > { %v3468_v13 = vpop.f32.mrf.mxu3 }
 0x323   : > { %v9065_v10 = vadd.f32 %v3468_v13, %v3355_v17  ;;  %v11406_v13 = vld [vmem:[#allocation33_spill] sm:$0xff] }
 0x324   : > { %v4510_v17 = vsel %vm4478_vm1, %v11406_v13, 0.0  ;;  %v11409_v13 = vld [vmem:[#allocation13_spill] sm:$0xff] }
 0x325   : > { %v4511_v1 = vadd.f32 %v4510_v17, %v4509_v30  ;;  %v11410_v17 = vld [vmem:[#allocation16_spill] sm:$0xff] }
 0x326   : > { %v4518_v30 = vsel %vm4478_vm1, %v11410_v17, 0.0 }
 0x327   : > { %v4513_v3 = vadd.f32 %v4512_v58, %v4511_v1  ;;  %v9095_v1 = vpop.f32.mrf.mxu0 }
 0x329   : > { %v3358_v19 = vpop.f32.mrf.mxu2  ;;  %v4515_v46 = vadd.f32 %v4514_v0, %v4513_v3 }
 0x32a   : > { %v3471_v51 = vpop.f32.mrf.mxu3 }
 0x32b   : > { %v9077_v61 = vadd.f32 %v3471_v51, %v3358_v19  ;;  %v4516_v19 = vsel %vm4478_vm1, %v11409_v13, 0.0 }
 0x32c   : > { %v4517_v55 = vadd.f32 %v4516_v19, %v4515_v46 }
 0x32e   : > { %v4519_v58 = vadd.f32 %v4518_v30, %v4517_v55  ;;  %v11414_v30 = vld [vmem:[#allocation22_spill] sm:$0xff] }
 0x32f   : > { %v9108_v55 = vpop.f32.mrf.mxu0  ;;  %v4524_v13 = vsel %vm4478_vm1, %v11414_v30, 0.0 }
 0x330   : > { %11413 = vst [vmem:[#allocation65_spill] sm:$0xff] %v9108_v55 }
 0x331   : > { %v3361_v4 = vpop.f32.mrf.mxu2 }
 0x332   : > { %v3474_v39 = vpop.f32.mrf.mxu3 }
 0x333   : > { %v3475_v47 = vadd.f32 %v3474_v39, %v3361_v4  ;;  %v4520_v39 = vsel %vm4478_vm1, %v11411_v23, 0.0  ;;  %v3946_v4 = vld [vmem:[%s11032_s3 + $0x10] sm:$0xff] }
 0x334   : > { %v4521_v0 = vadd.f32 %v4520_v39, %v4519_v58  ;;  %4057 = vmatpush.msrb.mxu1 %v3946_v4  ;;  %v11415_v23 = vld [vmem:[#allocation25_spill] sm:$0xff] }
 0x335   : > { %v9085_v56 = vadd.f32 %v3587_v57, %v3475_v47  ;;  %v11412_v47 = vld [vmem:[#allocation20_spill] sm:$0xff]  ;;  %v4526_v7 = vsel %vm4478_vm1, %v11415_v23, 0.0  ;;  %v4528_v23 = vsel %vm4478_vm1, %v11421_v8, 0.0 }
 0x336   : > { %v4522_v46 = vsel %vm4478_vm1, %v11412_v47, 0.0 }
 0x337   : > { %v4523_v19 = vadd.f32 %v4522_v46, %v4521_v0  ;;  %v11417_v0 = vld [vmem:[#allocation47_spill] sm:$0xff]  ;;  %v11419_v46 = vld [vmem:[#allocation53_spill] sm:$0xff] }
 0x338   : > { %v9124_v4 = vadd.f32 %v11417_v0, %v8836_v24  ;;  %v9128_v30 = vadd.f32 %v11419_v46, %v8866_v28  ;;  %v3626_v28 = vsel %vm919_vm2, %v9120_v5, 0.0 }
 0x339   : > { %v9089_v51 = vpop.f32.mrf.mxu2  ;;  %v4525_v17 = vadd.f32 %v4524_v13, %v4523_v19  ;;  %v11420_v13 = vld [vmem:[#allocation69_spill] sm:$0xff] }
 0x33a   : > { %v9091_v29 = vpop.f32.mrf.mxu3  ;;  %11418 = vst [vmem:[#allocation41_spill] sm:$0xff] %v9124_v4  ;;  %v9132_v19 = vadd.f32 %v11420_v13, %v8880_v45  ;;  %v3696_v24 = vmul.f32 %v9128_v30, %v9128_v30  ;;  %v11423_v45 = vld [vmem:[#allocation56_spill] sm:$0xff]  ;;  %v11424_v13 = vld [vmem:[#allocation29_spill] sm:$0xff]  ;;  %v3625_v42 = vsel %vm919_vm2, %v9124_v4, 0.0  ;;  %v3628_v2 = vsel %vm919_vm2, %v9128_v30, 0.0 }
 0x33b   : > { %v4527_v47 = vadd.f32 %v4526_v7, %v4525_v17  ;;  %v3694_v7 = vmul.f32 %v9124_v4, %v9124_v4  ;;  %v9142_v17 = vpop.f32.mrf.mxu0  ;;  %v9148_v0 = vadd.f32 %v11423_v45, %v8896_v40  ;;  %v9165_v40 = vadd.f32 %v8714_v21, %v8910_v44  ;;  %v11426_v44 = vld [vmem:[#allocation31_spill] sm:$0xff] }
 0x33c   : > { %11422 = vst [vmem:[#allocation68_spill] sm:$0xff] %v9142_v17  ;;  %v3627_v5 = vadd.f32 %v3626_v28, %v3625_v42  ;;  %v3729_v17 = vsel %vm919_vm2, %v3696_v24, 0.0  ;;  %v3630_v55 = vsel %vm919_vm2, %v9132_v19, 0.0  ;;  %v3439_v21 = vadd.f32 %v8946_v15, %v8942_v37 }
 0x33d   : > { %v4529_v31 = vadd.f32 %v4528_v23, %v4527_v47  ;;  %v4530_v23 = vsel %vm4478_vm1, %v11424_v13, 0.0  ;;  %v3697_v47 = vmul.f32 %v9132_v19, %v9132_v19  ;;  %v3726_v13 = vsel %vm919_vm2, %v3694_v7, 0.0 }
 0x33e   : > { %v3698_v4 = vmul.f32 %v9148_v0, %v9148_v0  ;;  %v3728_v7 = vadd.f32 %v3727_v60, %v3726_v13  ;;  %v3629_v42 = vadd.f32 %v3628_v2, %v3627_v5  ;;  %v3632_v28 = vsel %vm919_vm2, %v9148_v0, 0.0 }
 0x33f   : > { %v4531_v45 = vadd.f32 %v4530_v23, %v4529_v31  ;;  %v4532_v31 = vsel %vm4478_vm1, %v11426_v44, 0.0  ;;  %v3731_v24 = vsel %vm919_vm2, %v3697_v47, 0.0  ;;  %v3699_v23 = vmul.f32 %v9165_v40, %v9165_v40 }
 0x340   : > { %v3730_v15 = vadd.f32 %v3729_v17, %v3728_v7  ;;  %v3631_v44 = vadd.f32 %v3630_v55, %v3629_v42  ;;  %v3733_v2 = vsel %vm919_vm2, %v3698_v4, 0.0  ;;  %v3634_v60 = vsel %vm919_vm2, %v9165_v40, 0.0 }
 0x341   : > { %v9099_v57 = vpop.f32.mrf.mxu2  ;;  %v4533_v37 = vadd.f32 %v4532_v31, %v4531_v45  ;;  %v3700_v5 = vmul.f32 %v9175_v35, %v9175_v35  ;;  %v9198_v13 = vadd.f32 %v8858_v11, %v3439_v21  ;;  %v3735_v4 = vsel %vm919_vm2, %v3699_v23, 0.0 }
 0x342   : > { %v9101_v3 = vpop.f32.mrf.mxu3  ;;  %v3732_v43 = vadd.f32 %v3731_v24, %v3730_v15  ;;  %v3633_v14 = vadd.f32 %v3632_v28, %v3631_v44  ;;  %v3636_v45 = vsel %vm919_vm2, %v9175_v35, 0.0  ;;  %v3701_v11 = vmul.f32 %v9188_v9, %v9188_v9  ;;  %v11429_v15 = vld [vmem:[#allocation36_spill] sm:$0xff] }
 0x343   : > { %v9204_v17 = vpop.f32.mrf.mxu0  ;;  %v9214_v21 = vadd.f32 %v8882_v38, %v3442_v48  ;;  %v4535_v31 = vadd.f32 %v4534_v32, %v4533_v37  ;;  %v3737_v44 = vsel %vm919_vm2, %v3700_v5, 0.0  ;;  %v3638_v24 = vsel %vm919_vm2, %v9188_v9, 0.0 }
 0x344   : > { %v3734_v7 = vadd.f32 %v3733_v2, %v3732_v43  ;;  %v3635_v42 = vadd.f32 %v3634_v60, %v3633_v14  ;;  %v3702_v28 = vmul.f32 %v9198_v13, %v9198_v13  ;;  %v9223_v23 = vadd.f32 %v8900_v33, %v8974_v59 }
 0x345   : > { %v4536_v35 = vsel %vm4478_vm1, %v11429_v15, 0.0  ;;  %v3739_v37 = vsel %vm919_vm2, %v3701_v11, 0.0  ;;  %v3640_v2 = vsel %vm919_vm2, %v9198_v13, 0.0  ;;  %v3703_v60 = vmul.f32 %v9214_v21, %v9214_v21 }
 0x346   : > { %v3736_v38 = vadd.f32 %v3735_v4, %v3734_v7  ;;  %v3637_v48 = vadd.f32 %v3636_v45, %v3635_v42  ;;  %v9234_v5 = vadd.f32 %v8916_v16, %v8984_v27  ;;  %v4537_v32 = vadd.f32 %v4536_v35, %v4535_v31  ;;  %v3945_v16 = vld [vmem:[%s11032_s3 + $0x8] sm:$0xff]  ;;  %v11430_v27 = vld [vmem:[#allocation37_spill] sm:$0xff] }
 0x347   : > { %v3741_v43 = vsel %vm919_vm2, %v3702_v28, 0.0  ;;  %v3642_v14 = vsel %vm919_vm2, %v9214_v21, 0.0  ;;  %v3704_v4 = vmul.f32 %v9223_v23, %v9223_v23  ;;  %v9243_v45 = vadd.f32 %v8936_v41, %v8996_v18  ;;  %4058 = vmatpush.msrb.mxu1 %v3945_v16 }
 0x348   : > { %v3738_v33 = vadd.f32 %v3737_v44, %v3736_v38  ;;  %v3639_v59 = vadd.f32 %v3638_v24, %v3637_v48  ;;  %v4538_v35 = vsel %vm4478_vm1, %v11430_v27, 0.0  ;;  %v3743_v44 = vsel %vm919_vm2, %v3703_v60, 0.0  ;;  %v11431_v38 = vld [vmem:[#allocation38_spill] sm:$0xff] }
 0x349   : > { %v9112_v58 = vpop.f32.mrf.mxu2  ;;  %v3644_v41 = vsel %vm919_vm2, %v9223_v23, 0.0  ;;  %v3705_v18 = vmul.f32 %v9234_v5, %v9234_v5  ;;  %v9261_v24 = vadd.f32 %v8952_v12, %v9010_v53  ;;  %v4539_v28 = vadd.f32 %v4538_v35, %v4537_v32 }
 0x34a   : > { %v9114_v39 = vpop.f32.mrf.mxu3  ;;  %v3740_v31 = vadd.f32 %v3739_v37, %v3738_v33  ;;  %v3641_v7 = vadd.f32 %v3640_v2, %v3639_v59  ;;  %v4540_v48 = vsel %vm4478_vm1, %v11431_v38, 0.0  ;;  %v3745_v60 = vsel %vm919_vm2, %v3704_v4, 0.0 }
 0x34b   : > { %v9265_v33 = vpop.f32.mrf.mxu0  ;;  %v3646_v59 = vsel %vm919_vm2, %v9234_v5, 0.0  ;;  %v3706_v16 = vmul.f32 %v9243_v45, %v9243_v45  ;;  %v9274_v12 = vadd.f32 %v8968_v22, %v9022_v52  ;;  %v3747_v35 = vsel %vm919_vm2, %v3705_v18, 0.0 }
 0x34c   : > { %v3742_v37 = vadd.f32 %v3741_v43, %v3740_v31  ;;  %v3643_v2 = vadd.f32 %v3642_v14, %v3641_v7  ;;  %v3648_v43 = vsel %vm919_vm2, %v9243_v45, 0.0  ;;  %v3707_v14 = vmul.f32 %v9261_v24, %v9261_v24 }
 0x34d   : > { %v9283_v4 = vadd.f32 %v8986_v6, %v9028_v62  ;;  %v4541_v31 = vadd.f32 %v4540_v48, %v4539_v28  ;;  %v3749_v22 = vsel %vm919_vm2, %v3706_v16, 0.0  ;;  %v3650_v52 = vsel %vm919_vm2, %v9261_v24, 0.0 }
 0x34e   : > { %v3744_v53 = vadd.f32 %v3743_v44, %v3742_v37  ;;  %v3645_v32 = vadd.f32 %v3644_v41, %v3643_v2  ;;  %v3708_v44 = vmul.f32 %v9274_v12, %v9274_v12  ;;  %v9292_v41 = vadd.f32 %v9001_v34, %v9040_v50 }
 0x34f   : > { %v9298_v62 = vadd.f32 %v9014_v20, %v9052_v25  ;;  %v3751_v48 = vsel %vm919_vm2, %v3707_v14, 0.0  ;;  %v3652_v2 = vsel %vm919_vm2, %v9274_v12, 0.0  ;;  %v4542_v34 = vrot.slane %v4541_v31, 4 }
 0x350   : > { %v3746_v7 = vadd.f32 %v3745_v60, %v3744_v53  ;;  %v3647_v9 = vadd.f32 %v3646_v59, %v3645_v32  ;;  %v3709_v60 = vmul.f32 %v9283_v4, %v9283_v4  ;;  %v3753_v16 = vsel %vm919_vm2, %v3708_v44, 0.0 }
 0x351   : > { %v9150_v46 = vpop.f32.mrf.mxu2  ;;  %v3710_v20 = vmul.f32 %v9292_v41, %v9292_v41  ;;  %v9314_v25 = vadd.f32 %v9026_v49, %v9065_v10  ;;  %v3478_v49 = vadd.f32 %v9091_v29, %v9089_v51  ;;  %v4543_v10 = vadd.f32 %v4542_v34, %v4541_v31 }
 0x352   : > { %v9156_v8 = vpop.f32.mrf.mxu3  ;;  %v3748_v37 = vadd.f32 %v3747_v35, %v3746_v7  ;;  %v3649_v6 = vadd.f32 %v3648_v43, %v3647_v9  ;;  %v3654_v9 = vsel %vm919_vm2, %v9283_v4, 0.0  ;;  %v3711_v43 = vmul.f32 %v9298_v62, %v9298_v62 }
 0x353   : > { %v9316_v53 = vpop.f32.mrf.mxu0  ;;  %v3755_v14 = vsel %vm919_vm2, %v3709_v60, 0.0  ;;  %v3656_v7 = vsel %vm919_vm2, %v9292_v41, 0.0  ;;  %v3660_v31 = vsel %vm919_vm2, %v9314_v25, 0.0  ;;  %v3484_v34 = vadd.f32 %v9114_v39, %v9112_v58 }
 0x354   : > { %v3750_v50 = vadd.f32 %v3749_v22, %v3748_v37  ;;  %v3651_v59 = vadd.f32 %v3650_v52, %v3649_v6  ;;  %v9325_v22 = vadd.f32 %v9042_v54, %v9077_v61  ;;  %v3481_v37 = vadd.f32 %v9101_v3, %v9099_v57  ;;  %v11432_v54 = vld [vmem:[#allocation39_spill] sm:$0xff] }
 0x355   : > { %v3757_v6 = vsel %vm919_vm2, %v3710_v20, 0.0  ;;  %v4712_v61 = vrot.slane %v11432_v54, 4  ;;  %v3759_v51 = vsel %vm919_vm2, %v3711_v43, 0.0  ;;  %v9343_v3 = vadd.f32 %v9071_v63, %v3478_v49 }
 0x356   : > { %v3752_v32 = vadd.f32 %v3751_v48, %v3750_v50  ;;  %v3653_v35 = vadd.f32 %v3652_v2, %v3651_v59  ;;  %v3658_v48 = vsel %vm919_vm2, %v9298_v62, 0.0  ;;  %v3712_v2 = vmul.f32 %v9314_v25, %v9314_v25 }
 0x357   : > { %v3713_v57 = vmul.f32 %v9325_v22, %v9325_v22  ;;  %v3662_v43 = vsel %vm919_vm2, %v9325_v22, 0.0  ;;  %v3487_v63 = vadd.f32 %v9156_v8, %v9150_v46 }
 0x358   : > { %v3754_v52 = vadd.f32 %v3753_v16, %v3752_v32  ;;  %v3655_v44 = vadd.f32 %v3654_v9, %v3653_v35  ;;  %v4544_v16 = vrot.slane %v4543_v10, 2  ;;  %v9348_v32 = vadd.f32 %v9081_v26, %v3481_v37 }
 0x359   : > { %v9200_v47 = vpop.f32.mrf.mxu2  ;;  %v3761_v35 = vsel %vm919_vm2, %v3712_v2, 0.0  ;;  %v3763_v26 = vsel %vm919_vm2, %v3713_v57, 0.0  ;;  %v9366_v37 = vadd.f32 %v9095_v1, %v3484_v34 }
 0x35a   : > { %v9206_v55 = vpop.f32.mrf.mxu3  ;;  %v3756_v50 = vadd.f32 %v3755_v14, %v3754_v52  ;;  %v3657_v59 = vadd.f32 %v3656_v7, %v3655_v44  ;;  %v3714_v14 = vmul.f32 %v9085_v56, %v9085_v56  ;;  %v4713_v7 = vadd.f32 %v4712_v61, %v11432_v54  ;;  %v11433_v54 = vld [vmem:[#allocation65_spill] sm:$0xff] }
 0x35b   : > { %v3490_v49 = vadd.f32 %v9206_v55, %v9200_v47  ;;  %v3664_v52 = vsel %vm919_vm2, %v9085_v56, 0.0  ;;  %v3715_v44 = vmul.f32 %v9343_v3, %v9343_v3  ;;  %v3614_v8 = vpop.f32.mrf.mxu0  ;;  %v3716_v2 = vmul.f32 %v9348_v32, %v9348_v32 }
 0x35c   : > { %v3758_v9 = vadd.f32 %v3757_v6, %v3756_v50  ;;  %v3659_v20 = vadd.f32 %v3658_v48, %v3657_v59  ;;  %v4545_v6 = vadd.f32 %v4544_v16, %v4543_v10  ;;  %v3765_v47 = vsel %vm919_vm2, %v3714_v14, 0.0 }
 0x35d   : > { %v3666_v55 = vsel %vm919_vm2, %v9343_v3, 0.0  ;;  %v9374_v61 = vadd.f32 %v11433_v54, %v3487_v63  ;;  %v4714_v59 = vrot.slane %v4713_v7, 2  ;;  %v3767_v16 = vsel %vm919_vm2, %v3715_v44, 0.0 }
 0x35e   : > { %v3760_v58 = vadd.f32 %v3759_v51, %v3758_v9  ;;  %v3661_v39 = vadd.f32 %v3660_v31, %v3659_v20  ;;  %v11434_v31 = vld [vmem:[#allocation68_spill] sm:$0xff]  ;;  %v3668_v9 = vsel %vm919_vm2, %v9348_v32, 0.0  ;;  %v3717_v20 = vmul.f32 %v9366_v37, %v9366_v37 }
 0x35f   : > { %v9379_v57 = vadd.f32 %v11434_v31, %v3490_v49  ;;  %v3769_v14 = vsel %vm919_vm2, %v3716_v2, 0.0  ;;  %v3670_v63 = vsel %vm919_vm2, %v9366_v37, 0.0 }
 0x360   : > { %v3762_v46 = vadd.f32 %v3761_v35, %v3760_v58  ;;  %v3663_v48 = vadd.f32 %v3662_v43, %v3661_v39  ;;  %v3718_v58 = vmul.f32 %v9374_v61, %v9374_v61 }
 0x361   : > { %v9245_v11 = vpop.f32.mrf.mxu2 }
 0x362   : > { %v9252_v42 = vpop.f32.mrf.mxu3  ;;  %v3764_v10 = vadd.f32 %v3763_v26, %v3762_v46  ;;  %v3665_v51 = vadd.f32 %v3664_v52, %v3663_v48  ;;  %v4715_v26 = vadd.f32 %v4714_v59, %v4713_v7  ;;  %v3672_v46 = vsel %vm919_vm2, %v9374_v61, 0.0 }
 0x363   : > { %v3493_v50 = vadd.f32 %v9252_v42, %v9245_v11  ;;  %v4546_v11 = vrot.slane %v4545_v6, 1  ;;  %v3617_v54 = vpop.f32.mrf.mxu0 }
 0x364   : > { %v3766_v42 = vadd.f32 %v3765_v47, %v3764_v10  ;;  %v3667_v43 = vadd.f32 %v3666_v55, %v3665_v51  ;;  %v4716_v10 = vrot.slane %v4715_v26, 1 }
 0x365   : > { %v9394_v39 = vadd.f32 %v9204_v17, %v3493_v50  ;;  %v4547_v47 = vadd.f32 %v4546_v11, %v4545_v6 }
 0x366   : > { %v3768_v52 = vadd.f32 %v3767_v16, %v3766_v42  ;;  %v3669_v44 = vadd.f32 %v3668_v9, %v3667_v43 }
 0x367   : > { %v3720_v7 = vmul.f32 %v9394_v39, %v9394_v39  ;;  %v3676_v31 = vsel %vm919_vm2, %v9394_v39, 0.0 }
 0x368   : > { %v3770_v55 = vadd.f32 %v3769_v14, %v3768_v52  ;;  %v3671_v17 = vadd.f32 %v3670_v63, %v3669_v44  ;;  %v11435_v14 = vld [vmem:[#allocation40_spill] sm:$0xff] }
 0x369   : > { %v9294_v18 = vpop.f32.mrf.mxu2  ;;  %v9427_v63 = vmul.f32 %v4547_v47, %v11435_v14 }
 0x36a   : > { %v9300_v28 = vpop.f32.mrf.mxu3  ;;  %v3673_v51 = vadd.f32 %v3672_v46, %v3671_v17 }
 0x36b   : > { %v3496_v35 = vadd.f32 %v9300_v28, %v9294_v18  ;;  %v3719_v18 = vmul.f32 %v9379_v57, %v9379_v57  ;;  %v3771_v28 = vsel %vm919_vm2, %v3717_v20, 0.0  ;;  %11436 = vst [vmem:[#allocation72_spill] sm:$0xff] %v9427_v63 }
 0x36d   : > { %v9402_v48 = vadd.f32 %v9265_v33, %v3496_v35  ;;  %v3772_v33 = vadd.f32 %v3771_v28, %v3770_v55  ;;  %v3775_v6 = vsel %vm919_vm2, %v3719_v18, 0.0 }
 0x36f   : > { %v3678_v11 = vsel %vm919_vm2, %v9402_v48, 0.0 }
 0x371   : > { %v3385_v60 = vpop.f32.mrf.mxu2 }
 0x372   : > { %v3498_v29 = vpop.f32.mrf.mxu3 }
 0x373   : > { %v3499_v49 = vadd.f32 %v3498_v29, %v3385_v60  ;;  %v3773_v60 = vsel %vm919_vm2, %v3718_v58, 0.0  ;;  %v3674_v29 = vsel %vm919_vm2, %v9379_v57, 0.0  ;;  %v4717_v58 = vadd.f32 %v4716_v10, %v4715_v26 }
 0x374   : > { %v3774_v20 = vadd.f32 %v3773_v60, %v3772_v33  ;;  %v3675_v35 = vadd.f32 %v3674_v29, %v3673_v51 }
 0x375   : > { %v9410_v50 = vadd.f32 %v9316_v53, %v3499_v49  ;;  %v3777_v53 = vsel %vm919_vm2, %v3720_v7, 0.0  ;;  %v4789_v17 = vmul.f32 %v4717_v58, %v11435_v14 }
 0x376   : > { %v3776_v49 = vadd.f32 %v3775_v6, %v3774_v20 }
 0x377   : > { %v3722_v42 = vmul.f32 %v9410_v50, %v9410_v50  ;;  %v3680_v44 = vsel %vm919_vm2, %v9410_v50, 0.0 }
 0x378   : > { %v3778_v28 = vadd.f32 %v3777_v53, %v3776_v49 }
 0x379   : > { %v3388_v1 = vpop.f32.mrf.mxu2 }
 0x37a   : > { %v3501_v34 = vpop.f32.mrf.mxu3 }
 0x37b   : > { %v3502_v2 = vadd.f32 %v3501_v34, %v3388_v1  ;;  %v3721_v34 = vmul.f32 %v9402_v48, %v9402_v48 }
 0x37d   : > { %v9417_v16 = vadd.f32 %v3614_v8, %v3502_v2  ;;  %v3677_v8 = vadd.f32 %v3676_v31, %v3675_v35  ;;  %v3779_v52 = vsel %vm919_vm2, %v3721_v34, 0.0  ;;  %v3781_v2 = vsel %vm919_vm2, %v3722_v42, 0.0 }
 0x37e   : > { %v3780_v60 = vadd.f32 %v3779_v52, %v3778_v28 }
 0x37f   : > { %v3723_v18 = vmul.f32 %v9417_v16, %v9417_v16  ;;  %v3679_v46 = vadd.f32 %v3678_v11, %v3677_v8  ;;  %v3682_v55 = vsel %vm919_vm2, %v9417_v16, 0.0 }
 0x380   : > { %v3782_v6 = vadd.f32 %v3781_v2, %v3780_v60 }
 0x381   : > { %v3391_v59 = vpop.f32.mrf.mxu2  ;;  %v3681_v29 = vadd.f32 %v3680_v44, %v3679_v46  ;;  %v3783_v10 = vsel %vm919_vm2, %v3723_v18, 0.0 }
 0x382   : > { %v3504_v1 = vpop.f32.mrf.mxu3  ;;  %v3784_v35 = vadd.f32 %v3783_v10, %v3782_v6 }
 0x383   : > { %v3505_v9 = vadd.f32 %v3504_v1, %v3391_v59  ;;  %v3620_v59 = vpop.f32.mrf.mxu0  ;;  %v3683_v1 = vadd.f32 %v3682_v55, %v3681_v29 }
 0x385   : > { %v9424_v43 = vadd.f32 %v3617_v54, %v3505_v9  ;;  %v4791_v54 = vmul.f32 %v9427_v63, %v9427_v63 }
 0x387   : > { %v3724_v26 = vmul.f32 %v9424_v43, %v9424_v43  ;;  %v3684_v33 = vsel %vm919_vm2, %v9424_v43, 0.0  ;;  %v4793_v9 = vsub.f32 %v4789_v17, %v4791_v54 }
 0x388   : > { %v3685_v20 = vadd.f32 %v3684_v33, %v3683_v1 }
 0x389   : > { %v3394_v47 = vpop.f32.mrf.mxu2  ;;  %v3785_v31 = vsel %vm919_vm2, %v3724_v26, 0.0  ;;  %v4795_v8 = vmax.f32 %v4793_v9, 0.0 }
 0x38a   : > { %v3507_v7 = vpop.f32.mrf.mxu3  ;;  %v3786_v42 = vadd.f32 %v3785_v31, %v3784_v35 }
 0x38b   : > { %v3508_v51 = vadd.f32 %v3507_v7, %v3394_v47  ;;  %v4797_v46 = vadd.f32 1e-05, %v4795_v8  ;;  %v9453_v7 = vpop.f32.mrf.mxu1 }
 0x38d   : > { %v9446_v34 = vadd.f32 %v3620_v59, %v3508_v51  ;;  %6425 = vrsqrt.f32 %v4797_v46  ;;  %vm4805_vm1 = vweird.f32 %v4797_v46 }
 0x38f   : > { %v3686_v53 = vsel %vm919_vm2, %v9446_v34, 0.0  ;;  %v3725_v11 = vmul.f32 %v9446_v34, %v9446_v34 }
 0x390   : > { %v3687_v58 = vadd.f32 %v3686_v53, %v3685_v20  ;;  %v3944_v20 = vld [vmem:[%s11032_s3] sm:$0xff] }
 0x391   : > { %v3787_v49 = vsel %vm919_vm2, %v3725_v11, 0.0  ;;  %4059 = vmatpush.msrb.mxu1 %v3944_v20 }
 0x392   : > { %v3688_v52 = vrot.slane %v3687_v58, 4  ;;  %v3788_v44 = vadd.f32 %v3787_v49, %v3786_v42 }
 0x393   : > { %v6426_v33 = vpop.eup %6425  ;;  %v9466_v42 = vpop.f32.mrf.mxu1 }
 0x394   : > { %v3689_v18 = vadd.f32 %v3688_v52, %v3687_v58  ;;  %v3789_v28 = vrot.slane %v3788_v44, 4  ;;  %v4800_v9 = vmul.f32 %v6426_v33, %v4797_v46  ;;  %vm4806_vm0 = vweird.f32 %v6426_v33 }
 0x395   : > { %vm4807_vm9 = vmor %vm4805_vm1, %vm4806_vm0 }
 0x396   : > { %v3690_v2 = vrot.slane %v3689_v18, 2  ;;  %v3790_v55 = vadd.f32 %v3789_v28, %v3788_v44  ;;  %v4801_v11 = vmul.f32 %v6426_v33, %v4800_v9 }
 0x398   : > { %v3691_v26 = vadd.f32 %v3690_v2, %v3689_v18  ;;  %v3791_v47 = vrot.slane %v3790_v55, 2  ;;  %v4802_v52 = vmul.f32 0.5, %v4801_v11 }
 0x39a   : > { %v3692_v17 = vrot.slane %v3691_v26, 1  ;;  %v3792_v54 = vadd.f32 %v3791_v47, %v3790_v55  ;;  %v4803_v18 = vsub.f32 1.5, %v4802_v52 }
 0x39b   : > { %v9476_v55 = vpop.f32.mrf.mxu1 }
 0x39c   : > { %v3693_v60 = vadd.f32 %v3692_v17, %v3691_v26  ;;  %v3793_v29 = vrot.slane %v3792_v54, 1  ;;  %v4804_v26 = vmul.f32 %v6426_v33, %v4803_v18  ;;  %v9478_v17 = vpop.permute.xlu0 %4885 }
 0x39d   : > { %11437 = vst [vmem:[#allocation76_spill] sm:$0xff] %v9478_v17 }
 0x39e   : > { %v3794_v59 = vadd.f32 %v3793_v29, %v3792_v54  ;;  %v9456_v10 = vmul.f32 %v3693_v60, %v11435_v14  ;;  %v4808_v60 = vsel %vm4807_vm9, %v6426_v33, %v4804_v26  ;;  %v3623_v29 = vld [vmem:[%s11035_s6] sm:$0x1] }
 0x3a0   : > { %v3796_v51 = vmul.f32 %v3794_v59, %v11435_v14  ;;  %v3797_v6 = vmul.f32 %v9456_v10, %v9456_v10  ;;  %v3842_v1 = vsub.f32 %v9446_v34, %v9456_v10  ;;  %v3838_v58 = vsub.f32 %v9402_v48, %v9456_v10 }
 0x3a1   : > { %v3839_v49 = vsub.f32 %v9410_v50, %v9456_v10  ;;  %v3840_v34 = vsub.f32 %v9417_v16, %v9456_v10  ;;  %v3841_v8 = vsub.f32 %v9424_v43, %v9456_v10  ;;  %v3821_v46 = vsub.f32 %v9223_v23, %v9456_v10  ;;  %v11440_v50 = vld [vmem:[#allocation63_spill] sm:$0xff] }
 0x3a2   : > { %v3798_v31 = vsub.f32 %v3796_v51, %v3797_v6  ;;  %v4888_v51 = vmul.f32 %v9478_v17, %v4808_v60  ;;  %v11438_v6 = vld [vmem:[#allocation41_spill] sm:$0xff]  ;;  %v3822_v20 = vsub.f32 %v9234_v5, %v9456_v10  ;;  %v3823_v33 = vsub.f32 %v9243_v45, %v9456_v10 }
 0x3a3   : > { %v3825_v11 = vsub.f32 %v9274_v12, %v9456_v10  ;;  %v3826_v52 = vsub.f32 %v9283_v4, %v9456_v10  ;;  %v3828_v23 = vsub.f32 %v9298_v62, %v9456_v10  ;;  %v3829_v5 = vsub.f32 %v9314_v25, %v9456_v10  ;;  %v9506_v18 = vpop.f32.mrf.mxu1 }
 0x3a4   : > { %v3799_v35 = vmax.f32 %v3798_v31, 0.0  ;;  %v3811_v31 = vsub.f32 %v11438_v6, %v9456_v10  ;;  %v3830_v45 = vsub.f32 %v9325_v22, %v9456_v10  ;;  %v3831_v12 = vsub.f32 %v9085_v56, %v9456_v10 }
 0x3a5   : > { %v3832_v4 = vsub.f32 %v9343_v3, %v9456_v10  ;;  %v3834_v62 = vsub.f32 %v9366_v37, %v9456_v10  ;;  %v3835_v25 = vsub.f32 %v9374_v61, %v9456_v10  ;;  %v3836_v22 = vsub.f32 %v9379_v57, %v9456_v10 }
 0x3a6   : > { %v3800_v53 = vadd.f32 1e-06, %v3799_v35 }
 0x3a8   : > { %6427 = vrsqrt.f32 %v3800_v53  ;;  %vm3807_vm10 = vweird.f32 %v3800_v53 }
 0x3ab   : > { %v9615_v16 = vpop.f32.mrf.mxu1 }
 0x3ae   : > { %v6428_v44 = vpop.eup %6427 }
 0x3af   : > { %v3802_v28 = vmul.f32 %v6428_v44, %v3800_v53  ;;  %vm3808_vm8 = vweird.f32 %v6428_v44  ;;  %v3824_v53 = vsub.f32 %v9261_v24, %v9456_v10 }
 0x3b0   : > { %vm3809_vm11 = vmor %vm3807_vm10, %vm3808_vm8 }
 0x3b1   : > { %v3803_v2 = vmul.f32 %v6428_v44, %v3802_v28  ;;  %v3837_v28 = vsub.f32 %v9394_v39, %v9456_v10 }
 0x3b3   : > { %v3804_v47 = vmul.f32 0.5, %v3803_v2 }
 0x3b5   : > { %v3805_v54 = vsub.f32 1.5, %v3804_v47 }
 0x3b7   : > { %v3806_v59 = vmul.f32 %v6428_v44, %v3805_v54 }
 0x3b9   : > { %v3810_v9 = vsel %vm3809_vm11, %v6428_v44, %v3806_v59  ;;  %v3827_v44 = vsub.f32 %v9292_v41, %v9456_v10  ;;  %v3833_v41 = vsub.f32 %v9348_v32, %v9456_v10 }
 0x3ba   : > { %v3843_v35 = vmul.f32 %v3810_v9, %v3623_v29  ;;  %v9575_v9 = vld [vmem:[%s11036_s7] ss:$0 sm:$0xff] }
 0x3bc   : > { %v9508_v24 = vperm.slane %v3843_v35, 0 }
 0x3be   : > { %v9525_v56 = vmul.f32 %v9508_v24, %v3842_v1  ;;  %v9528_v3 = vmul.f32 %v9508_v24, %v3821_v46  ;;  %v9531_v32 = vmul.f32 %v9508_v24, %v3822_v20  ;;  %v9534_v37 = vmul.f32 %v9508_v24, %v3823_v33 }
 0x3bf   : > { %v9537_v61 = vmul.f32 %v9508_v24, %v3824_v53  ;;  %v9540_v57 = vmul.f32 %v9508_v24, %v3825_v11  ;;  %v9543_v39 = vmul.f32 %v9508_v24, %v3826_v52  ;;  %v9546_v1 = vmul.f32 %v9508_v24, %v3827_v44  ;;  %v11441_v52 = vld [vmem:[#allocation15_spill] sm:$0xff] }
 0x3c0   : > { %v9549_v2 = vmul.f32 %v9508_v24, %v3828_v23  ;;  %v9552_v26 = vmul.f32 %v9508_v24, %v3829_v5  ;;  %v9555_v47 = vmul.f32 %v9508_v24, %v3830_v45  ;;  %v9558_v54 = vmul.f32 %v9508_v24, %v3831_v12 }
 0x3c1   : > { %v9561_v60 = vmul.f32 %v9508_v24, %v3832_v4  ;;  %v9564_v29 = vmul.f32 %v9508_v24, %v3833_v41  ;;  %v9567_v59 = vmul.f32 %v9508_v24, %v3834_v62  ;;  %v9570_v6 = vmul.f32 %v9508_v24, %v3835_v25  ;;  %v11447_v62 = vld [vmem:[#allocation12_spill] sm:$0xff] }
 0x3c2   : > { %v9578_v46 = vmul.f32 %v9508_v24, %v3836_v22  ;;  %v9581_v20 = vmul.f32 %v9508_v24, %v3837_v28  ;;  %v9587_v33 = vmul.f32 %v9508_v24, %v3838_v58  ;;  %v9593_v35 = vmul.f32 %v9508_v24, %v3839_v49  ;;  %v11448_v22 = vld [vmem:[#allocation26_spill] sm:$0xff] }
 0x3c3   : > { %v9595_v53 = vperm.slane %v4888_v51, 0  ;;  %v9601_v11 = vmul.f32 %v9508_v24, %v3840_v34  ;;  %v9607_v48 = vmul.f32 %v9508_v24, %v3841_v8  ;;  %v3845_v58 = vmul.f32 %v9508_v24, %v3811_v31  ;;  %v11443_v8 = vld [vmem:[#allocation21_spill] sm:$0xff]  ;;  %v11444_v31 = vld [vmem:[#allocation14_spill] sm:$0xff] }
 0x3c4   : > { %v3812_v49 = vsub.f32 %v11440_v50, %v9456_v10  ;;  %v4831_v44 = vsub.f32 %v11441_v52, %v9427_v63  ;;  %v4837_v5 = vsub.f32 %v11443_v8, %v9427_v63  ;;  %v4829_v45 = vsub.f32 %v11444_v31, %v9427_v63  ;;  %v11451_v52 = vld [vmem:[#allocation17_spill] sm:$0xff]  ;;  %v9656_v31 = vpop.f32.mrf.mxu1 }
 0x3c5   : > { %11439 = vst [vmem:[#allocation75_spill] sm:$0xff] %v9595_v53  ;;  %v3880_v51 = vadd.f32 %v9575_v9, %v3845_v58  ;;  %v4827_v25 = vsub.f32 %v11447_v62, %v9427_v63  ;;  %v4843_v28 = vsub.f32 %v11448_v22, %v9427_v63  ;;  %v3813_v58 = vsub.f32 %v9128_v30, %v9456_v10 }
 0x3c6   : > { %v3846_v23 = vmul.f32 %v9508_v24, %v3812_v49  ;;  %v9619_v43 = vmul.f32 %v9595_v53, %v4831_v44  ;;  %v9627_v12 = vmul.f32 %v9595_v53, %v4837_v5  ;;  %v9631_v41 = vmul.f32 %v9595_v53, %v4829_v45  ;;  %v11450_v49 = vld [vmem:[#allocation19_spill] sm:$0xff]  ;;  %v11455_v45 = vld [vmem:[#allocation32_spill] sm:$0xff] }
 0x3c7   : > { %v3912_v34 = vmax.f32 %v3880_v51, 0.0  ;;  %v9640_v50 = vmul.f32 %v9595_v53, %v4827_v25  ;;  %v4835_v51 = vsub.f32 %v11450_v49, %v9427_v63  ;;  %v4833_v44 = vsub.f32 %v11451_v52, %v9427_v63  ;;  %v11456_v25 = vld [vmem:[#allocation24_spill] sm:$0xff] }
 0x3c8   : > { %11442 = vst [vmem:[#allocation74_spill] sm:$0xff] %v9619_v43  ;;  %v3881_v4 = vadd.f32 %v9575_v9, %v3846_v23  ;;  %v3847_v8 = vmul.f32 %v9508_v24, %v3813_v58  ;;  %v4849_v62 = vsub.f32 %v11455_v45, %v9427_v63  ;;  %v4841_v22 = vsub.f32 %v11456_v25, %v9427_v63 }
 0x3c9   : > { %5801 = vmatmul.msk.f32.vlgmr.msrb.gmra.mxu1 %vm919_vm2, %v3912_v34  ;;  %11445 = vst [vmem:[#allocation79_spill] sm:$0xff] %v9627_v12  ;;  %v9647_v34 = vmul.f32 %v9595_v53, %v4843_v28  ;;  %v9651_v5 = vmul.f32 %v9595_v53, %v4835_v51  ;;  %v9654_v30 = vmul.f32 %v9595_v53, %v4833_v44  ;;  %v11460_v51 = vld [vmem:[#allocation11_spill] sm:$0xff] }
 0x3ca   : > { %11446 = vst [vmem:[#allocation78_spill] sm:$0xff] %v9631_v41  ;;  %v3913_v23 = vmax.f32 %v3881_v4, 0.0  ;;  %v11457_v4 = vld [vmem:[#allocation23_spill] sm:$0xff]  ;;  %v9666_v58 = vmul.f32 %v9595_v53, %v4849_v62  ;;  %v9669_v49 = vmul.f32 %v9595_v53, %v4841_v22  ;;  %v4855_v52 = vsub.f32 %v11460_v51, %v9427_v63  ;;  %v11464_v22 = vld [vmem:[#allocation28_spill] sm:$0xff] }
 0x3cb   : > { %11449 = vst [vmem:[#allocation82_spill] sm:$0xff] %v9640_v50  ;;  %v4839_v28 = vsub.f32 %v11457_v4, %v9427_v63  ;;  %v3882_v44 = vadd.f32 %v9575_v9, %v3847_v8  ;;  %v3814_v62 = vsub.f32 %v9132_v19, %v9456_v10 }
 0x3cc   : > { %11452 = vst [vmem:[#allocation80_spill] sm:$0xff] %v9647_v34  ;;  %v9678_v25 = vmul.f32 %v9595_v53, %v4855_v52  ;;  %v11465_v34 = vld [vmem:[#allocation18_spill] sm:$0xff] }
 0x3cd   : > { %11453 = vst [vmem:[#allocation83_spill] sm:$0xff] %v9651_v5  ;;  %v9675_v45 = vmul.f32 %v9595_v53, %v4839_v28  ;;  %v4861_v51 = vsub.f32 %v11465_v34, %v9427_v63  ;;  %v11467_v28 = vld [vmem:[#allocation35_spill] sm:$0xff]  ;;  %v3914_v52 = vmax.f32 %v3882_v44, 0.0  ;;  %v11471_v34 = vld [vmem:[#allocation33_spill] sm:$0xff]  ;;  %v9708_v44 = vpop.f32.mrf.mxu1 }
 0x3ce   : > { %11454 = vst [vmem:[#allocation87_spill] sm:$0xff] %v9654_v30 }
 0x3cf   : > { %11458 = vst [vmem:[#allocation90_spill] sm:$0xff] %v9666_v58  ;;  %v4845_v58 = vsub.f32 %v11464_v22, %v9427_v63  ;;  %v9698_v19 = vmul.f32 %v9595_v53, %v4861_v51 }
 0x3d0   : > { %11459 = vst [vmem:[#allocation47_spill] sm:$0xff] %v9669_v49  ;;  %v4851_v49 = vsub.f32 %v11471_v34, %v9427_v63 }
 0x3d1   : > { %5802 = vmatmul.msk.f32.gmra.mxu1 %vm919_vm2, %v3913_v23  ;;  %11461 = vst [vmem:[#allocation53_spill] sm:$0xff] %v9675_v45  ;;  %v11463_v23 = vld [vmem:[#allocation30_spill] sm:$0xff]  ;;  %v4853_v45 = vsub.f32 %v11467_v28, %v9427_v63 }
 0x3d2   : > { %11462 = vst [vmem:[#allocation69_spill] sm:$0xff] %v9678_v25  ;;  %v4847_v4 = vsub.f32 %v11463_v23, %v9427_v63  ;;  %v3848_v25 = vmul.f32 %v9508_v24, %v3814_v62  ;;  %v9695_v23 = vmul.f32 %v9595_v53, %v4845_v58  ;;  %v9711_v62 = vmul.f32 %v9595_v53, %v4851_v49  ;;  %v11474_v58 = vld [vmem:[#allocation16_spill] sm:$0xff]  ;;  %v11478_v49 = vld [vmem:[#allocation31_spill] sm:$0xff] }
 0x3d3   : > { %11469 = vst [vmem:[#allocation36_spill] sm:$0xff] %v9698_v19  ;;  %v9701_v22 = vmul.f32 %v9595_v53, %v4853_v45  ;;  %v4859_v51 = vsub.f32 %v11474_v58, %v9427_v63 }
 0x3d4   : > { %v9689_v8 = vmul.f32 %v9595_v53, %v4847_v4  ;;  %11468 = vst [vmem:[#allocation34_spill] sm:$0xff] %v9695_v23  ;;  %v11472_v4 = vld [vmem:[#allocation25_spill] sm:$0xff]  ;;  %v3883_v19 = vadd.f32 %v9575_v9, %v3848_v25  ;;  %v11479_v23 = vld [vmem:[#allocation22_spill] sm:$0xff]  ;;  %v3819_v25 = vsub.f32 %v9198_v13, %v9456_v10  ;;  %v4879_v13 = vsub.f32 %v11430_v27, %v9427_v63 }
 0x3d5   : > { %11470 = vst [vmem:[#allocation37_spill] sm:$0xff] %v9701_v22  ;;  %v4867_v28 = vsub.f32 %v11472_v4, %v9427_v63  ;;  %v9720_v34 = vmul.f32 %v9595_v53, %v4859_v51  ;;  %v3815_v4 = vsub.f32 %v9148_v0, %v9456_v10  ;;  %v4865_v58 = vsub.f32 %v11479_v23, %v9427_v63  ;;  %v11481_v51 = vld [vmem:[#allocation20_spill] sm:$0xff] }
 0x3d6   : > { %11466 = vst [vmem:[#allocation56_spill] sm:$0xff] %v9689_v8 }
 0x3d7   : > { %11473 = vst [vmem:[#allocation38_spill] sm:$0xff] %v9711_v62  ;;  %v9717_v45 = vmul.f32 %v9595_v53, %v4867_v28  ;;  %v4873_v62 = vsub.f32 %v11478_v49, %v9427_v63  ;;  %v9742_v49 = vmul.f32 %v9595_v53, %v4865_v58 }
 0x3d8   : > { %11476 = vst [vmem:[#allocation65_spill] sm:$0xff] %v9720_v34  ;;  %v3915_v34 = vmax.f32 %v3883_v19, 0.0  ;;  %v11485_v19 = vld [vmem:[#allocation29_spill] sm:$0xff] }
 0x3d9   : > { %5803 = vmatmul.msk.f32.gmra.mxu1 %vm919_vm2, %v3914_v52  ;;  %11475 = vst [vmem:[#allocation39_spill] sm:$0xff] %v9717_v45  ;;  %v11477_v52 = vld [vmem:[#allocation13_spill] sm:$0xff]  ;;  %v4863_v45 = vsub.f32 %v11481_v51, %v9427_v63  ;;  %v9739_v0 = vmul.f32 %v9595_v53, %v4873_v62  ;;  %v4871_v51 = vsub.f32 %v11485_v19, %v9427_v63  ;;  %v11487_v62 = vld [vmem:[#allocation27_spill] sm:$0xff] }
 0x3da   : > { %v4857_v22 = vsub.f32 %v11477_v52, %v9427_v63  ;;  %v3849_v52 = vmul.f32 %v9508_v24, %v3815_v4  ;;  %11483 = vst [vmem:[#allocation63_spill] sm:$0xff] %v9742_v49  ;;  %v9754_v4 = vmul.f32 %v9595_v53, %v4879_v13  ;;  %v4869_v58 = vsub.f32 %v11487_v62, %v9427_v63 }
 0x3db   : > { %11482 = vst [vmem:[#allocation41_spill] sm:$0xff] %v9739_v0  ;;  %v9745_v23 = vmul.f32 %v9595_v53, %v4863_v45  ;;  %v4877_v45 = vsub.f32 %v11429_v15, %v9427_v63  ;;  %v9762_v27 = vmul.f32 %v9595_v53, %v4871_v51  ;;  %v3816_v13 = vsub.f32 %v9165_v40, %v9456_v10 }
 0x3dc   : > { %v9733_v28 = vmul.f32 %v9595_v53, %v4857_v22  ;;  %v3853_v22 = vmul.f32 %v9508_v24, %v3819_v25  ;;  %11486 = vst [vmem:[#allocation21_spill] sm:$0xff] %v9754_v4  ;;  %v3884_v0 = vadd.f32 %v9575_v9, %v3849_v52  ;;  %v9767_v25 = vmul.f32 %v9595_v53, %v4869_v58 }
 0x3dd   : > { %11484 = vst [vmem:[#allocation15_spill] sm:$0xff] %v9745_v23  ;;  %v9770_v19 = vmul.f32 %v9595_v53, %v4877_v45  ;;  %v4875_v62 = vsub.f32 %v11428_v36, %v9427_v63  ;;  %v4881_v15 = vsub.f32 %v11431_v38, %v9427_v63  ;;  %v3820_v52 = vsub.f32 %v9214_v21, %v9456_v10  ;;  %v11493_v38 = vld [vmem:[#allocation66_spill] sm:$0xff] }
 0x3de   : > { %11480 = vst [vmem:[#allocation68_spill] sm:$0xff] %v9733_v28  ;;  %v3916_v51 = vmax.f32 %v3884_v0, 0.0 }
 0x3df   : > { %11488 = vst [vmem:[#allocation14_spill] sm:$0xff] %v9762_v27  ;;  %v3850_v27 = vmul.f32 %v9508_v24, %v3816_v13  ;;  %v9782_v58 = vmul.f32 %v9595_v53, %v4875_v62  ;;  %v9785_v45 = vmul.f32 %v9595_v53, %v4881_v15  ;;  %v3854_v40 = vmul.f32 %v9508_v24, %v3820_v52  ;;  %v11494_v62 = vld [vmem:[#allocation70_spill] sm:$0xff] }
 0x3e0   : > { %11489 = vst [vmem:[#allocation12_spill] sm:$0xff] %v9767_v25  ;;  %v3818_v15 = vsub.f32 %v11494_v62, %v9456_v10 }
 0x3e1   : > { %5804 = vmatmul.msk.f32.gmra.mxu1 %vm919_vm2, %v3915_v34  ;;  %v9764_v34 = vpop.f32.mrf.mxu1  ;;  %11490 = vst [vmem:[#allocation26_spill] sm:$0xff] %v9770_v19  ;;  %v3885_v36 = vadd.f32 %v9575_v9, %v3850_v27  ;;  %v3817_v19 = vsub.f32 %v11493_v38, %v9456_v10  ;;  %v3889_v10 = vadd.f32 %v9575_v9, %v3854_v40 }
 0x3e2   : > { %11491 = vst [vmem:[#allocation19_spill] sm:$0xff] %v9782_v58  ;;  %v3852_v52 = vmul.f32 %v9508_v24, %v3818_v15  ;;  %v3892_v40 = vadd.f32 %v9575_v9, %v9534_v37 }
 0x3e3   : > { %11492 = vst [vmem:[#allocation17_spill] sm:$0xff] %v9785_v45  ;;  %v3917_v21 = vmax.f32 %v3885_v36, 0.0  ;;  %v3851_v0 = vmul.f32 %v9508_v24, %v3817_v19  ;;  %v3888_v36 = vadd.f32 %v9575_v9, %v3853_v22  ;;  %v3921_v24 = vmax.f32 %v3889_v10, 0.0 }
 0x3e4   : > { %v3887_v27 = vadd.f32 %v9575_v9, %v3852_v52  ;;  %v3891_v22 = vadd.f32 %v9575_v9, %v9531_v32 }
 0x3e5   : > { %v3886_v13 = vadd.f32 %v9575_v9, %v3851_v0 }
 0x3e6   : > { %v3919_v38 = vmax.f32 %v3887_v27, 0.0  ;;  %v3924_v27 = vmax.f32 %v3892_v40, 0.0  ;;  %v11497_v40 = vld [vmem:[#allocation71_spill] sm:$0xff] }
 0x3e9   : > { %5805 = vmatmul.msk.f32.gmra.mxu1 %vm919_vm2, %v3916_v51  ;;  %v9792_v25 = vpop.f32.mrf.mxu1  ;;  %v3918_v51 = vmax.f32 %v3886_v13, 0.0  ;;  %v3890_v13 = vadd.f32 %v9575_v9, %v9528_v3  ;;  %v11495_v3 = vlaneseq }
 0x3eb   : > { %v3922_v15 = vmax.f32 %v3890_v13, 0.0 }
 0x3f1   : > { %5806 = vmatmul.msk.f32.gmra.mxu1 %vm919_vm2, %v3917_v21  ;;  %v9800_v45 = vpop.f32.mrf.mxu1  ;;  %v3920_v21 = vmax.f32 %v3888_v36, 0.0 }
 0x3f9   : > { %5807 = vmatmul.msk.f32.gmra.mxu1 %vm919_vm2, %v3918_v51  ;;  %v9805_v19 = vpop.f32.mrf.mxu1  ;;  %v3923_v51 = vmax.f32 %v3891_v22, 0.0 }
 0x401   : > { %5808 = vmatmul.msk.f32.gmra.mxu1 %vm919_vm2, %v3919_v38  ;;  %v9810_v0 = vpop.f32.mrf.mxu1  ;;  %v9827_v38 = vand.u32 127, %v11495_v3 }
 0x403   : > { %v9834_v32 = vmul.u32 4, %v9827_v38  ;;  %v480_v10 = vadd.s32 1, %v9827_v38 }
 0x405   : > { %v9839_v37 = vmul.u32 4, %v480_v10  ;;  %vm478_vm15 = vcmp.ge.s32.totalorder %v11497_v40, %v9834_v32 }
 0x407   : > { %vm496_vm3 = vcmp.lt.s32.totalorder %v11497_v40, %v9839_v37 }
 0x408   : > { %vm512_vm4 = vmand %vm478_vm15, %vm496_vm3 }
 0x409   : > { %5809 = vmatmul.msk.f32.gmra.mxu1 %vm919_vm2, %v3920_v21  ;;  %v9815_v62 = vpop.f32.mrf.mxu1  ;;  %v3893_v21 = vadd.f32 %v9575_v9, %v9537_v61  ;;  %v3894_v61 = vadd.f32 %v9575_v9, %v9540_v57 }
 0x40b   : > { %v3925_v13 = vmax.f32 %v3893_v21, 0.0  ;;  %v3896_v21 = vadd.f32 %v9575_v9, %v9546_v1 }
 0x411   : > { %5810 = vmatmul.msk.f32.gmra.mxu1 %vm919_vm2, %v3921_v24  ;;  %v9820_v52 = vpop.f32.mrf.mxu1  ;;  %v11496_v24 = vld [vmem:[#allocation81_spill] sm:$0xff] }
 0x412   : > { %vm479_vm12 = vcmp.ge.s32.totalorder %v11496_v24, %v9834_v32  ;;  %vm497_vm13 = vcmp.lt.s32.totalorder %v11496_v24, %v9839_v37  ;;  %v3928_v24 = vmax.f32 %v3896_v21, 0.0 }
 0x413   : > { %vm513_vm14 = vmand %vm479_vm12, %vm497_vm13 }
 0x419   : > { %5811 = vmatmul.msk.f32.gmra.mxu1 %vm919_vm2, %v3922_v15  ;;  %v9829_v36 = vpop.f32.mrf.mxu1  ;;  %v11199_v15 = vmov 1.0  }
 0x41a   : > { %5833 = vmatpush.msk.msra.mxu2 %vm513_vm14, %v11199_v15  ;;  %5849 = vmatpush.msk.msra.mxu3 %vm513_vm14, %v11199_v15 }
 0x41c   : > { %5834 = vmatpush.msk.msra.mxu2 %vm512_vm4, %v11199_v15  ;;  %5850 = vmatpush.msk.msra.mxu3 %vm512_vm4, %v11199_v15 }
 0x421   : > { %5812 = vmatmul.msk.f32.gmra.mxu1 %vm919_vm2, %v3923_v51  ;;  %v9848_v22 = vpop.f32.mrf.mxu1  ;;  %v3926_v51 = vmax.f32 %v3894_v61, 0.0 }
 0x429   : > { %5813 = vmatmul.msk.f32.gmra.mxu1 %vm919_vm2, %v3924_v27  ;;  %v3895_v27 = vadd.f32 %v9575_v9, %v9543_v39  ;;  %v9859_v57 = vpop.f32.mrf.mxu1  ;;  %v3897_v39 = vadd.f32 %v9575_v9, %v9549_v2  ;;  %v3899_v2 = vadd.f32 %v9575_v9, %v9555_v47  ;;  %v3901_v47 = vadd.f32 %v9575_v9, %v9561_v60 }
 0x42a   : > { %v3903_v60 = vadd.f32 %v9575_v9, %v9567_v59  ;;  %v3905_v59 = vadd.f32 %v9575_v9, %v9578_v46  ;;  %v3907_v46 = vadd.f32 %v9575_v9, %v9587_v33  ;;  %v3909_v33 = vadd.f32 %v9575_v9, %v9601_v11 }
 0x42b   : > { %v3927_v3 = vmax.f32 %v3895_v27, 0.0  ;;  %v3929_v61 = vmax.f32 %v3897_v39, 0.0  ;;  %v3931_v21 = vmax.f32 %v3899_v2, 0.0  ;;  %v3911_v11 = vadd.f32 %v9575_v9, %v9525_v56 }
 0x431   : > { %5814 = vmatmul.msk.f32.gmra.mxu1 %vm919_vm2, %v3925_v13  ;;  %v11498_v13 = vld [vmem:[#allocation77_spill] sm:$0xff] }
 0x432   : > { %vm477_vm5 = vcmp.ge.s32.totalorder %v11498_v13, %v9834_v32  ;;  %vm495_vm7 = vcmp.lt.s32.totalorder %v11498_v13, %v9839_v37 }
 0x433   : > { %vm511_vm0 = vmand %vm477_vm5, %vm495_vm7 }
 0x434   : > { %5835 = vmatpush.msk.msra.mxu2 %vm511_vm0, %v11199_v15  ;;  %5851 = vmatpush.msk.msra.mxu3 %vm511_vm0, %v11199_v15 }
 0x439   : > { %5815 = vmatmul.msk.f32.gmra.mxu1 %vm919_vm2, %v3926_v51  ;;  %v3898_v51 = vadd.f32 %v9575_v9, %v9552_v26 }
 0x43b   : > { %v3930_v27 = vmax.f32 %v3898_v51, 0.0  ;;  %v3933_v51 = vmax.f32 %v3901_v47, 0.0 }
 0x441   : > { %5816 = vmatmul.msk.f32.gmra.mxu1 %vm919_vm2, %v3927_v3  ;;  %v11499_v3 = vld [vmem:[#allocation67_spill] sm:$0xff] }
 0x442   : > { %vm476_vm1 = vcmp.ge.s32.totalorder %v11499_v3, %v9834_v32  ;;  %vm494_vm8 = vcmp.lt.s32.totalorder %v11499_v3, %v9839_v37 }
 0x443   : > { %vm510_vm9 = vmand %vm476_vm1, %vm494_vm8 }
 0x444   : > { %5836 = vmatpush.msk.msra.mxu2 %vm510_vm9, %v11199_v15  ;;  %5852 = vmatpush.msk.msra.mxu3 %vm510_vm9, %v11199_v15 }
 0x446   : > { %v9864_v10 = vpop.f32.mrf.mxu1 }
 0x447   : > { %v4196_v58 = vmul.f32 %v9864_v10, %v9864_v10 }
 0x449   : > { %5817 = vmatmul.msk.f32.gmra.mxu1 %vm919_vm2, %v3928_v24  ;;  %v3900_v24 = vadd.f32 %v9575_v9, %v9558_v54 }
 0x44b   : > { %v3932_v39 = vmax.f32 %v3900_v24, 0.0  ;;  %v3935_v24 = vmax.f32 %v3903_v60, 0.0 }
 0x44e   : > { %v9875_v1 = vpop.f32.mrf.mxu1 }
 0x44f   : > { %v4159_v49 = vadd.f32 %v9875_v1, %v9864_v10 }
 0x451   : > { %5818 = vmatmul.msk.f32.gmra.mxu1 %vm919_vm2, %v3929_v61  ;;  %v11500_v61 = vld [vmem:[#allocation73_spill] sm:$0xff] }
 0x452   : > { %vm475_vm10 = vcmp.ge.s32.totalorder %v11500_v61, %v9834_v32  ;;  %vm493_vm11 = vcmp.lt.s32.totalorder %v11500_v61, %v9839_v37 }
 0x453   : > { %vm509_vm12 = vmand %vm475_vm10, %vm493_vm11 }
 0x454   : > { %5837 = vmatpush.msk.msra.mxu2 %vm509_vm12, %v11199_v15  ;;  %5853 = vmatpush.msk.msra.mxu3 %vm509_vm12, %v11199_v15 }
 0x456   : > { %v9880_v40 = vpop.f32.mrf.mxu1 }
 0x457   : > { %v4198_v23 = vmul.f32 %v9880_v40, %v9880_v40 }
 0x459   : > { %5819 = vmatmul.msk.f32.gmra.mxu1 %vm919_vm2, %v3930_v27  ;;  %v3902_v27 = vadd.f32 %v9575_v9, %v9564_v29 }
 0x45b   : > { %v3934_v2 = vmax.f32 %v3902_v27, 0.0  ;;  %v3937_v27 = vmax.f32 %v3905_v59, 0.0 }
 0x45e   : > { %v9891_v26 = vpop.f32.mrf.mxu1 }
 0x45f   : > { %v4199_v8 = vmul.f32 %v9891_v26, %v9891_v26 }
 0x461   : > { %5820 = vmatmul.msk.f32.gmra.mxu1 %vm919_vm2, %v3931_v21  ;;  %v11502_v21 = vld [vmem:[#allocation61_spill] sm:$0xff] }
 0x462   : > { %vm474_vm13 = vcmp.ge.s32.totalorder %v11502_v21, %v9834_v32  ;;  %vm492_vm14 = vcmp.lt.s32.totalorder %v11502_v21, %v9839_v37 }
 0x463   : > { %vm508_vm15 = vmand %vm474_vm13, %vm492_vm14 }
 0x464   : > { %5838 = vmatpush.msk.msra.mxu2 %vm508_vm15, %v11199_v15  ;;  %5854 = vmatpush.msk.msra.mxu3 %vm508_vm15, %v11199_v15 }
 0x466   : > { %v9896_v13 = vpop.f32.mrf.mxu1 }
 0x467   : > { %v4200_v12 = vmul.f32 %v9896_v13, %v9896_v13 }
 0x469   : > { %5821 = vmatmul.msk.f32.gmra.mxu1 %vm919_vm2, %v3932_v39  ;;  %v3904_v39 = vadd.f32 %v9575_v9, %v9570_v6 }
 0x46b   : > { %v3936_v47 = vmax.f32 %v3904_v39, 0.0  ;;  %v3939_v39 = vmax.f32 %v3907_v46, 0.0 }
 0x46e   : > { %v9907_v54 = vpop.f32.mrf.mxu1 }
 0x46f   : > { %v4201_v50 = vmul.f32 %v9907_v54, %v9907_v54 }
 0x471   : > { %5822 = vmatmul.msk.f32.gmra.mxu1 %vm919_vm2, %v3933_v51  ;;  %v11503_v51 = vld [vmem:[#allocation64_spill] sm:$0xff] }
 0x472   : > { %vm473_vm3 = vcmp.ge.s32.totalorder %v11503_v51, %v9834_v32  ;;  %vm491_vm4 = vcmp.lt.s32.totalorder %v11503_v51, %v9839_v37 }
 0x473   : > { %vm507_vm5 = vmand %vm473_vm3, %vm491_vm4 }
 0x474   : > { %5839 = vmatpush.msk.msra.mxu2 %vm507_vm5, %v11199_v15  ;;  %5855 = vmatpush.msk.msra.mxu3 %vm507_vm5, %v11199_v15 }
 0x476   : > { %v9912_v3 = vpop.f32.mrf.mxu1 }
 0x477   : > { %11501 = vst [vmem:[#allocation32_spill] sm:$0xff] %v9912_v3 }
 0x479   : > { %5823 = vmatmul.msk.f32.gmra.mxu1 %vm919_vm2, %v3934_v2  ;;  %v3906_v2 = vadd.f32 %v9575_v9, %v9581_v20 }
 0x47b   : > { %v3938_v60 = vmax.f32 %v3906_v2, 0.0  ;;  %v3941_v2 = vmax.f32 %v3909_v33, 0.0  ;;  %v11510_v33 = vld [vmem:[#allocation49_spill] sm:$0xff] }
 0x47c   : > { %vm468_vm4 = vcmp.ge.s32.totalorder %v11510_v33, %v9834_v32  ;;  %vm486_vm5 = vcmp.lt.s32.totalorder %v11510_v33, %v9839_v37  ;;  %v4197_v33 = vmul.f32 %v9875_v1, %v9875_v1 }
 0x47e   : > { %v9923_v29 = vpop.f32.mrf.mxu1  ;;  %v4228_v28 = vadd.f32 %v4197_v33, %v4196_v58  ;;  %v11518_v58 = vld [vmem:[#allocation45_spill] sm:$0xff] }
 0x480   : > { %v4229_v4 = vadd.f32 %v4228_v28, %v4198_v23 }
 0x481   : > { %5824 = vmatmul.msk.f32.gmra.mxu1 %vm919_vm2, %v3935_v24  ;;  %v11504_v24 = vld [vmem:[#allocation62_spill] sm:$0xff] }
 0x482   : > { %vm472_vm7 = vcmp.ge.s32.totalorder %v11504_v24, %v9834_v32  ;;  %vm490_vm0 = vcmp.lt.s32.totalorder %v11504_v24, %v9839_v37  ;;  %v4230_v43 = vadd.f32 %v4229_v4, %v4199_v8 }
 0x483   : > { %vm506_vm1 = vmand %vm472_vm7, %vm490_vm0 }
 0x484   : > { %5840 = vmatpush.msk.msra.mxu2 %vm506_vm1, %v11199_v15  ;;  %5856 = vmatpush.msk.msra.mxu3 %vm506_vm1, %v11199_v15  ;;  %vm502_vm7 = vmand %vm468_vm4, %vm486_vm5  ;;  %v4231_v28 = vadd.f32 %v4230_v43, %v4200_v12 }
 0x486   : > { %v9928_v61 = vpop.f32.mrf.mxu1  ;;  %v4232_v8 = vadd.f32 %v4231_v28, %v4201_v50 }
 0x487   : > { %v4204_v43 = vmul.f32 %v9928_v61, %v9928_v61 }
 0x489   : > { %5825 = vmatmul.msk.f32.gmra.mxu1 %vm919_vm2, %v3936_v47  ;;  %v3908_v47 = vadd.f32 %v9575_v9, %v9593_v35 }
 0x48b   : > { %v3940_v59 = vmax.f32 %v3908_v47, 0.0  ;;  %v3943_v47 = vmax.f32 %v3911_v11, 0.0 }
 0x48e   : > { %v9939_v6 = vpop.f32.mrf.mxu1 }
 0x491   : > { %5826 = vmatmul.msk.f32.gmra.mxu1 %vm919_vm2, %v3937_v27  ;;  %v11506_v27 = vld [vmem:[#allocation57_spill] sm:$0xff] }
 0x492   : > { %vm471_vm8 = vcmp.ge.s32.totalorder %v11506_v27, %v9834_v32  ;;  %vm489_vm9 = vcmp.lt.s32.totalorder %v11506_v27, %v9839_v37  ;;  %v11508_v27 = vld [vmem:[#allocation51_spill] sm:$0xff] }
 0x493   : > { %vm505_vm10 = vmand %vm471_vm8, %vm489_vm9  ;;  %vm469_vm14 = vcmp.ge.s32.totalorder %v11508_v27, %v9834_v32  ;;  %vm487_vm15 = vcmp.lt.s32.totalorder %v11508_v27, %v9839_v37 }
 0x494   : > { %5841 = vmatpush.msk.msra.mxu2 %vm505_vm10, %v11199_v15  ;;  %5857 = vmatpush.msk.msra.mxu3 %vm505_vm10, %v11199_v15  ;;  %vm503_vm3 = vmand %vm469_vm14, %vm487_vm15 }
 0x496   : > { %v9944_v21 = vpop.f32.mrf.mxu1 }
 0x497   : > { %v4206_v28 = vmul.f32 %v9944_v21, %v9944_v21 }
 0x499   : > { %5827 = vmatmul.msk.f32.gmra.mxu1 %vm919_vm2, %v3938_v60  ;;  %v3910_v60 = vadd.f32 %v9575_v9, %v9607_v48 }
 0x49b   : > { %v3942_v46 = vmax.f32 %v3910_v60, 0.0 }
 0x49e   : > { %v9955_v20 = vpop.f32.mrf.mxu1 }
 0x4a1   : > { %5828 = vmatmul.msk.f32.gmra.mxu1 %vm919_vm2, %v3939_v39  ;;  %v11507_v39 = vld [vmem:[#allocation55_spill] sm:$0xff] }
 0x4a2   : > { %vm470_vm11 = vcmp.ge.s32.totalorder %v11507_v39, %v9834_v32  ;;  %vm488_vm12 = vcmp.lt.s32.totalorder %v11507_v39, %v9839_v37 }
 0x4a3   : > { %vm504_vm13 = vmand %vm470_vm11, %vm488_vm12  ;;  %vm465_vm12 = vcmp.ge.s32.totalorder %v11518_v58, %v9834_v32 }
 0x4a4   : > { %5842 = vmatpush.msk.msra.mxu2 %vm504_vm13, %v11199_v15  ;;  %5858 = vmatpush.msk.msra.mxu3 %vm504_vm13, %v11199_v15  ;;  %vm483_vm13 = vcmp.lt.s32.totalorder %v11518_v58, %v9839_v37 }
 0x4a5   : > { %vm499_vm14 = vmand %vm465_vm12, %vm483_vm13 }
 0x4a6   : > { %v9960_v51 = vpop.f32.mrf.mxu1  ;;  %5843 = vmatpush.msk.msra.mxu2 %vm503_vm3, %v11199_v15  ;;  %5859 = vmatpush.msk.msra.mxu3 %vm503_vm3, %v11199_v15 }
 0x4a7   : > { %11505 = vst [vmem:[#allocation24_spill] sm:$0xff] %v9960_v51 }
 0x4a8   : > { %5844 = vmatpush.msk.msra.mxu2 %vm502_vm7, %v11199_v15  ;;  %5860 = vmatpush.msk.msra.mxu3 %vm502_vm7, %v11199_v15 }
 0x4a9   : > { %5829 = vmatmul.msk.f32.gmra.mxu1 %vm919_vm2, %v3940_v59 }
 0x4ae   : > { %v9971_v35 = vpop.f32.mrf.mxu1 }
 0x4b1   : > { %5830 = vmatmul.msk.f32.gmra.mxu1 %vm919_vm2, %v3941_v2 }
 0x4b6   : > { %v9976_v24 = vpop.f32.mrf.mxu1 }
 0x4b9   : > { %5831 = vmatmul.msk.f32.gmra.mxu1 %vm919_vm2, %v3942_v46  ;;  %v11513_v46 = vld [vmem:[#allocation48_spill] sm:$0xff] }
 0x4ba   : > { %vm467_vm0 = vcmp.ge.s32.totalorder %v11513_v46, %v9834_v32  ;;  %vm485_vm1 = vcmp.lt.s32.totalorder %v11513_v46, %v9839_v37 }
 0x4bb   : > { %vm501_vm8 = vmand %vm467_vm0, %vm485_vm1 }
 0x4bc   : > { %5845 = vmatpush.msk.msra.mxu2 %vm501_vm8, %v11199_v15  ;;  %5861 = vmatpush.msk.msra.mxu3 %vm501_vm8, %v11199_v15 }
 0x4be   : > { %v9987_v48 = vpop.f32.mrf.mxu1 }
 0x4c1   : > { %5832 = vmatmul.msk.f32.gmra.mxu1 %vm919_vm2, %v3943_v47  ;;  %v11516_v47 = vld [vmem:[#allocation46_spill] sm:$0xff] }
 0x4c2   : > { %vm466_vm9 = vcmp.ge.s32.totalorder %v11516_v47, %v9834_v32  ;;  %vm484_vm10 = vcmp.lt.s32.totalorder %v11516_v47, %v9839_v37 }
 0x4c3   : > { %vm500_vm11 = vmand %vm466_vm9, %vm484_vm10 }
 0x4c4   : > { %5846 = vmatpush.msk.msra.mxu2 %vm500_vm11, %v11199_v15  ;;  %5862 = vmatpush.msk.msra.mxu3 %vm500_vm11, %v11199_v15  ;;  %v4160_v15 = vadd.f32 %v4159_v49, %v9880_v40  ;;  %v4202_v49 = vmul.f32 %v9912_v3, %v9912_v3 }
 0x4c6   : > { %v9990_v59 = vpop.f32.mrf.mxu1  ;;  %v4161_v5 = vadd.f32 %v4160_v15, %v9891_v26  ;;  %v11519_v15 = vmov 1.0   ;;  %v4233_v33 = vadd.f32 %v4232_v8, %v4202_v49  ;;  %v4207_v8 = vmul.f32 %v9955_v20, %v9955_v20 }
 0x4c7   : > { %5847 = vmatpush.msk.msra.mxu2 %vm499_vm14, %v11519_v15  ;;  %5863 = vmatpush.msk.msra.mxu3 %vm499_vm14, %v11519_v15 }
 0x4c8   : > { %v4162_v41 = vadd.f32 %v4161_v5, %v9896_v13  ;;  %v4203_v5 = vmul.f32 %v9923_v29, %v9923_v29 }
 0x4ca   : > { %v4163_v23 = vadd.f32 %v4162_v41, %v9907_v54  ;;  %v4234_v63 = vadd.f32 %v4233_v33, %v4203_v5  ;;  %v4205_v41 = vmul.f32 %v9939_v6, %v9939_v6  ;;  %v4208_v5 = vmul.f32 %v9960_v51, %v9960_v51 }
 0x4cb   : > { %v4209_v33 = vmul.f32 %v9971_v35, %v9971_v35 }
 0x4cc   : > { %v4164_v4 = vadd.f32 %v4163_v23, %v9912_v3  ;;  %v4235_v50 = vadd.f32 %v4234_v63, %v4204_v43  ;;  %v11520_v43 = vld [vmem:[#allocation42_spill] sm:$0xff] }
 0x4cd   : > { %vm464_vm15 = vcmp.ge.s32.totalorder %v11520_v43, %v9834_v32  ;;  %vm482_vm3 = vcmp.lt.s32.totalorder %v11520_v43, %v9839_v37  ;;  %v4212_v37 = vmul.f32 %v9990_v59, %v9990_v59 }
 0x4ce   : > { %v9998_v56 = vpop.f32.mrf.mxu1  ;;  %v4165_v53 = vadd.f32 %v4164_v4, %v9923_v29  ;;  %v4236_v49 = vadd.f32 %v4235_v50, %v4205_v41  ;;  %v4210_v50 = vmul.f32 %v9976_v24, %v9976_v24  ;;  %vm498_vm4 = vmand %vm464_vm15, %vm482_vm3 }
 0x4cf   : > { %5848 = vmatpush.msk.msra.mxu2 %vm498_vm4, %v11519_v15  ;;  %5864 = vmatpush.msk.msra.mxu3 %vm498_vm4, %v11519_v15 }
 0x4d0   : > { %v4166_v17 = vadd.f32 %v4165_v53, %v9928_v61  ;;  %v4237_v3 = vadd.f32 %v4236_v49, %v4206_v28 }
 0x4d2   : > { %v4167_v23 = vadd.f32 %v4166_v17, %v9939_v6  ;;  %v4238_v63 = vadd.f32 %v4237_v3, %v4207_v8  ;;  %v4211_v3 = vmul.f32 %v9987_v48, %v9987_v48 }
 0x4d4   : > { %v4168_v14 = vadd.f32 %v4167_v23, %v9944_v21  ;;  %v4239_v41 = vadd.f32 %v4238_v63, %v4208_v5 }
 0x4d6   : > { %v10000_v9 = vpop.f32.mrf.mxu1  ;;  %v4169_v53 = vadd.f32 %v4168_v14, %v9955_v20  ;;  %v4240_v14 = vadd.f32 %v4239_v41, %v4209_v33 }
 0x4d7   : > { %11509 = vst [vmem:[#allocation23_spill] sm:$0xff] %v10000_v9 }
 0x4d8   : > { %v4170_v17 = vadd.f32 %v4169_v53, %v9960_v51  ;;  %v4241_v23 = vadd.f32 %v4240_v14, %v4210_v50  ;;  %v4213_v53 = vmul.f32 %v9998_v56, %v9998_v56 }
 0x4da   : > { %v4171_v28 = vadd.f32 %v4170_v17, %v9971_v35  ;;  %v4242_v5 = vadd.f32 %v4241_v23, %v4211_v3  ;;  %v4214_v17 = vmul.f32 %v10000_v9, %v10000_v9 }
 0x4dc   : > { %v4172_v32 = vadd.f32 %v4171_v28, %v9976_v24  ;;  %v4243_v33 = vadd.f32 %v4242_v5, %v4212_v37 }
 0x4de   : > { %v10008_v2 = vpop.f32.mrf.mxu1  ;;  %v4173_v8 = vadd.f32 %v4172_v32, %v9987_v48  ;;  %v4244_v50 = vadd.f32 %v4243_v33, %v4213_v53 }
 0x4df   : > { %11511 = vst [vmem:[#allocation11_spill] sm:$0xff] %v10008_v2  ;;  %v4215_v28 = vmul.f32 %v10008_v2, %v10008_v2 }
 0x4e0   : > { %v4174_v63 = vadd.f32 %v4173_v8, %v9990_v59  ;;  %v4245_v51 = vadd.f32 %v4244_v50, %v4214_v17 }
 0x4e2   : > { %v4175_v41 = vadd.f32 %v4174_v63, %v9998_v56  ;;  %v4246_v37 = vadd.f32 %v4245_v51, %v4215_v28 }
 0x4e4   : > { %v4176_v14 = vadd.f32 %v4175_v41, %v10000_v9 }
 0x4e6   : > { %v10010_v60 = vpop.f32.mrf.mxu1  ;;  %v4177_v23 = vadd.f32 %v4176_v14, %v10008_v2 }
 0x4e7   : > { %11512 = vst [vmem:[#allocation30_spill] sm:$0xff] %v10010_v60  ;;  %v4216_v3 = vmul.f32 %v10010_v60, %v10010_v60 }
 0x4e8   : > { %v4178_v5 = vadd.f32 %v4177_v23, %v10010_v60  ;;  %v557_v23 = vadd.s32 1, %v11513_v46 }
 0x4e9   : > { %v4247_v53 = vadd.f32 %v4246_v37, %v4216_v3  ;;  %v549_v3 = vmul.u32 4, %v11513_v46 }
 0x4eb   : > { %vm10136_vm5 = vcmp.ge.s32.totalorder %v9827_v38, %v549_v3 }
 0x4ee   : > { %v10018_v39 = vpop.f32.mrf.mxu1 }
 0x4ef   : > { %11514 = vst [vmem:[#allocation28_spill] sm:$0xff] %v10018_v39  ;;  %v4217_v8 = vmul.f32 %v10018_v39, %v10018_v39  ;;  %v4179_v33 = vadd.f32 %v4178_v5, %v10018_v39  ;;  %v556_v5 = vadd.s32 1, %v11516_v47 }
 0x4f1   : > { %v4248_v17 = vadd.f32 %v4247_v53, %v4217_v8  ;;  %v548_v8 = vmul.u32 4, %v11516_v47 }
 0x4f3   : > { %vm10141_vm7 = vcmp.ge.s32.totalorder %v9827_v38, %v548_v8 }
 0x4f6   : > { %v10020_v11 = vpop.f32.mrf.mxu1 }
 0x4f7   : > { %11515 = vst [vmem:[#allocation18_spill] sm:$0xff] %v10020_v11  ;;  %v4218_v63 = vmul.f32 %v10020_v11, %v10020_v11  ;;  %v4180_v50 = vadd.f32 %v4179_v33, %v10020_v11 }
 0x4f9   : > { %v4249_v9 = vadd.f32 %v4248_v17, %v4218_v63  ;;  %v561_v17 = vmul.u32 4, %v557_v23 }
 0x4fb   : > { %vm565_vm0 = vcmp.lt.s32.totalorder %v9827_v38, %v561_v17 }
 0x4fc   : > { %vm569_vm1 = vmand %vm10136_vm5, %vm565_vm0 }
 0x4fd   : > { %5865 = vmatpush.msk.msrb.mxu2 %vm569_vm1, %v11519_v15  ;;  %5870 = vmatpush.msk.msrb.mxu3 %vm569_vm1, %v11519_v15 }
 0x4fe   : > { %v10028_v27 = vpop.f32.mrf.mxu1 }
 0x4ff   : > { %11517 = vst [vmem:[#allocation35_spill] sm:$0xff] %v10028_v27  ;;  %v4219_v41 = vmul.f32 %v10028_v27, %v10028_v27  ;;  %v4181_v51 = vadd.f32 %v4180_v50, %v10028_v27 }
 0x501   : > { %v4250_v37 = vadd.f32 %v4249_v9, %v4219_v41  ;;  %v560_v9 = vmul.u32 4, %v556_v5 }
 0x503   : > { %vm564_vm8 = vcmp.lt.s32.totalorder %v9827_v38, %v560_v9 }
 0x504   : > { %vm568_vm9 = vmand %vm10141_vm7, %vm564_vm8 }
 0x505   : > { %5866 = vmatpush.msk.msrb.mxu2 %vm568_vm9, %v11519_v15  ;;  %5871 = vmatpush.msk.msrb.mxu3 %vm568_vm9, %v11519_v15 }
 0x506   : > { %v10043_v30 = vpop.f32.mrf.mxu1 }
 0x507   : > { %v4220_v28 = vmul.f32 %v10043_v30, %v10043_v30  ;;  %v4182_v53 = vadd.f32 %v4181_v51, %v10043_v30 }
 0x509   : > { %v4251_v46 = vadd.f32 %v4250_v37, %v4220_v28 }
 0x50e   : > { %v10063_v12 = vpop.f32.mrf.mxu1 }
 0x50f   : > { %v4221_v63 = vmul.f32 %v10063_v12, %v10063_v12  ;;  %v4183_v47 = vadd.f32 %v4182_v53, %v10063_v12 }
 0x511   : > { %v4252_v51 = vadd.f32 %v4251_v46, %v4221_v63 }
 0x516   : > { %v10077_v4 = vpop.f32.mrf.mxu1 }
 0x517   : > { %v4222_v41 = vmul.f32 %v10077_v4, %v10077_v4  ;;  %v4184_v3 = vadd.f32 %v4183_v47, %v10077_v4 }
 0x519   : > { %v4253_v37 = vadd.f32 %v4252_v51, %v4222_v41 }
 0x51e   : > { %v10097_v49 = vpop.f32.mrf.mxu1 }
 0x51f   : > { %v4223_v23 = vmul.f32 %v10097_v49, %v10097_v49  ;;  %v4185_v8 = vadd.f32 %v4184_v3, %v10097_v49 }
 0x521   : > { %v4254_v53 = vadd.f32 %v4253_v37, %v4223_v23 }
 0x526   : > { %v10111_v32 = vpop.f32.mrf.mxu1 }
 0x527   : > { %v4224_v5 = vmul.f32 %v10111_v32, %v10111_v32  ;;  %v4186_v63 = vadd.f32 %v4185_v8, %v10111_v32 }
 0x529   : > { %v4255_v17 = vadd.f32 %v4254_v53, %v4224_v5 }
 0x52e   : > { %v10123_v14 = vpop.f32.mrf.mxu1 }
 0x52f   : > { %v4225_v33 = vmul.f32 %v10123_v14, %v10123_v14  ;;  %v4187_v50 = vadd.f32 %v4186_v63, %v10123_v14 }
 0x531   : > { %v4256_v46 = vadd.f32 %v4255_v17, %v4225_v33 }
 0x536   : > { %v10159_v28 = vpop.f32.mrf.mxu1 }
 0x537   : > { %v4226_v9 = vmul.f32 %v10159_v28, %v10159_v28  ;;  %v4188_v47 = vadd.f32 %v4187_v50, %v10159_v28 }
 0x539   : > { %v4257_v51 = vadd.f32 %v4256_v46, %v4226_v9  ;;  %v547_v9 = vmul.u32 4, %v11518_v58  ;;  %v555_v46 = vadd.s32 1, %v11518_v58 }
 0x53b   : > { %vm551_vm10 = vcmp.ge.s32.totalorder %v9827_v38, %v547_v9 }
 0x53e   : > { %v10173_v41 = vpop.f32.mrf.mxu1 }
 0x53f   : > { %v4189_v3 = vadd.f32 %v4188_v47, %v10173_v41  ;;  %v4227_v23 = vmul.f32 %v10173_v41, %v10173_v41  ;;  %v6505_v47 = vmov 1024.0  }
 0x540   : > { %6429 = vrcp.f32 %v6505_v47  ;;  %v4619_v47 = vmul.f32 %v9476_v55, %v9476_v55 }
 0x541   : > { %v4190_v37 = vrot.slane %v4189_v3, 4  ;;  %v4258_v8 = vadd.f32 %v4257_v51, %v4227_v23  ;;  %v559_v51 = vmul.u32 4, %v555_v46 }
 0x543   : > { %v4191_v39 = vadd.f32 %v4190_v37, %v4189_v3  ;;  %v4259_v5 = vrot.slane %v4258_v8, 4  ;;  %v546_v3 = vmul.u32 4, %v11520_v43  ;;  %vm563_vm11 = vcmp.lt.s32.totalorder %v9827_v38, %v559_v51 }
 0x544   : > { %vm567_vm13 = vmand %vm551_vm10, %vm563_vm11 }
 0x545   : > { %v4192_v53 = vrot.slane %v4191_v39, 2  ;;  %v4260_v63 = vadd.f32 %v4259_v5, %v4258_v8  ;;  %vm550_vm12 = vcmp.ge.s32.totalorder %v9827_v38, %v546_v3  ;;  %5867 = vmatpush.msk.msrb.mxu2 %vm567_vm13, %v11519_v15  ;;  %5872 = vmatpush.msk.msrb.mxu3 %vm567_vm13, %v11519_v15 }
 0x547   : > { %v4193_v27 = vadd.f32 %v4192_v53, %v4191_v39  ;;  %v4261_v11 = vrot.slane %v4260_v63, 2  ;;  %v554_v39 = vadd.s32 1, %v11520_v43 }
 0x549   : > { %v4194_v60 = vrot.slane %v4193_v27, 1  ;;  %v4262_v33 = vadd.f32 %v4261_v11, %v4260_v63 }
 0x54b   : > { %v4195_v17 = vadd.f32 %v4194_v60, %v4193_v27  ;;  %v4263_v50 = vrot.slane %v4262_v33, 1  ;;  %v558_v60 = vmul.u32 4, %v554_v39  ;;  %v4551_v39 = vsel %vm919_vm2, %v9476_v55, 0.0 }
 0x54d   : > { %v4264_v2 = vadd.f32 %v4263_v50, %v4262_v33  ;;  %4281 = vmatmul.f32.vlgmr.msra.gmra.mxu2 %v4195_v17  ;;  %vm562_vm14 = vcmp.lt.s32.totalorder %v9827_v38, %v558_v60  ;;  %v4617_v33 = vmul.f32 %v9453_v7, %v9453_v7  ;;  %v4548_v17 = vsel %vm919_vm2, %v9453_v7, 0.0 }
 0x54e   : > { %vm566_vm15 = vmand %vm550_vm12, %vm562_vm14  ;;  %v4549_v50 = vsel %vm919_vm2, %v9466_v42, 0.0  ;;  %v4721_v60 = vsel %vm919_vm2, %v4619_v47, 0.0  ;;  %v4559_v47 = vsel %vm919_vm2, %v9708_v44, 0.0 }
 0x54f   : > { %4309 = vmatmul.f32.vlgmr.msra.gmra.mxu3 %v4264_v2  ;;  %v6430_v2 = vpop.eup %6429  ;;  %5868 = vmatpush.msk.msrb.mxu2 %vm566_vm15, %v11519_v15  ;;  %v4718_v9 = vsel %vm919_vm2, %v4617_v33, 0.0  ;;  %v4550_v51 = vadd.f32 %v4549_v50, %v4548_v17  ;;  %v4623_v50 = vmul.f32 %v9708_v44, %v9708_v44 }
 0x550   : > { %5873 = vmatpush.msk.msrb.mxu3 %vm566_vm15, %v11519_v15  ;;  %v4286_v11 = vmul.f32 1024.0, %v6430_v2  ;;  %vm4290_vm3 = vweird.f32 %v6430_v2  ;;  %v4618_v15 = vmul.f32 %v9466_v42, %v9466_v42 }
 0x552   : > { %v4287_v27 = vsub.f32 1.0, %v4286_v11  ;;  %v4719_v46 = vsel %vm919_vm2, %v4618_v15, 0.0  ;;  %v4552_v11 = vadd.f32 %v4551_v39, %v4550_v51  ;;  %v4557_v15 = vsel %vm919_vm2, %v9656_v31, 0.0 }
 0x553   : > { %v4720_v3 = vadd.f32 %v4719_v46, %v4718_v9  ;;  %v4729_v51 = vsel %vm919_vm2, %v4623_v50, 0.0  ;;  %v4567_v50 = vsel %vm919_vm2, %v9805_v19, 0.0 }
 0x554   : > { %v4288_v58 = vmul.f32 %v6430_v2, %v4287_v27 }
 0x555   : > { %v4722_v27 = vadd.f32 %v4721_v60, %v4720_v3  ;;  %v4624_v3 = vmul.f32 %v9764_v34, %v9764_v34 }
 0x556   : > { %v4289_v43 = vadd.f32 %v6430_v2, %v4288_v58  ;;  %v4553_v58 = vsel %vm919_vm2, %v9506_v18, 0.0 }
 0x558   : > { %v4291_v23 = vsel %vm4290_vm3, %v6430_v2, %v4289_v43  ;;  %v4620_v2 = vmul.f32 %v9506_v18, %v9506_v18 }
 0x55a   : > { %v4723_v43 = vsel %vm919_vm2, %v4620_v2, 0.0  ;;  %v4561_v2 = vsel %vm919_vm2, %v9764_v34, 0.0 }
 0x5d0   : > { %v4282_v37 = vpop.f32.mrf.mxu2 }
 0x5d1   : > { %v4292_v8 = vmul.f32 %v4291_v23, %v4282_v37  ;;  %v4554_v37 = vadd.f32 %v4553_v58, %v4552_v11  ;;  %v4731_v11 = vsel %vm919_vm2, %v4624_v3, 0.0  ;;  %v4569_v3 = vsel %vm919_vm2, %v9810_v0, 0.0 }
 0x5d2   : > { %v4310_v5 = vpop.f32.mrf.mxu3 }
 0x5d3   : > { %v4314_v53 = vmul.f32 %v4292_v8, %v4292_v8  ;;  %v4313_v63 = vmul.f32 %v4310_v5, %v4291_v23  ;;  %5869 = vmatmul.msk.f32.vlgmr.msrb.gmra.mxu2 %vm919_vm2, %v4292_v8  ;;  %v4621_v23 = vmul.f32 %v9615_v16, %v9615_v16  ;;  %v4724_v8 = vadd.f32 %v4723_v43, %v4722_v27 }
 0x5d4   : > { %v4555_v5 = vsel %vm919_vm2, %v9615_v16, 0.0  ;;  %v4625_v27 = vmul.f32 %v9792_v25, %v9792_v25 }
 0x5d5   : > { %v4315_v38 = vsub.f32 %v4313_v63, %v4314_v53  ;;  %v4725_v53 = vsel %vm919_vm2, %v4621_v23, 0.0  ;;  %v4622_v63 = vmul.f32 %v9656_v31, %v9656_v31  ;;  %v4563_v23 = vsel %vm919_vm2, %v9792_v25, 0.0 }
 0x5d6   : > { %v4726_v33 = vadd.f32 %v4725_v53, %v4724_v8  ;;  %v4626_v8 = vmul.f32 %v9800_v45, %v9800_v45 }
 0x5d7   : > { %5874 = vmatmul.msk.f32.vlgmr.msrb.gmra.mxu3 %vm919_vm2, %v4315_v38  ;;  %v4556_v38 = vadd.f32 %v4555_v5, %v4554_v37  ;;  %v4727_v17 = vsel %vm919_vm2, %v4622_v63, 0.0  ;;  %v4733_v37 = vsel %vm919_vm2, %v4625_v27, 0.0  ;;  %v4565_v63 = vsel %vm919_vm2, %v9800_v45, 0.0 }
 0x5d8   : > { %v4728_v46 = vadd.f32 %v4727_v17, %v4726_v33  ;;  %v4627_v33 = vmul.f32 %v9805_v19, %v9805_v19  ;;  %v4571_v27 = vsel %vm919_vm2, %v9815_v62, 0.0 }
 0x5d9   : > { %v4558_v9 = vadd.f32 %v4557_v15, %v4556_v38  ;;  %v4735_v38 = vsel %vm919_vm2, %v4626_v8, 0.0  ;;  %v4573_v8 = vsel %vm919_vm2, %v9820_v52, 0.0 }
 0x5da   : > { %v4730_v60 = vadd.f32 %v4729_v51, %v4728_v46  ;;  %v4628_v46 = vmul.f32 %v9810_v0, %v9810_v0 }
 0x5db   : > { %v4560_v39 = vadd.f32 %v4559_v47, %v4558_v9  ;;  %v4737_v9 = vsel %vm919_vm2, %v4627_v33, 0.0  ;;  %v4575_v33 = vsel %vm919_vm2, %v9829_v36, 0.0 }
 0x5dc   : > { %v4732_v43 = vadd.f32 %v4731_v11, %v4730_v60  ;;  %v4629_v60 = vmul.f32 %v9815_v62, %v9815_v62 }
 0x5dd   : > { %v4562_v58 = vadd.f32 %v4561_v2, %v4560_v39  ;;  %v4739_v39 = vsel %vm919_vm2, %v4628_v46, 0.0  ;;  %v4577_v46 = vsel %vm919_vm2, %v9848_v22, 0.0 }
 0x5de   : > { %v4734_v53 = vadd.f32 %v4733_v37, %v4732_v43  ;;  %v4630_v43 = vmul.f32 %v9820_v52, %v9820_v52 }
 0x5df   : > { %v4564_v5 = vadd.f32 %v4563_v23, %v4562_v58  ;;  %v4741_v58 = vsel %vm919_vm2, %v4629_v60, 0.0  ;;  %v4579_v60 = vsel %vm919_vm2, %v9859_v57, 0.0 }
 0x5e0   : > { %v4736_v17 = vadd.f32 %v4735_v38, %v4734_v53  ;;  %v4631_v53 = vmul.f32 %v9829_v36, %v9829_v36 }
 0x5e1   : > { %v4566_v15 = vadd.f32 %v4565_v63, %v4564_v5  ;;  %v4743_v5 = vsel %vm919_vm2, %v4630_v43, 0.0 }
 0x5e2   : > { %v4738_v51 = vadd.f32 %v4737_v9, %v4736_v17  ;;  %v4632_v17 = vmul.f32 %v9848_v22, %v9848_v22 }
 0x5e3   : > { %v4568_v47 = vadd.f32 %v4567_v50, %v4566_v15  ;;  %v4745_v15 = vsel %vm919_vm2, %v4631_v53, 0.0 }
 0x5e4   : > { %v4740_v11 = vadd.f32 %v4739_v39, %v4738_v51  ;;  %v4633_v51 = vmul.f32 %v9859_v57, %v9859_v57 }
 0x5e5   : > { %v4570_v2 = vadd.f32 %v4569_v3, %v4568_v47  ;;  %v4747_v47 = vsel %vm919_vm2, %v4632_v17, 0.0 }
 0x5e6   : > { %v4742_v37 = vadd.f32 %v4741_v58, %v4740_v11 }
 0x5e7   : > { %v4572_v23 = vadd.f32 %v4571_v27, %v4570_v2  ;;  %v11525_v2 = vld [vmem:[#allocation84_spill] sm:$0xff]  ;;  %v4749_v27 = vsel %vm919_vm2, %v4633_v51, 0.0  ;;  %v11528_v51 = vld [vmem:[#allocation89_spill] sm:$0xff] }
 0x5e8   : > { %v4744_v38 = vadd.f32 %v4743_v5, %v4742_v37  ;;  %v4634_v11 = vmul.f32 %v11525_v2, %v11525_v2  ;;  %v4581_v43 = vsel %vm919_vm2, %v11525_v2, 0.0 }
 0x5e9   : > { %v4574_v63 = vadd.f32 %v4573_v8, %v4572_v23  ;;  %v11526_v8 = vld [vmem:[#allocation86_spill] sm:$0xff] }
 0x5ea   : > { %v4746_v9 = vadd.f32 %v4745_v15, %v4744_v38  ;;  %v4751_v37 = vsel %vm919_vm2, %v4634_v11, 0.0  ;;  %v4635_v5 = vmul.f32 %v11526_v8, %v11526_v8  ;;  %v11527_v15 = vld [vmem:[#allocation88_spill] sm:$0xff] }
 0x5eb   : > { %v4576_v50 = vadd.f32 %v4575_v33, %v4574_v63  ;;  %v4583_v63 = vsel %vm919_vm2, %v11526_v8, 0.0  ;;  %v4636_v17 = vmul.f32 %v11527_v15, %v11527_v15 }
 0x5ec   : > { %v4748_v39 = vadd.f32 %v4747_v47, %v4746_v9  ;;  %v4753_v33 = vsel %vm919_vm2, %v4635_v5, 0.0  ;;  %v4585_v9 = vsel %vm919_vm2, %v11527_v15, 0.0 }
 0x5ed   : > { %v4578_v3 = vadd.f32 %v4577_v46, %v4576_v50  ;;  %v4755_v47 = vsel %vm919_vm2, %v4636_v17, 0.0 }
 0x5ee   : > { %v4750_v23 = vadd.f32 %v4749_v27, %v4748_v39 }
 0x5ef   : > { %v4580_v58 = vadd.f32 %v4579_v60, %v4578_v3  ;;  %v4637_v3 = vmul.f32 %v11528_v51, %v11528_v51  ;;  %v4587_v60 = vsel %vm919_vm2, %v11528_v51, 0.0  ;;  %v11533_v51 = vld [vmem:[#allocation50_spill] sm:$0xff] }
 0x5f0   : > { %v4752_v38 = vadd.f32 %v4751_v37, %v4750_v23 }
 0x5f1   : > { %v4582_v53 = vadd.f32 %v4581_v43, %v4580_v58  ;;  %v4757_v27 = vsel %vm919_vm2, %v4637_v3, 0.0  ;;  %v11529_v58 = vld [vmem:[#allocation91_spill] sm:$0xff] }
 0x5f2   : > { %v4754_v46 = vadd.f32 %v4753_v33, %v4752_v38  ;;  %v4638_v43 = vmul.f32 %v11529_v58, %v11529_v58  ;;  %v4589_v37 = vsel %vm919_vm2, %v11529_v58, 0.0 }
 0x5f3   : > { %v4584_v50 = vadd.f32 %v4583_v63, %v4582_v53  ;;  %v11530_v63 = vld [vmem:[#allocation92_spill] sm:$0xff] }
 0x5f4   : > { %v4756_v11 = vadd.f32 %v4755_v47, %v4754_v46  ;;  %v4759_v53 = vsel %vm919_vm2, %v4638_v43, 0.0  ;;  %v4639_v38 = vmul.f32 %v11530_v63, %v11530_v63  ;;  %v4591_v17 = vsel %vm919_vm2, %v11530_v63, 0.0  ;;  %v11531_v46 = vld [vmem:[#allocation60_spill] sm:$0xff]  ;;  %v11532_v43 = vld [vmem:[#allocation85_spill] sm:$0xff] }
 0x5f5   : > { %v4586_v39 = vadd.f32 %v4585_v9, %v4584_v50  ;;  %v4640_v47 = vmul.f32 %v11531_v46, %v11531_v46 }
 0x5f6   : > { %v4758_v5 = vadd.f32 %v4757_v27, %v4756_v11  ;;  %v4761_v9 = vsel %vm919_vm2, %v4639_v38, 0.0 }
 0x5f7   : > { %v4588_v23 = vadd.f32 %v4587_v60, %v4586_v39  ;;  %v4593_v60 = vsel %vm919_vm2, %v11531_v46, 0.0  ;;  %v4763_v27 = vsel %vm919_vm2, %v4640_v47, 0.0  ;;  %v11535_v46 = vld [vmem:[#allocation52_spill] sm:$0xff] }
 0x5f8   : > { %v4760_v50 = vadd.f32 %v4759_v53, %v4758_v5  ;;  %v4595_v5 = vsel %vm919_vm2, %v11532_v43, 0.0 }
 0x5f9   : > { %v4590_v33 = vadd.f32 %v4589_v37, %v4588_v23  ;;  %v4641_v23 = vmul.f32 %v11532_v43, %v11532_v43 }
 0x5fa   : > { %v4762_v11 = vadd.f32 %v4761_v9, %v4760_v50  ;;  %v4597_v50 = vsel %vm919_vm2, %v11533_v51, 0.0 }
 0x5fb   : > { %v4592_v39 = vadd.f32 %v4591_v17, %v4590_v33  ;;  %v4765_v38 = vsel %vm919_vm2, %v4641_v23, 0.0  ;;  %v4642_v33 = vmul.f32 %v11533_v51, %v11533_v51 }
 0x5fc   : > { %v4764_v53 = vadd.f32 %v4763_v27, %v4762_v11 }
 0x5fd   : > { %v4594_v58 = vadd.f32 %v4593_v60, %v4592_v39  ;;  %v4767_v47 = vsel %vm919_vm2, %v4642_v33, 0.0 }
 0x5fe   : > { %v4766_v9 = vadd.f32 %v4765_v38, %v4764_v53  ;;  %v4601_v53 = vsel %vm919_vm2, %v11535_v46, 0.0 }
 0x5ff   : > { %v4596_v17 = vadd.f32 %v4595_v5, %v4594_v58  ;;  %v4644_v58 = vmul.f32 %v11535_v46, %v11535_v46 }
 0x600   : > { %v4768_v27 = vadd.f32 %v4767_v47, %v4766_v9 }
 0x601   : > { %v4771_v15 = vsel %vm919_vm2, %v4644_v58, 0.0 }
 0x656   : > { %v4336_v58 = vpop.f32.mrf.mxu2 }
 0x657   : > { %v10346_v46 = vperm.slane %v4336_v58, 0 }
 0x65a   : > { %v4359_v3 = vpop.f32.mrf.mxu3 }
 0x65b   : > { %v4362_v37 = vmax.f32 %v4359_v3, 0.0  ;;  %v11534_v3 = vld [vmem:[#allocation54_spill] sm:$0xff] }
 0x65c   : > { %v4643_v39 = vmul.f32 %v11534_v3, %v11534_v3  ;;  %v4599_v11 = vsel %vm919_vm2, %v11534_v3, 0.0 }
 0x65d   : > { %v4363_v63 = vadd.f32 1e-06, %v4362_v37  ;;  %v4598_v37 = vadd.f32 %v4597_v50, %v4596_v17  ;;  %v11536_v17 = vld [vmem:[#allocation43_spill] sm:$0xff] }
 0x65e   : > { %v4769_v43 = vsel %vm919_vm2, %v4643_v39, 0.0  ;;  %v4645_v50 = vmul.f32 %v11536_v17, %v11536_v17  ;;  %v4603_v47 = vsel %vm919_vm2, %v11536_v17, 0.0 }
 0x65f   : > { %6431 = vrsqrt.f32 %v4363_v63  ;;  %v4600_v51 = vadd.f32 %v4599_v11, %v4598_v37  ;;  %v4770_v38 = vadd.f32 %v4769_v43, %v4768_v27  ;;  %v4157_v37 = vld [vmem:[%s11037_s8] sm:$0x1]  ;;  %vm4370_vm5 = vweird.f32 %v4363_v63 }
 0x660   : > { %v4773_v43 = vsel %vm919_vm2, %v4645_v50, 0.0  ;;  %v11537_v27 = vld [vmem:[#allocation59_spill] sm:$0xff] }
 0x661   : > { %v4602_v9 = vadd.f32 %v4601_v53, %v4600_v51  ;;  %v4772_v39 = vadd.f32 %v4771_v15, %v4770_v38  ;;  %v11538_v51 = vld [vmem:[#allocation44_spill] sm:$0xff]  ;;  %v4605_v38 = vsel %vm919_vm2, %v11537_v27, 0.0 }
 0x662   : > { %v4647_v53 = vmul.f32 %v11538_v51, %v11538_v51  ;;  %v4607_v50 = vsel %vm919_vm2, %v11538_v51, 0.0 }
 0x663   : > { %v4774_v15 = vadd.f32 %v4773_v43, %v4772_v39  ;;  %v4376_v39 = vsub.f32 %v9875_v1, %v10346_v46  ;;  %v4400_v43 = vsub.f32 %v10063_v12, %v10346_v46  ;;  %v4404_v1 = vsub.f32 %v10123_v14, %v10346_v46  ;;  %v10391_v14 = vld [vmem:[%s11038_s9] ss:$0 sm:$0xff] }
 0x664   : > { %v4777_v8 = vsel %vm919_vm2, %v4647_v53, 0.0 }
 0x665   : > { %v6432_v60 = vpop.eup %6431 }
 0x666   : > { %v4365_v23 = vmul.f32 %v6432_v60, %v4363_v63  ;;  %vm4371_vm4 = vweird.f32 %v6432_v60 }
 0x667   : > { %vm4372_vm7 = vmor %vm4370_vm5, %vm4371_vm4 }
 0x668   : > { %v4366_v5 = vmul.f32 %v6432_v60, %v4365_v23  ;;  %v4646_v23 = vmul.f32 %v11537_v27, %v11537_v27 }
 0x66a   : > { %v4367_v33 = vmul.f32 0.5, %v4366_v5  ;;  %v4775_v63 = vsel %vm919_vm2, %v4646_v23, 0.0  ;;  %v4402_v23 = vsub.f32 %v10097_v49, %v10346_v46 }
 0x66c   : > { %v4368_v3 = vsub.f32 1.5, %v4367_v33  ;;  %v4604_v33 = vadd.f32 %v4603_v47, %v4602_v9  ;;  %v4776_v9 = vadd.f32 %v4775_v63, %v4774_v15  ;;  %v4375_v47 = vsub.f32 %v9864_v10, %v10346_v46 }
 0x66d   : > { %v4403_v10 = vsub.f32 %v10111_v32, %v10346_v46 }
 0x66e   : > { %v4369_v11 = vmul.f32 %v6432_v60, %v4368_v3  ;;  %v4606_v3 = vadd.f32 %v4605_v38, %v4604_v33  ;;  %v11539_v33 = vld [vmem:[#allocation58_spill] sm:$0xff] }
 0x66f   : > { %v4648_v53 = vmul.f32 %v11539_v33, %v11539_v33 }
 0x670   : > { %v4373_v5 = vsel %vm4372_vm7, %v6432_v60, %v4369_v11  ;;  %v4399_v11 = vsub.f32 %v10043_v30, %v10346_v46  ;;  %v4406_v30 = vsub.f32 %v10173_v41, %v10346_v46 }
 0x671   : > { %v4407_v17 = vmul.f32 %v4373_v5, %v4157_v37  ;;  %v4377_v37 = vsub.f32 %v9880_v40, %v10346_v46  ;;  %v4405_v40 = vsub.f32 %v10159_v28, %v10346_v46 }
 0x673   : > { %v10352_v60 = vperm.slane %v4407_v17, 0  ;;  %v4401_v17 = vsub.f32 %v10077_v4, %v10346_v46 }
 0x675   : > { %v10377_v12 = vmul.f32 %v10352_v60, %v4399_v11  ;;  %v10380_v4 = vmul.f32 %v10352_v60, %v4400_v43  ;;  %v10383_v49 = vmul.f32 %v10352_v60, %v4401_v17  ;;  %v10386_v32 = vmul.f32 %v10352_v60, %v4402_v23 }
 0x676   : > { %v10394_v28 = vmul.f32 %v10352_v60, %v4403_v10  ;;  %v10397_v41 = vmul.f32 %v10352_v60, %v4404_v1  ;;  %v10400_v58 = vmul.f32 %v10352_v60, %v4405_v40  ;;  %v10403_v5 = vmul.f32 %v10352_v60, %v4406_v30 }
 0x677   : > { %v4411_v15 = vmul.f32 %v10352_v60, %v4377_v37  ;;  %v4410_v38 = vmul.f32 %v10352_v60, %v4376_v39  ;;  %v4409_v63 = vmul.f32 %v10352_v60, %v4375_v47  ;;  %v4608_v11 = vadd.f32 %v4607_v50, %v4606_v3 }
 0x678   : > { %v4609_v43 = vsel %vm919_vm2, %v11539_v33, 0.0  ;;  %v4778_v1 = vadd.f32 %v4777_v8, %v4776_v9  ;;  %v4779_v40 = vsel %vm919_vm2, %v4648_v53, 0.0  ;;  %v4379_v37 = vsub.f32 %v9896_v13, %v10346_v46 }
 0x679   : > { %v4446_v17 = vadd.f32 %v10391_v14, %v4411_v15  ;;  %v4445_v23 = vadd.f32 %v10391_v14, %v4410_v38  ;;  %v4444_v10 = vadd.f32 %v10391_v14, %v4409_v63  ;;  %v4380_v39 = vsub.f32 %v9907_v54, %v10346_v46 }
 0x67a   : > { %v4610_v3 = vadd.f32 %v4609_v43, %v4608_v11  ;;  %v4378_v50 = vsub.f32 %v9891_v26, %v10346_v46  ;;  %v4413_v9 = vmul.f32 %v10352_v60, %v4379_v37  ;;  %v4780_v47 = vadd.f32 %v4779_v40, %v4778_v1  ;;  %v11540_v43 = vld [vmem:[#allocation32_spill] sm:$0xff] }
 0x67b   : > { %5061 = vrot.lane.b32.xlu1 %v4446_v17, %s6501_s30  ;;  %5059 = vrot.lane.b32.xlu0 %v4445_v23, %s6501_s30  ;;  %v4414_v8 = vmul.f32 %v10352_v60, %v4380_v39  ;;  %v4382_v26 = vsub.f32 %v9923_v29, %v10346_v46  ;;  %v4383_v63 = vsub.f32 %v9928_v61, %v10346_v46 }
 0x67c   : > { %5057 = vrot.lane.b32.xlu2 %v4444_v10, %s6501_s30  ;;  %v4412_v13 = vmul.f32 %v10352_v60, %v4378_v50  ;;  %v4611_v30 = vrot.slane %v4610_v3, 4  ;;  %v4448_v53 = vadd.f32 %v10391_v14, %v4413_v9  ;;  %v4781_v15 = vrot.slane %v4780_v47, 4 }
 0x67d   : > { %v4449_v54 = vadd.f32 %v10391_v14, %v4414_v8  ;;  %v4381_v17 = vsub.f32 %v11540_v43, %v10346_v46  ;;  %v4417_v23 = vmul.f32 %v10352_v60, %v4383_v63  ;;  %v4416_v10 = vmul.f32 %v10352_v60, %v4382_v26  ;;  %v11541_v43 = vld [vmem:[#allocation24_spill] sm:$0xff] }
 0x67e   : > { %v4447_v38 = vadd.f32 %v10391_v14, %v4412_v13  ;;  %v4612_v11 = vadd.f32 %v4611_v30, %v4610_v3  ;;  %v4782_v1 = vadd.f32 %v4781_v15, %v4780_v47  ;;  %v4385_v50 = vsub.f32 %v9944_v21, %v10346_v46 }
 0x67f   : > { %v4415_v29 = vmul.f32 %v10352_v60, %v4381_v17  ;;  %v4452_v61 = vadd.f32 %v10391_v14, %v4417_v23  ;;  %v4451_v37 = vadd.f32 %v10391_v14, %v4416_v10  ;;  %v4386_v8 = vsub.f32 %v9955_v20, %v10346_v46 }
 0x680   : > { %v4613_v40 = vrot.slane %v4612_v11, 2  ;;  %v4783_v39 = vrot.slane %v4782_v1, 2  ;;  %v4384_v47 = vsub.f32 %v9939_v6, %v10346_v46  ;;  %v4419_v13 = vmul.f32 %v10352_v60, %v4385_v50 }
 0x681   : > { %v4450_v3 = vadd.f32 %v10391_v14, %v4415_v29  ;;  %v4420_v30 = vmul.f32 %v10352_v60, %v4386_v8  ;;  %v4388_v6 = vsub.f32 %v9971_v35, %v10346_v46  ;;  %v4389_v63 = vsub.f32 %v9976_v24, %v10346_v46  ;;  %v11542_v29 = vld [vmem:[#allocation40_spill] sm:$0xff] }
 0x682   : > { %v4614_v9 = vadd.f32 %v4613_v40, %v4612_v11  ;;  %v4418_v21 = vmul.f32 %v10352_v60, %v4384_v47  ;;  %v4454_v15 = vadd.f32 %v10391_v14, %v4419_v13  ;;  %v4387_v17 = vsub.f32 %v11541_v43, %v10346_v46 }
 0x683   : > { %5067 = vrot.lane.b32.xlu1 %v4449_v54, %s6501_s30  ;;  %5065 = vrot.lane.b32.xlu0 %v4448_v53, %s6501_s30  ;;  %v4784_v54 = vadd.f32 %v4783_v39, %v4782_v1  ;;  %v4455_v20 = vadd.f32 %v10391_v14, %v4420_v30  ;;  %v10472_v23 = vadd.f32 %v10391_v14, %v10383_v49 }
 0x684   : > { %5063 = vrot.lane.b32.xlu2 %v4447_v38, %s6501_s30  ;;  %v4615_v53 = vrot.slane %v4614_v9, 1  ;;  %v4453_v26 = vadd.f32 %v10391_v14, %v4418_v21  ;;  %v4422_v10 = vmul.f32 %v10352_v60, %v4388_v6  ;;  %v4423_v35 = vmul.f32 %v10352_v60, %v4389_v63  ;;  %v11545_v63 = vld [vmem:[#allocation23_spill] sm:$0xff] }
 0x685   : > { %v4785_v38 = vrot.slane %v4784_v54, 1  ;;  %v4421_v24 = vmul.f32 %v10352_v60, %v4387_v17  ;;  %v4392_v8 = vsub.f32 %v9998_v56, %v10346_v46  ;;  %v4468_v47 = vadd.f32 %v10391_v14, %v10377_v12  ;;  %v11543_v12 = vld [vmem:[#allocation11_spill] sm:$0xff] }
 0x686   : > { %v4616_v11 = vadd.f32 %v4615_v53, %v4614_v9  ;;  %v4469_v9 = vadd.f32 %v10391_v14, %v10380_v4  ;;  %v4390_v13 = vsub.f32 %v9987_v48, %v10346_v46  ;;  %v4471_v6 = vadd.f32 %v10391_v14, %v10386_v32 }
 0x687   : > { %v4786_v1 = vadd.f32 %v4785_v38, %v4784_v54  ;;  %v4456_v50 = vadd.f32 %v10391_v14, %v4421_v24  ;;  %v4426_v30 = vmul.f32 %v10352_v60, %v4392_v8  ;;  %v11544_v38 = vld [vmem:[#allocation30_spill] sm:$0xff]  ;;  %v4475_v43 = vadd.f32 %v10391_v14, %v10403_v5 }
 0x688   : > { %v10478_v40 = vmul.f32 %v4616_v11, %v11542_v29  ;;  %v4424_v54 = vmul.f32 %v10352_v60, %v4390_v13  ;;  %v4393_v11 = vsub.f32 %v11545_v63, %v10346_v46 }
 0x689   : > { %v4790_v39 = vmul.f32 %v4786_v1, %v11542_v29  ;;  %v4461_v4 = vadd.f32 %v10391_v14, %v4426_v30  ;;  %v11546_v29 = vld [vmem:[#allocation18_spill] sm:$0xff] }
 0x68a   : > { %v4792_v49 = vmul.f32 %v10478_v40, %v10478_v40  ;;  %v4459_v48 = vadd.f32 %v10391_v14, %v4424_v54 }
 0x68b   : > { %5073 = vrot.lane.b32.xlu1 %v4452_v61, %s6501_s30  ;;  %5071 = vrot.lane.b32.xlu0 %v4451_v37, %s6501_s30  ;;  %v4458_v61 = vadd.f32 %v10391_v14, %v4423_v35  ;;  %v4457_v37 = vadd.f32 %v10391_v14, %v4422_v10  ;;  %v4427_v35 = vmul.f32 %v10352_v60, %v4393_v11 }
 0x68c   : > { %5069 = vrot.lane.b32.xlu2 %v4450_v3, %s6501_s30  ;;  %v4391_v3 = vsub.f32 %v9990_v59, %v10346_v46  ;;  %v4473_v59 = vadd.f32 %v10391_v14, %v10397_v41  ;;  %v4794_v21 = vsub.f32 %v4790_v39, %v4792_v49  ;;  %v4395_v41 = vsub.f32 %v11544_v38, %v10346_v46  ;;  %v11548_v49 = vld [vmem:[#allocation28_spill] sm:$0xff] }
 0x68d   : > { %v4462_v32 = vadd.f32 %v10391_v14, %v4427_v35  ;;  %v4474_v39 = vadd.f32 %v10391_v14, %v10400_v58 }
 0x68e   : > { %v4425_v56 = vmul.f32 %v10352_v60, %v4391_v3  ;;  %v4429_v10 = vmul.f32 %v10352_v60, %v4395_v41  ;;  %v4396_v3 = vsub.f32 %v11548_v49, %v10346_v46  ;;  %v4826_v49 = vsub.f32 %v9506_v18, %v10478_v40 }
 0x690   : > { %v4460_v53 = vadd.f32 %v10391_v14, %v4425_v56  ;;  %v4430_v13 = vmul.f32 %v10352_v60, %v4396_v3 }
 0x693   : > { %5079 = vrot.lane.b32.xlu1 %v4455_v20, %s6501_s30  ;;  %5077 = vrot.lane.b32.xlu0 %v4454_v15, %s6501_s30  ;;  %v4394_v20 = vsub.f32 %v11543_v12, %v10346_v46  ;;  %v4796_v15 = vmax.f32 %v4794_v21, 0.0  ;;  %v4465_v21 = vadd.f32 %v10391_v14, %v4430_v13  ;;  %v11549_v12 = vld [vmem:[#allocation76_spill] sm:$0xff]  ;;  %v11555_v13 = vld [vmem:[#allocation10_spill] sm:$0xff] }
 0x694   : > { %5075 = vrot.lane.b32.xlu2 %v4453_v26, %s6501_s30  ;;  %v4472_v26 = vadd.f32 %v10391_v14, %v10394_v28  ;;  %v4464_v28 = vadd.f32 %v10391_v14, %v4429_v10 }
 0x695   : > { %v4428_v17 = vmul.f32 %v10352_v60, %v4394_v20  ;;  %v4798_v1 = vadd.f32 1e-05, %v4796_v15  ;;  %v11552_v15 = vld [vmem:[#allocation75_spill] sm:$0xff] }
 0x697   : > { %v4463_v24 = vadd.f32 %v10391_v14, %v4428_v17  ;;  %6433 = vrsqrt.f32 %v4798_v1  ;;  %vm4815_vm2 = vweird.f32 %v4798_v1 }
 0x69b   : > { %5085 = vrot.lane.b32.xlu1 %v4458_v61, %s6501_s30  ;;  %5083 = vrot.lane.b32.xlu0 %v4457_v37, %s6501_s30  ;;  %v4397_v61 = vsub.f32 %v11546_v29, %v10346_v46  ;;  %v11547_v37 = vld [vmem:[#allocation35_spill] sm:$0xff]  ;;  %v11554_v29 = vld [vmem:[#allocation8_spill] sm:$0xff] }
 0x69c   : > { %5081 = vrot.lane.b32.xlu2 %v4456_v50, %s6501_s30  ;;  %v4398_v5 = vsub.f32 %v11547_v37, %v10346_v46 }
 0x69d   : > { %v4431_v50 = vmul.f32 %v10352_v60, %v4397_v61  ;;  %v6434_v56 = vpop.eup %6433 }
 0x69e   : > { %v4432_v8 = vmul.f32 %v10352_v60, %v4398_v5  ;;  %v4810_v46 = vmul.f32 %v6434_v56, %v4798_v1  ;;  %vm4816_vm0 = vweird.f32 %v6434_v56  ;;  %v4822_v1 = vsub.f32 %v9466_v42, %v10478_v40 }
 0x69f   : > { %v4466_v54 = vadd.f32 %v10391_v14, %v4431_v50  ;;  %vm4817_vm1 = vmor %vm4815_vm2, %vm4816_vm0  ;;  %v4824_v42 = vsub.f32 %v9476_v55, %v10478_v40 }
 0x6a0   : > { %v4467_v30 = vadd.f32 %v10391_v14, %v4432_v8  ;;  %v4811_v58 = vmul.f32 %v6434_v56, %v4810_v46 }
 0x6a2   : > { %v4812_v60 = vmul.f32 0.5, %v4811_v58 }
 0x6a3   : > { %5091 = vrot.lane.b32.xlu1 %v4461_v4, %s6501_s30  ;;  %5089 = vrot.lane.b32.xlu0 %v4460_v53, %s6501_s30 }
 0x6a4   : > { %5087 = vrot.lane.b32.xlu2 %v4459_v48, %s6501_s30  ;;  %v4813_v4 = vsub.f32 1.5, %v4812_v60 }
 0x6a6   : > { %v4814_v14 = vmul.f32 %v6434_v56, %v4813_v4 }
 0x6a8   : > { %v4818_v53 = vsel %vm4817_vm1, %v6434_v56, %v4814_v14 }
 0x6a9   : > { %v4889_v20 = vmul.f32 %v11549_v12, %v4818_v53 }
 0x6ab   : > { %5097 = vrot.lane.b32.xlu1 %v4464_v28, %s6501_s30  ;;  %5095 = vrot.lane.b32.xlu0 %v4463_v24, %s6501_s30  ;;  %v11553_v24 = vld [vmem:[#allocation9_spill] sm:$0xff] }
 0x6ac   : > { %5093 = vrot.lane.b32.xlu2 %v4462_v32, %s6501_s30 }
 0x6b3   : > { %5103 = vrot.lane.b32.xlu1 %v4467_v30, %s6501_s30  ;;  %5101 = vrot.lane.b32.xlu0 %v4466_v54, %s6501_s30 }
 0x6b4   : > { %5099 = vrot.lane.b32.xlu2 %v4465_v21, %s6501_s30 }
 0x6bb   : > { %5109 = vrot.lane.b32.xlu1 %v10472_v23, %s6501_s30  ;;  %5107 = vrot.lane.b32.xlu0 %v4469_v9, %s6501_s30  ;;  %v10558_v23 = vperm.slane %v4889_v20, 0  ;;  %v4820_v9 = vsub.f32 %v9453_v7, %v10478_v40 }
 0x6bc   : > { %5105 = vrot.lane.b32.xlu2 %v4468_v47, %s6501_s30  ;;  %v11550_v47 = vld [vmem:[#allocation72_spill] sm:$0xff] }
 0x6bd   : > { %v4893_v41 = vmul.f32 %v10558_v23, %v4820_v9  ;;  %v4823_v32 = vsub.f32 %v11553_v24, %v11550_v47  ;;  %v4821_v61 = vsub.f32 %v11554_v29, %v11550_v47  ;;  %v4825_v56 = vsub.f32 %v11555_v13, %v11550_v47  ;;  %v11557_v24 = vld [vmem:[#allocation82_spill] sm:$0xff] }
 0x6be   : > { %v4899_v30 = vmul.f32 %v10558_v23, %v4826_v49  ;;  %v4897_v46 = vmul.f32 %v10558_v23, %v4824_v42  ;;  %v4832_v29 = vsub.f32 %v9708_v44, %v10478_v40  ;;  %v11558_v44 = vld [vmem:[#allocation74_spill] sm:$0xff] }
 0x6bf   : > { %v4896_v37 = vmul.f32 %v11552_v15, %v4823_v32  ;;  %v4894_v5 = vmul.f32 %v11552_v15, %v4821_v61  ;;  %v4898_v55 = vmul.f32 %v11552_v15, %v4825_v56 }
 0x6c0   : > { %v4905_v49 = vmul.f32 %v10558_v23, %v4832_v29 }
 0x6c3   : > { %5115 = vrot.lane.b32.xlu1 %v4473_v59, %s6501_s30  ;;  %5113 = vrot.lane.b32.xlu0 %v4472_v26, %s6501_s30  ;;  %v11551_v59 = vld [vmem:[#allocation7_spill] sm:$0xff]  ;;  %v10566_v26 = vpop.permute.xlu1 %4958 }
 0x6c4   : > { %5111 = vrot.lane.b32.xlu2 %v4471_v6, %s6501_s30  ;;  %v4819_v48 = vsub.f32 %v11551_v59, %v11550_v47  ;;  %v4962_v63 = vadd.f32 %v10566_v26, %v4893_v41  ;;  %v4965_v3 = vadd.f32 %v10566_v26, %v4896_v37  ;;  %v4963_v50 = vadd.f32 %v10566_v26, %v4894_v5 }
 0x6c5   : > { %v4968_v20 = vadd.f32 %v10566_v26, %v4899_v30  ;;  %v4966_v9 = vadd.f32 %v10566_v26, %v4897_v46  ;;  %v4967_v47 = vadd.f32 %v10566_v26, %v4898_v55  ;;  %v4969_v32 = vadd.f32 %v10566_v26, %v11557_v24 }
 0x6c6   : > { %v4892_v38 = vmul.f32 %v11552_v15, %v4819_v48  ;;  %v4828_v15 = vsub.f32 %v9615_v16, %v10478_v40  ;;  %v4974_v56 = vadd.f32 %v10566_v26, %v4905_v49  ;;  %v4973_v30 = vadd.f32 %v10566_v26, %v11558_v44 }
 0x6c7   : > { %v4834_v46 = vsub.f32 %v9764_v34, %v10478_v40 }
 0x6c8   : > { %v4961_v6 = vadd.f32 %v10566_v26, %v4892_v38 }
 0x6c9   : > { %v4907_v55 = vmul.f32 %v10558_v23, %v4834_v46 }
 0x6cb   : > { %5119 = vrot.lane.b32.xlu0 %v4475_v43, %s6501_s30  ;;  %v4976_v34 = vadd.f32 %v10566_v26, %v4907_v55 }
 0x6cc   : > { %5117 = vrot.lane.b32.xlu2 %v4474_v39, %s6501_s30  ;;  %v4895_v39 = vmul.f32 %v10558_v23, %v4822_v1  ;;  %s404_s30 = sand.u32 1, %s6489_s22  }
 0x6cd   : > { %s5651_s18 = sshll.u32 %s404_s30, 8 }
 0x6ce   : > { %v4964_v8 = vadd.f32 %v10566_v26, %v4895_v39  ;;  %s10810_s19 = scalar_lea.vmem [#allocation2], %s5651_s18 }
 0x6cf   : > { %s5582_s16 = sshll.u32 %s10810_s19, 4  ;;  %s5583_s16 = int_to_ptr.vmem [resolvable:$true] %s5582_s16 }
 0x6d6   : > { %v5058_v11 = vpop.permute.xlu2 %5057 }
 0x6d7   : > { %v5153_v43 = vadd.f32 %v5058_v11, %v4961_v6  ;;  %v5154_v17 = vadd.f32 %v5058_v11, %v4962_v63  ;;  %v4901_v63 = vmul.f32 %v10558_v23, %v4828_v15  ;;  %v4838_v15 = vsub.f32 %v9800_v45, %v10478_v40  ;;  %v11561_v45 = vld [vmem:[#allocation79_spill] sm:$0xff] }
 0x6d9   : > { %v5217_v10 = vmax.f32 %v5153_v43, 0.0  ;;  %v5218_v35 = vmax.f32 %v5154_v17, 0.0  ;;  %v4970_v16 = vadd.f32 %v10566_v26, %v4901_v63 }
 0x6db   : > { %5347 = vrot.lane.b32.xlu2 %v5218_v35, %s6503_s15  ;;  %5345 = vrot.lane.b32.xlu1 %v5217_v10, %s6503_s15  ;;  %v11556_v35 = vld [vmem:[#allocation78_spill] sm:$0xff] }
 0x6dc   : > { %v4971_v1 = vadd.f32 %v10566_v26, %v11556_v35 }
 0x6de   : > { %v5064_v7 = vpop.permute.xlu2 %5063 }
 0x6df   : > { %v5160_v59 = vadd.f32 %v5064_v7, %v4968_v20  ;;  %v5159_v38 = vadd.f32 %v5064_v7, %v4967_v47  ;;  %v4830_v7 = vsub.f32 %v9656_v31, %v10478_v40 }
 0x6e1   : > { %v5224_v11 = vmax.f32 %v5160_v59, 0.0  ;;  %v5223_v17 = vmax.f32 %v5159_v38, 0.0  ;;  %v4903_v42 = vmul.f32 %v10558_v23, %v4830_v7  ;;  %v11560_v59 = vld [vmem:[#allocation87_spill] sm:$0xff] }
 0x6e3   : > { %v4972_v31 = vadd.f32 %v10566_v26, %v4903_v42 }
 0x6e6   : > { %v10574_v28 = vpop.permute.xlu2 %5069 }
 0x6ed   : > { %v5062_v54 = vpop.permute.xlu1 %5061  ;;  %v5060_v21 = vpop.permute.xlu0 %5059 }
 0x6ee   : > { %v5157_v58 = vadd.f32 %v5062_v54, %v4965_v3  ;;  %v5155_v18 = vadd.f32 %v5060_v21, %v4963_v50  ;;  %v5156_v60 = vadd.f32 %v5060_v21, %v4964_v8  ;;  %v10594_v4 = vpop.permute.xlu2 %5075  ;;  %v5158_v48 = vadd.f32 %v5062_v54, %v4966_v9  ;;  %v11559_v9 = vld [vmem:[#allocation83_spill] sm:$0xff] }
 0x6ef   : > { %v5166_v54 = vadd.f32 %v10574_v28, %v4974_v56  ;;  %v4977_v47 = vadd.f32 %v10566_v26, %v11559_v9 }
 0x6f0   : > { %v5221_v14 = vmax.f32 %v5157_v58, 0.0  ;;  %v5219_v53 = vmax.f32 %v5155_v18, 0.0  ;;  %v5220_v12 = vmax.f32 %v5156_v60, 0.0  ;;  %v5222_v43 = vmax.f32 %v5158_v48, 0.0 }
 0x6f1   : > { %v5165_v58 = vadd.f32 %v10574_v28, %v4973_v30  ;;  %v4975_v48 = vadd.f32 %v10566_v26, %v11560_v59  ;;  %v4836_v28 = vsub.f32 %v9792_v25, %v10478_v40  ;;  %v11563_v30 = vld [vmem:[#allocation53_spill] sm:$0xff] }
 0x6f2   : > { %5349 = vrot.lane.b32.xlu0 %v5219_v53, %s6503_s15  ;;  %5353 = vrot.lane.b32.xlu2 %v5221_v14, %s6503_s15  ;;  %v5230_v14 = vmax.f32 %v5166_v54, 0.0  ;;  %v4844_v54 = vsub.f32 %v9815_v62, %v10478_v40 }
 0x6f3   : > { %5351 = vrot.lane.b32.xlu1 %v5220_v12, %s6503_s15  ;;  %v5229_v12 = vmax.f32 %v5165_v58, 0.0 }
 0x6f5   : > { %v5068_v41 = vpop.permute.xlu1 %5067  ;;  %v5066_v10 = vpop.permute.xlu0 %5065 }
 0x6f6   : > { %v10605_v6 = vpop.permute.xlu2 %5081  ;;  %v5163_v61 = vadd.f32 %v5068_v41, %v4971_v1  ;;  %v5161_v37 = vadd.f32 %v5066_v10, %v4969_v32  ;;  %v5162_v5 = vadd.f32 %v5066_v10, %v4970_v16  ;;  %v5164_v21 = vadd.f32 %v5068_v41, %v4972_v31  ;;  %v11562_v31 = vld [vmem:[#allocation47_spill] sm:$0xff] }
 0x6f7   : > { %v4979_v16 = vadd.f32 %v10566_v26, %v11561_v45  ;;  %v4983_v44 = vadd.f32 %v10566_v26, %v11562_v31 }
 0x6f8   : > { %v5227_v50 = vmax.f32 %v5163_v61, 0.0  ;;  %v5225_v8 = vmax.f32 %v5161_v37, 0.0  ;;  %v5226_v13 = vmax.f32 %v5162_v5, 0.0  ;;  %v5228_v53 = vmax.f32 %v5164_v21, 0.0 }
 0x6f9   : > { %v4840_v61 = vsub.f32 %v9805_v19, %v10478_v40  ;;  %v5171_v37 = vadd.f32 %v10594_v4, %v4979_v16 }
 0x6fa   : > { %5355 = vrot.lane.b32.xlu0 %v5222_v43, %s6503_s15  ;;  %5359 = vrot.lane.b32.xlu2 %v5224_v11, %s6503_s15  ;;  %v4911_v43 = vmul.f32 %v10558_v23, %v4838_v15 }
 0x6fb   : > { %5357 = vrot.lane.b32.xlu1 %v5223_v17, %s6503_s15  ;;  %v4909_v17 = vmul.f32 %v10558_v23, %v4836_v28  ;;  %v5235_v56 = vmax.f32 %v5171_v37, 0.0  ;;  %v11564_v28 = vld [vmem:[#allocation80_spill] sm:$0xff] }
 0x6fc   : > { %v4980_v32 = vadd.f32 %v10566_v26, %v4911_v43  ;;  %v4985_v15 = vadd.f32 %v10566_v26, %v11564_v28 }
 0x6fd   : > { %v5074_v39 = vpop.permute.xlu1 %5073  ;;  %v5072_v20 = vpop.permute.xlu0 %5071  ;;  %v4978_v25 = vadd.f32 %v10566_v26, %v4909_v17  ;;  %v11565_v17 = vld [vmem:[#allocation21_spill] sm:$0xff] }
 0x6fe   : > { %v10622_v3 = vpop.permute.xlu2 %5087  ;;  %v5169_v38 = vadd.f32 %v5074_v39, %v4977_v47  ;;  %v5167_v41 = vadd.f32 %v5072_v20, %v4975_v48  ;;  %v5168_v63 = vadd.f32 %v5072_v20, %v4976_v34  ;;  %v5172_v7 = vadd.f32 %v10594_v4, %v4980_v32 }
 0x6ff   : > { %v5170_v29 = vadd.f32 %v5074_v39, %v4978_v25  ;;  %v4981_v39 = vadd.f32 %v10566_v26, %v11563_v30  ;;  %v4842_v4 = vsub.f32 %v9810_v0, %v10478_v40  ;;  %v4880_v20 = vsub.f32 %v11538_v51, %v10478_v40 }
 0x700   : > { %v5233_v35 = vmax.f32 %v5169_v38, 0.0  ;;  %v5231_v1 = vmax.f32 %v5167_v41, 0.0  ;;  %v5232_v24 = vmax.f32 %v5168_v63, 0.0  ;;  %v4846_v41 = vsub.f32 %v9820_v52, %v10478_v40  ;;  %v11566_v52 = vld [vmem:[#allocation56_spill] sm:$0xff] }
 0x701   : > { %v4953_v62 = vmul.f32 %v10558_v23, %v4880_v20  ;;  %v5177_v63 = vadd.f32 %v10605_v6, %v4985_v15  ;;  %v4878_v30 = vsub.f32 %v11537_v27, %v10478_v40 }
 0x702   : > { %5361 = vrot.lane.b32.xlu0 %v5225_v8, %s6503_s15  ;;  %5365 = vrot.lane.b32.xlu2 %v5227_v50, %s6503_s15  ;;  %v4913_v50 = vmul.f32 %v10558_v23, %v4840_v61  ;;  %v5236_v8 = vmax.f32 %v5172_v7, 0.0  ;;  %v4919_v32 = vmul.f32 %v10558_v23, %v4846_v41 }
 0x703   : > { %5363 = vrot.lane.b32.xlu1 %v5226_v13, %s6503_s15  ;;  %v5234_v13 = vmax.f32 %v5170_v29, 0.0  ;;  %v5241_v7 = vmax.f32 %v5177_v63, 0.0  ;;  %v11567_v29 = vld [vmem:[#allocation34_spill] sm:$0xff] }
 0x704   : > { %v4982_v19 = vadd.f32 %v10566_v26, %v4913_v50  ;;  %v4987_v61 = vadd.f32 %v10566_v26, %v11567_v29  ;;  %v4848_v50 = vsub.f32 %v9829_v36, %v10478_v40  ;;  %v4951_v36 = vmul.f32 %v10558_v23, %v4878_v30  ;;  %v11571_v63 = vld [vmem:[#allocation86_spill] sm:$0xff] }
 0x705   : > { %v10635_v18 = vpop.permute.xlu1 %5079  ;;  %v5078_v49 = vpop.permute.xlu0 %5077 }
 0x706   : > { %v10637_v60 = vpop.permute.xlu2 %5093  ;;  %v5175_v21 = vadd.f32 %v10635_v18, %v4983_v44  ;;  %v5173_v46 = vadd.f32 %v5078_v49, %v4981_v39  ;;  %v5174_v58 = vadd.f32 %v5078_v49, %v4982_v19  ;;  %v4988_v49 = vadd.f32 %v10566_v26, %v4919_v32 }
 0x707   : > { %v4921_v19 = vmul.f32 %v10558_v23, %v4848_v50 }
 0x708   : > { %v5239_v9 = vmax.f32 %v5175_v21, 0.0  ;;  %v5237_v0 = vmax.f32 %v5173_v46, 0.0  ;;  %v5238_v59 = vmax.f32 %v5174_v58, 0.0  ;;  %v11568_v58 = vld [vmem:[#allocation90_spill] sm:$0xff] }
 0x709   : > { %v4990_v46 = vadd.f32 %v10566_v26, %v4921_v19  ;;  %v4991_v27 = vadd.f32 %v10566_v26, %v11568_v58 }
 0x70a   : > { %5367 = vrot.lane.b32.xlu0 %v5228_v53, %s6503_s15  ;;  %5371 = vrot.lane.b32.xlu2 %v5230_v14, %s6503_s15  ;;  %v4917_v14 = vmul.f32 %v10558_v23, %v4844_v54  ;;  %v4915_v53 = vmul.f32 %v10558_v23, %v4842_v4 }
 0x70b   : > { %5369 = vrot.lane.b32.xlu1 %v5229_v12, %s6503_s15 }
 0x70c   : > { %v4986_v48 = vadd.f32 %v10566_v26, %v4917_v14  ;;  %v4984_v34 = vadd.f32 %v10566_v26, %v4915_v53 }
 0x70d   : > { %v10652_v11 = vpop.permute.xlu1 %5085  ;;  %v5084_v47 = vpop.permute.xlu0 %5083 }
 0x70e   : > { %v10656_v10 = vpop.permute.xlu2 %5099  ;;  %v5178_v51 = vadd.f32 %v10605_v6, %v4986_v48  ;;  %v5176_v38 = vadd.f32 %v10635_v18, %v4984_v34  ;;  %v4989_v6 = vadd.f32 %v10566_v26, %v11566_v52  ;;  %v5180_v31 = vadd.f32 %v5084_v47, %v4988_v49 }
 0x70f   : > { %v5182_v53 = vadd.f32 %v10652_v11, %v4990_v46  ;;  %v11576_v46 = vld [vmem:[#allocation89_spill] sm:$0xff] }
 0x710   : > { %v5242_v18 = vmax.f32 %v5178_v51, 0.0  ;;  %v5240_v16 = vmax.f32 %v5176_v38, 0.0  ;;  %v5244_v21 = vmax.f32 %v5180_v31, 0.0  ;;  %v11569_v51 = vld [vmem:[#allocation37_spill] sm:$0xff]  ;;  %v11570_v38 = vld [vmem:[#allocation38_spill] sm:$0xff]  ;;  %v4860_v58 = vsub.f32 %v11576_v46, %v10478_v40 }
 0x711   : > { %v5246_v28 = vmax.f32 %v5182_v53, 0.0  ;;  %v4993_v41 = vadd.f32 %v10566_v26, %v11570_v38 }
 0x712   : > { %5373 = vrot.lane.b32.xlu0 %v5231_v1, %s6503_s15  ;;  %5377 = vrot.lane.b32.xlu2 %v5233_v35, %s6503_s15  ;;  %v5021_v35 = vadd.f32 %v10566_v26, %v11565_v17  ;;  %v5022_v1 = vadd.f32 %v10566_v26, %v4953_v62  ;;  %v4856_v17 = vsub.f32 %v11571_v63, %v10478_v40 }
 0x713   : > { %5375 = vrot.lane.b32.xlu1 %v5232_v24, %s6503_s15 }
 0x714   : > { %v4929_v32 = vmul.f32 %v10558_v23, %v4856_v17 }
 0x715   : > { %v10669_v5 = vpop.permute.xlu1 %5091  ;;  %v5090_v37 = vpop.permute.xlu0 %5089 }
 0x716   : > { %v10671_v42 = vpop.permute.xlu2 %5105  ;;  %v4998_v29 = vadd.f32 %v10566_v26, %v4929_v32 }
 0x718   : > { %v5190_v49 = vadd.f32 %v10637_v60, %v4998_v29 }
 0x71a   : > { %5379 = vrot.lane.b32.xlu0 %v5234_v13, %s6503_s15  ;;  %5383 = vrot.lane.b32.xlu2 %v5236_v8, %s6503_s15  ;;  %v4850_v8 = vsub.f32 %v9848_v22, %v10478_v40  ;;  %v5181_v13 = vadd.f32 %v10652_v11, %v4989_v6  ;;  %v4995_v11 = vadd.f32 %v10566_v26, %v11569_v51 }
 0x71b   : > { %5381 = vrot.lane.b32.xlu1 %v5235_v56, %s6503_s15  ;;  %v5179_v56 = vadd.f32 %v5084_v47, %v4987_v61  ;;  %v5183_v47 = vadd.f32 %v10622_v3, %v4991_v27  ;;  %v11572_v61 = vld [vmem:[#allocation69_spill] sm:$0xff]  ;;  %v11577_v27 = vld [vmem:[#allocation91_spill] sm:$0xff] }
 0x71c   : > { %v4923_v39 = vmul.f32 %v10558_v23, %v4850_v8  ;;  %v5245_v4 = vmax.f32 %v5181_v13, 0.0  ;;  %v11573_v13 = vld [vmem:[#allocation88_spill] sm:$0xff] }
 0x71d   : > { %v10687_v55 = vpop.permute.xlu1 %5097  ;;  %v5243_v54 = vmax.f32 %v5179_v56, 0.0  ;;  %v5096_v20 = vpop.permute.xlu0 %5095  ;;  %v5247_v15 = vmax.f32 %v5183_v47, 0.0  ;;  %v4858_v56 = vsub.f32 %v11573_v13, %v10478_v40 }
 0x71e   : > { %v10691_v12 = vpop.permute.xlu2 %5111  ;;  %v4992_v22 = vadd.f32 %v10566_v26, %v4923_v39  ;;  %v5254_v39 = vmax.f32 %v5190_v49, 0.0 }
 0x71f   : > { %v4931_v30 = vmul.f32 %v10558_v23, %v4858_v56 }
 0x720   : > { %v5184_v14 = vadd.f32 %v10622_v3, %v4992_v22  ;;  %v4854_v3 = vsub.f32 %v11525_v2, %v10478_v40 }
 0x722   : > { %5385 = vrot.lane.b32.xlu0 %v5237_v0, %s6503_s15  ;;  %5389 = vrot.lane.b32.xlu2 %v5239_v9, %s6503_s15  ;;  %v5020_v9 = vadd.f32 %v10566_v26, %v4951_v36  ;;  %v4852_v0 = vsub.f32 %v9859_v57, %v10478_v40  ;;  %v5248_v34 = vmax.f32 %v5184_v14, 0.0  ;;  %v11574_v36 = vld [vmem:[#allocation65_spill] sm:$0xff]  ;;  %v4862_v14 = vsub.f32 %v11577_v27, %v10478_v40 }
 0x723   : > { %5387 = vrot.lane.b32.xlu1 %v5238_v59, %s6503_s15 }
 0x724   : > { %v4925_v48 = vmul.f32 %v10558_v23, %v4852_v0 }
 0x725   : > { %v10708_v43 = vpop.permute.xlu1 %5103 }
 0x726   : > { %v5118_v24 = vpop.permute.xlu2 %5117  ;;  %v4994_v57 = vadd.f32 %v10566_v26, %v4925_v48 }
 0x727   : > { %v10714_v25 = vadd.f32 %v5118_v24, %v5021_v35  ;;  %v10716_v45 = vadd.f32 %v5118_v24, %v5022_v1  ;;  %v5187_v35 = vadd.f32 %v10669_v5, %v4995_v11  ;;  %v5185_v1 = vadd.f32 %v5090_v37, %v4993_v41 }
 0x728   : > { %v5186_v24 = vadd.f32 %v5090_v37, %v4994_v57  ;;  %v4997_v37 = vadd.f32 %v10566_v26, %v11572_v61 }
 0x729   : > { %v5249_v52 = vmax.f32 %v5185_v1, 0.0 }
 0x72a   : > { %5391 = vrot.lane.b32.xlu0 %v5240_v16, %s6503_s15  ;;  %5395 = vrot.lane.b32.xlu2 %v5242_v18, %s6503_s15  ;;  %v4927_v18 = vmul.f32 %v10558_v23, %v4854_v3  ;;  %v10772_v16 = vpop.permute.xlu0 %5101  ;;  %v5250_v6 = vmax.f32 %v5186_v24, 0.0  ;;  %v5189_v31 = vadd.f32 %v10637_v60, %v4997_v37  ;;  %v5000_v60 = vadd.f32 %v10566_v26, %v4931_v30  ;;  %v11579_v24 = vld [vmem:[#allocation92_spill] sm:$0xff]  ;;  %v11581_v37 = vld [vmem:[#allocation15_spill] sm:$0xff] }
 0x72b   : > { %5393 = vrot.lane.b32.xlu1 %v5241_v7, %s6503_s15  ;;  %v5251_v7 = vmax.f32 %v5187_v35, 0.0  ;;  %v4864_v32 = vsub.f32 %v11579_v24, %v10478_v40  ;;  %v5005_v49 = vadd.f32 %v10566_v26, %v11581_v37  ;;  %v11589_v24 = vld [vmem:[#allocation52_spill] sm:$0xff] }
 0x72c   : > { %v4996_v2 = vadd.f32 %v10566_v26, %v4927_v18  ;;  %v5192_v47 = vadd.f32 %v5096_v20, %v5000_v60 }
 0x72d   : > { %v10731_v44 = vpop.permute.xlu1 %5109 }
 0x72e   : > { %v5188_v50 = vadd.f32 %v10669_v5, %v4996_v2  ;;  %v11575_v5 = vld [vmem:[#allocation68_spill] sm:$0xff]  ;;  %v5256_v38 = vmax.f32 %v5192_v47, 0.0  ;;  %v11580_v2 = vld [vmem:[#allocation63_spill] sm:$0xff]  ;;  %v11585_v47 = vld [vmem:[#allocation50_spill] sm:$0xff] }
 0x72f   : > { %v4999_v22 = vadd.f32 %v10566_v26, %v11575_v5  ;;  %v5007_v61 = vadd.f32 %v10566_v26, %v11580_v2 }
 0x730   : > { %v5252_v19 = vmax.f32 %v5188_v50, 0.0 }
 0x731   : > { %v5199_v56 = vadd.f32 %v10708_v43, %v5007_v61 }
 0x732   : > { %5397 = vrot.lane.b32.xlu0 %v5243_v54, %s6503_s15  ;;  %5401 = vrot.lane.b32.xlu2 %v5245_v4, %s6503_s15  ;;  %v10788_v4 = vpop.permute.xlu0 %5107  ;;  %v5253_v54 = vmax.f32 %v5189_v31, 0.0  ;;  %v5197_v31 = vadd.f32 %v10772_v16, %v5005_v49 }
 0x733   : > { %5399 = vrot.lane.b32.xlu1 %v5244_v21, %s6503_s15  ;;  %v5001_v21 = vadd.f32 %v10566_v26, %v11574_v36 }
 0x734   : > { %v5261_v5 = vmax.f32 %v5197_v31, 0.0 }
 0x735   : > { %v10751_v59 = vpop.permute.xlu1 %5115  ;;  %v5348_v8 = vpop.permute.xlu2 %5347  ;;  %v5193_v53 = vadd.f32 %v10687_v55, %v5001_v21  ;;  %v5263_v21 = vmax.f32 %v5199_v56, 0.0 }
 0x736   : > { %v10754_v62 = vadd.f32 %v10751_v59, %v5020_v9  ;;  %v5191_v9 = vadd.f32 %v5096_v20, %v4999_v22  ;;  %v11578_v20 = vld [vmem:[#allocation36_spill] sm:$0xff] }
 0x737   : > { %v5257_v51 = vmax.f32 %v5193_v53, 0.0  ;;  %v5003_v63 = vadd.f32 %v10566_v26, %v11578_v20  ;;  %v11587_v20 = vld [vmem:[#allocation12_spill] sm:$0xff] }
 0x738   : > { %v5255_v11 = vmax.f32 %v5191_v9, 0.0 }
 0x739   : > { %v5195_v18 = vadd.f32 %v10656_v10, %v5003_v63  ;;  %v5011_v63 = vadd.f32 %v10566_v26, %v11587_v20 }
 0x73a   : > { %5403 = vrot.lane.b32.xlu0 %v5246_v28, %s6503_s15  ;;  %5407 = vrot.lane.b32.xlu2 %v5248_v34, %s6503_s15  ;;  %v4935_v34 = vmul.f32 %v10558_v23, %v4862_v14  ;;  %v4933_v28 = vmul.f32 %v10558_v23, %v4860_v58  ;;  %v10815_v3 = vpop.permute.xlu0 %5113  ;;  %v11584_v58 = vld [vmem:[#allocation39_spill] sm:$0xff] }
 0x73b   : > { %5405 = vrot.lane.b32.xlu1 %v5247_v15, %s6503_s15  ;;  %v5259_v29 = vmax.f32 %v5195_v18, 0.0  ;;  %v5009_v27 = vadd.f32 %v10566_v26, %v11584_v58 }
 0x73c   : > { %v5004_v41 = vadd.f32 %v10566_v26, %v4935_v34  ;;  %v5002_v57 = vadd.f32 %v10566_v26, %v4933_v28 }
 0x73d   : > { %v5201_v34 = vadd.f32 %v10671_v42, %v5009_v27 }
 0x73e   : > { %v5196_v17 = vadd.f32 %v10656_v10, %v5004_v41  ;;  %v5194_v35 = vadd.f32 %v10687_v55, %v5002_v57  ;;  %v11582_v10 = vld [vmem:[#allocation60_spill] sm:$0xff]  ;;  %v11586_v57 = vld [vmem:[#allocation14_spill] sm:$0xff] }
 0x73f   : > { %v4866_v50 = vsub.f32 %v11582_v10, %v10478_v40  ;;  %v5265_v41 = vmax.f32 %v5201_v34, 0.0 }
 0x741   : > { %v4939_v36 = vmul.f32 %v10558_v23, %v4866_v50 }
 0x742   : > { %5409 = vrot.lane.b32.xlu0 %v5249_v52, %s6503_s15  ;;  %5413 = vrot.lane.b32.xlu2 %v5251_v7, %s6503_s15  ;;  %v4937_v7 = vmul.f32 %v10558_v23, %v4864_v32  ;;  %v5260_v52 = vmax.f32 %v5196_v17, 0.0  ;;  %v10844_v30 = vpop.permute.xlu0 %5119  ;;  %v11588_v17 = vld [vmem:[#allocation54_spill] sm:$0xff]  ;;  %v4874_v32 = vsub.f32 %v11589_v24, %v10478_v40  ;;  %v5277_v24 = vmax.f32 %v10714_v25, 0.0 }
 0x743   : > { %5411 = vrot.lane.b32.xlu1 %v5250_v6, %s6503_s15  ;;  %v5258_v6 = vmax.f32 %v5194_v35, 0.0  ;;  %v5008_v46 = vadd.f32 %v10566_v26, %v4939_v36  ;;  %v4872_v35 = vsub.f32 %v11588_v17, %v10478_v40  ;;  %v11591_v36 = vld [vmem:[#allocation43_spill] sm:$0xff]  ;;  %v5278_v17 = vmax.f32 %v10716_v45, 0.0 }
 0x744   : > { %v5006_v55 = vadd.f32 %v10566_v26, %v4937_v7  ;;  %v5203_v7 = vadd.f32 %v10788_v4, %v5011_v63  ;;  %v4947_v37 = vmul.f32 %v10558_v23, %v4874_v32  ;;  %v11594_v32 = vld [vmem:[#allocation17_spill] sm:$0xff] }
 0x745   : > { %v5200_v14 = vadd.f32 %v10708_v43, %v5008_v46  ;;  %v5013_v43 = vadd.f32 %v10566_v26, %v11586_v57  ;;  %v4945_v49 = vmul.f32 %v10558_v23, %v4872_v35  ;;  %v5276_v35 = vmax.f32 %v10754_v62, 0.0 }
 0x746   : > { %v5267_v50 = vmax.f32 %v5203_v7, 0.0 }
 0x747   : > { %v5205_v18 = vadd.f32 %v10731_v44, %v5013_v43 }
 0x749   : > { %v5269_v10 = vmax.f32 %v5205_v18, 0.0  ;;  %v5023_v18 = vadd.f32 %v10566_v26, %v11594_v32 }
 0x74a   : > { %5415 = vrot.lane.b32.xlu0 %v5252_v19, %s6503_s15  ;;  %5419 = vrot.lane.b32.xlu2 %v5254_v39, %s6503_s15  ;;  %v5198_v19 = vadd.f32 %v10772_v16, %v5006_v55 }
 0x74b   : > { %5417 = vrot.lane.b32.xlu1 %v5253_v54, %s6503_s15 }
 0x74c   : > { %v10805_v0 = vpop.permute.xlu2 %5353  ;;  %v5262_v22 = vmax.f32 %v5198_v19, 0.0 }
 0x74d   : > { %v5346_v48 = vpop.permute.xlu1 %5345 }
 0x74e   : > { %v5473_v15 = vsel %vm3023_vm6, %v5346_v48, %v5348_v8  ;;  %v11583_v8 = vld [vmem:[#allocation85_spill] sm:$0xff]  ;;  %v4870_v48 = vsub.f32 %v11585_v47, %v10478_v40 }
 0x74f   : > { %5537 = vst [vmem:[%s10810_s19] sm:$0xff] %v5473_v15  ;;  %v4868_v13 = vsub.f32 %v11583_v8, %v10478_v40 }
 0x751   : > { %v4941_v54 = vmul.f32 %v10558_v23, %v4868_v13  ;;  %v5016_v13 = vadd.f32 %v10566_v26, %v4947_v37 }
 0x752   : > { %5421 = vrot.lane.b32.xlu0 %v5255_v11, %s6503_s15  ;;  %5425 = vrot.lane.b32.xlu2 %v5257_v51, %s6503_s15  ;;  %v4943_v51 = vmul.f32 %v10558_v23, %v4870_v48 }
 0x753   : > { %5423 = vrot.lane.b32.xlu1 %v5256_v38, %s6503_s15  ;;  %v5010_v60 = vadd.f32 %v10566_v26, %v4941_v54  ;;  %v5264_v38 = vmax.f32 %v5200_v14, 0.0  ;;  %v11592_v14 = vld [vmem:[#allocation26_spill] sm:$0xff] }
 0x754   : > { %v10824_v1 = vpop.permute.xlu2 %5359 }
 0x755   : > { %v5202_v16 = vadd.f32 %v10671_v42, %v5010_v60  ;;  %v5012_v42 = vadd.f32 %v10566_v26, %v4943_v51 }
 0x757   : > { %v5266_v11 = vmax.f32 %v5202_v16, 0.0 }
 0x75a   : > { %5427 = vrot.lane.b32.xlu0 %v5258_v6, %s6503_s15  ;;  %5431 = vrot.lane.b32.xlu2 %v5260_v52, %s6503_s15 }
 0x75b   : > { %5429 = vrot.lane.b32.xlu1 %v5259_v29, %s6503_s15  ;;  %v5204_v29 = vadd.f32 %v10788_v4, %v5012_v42  ;;  %v5014_v4 = vadd.f32 %v10566_v26, %v4945_v49 }
 0x75c   : > { %v10846_v39 = vpop.permute.xlu2 %5365 }
 0x75d   : > { %v5268_v8 = vmax.f32 %v5204_v29, 0.0  ;;  %v5206_v31 = vadd.f32 %v10731_v44, %v5014_v4  ;;  %v5019_v44 = vadd.f32 %v10566_v26, %v11592_v14 }
 0x75f   : > { %v5270_v27 = vmax.f32 %v5206_v31, 0.0  ;;  %v5211_v48 = vadd.f32 %v10751_v59, %v5019_v44 }
 0x761   : > { %v5275_v57 = vmax.f32 %v5211_v48, 0.0 }
 0x762   : > { %5433 = vrot.lane.b32.xlu0 %v5261_v5, %s6503_s15  ;;  %5437 = vrot.lane.b32.xlu2 %v5263_v21, %s6503_s15  ;;  %v4876_v21 = vsub.f32 %v11591_v36, %v10478_v40 }
 0x763   : > { %5435 = vrot.lane.b32.xlu1 %v5262_v22, %s6503_s15 }
 0x764   : > { %v5350_v53 = vpop.permute.xlu0 %5349  ;;  %v10860_v9 = vpop.permute.xlu2 %5371  ;;  %v4949_v46 = vmul.f32 %v10558_v23, %v4876_v21 }
 0x765   : > { %v5352_v28 = vpop.permute.xlu1 %5351 }
 0x766   : > { %v5474_v15 = vsel %vm3023_vm6, %v5350_v53, %v5352_v28  ;;  %v11593_v53 = vld [vmem:[#allocation19_spill] sm:$0xff] }
 0x767   : > { %5538 = vst [vmem:[%s10810_s19 + $0x8] sm:$0xff] %v5474_v15  ;;  %v5017_v47 = vadd.f32 %v10566_v26, %v11593_v53 }
 0x769   : > { %v5209_v34 = vadd.f32 %v10815_v3, %v5017_v47 }
 0x76a   : > { %5439 = vrot.lane.b32.xlu0 %v5264_v38, %s6503_s15  ;;  %5443 = vrot.lane.b32.xlu2 %v5266_v11, %s6503_s15 }
 0x76b   : > { %5441 = vrot.lane.b32.xlu1 %v5265_v41, %s6503_s15  ;;  %v5273_v43 = vmax.f32 %v5209_v34, 0.0 }
 0x76c   : > { %v5356_v52 = vpop.permute.xlu0 %5355  ;;  %v10882_v6 = vpop.permute.xlu2 %5377 }
 0x76d   : > { %v5475_v2 = vsel %vm3023_vm6, %v10805_v0, %v5356_v52  ;;  %v5358_v61 = vpop.permute.xlu1 %5357  ;;  %v11590_v0 = vld [vmem:[#allocation41_spill] sm:$0xff] }
 0x76e   : > { %5539 = vst [vmem:[%s10810_s19 + $0x10] sm:$0xff] %v5475_v2  ;;  %v5476_v55 = vsel %vm3023_vm6, %v5358_v61, %v10824_v1  ;;  %v5015_v56 = vadd.f32 %v10566_v26, %v11590_v0  ;;  %v5208_v1 = vadd.f32 %v10691_v12, %v5016_v13 }
 0x76f   : > { %5540 = vst [vmem:[%s10810_s19 + $0x18] sm:$0xff] %v5476_v55 }
 0x770   : > { %v5207_v5 = vadd.f32 %v10691_v12, %v5015_v56  ;;  %v5272_v58 = vmax.f32 %v5208_v1, 0.0  ;;  %v5018_v12 = vadd.f32 %v10566_v26, %v4949_v46 }
 0x772   : > { %5445 = vrot.lane.b32.xlu0 %v5267_v50, %s6503_s15  ;;  %5449 = vrot.lane.b32.xlu2 %v5269_v10, %s6503_s15  ;;  %v5271_v16 = vmax.f32 %v5207_v5, 0.0  ;;  %v5210_v51 = vadd.f32 %v10815_v3, %v5018_v12  ;;  %v4882_v3 = vsub.f32 %v11539_v33, %v10478_v40  ;;  %v5215_v40 = vadd.f32 %v10844_v30, %v5023_v18 }
 0x773   : > { %5447 = vrot.lane.b32.xlu1 %v5268_v8, %s6503_s15 }
 0x774   : > { %v5362_v19 = vpop.permute.xlu0 %5361  ;;  %v5384_v54 = vpop.permute.xlu2 %5383  ;;  %v5274_v20 = vmax.f32 %v5210_v51, 0.0 }
 0x775   : > { %v5364_v22 = vpop.permute.xlu1 %5363 }
 0x776   : > { %v5477_v60 = vsel %vm3023_vm6, %v5362_v19, %v5364_v22 }
 0x777   : > { %5541 = vst [vmem:[%s10810_s19 + $0x20] sm:$0xff] %v5477_v60 }
 0x77a   : > { %5451 = vrot.lane.b32.xlu0 %v5270_v27, %s6503_s15  ;;  %5455 = vrot.lane.b32.xlu2 %v5272_v58, %s6503_s15 }
 0x77b   : > { %5453 = vrot.lane.b32.xlu1 %v5271_v16, %s6503_s15 }
 0x77c   : > { %v5368_v28 = vpop.permute.xlu0 %5367  ;;  %v5390_v15 = vpop.permute.xlu2 %5389 }
 0x77d   : > { %v5478_v11 = vsel %vm3023_vm6, %v10846_v39, %v5368_v28  ;;  %v5370_v38 = vpop.permute.xlu1 %5369 }
 0x77e   : > { %5542 = vst [vmem:[%s10810_s19 + $0x28] sm:$0xff] %v5478_v11  ;;  %v5479_v41 = vsel %vm3023_vm6, %v5370_v38, %v10860_v9  ;;  %v4955_v9 = vmul.f32 %v10558_v23, %v4882_v3 }
 0x77f   : > { %5543 = vst [vmem:[%s10810_s19 + $0x30] sm:$0xff] %v5479_v41 }
 0x780   : > { %v5024_v33 = vadd.f32 %v10566_v26, %v4955_v9  ;;  %v5279_v26 = vmax.f32 %v5215_v40, 0.0 }
 0x782   : > { %5457 = vrot.lane.b32.xlu0 %v5273_v43, %s6503_s15  ;;  %5461 = vrot.lane.b32.xlu2 %v5275_v57, %s6503_s15  ;;  %v5216_v45 = vadd.f32 %v10844_v30, %v5024_v33 }
 0x783   : > { %5459 = vrot.lane.b32.xlu1 %v5274_v20, %s6503_s15 }
 0x784   : > { %v5374_v59 = vpop.permute.xlu0 %5373  ;;  %v5396_v63 = vpop.permute.xlu2 %5395  ;;  %v5280_v29 = vmax.f32 %v5216_v45, 0.0 }
 0x785   : > { %v5376_v39 = vpop.permute.xlu1 %5375 }
 0x786   : > { %v5480_v42 = vsel %vm3023_vm6, %v5374_v59, %v5376_v39 }
 0x787   : > { %5544 = vst [vmem:[%s10810_s19 + $0x38] sm:$0xff] %v5480_v42 }
 0x78a   : > { %5463 = vrot.lane.b32.xlu0 %v5276_v35, %s6503_s15  ;;  %5467 = vrot.lane.b32.xlu2 %v5278_v17, %s6503_s15 }
 0x78b   : > { %5465 = vrot.lane.b32.xlu1 %v5277_v24, %s6503_s15 }
 0x78c   : > { %v5380_v23 = vpop.permute.xlu0 %5379  ;;  %v5402_v52 = vpop.permute.xlu2 %5401 }
 0x78d   : > { %v5481_v25 = vsel %vm3023_vm6, %v10882_v6, %v5380_v23  ;;  %v5382_v62 = vpop.permute.xlu1 %5381 }
 0x78e   : > { %5545 = vst [vmem:[%s10810_s19 + $0x40] sm:$0xff] %v5481_v25  ;;  %v5482_v7 = vsel %vm3023_vm6, %v5382_v62, %v5384_v54 }
 0x78f   : > { %5546 = vst [vmem:[%s10810_s19 + $0x48] sm:$0xff] %v5482_v7 }
 0x792   : > { %5469 = vrot.lane.b32.xlu0 %v5279_v26, %s6503_s15 }
 0x793   : > { %5471 = vrot.lane.b32.xlu1 %v5280_v29, %s6503_s15  ;;  %s5881_s15 = sshll.u32 %s6594_s25, 8  ;;  %s5570_s25 = scalar_lea.sflag [#allocation3], %s404_s30 }
 0x794   : > { %v5386_v2 = vpop.permute.xlu0 %5385  ;;  %v5408_v6 = vpop.permute.xlu2 %5407  ;;  %s5581_s29 = scalar_lea.hbm %s11041_s12, %s5881_s15 }
 0x795   : > { %v5388_v30 = vpop.permute.xlu1 %5387  ;;  %s5584_s23 = sshll.u32 %s5581_s29, 4  ;;  %s5585_s23 = int_to_ptr.hbm [resolvable:$true] %s5584_s23 }
 0x796   : > { %v5483_v61 = vsel %vm3023_vm6, %v5386_v2, %v5388_v30  ;;  %s6449_s26 = sshra.s32 %s5585_s23, 4  ;;  %s6450_s26 = int_to_ptr.hbm [resolvable:$true] %s6449_s26 }
 0x797   : > { %5547 = vst [vmem:[%s10810_s19 + $0x50] sm:$0xff] %v5483_v61  ;;  %s6451_s17 = scalar_lea.hbm %s6450_s26, 256  ;;  %p6456_p0 = scmp.lt.s32.totalorder %s6450_s26, %s11041_s12 }
 0x798   : > { %p6452_p11 = scmp.ne.s32.totalorder %s6450_s26, %s6451_s17  ;;  %p6457_p1 = scmp.lt.s32.totalorder %s6455_s20, %s6451_s17 }
 0x79a   : > { %p6453_p12 = pnand %p6452_p11, %p6611_p5  ;;  %p6458_p2 = por %p6457_p1, %p6456_p0 }
 0x79c   : > { %v5392_v37 = vpop.permute.xlu0 %5391  ;;  %v5414_v50 = vpop.permute.xlu2 %5413  ;;  %p6454_p13 = pneg %p6453_p12 }
 0x79d   : > { %v5484_v49 = vsel %vm3023_vm6, %v5390_v15, %v5392_v37  ;;  %v5394_v55 = vpop.permute.xlu1 %5393 }
 0x79e   : > { %5548 = vst [vmem:[%s10810_s19 + $0x58] sm:$0xff] %v5484_v49  ;;  %v5485_v10 = vsel %vm3023_vm6, %v5394_v55, %v5396_v63  ;;  %p6459_p3 = pnand %p6458_p2, %p6454_p13 }
 0x79f   : > { %5549 = vst [vmem:[%s10810_s19 + $0x60] sm:$0xff] %v5485_v10 }
 0x7a4   : > { %v5398_v8 = vpop.permute.xlu0 %5397  ;;  %v5420_v56 = vpop.permute.xlu2 %5419 }
 0x7a5   : > { %v5400_v13 = vpop.permute.xlu1 %5399 }
 0x7a6   : > { %v5486_v4 = vsel %vm3023_vm6, %v5398_v8, %v5400_v13 }
 0x7a7   : > { %5550 = vst [vmem:[%s10810_s19 + $0x68] sm:$0xff] %v5486_v4 }
 0x7ac   : > { %v5404_v0 = vpop.permute.xlu0 %5403  ;;  %v5426_v5 = vpop.permute.xlu2 %5425 }
 0x7ad   : > { %v5487_v1 = vsel %vm3023_vm6, %v5402_v52, %v5404_v0  ;;  %v5406_v31 = vpop.permute.xlu1 %5405 }
 0x7ae   : > { %5551 = vst [vmem:[%s10810_s19 + $0x70] sm:$0xff] %v5487_v1  ;;  %v5488_v19 = vsel %vm3023_vm6, %v5406_v31, %v5408_v6 }
 0x7af   : > { %5552 = vst [vmem:[%s10810_s19 + $0x78] sm:$0xff] %v5488_v19 }
 0x7b4   : > { %v5410_v54 = vpop.permute.xlu0 %5409  ;;  %v5432_v27 = vpop.permute.xlu2 %5431 }
 0x7b5   : > { %v5412_v36 = vpop.permute.xlu1 %5411 }
 0x7b6   : > { %v5489_v21 = vsel %vm3023_vm6, %v5410_v54, %v5412_v36 }
 0x7b7   : > { %5553 = vst [vmem:[%s10810_s19 + $0x80] sm:$0xff] %v5489_v21 }
 0x7bc   : > { %v5416_v22 = vpop.permute.xlu0 %5415  ;;  %v5438_v53 = vpop.permute.xlu2 %5437 }
 0x7bd   : > { %v5490_v60 = vsel %vm3023_vm6, %v5414_v50, %v5416_v22  ;;  %v5418_v46 = vpop.permute.xlu1 %5417 }
 0x7be   : > { %5554 = vst [vmem:[%s10810_s19 + $0x88] sm:$0xff] %v5490_v60  ;;  %v5491_v58 = vsel %vm3023_vm6, %v5418_v46, %v5420_v56 }
 0x7bf   : > { %5555 = vst [vmem:[%s10810_s19 + $0x90] sm:$0xff] %v5491_v58 }
 0x7c4   : > { %v5422_v16 = vpop.permute.xlu0 %5421  ;;  %v5444_v15 = vpop.permute.xlu2 %5443 }
 0x7c5   : > { %v5424_v14 = vpop.permute.xlu1 %5423 }
 0x7c6   : > { %v5492_v44 = vsel %vm3023_vm6, %v5422_v16, %v5424_v14 }
 0x7c7   : > { %5556 = vst [vmem:[%s10810_s19 + $0x98] sm:$0xff] %v5492_v44 }
 0x7cc   : > { %v5428_v47 = vpop.permute.xlu0 %5427  ;;  %v5450_v20 = vpop.permute.xlu2 %5449 }
 0x7cd   : > { %v5493_v12 = vsel %vm3023_vm6, %v5426_v5, %v5428_v47  ;;  %v5430_v48 = vpop.permute.xlu1 %5429 }
 0x7ce   : > { %5557 = vst [vmem:[%s10810_s19 + $0xa0] sm:$0xff] %v5493_v12  ;;  %v5494_v34 = vsel %vm3023_vm6, %v5430_v48, %v5432_v27 }
 0x7cf   : > { %5558 = vst [vmem:[%s10810_s19 + $0xa8] sm:$0xff] %v5494_v34 }
 0x7d4   : > { %v5434_v28 = vpop.permute.xlu0 %5433  ;;  %v5456_v63 = vpop.permute.xlu2 %5455 }
 0x7d5   : > { %v5436_v51 = vpop.permute.xlu1 %5435 }
 0x7d6   : > { %v5495_v11 = vsel %vm3023_vm6, %v5434_v28, %v5436_v51 }
 0x7d7   : > { %5559 = vst [vmem:[%s10810_s19 + $0xb0] sm:$0xff] %v5495_v11 }
 0x7dc   : > { %v5440_v38 = vpop.permute.xlu0 %5439  ;;  %v5462_v24 = vpop.permute.xlu2 %5461 }
 0x7dd   : > { %v5496_v41 = vsel %vm3023_vm6, %v5438_v53, %v5440_v38  ;;  %v5442_v57 = vpop.permute.xlu1 %5441 }
 0x7de   : > { %5560 = vst [vmem:[%s10810_s19 + $0xb8] sm:$0xff] %v5496_v41  ;;  %v5497_v43 = vsel %vm3023_vm6, %v5442_v57, %v5444_v15 }
 0x7df   : > { %5561 = vst [vmem:[%s10810_s19 + $0xc0] sm:$0xff] %v5497_v43 }
 0x7e4   : > { %v5446_v59 = vpop.permute.xlu0 %5445  ;;  %v5468_v23 = vpop.permute.xlu2 %5467 }
 0x7e5   : > { %v5448_v3 = vpop.permute.xlu1 %5447 }
 0x7e6   : > { %v5498_v39 = vsel %vm3023_vm6, %v5446_v59, %v5448_v3 }
 0x7e7   : > { %5562 = vst [vmem:[%s10810_s19 + $0xc8] sm:$0xff] %v5498_v39 }
 0x7ec   : > { %v5452_v42 = vpop.permute.xlu0 %5451 }
 0x7ed   : > { %v5499_v9 = vsel %vm3023_vm6, %v5450_v20, %v5452_v42  ;;  %v5454_v17 = vpop.permute.xlu1 %5453 }
 0x7ee   : > { %5563 = vst [vmem:[%s10810_s19 + $0xd0] sm:$0xff] %v5499_v9  ;;  %v5500_v35 = vsel %vm3023_vm6, %v5454_v17, %v5456_v63 }
 0x7ef   : > { %5564 = vst [vmem:[%s10810_s19 + $0xd8] sm:$0xff] %v5500_v35 }
 0x7f4   : > { %v5458_v32 = vpop.permute.xlu0 %5457 }
 0x7f5   : > { %v5460_v18 = vpop.permute.xlu1 %5459 }
 0x7f6   : > { %v5501_v33 = vsel %vm3023_vm6, %v5458_v32, %v5460_v18 }
 0x7f7   : > { %5565 = vst [vmem:[%s10810_s19 + $0xe0] sm:$0xff] %v5501_v33 }
 0x7fc   : > { %v5464_v40 = vpop.permute.xlu0 %5463 }
 0x7fd   : > { %v5502_v45 = vsel %vm3023_vm6, %v5462_v24, %v5464_v40  ;;  %v5466_v25 = vpop.permute.xlu1 %5465 }
 0x7fe   : > { %5566 = vst [vmem:[%s10810_s19 + $0xe8] sm:$0xff] %v5502_v45  ;;  %v5503_v62 = vsel %vm3023_vm6, %v5466_v25, %v5468_v23 }
 0x7ff   : > { %5567 = vst [vmem:[%s10810_s19 + $0xf0] sm:$0xff] %v5503_v62 }
 0x804   : > { %v5470_v7 = vpop.permute.xlu0 %5469 }
 0x805   : > { %v5472_v52 = vpop.permute.xlu1 %5471 }
 0x806   : > { %v5504_v26 = vsel %vm3023_vm6, %v5470_v7, %v5472_v52 }
 0x807   : > { %5568 = vst [vmem:[%s10810_s19 + $0xf8] sm:$0xff] %v5504_v26 }
 0x808   : > { %6462 = shalt.err (!%p6459_p3)
}
 0x809   : > { %s6506_s30 = smov 128   ;;  %s6507_s19 = smov 8  }
 0x80a   : > { %5898 = dma.vmem_to_hbm [thread:$0]  (%p6611_p5), %s5583_s16, 4096, %s5585_s23, %s5570_s25, %s6506_s30, %s6506_s30, %s6507_s19  }
 0x80b PF: > { %p5904_p4 = scmp.ge.s32.totalorder %s6497_s24, 2  ;;  %s5599_s18 = sand.u32 1, %s6485_s21  }
 0x80c   : > { %s5600_s15 = scalar_lea.sflag [#allocation3], %s5599_s18 }
 0x80d   : > { %p5901_p7 = pnand %p5904_p4, %p6615_p6 }
 0x80f   : > { %p5902_p8 = pneg %p5901_p7 }
 0x811   : > { %6480 = dma.done.wait (%p5902_p8), %s5600_s15, 4096  }
 0x812   : > { %6482 = vsyncadd (%p5902_p8), %s5600_s15, 4294963200  ;;  %s11595_s26 = sld [smem:[#allocation5_spill]]  ;;  %p22_p9 = scmp.ge.s32.totalorder %s6598_s27, 4  }
 0x813   : > { %s11596_s23 = sld [smem:[#allocation6_spill]]  ;;  %s11597_s21 = smov %s6489_s22 }
 0x814   : > { %s11599_s24 = smov %s6598_s27  ;;  %24 = sbr.rel (!%p22_p9) target bundleno = 3 (0x3), region = 103 }
 0x818   : > { %s11598_s22 = smov %s11595_s26 }
 0x819   :  { %5606 = vsyncpa [#allocation3], 1 }
 0x81a   :  { %5608 = vsyncpa [#allocation3 + $0x1], 1 }

</bundles_post_ra>
